<compile_context>
chip_gen: v6e
topology: v6e:2x2x1
jax: 0.10.0
libtpu: 0.0.40
codegen_flags: <defaults>
</compile_context>

<pallas_src>
import jax
import jax.numpy as jnp
from jax.experimental import pallas as pl
from jax.experimental.pallas import tpu as pltpu

A_PARAM = 0.2  # nn.Parameter a, init value 0.2
B_PARAM = 0.2  # nn.Parameter b, init value 0.2


# ----------------------------------------------------------------------------
# Kernel 1: carry-independent precompute (importance mix, adjacency, time MLP)
# ----------------------------------------------------------------------------
def _precompute_kernel(x_ref, wk_ref, dy_ref, rc_ref, edyn_ref, ti_ref,
                       estat_ref, w1_ref, b1_ref, w2_ref, b2_ref, w3_ref, b3_ref,
                       xm_ref, a_ref, tw_ref):
    # refs for one batch element:
    #   x/wk/dy/rc: (T, N, D)   edyn: (T, N, E)   ti: (T*N, 2D)   estat: (N, E)
    x = x_ref[...]

    def weighted(ref):
        # Matches the PyTorch reference exactly (incl. the +1e-6 on the sum).
        s = -jnp.abs(x - ref[...])                          # (T, N, D)
        s = jnp.mean(s, axis=1, keepdims=True)              # mean over nodes
        w = s / (jnp.sum(s, axis=0, keepdims=True) + 1e-6)  # normalize over time
        return x * w

    xm_ref[...] = x + weighted(wk_ref) + weighted(dy_ref) + weighted(rc_ref)

    # Dynamic adaptive adjacency for ALL timesteps at once (batched MXU matmul,
    # contraction over E — no explicit transpose).
    nodevec = jnp.tanh(edyn_ref[...] * estat_ref[...][None, :, :])   # (T, N, E)
    adj = jnp.einsum('tne,tme->tnm', nodevec, nodevec,
                     preferred_element_type=jnp.float32)             # (T, N, N)
    a_ref[...] = jax.nn.softmax(jax.nn.relu(adj), axis=-1).astype(a_ref.dtype)

    # time_weight_generator MLP, batched over T*N rows (lane/MXU friendly).
    ti = ti_ref[...]                                                 # (T*N, 2D)
    h1 = jax.nn.relu(jnp.dot(ti, w1_ref[...],
                             preferred_element_type=jnp.float32) + b1_ref[...])
    h2 = jax.nn.relu(jnp.dot(h1, w2_ref[...],
                             preferred_element_type=jnp.float32) + b2_ref[...])
    tw = jax.nn.sigmoid(jnp.dot(h2, w3_ref[...],
                                preferred_element_type=jnp.float32) + b3_ref[...])
    tw_ref[...] = tw.astype(tw_ref.dtype)                            # (T*N, 1)


def dgcrm_precompute(x, weekly, daily, recent, e_dyn, time_feat, day_feat,
                     e_static, mlp):
    B, T, N, D = x.shape
    E = e_static.shape[-1]
    # Pre-concatenate / flatten in the wrapper (free XLA reshape) so the kernel
    # only does dense 2-D matmuls.
    ti = jnp.concatenate([time_feat, day_feat], axis=-1).reshape(B, T * N, 2 * D)

    W1, W2, W3 = mlp["W1"], mlp["W2"], mlp["W3"]
    b1 = mlp["b1"].reshape(1, -1)
    b2 = mlp["b2"].reshape(1, -1)
    b3 = mlp["b3"].reshape(1, 1)

    seqD = pl.BlockSpec((None, T, N, D), lambda b: (b, 0, 0, 0))
    seqE = pl.BlockSpec((None, T, N, E), lambda b: (b, 0, 0, 0))
    ti_spec = pl.BlockSpec((None, T * N, 2 * D), lambda b: (b, 0, 0))

    def full_spec(shp):
        return pl.BlockSpec(shp, lambda b, _n=len(shp): (0,) * _n)

    out_shapes = (jax.ShapeDtypeStruct((B, T, N, D), x.dtype),
                  jax.ShapeDtypeStruct((B, T, N, N), x.dtype),
                  jax.ShapeDtypeStruct((B, T * N, 1), x.dtype))
    out_specs = (seqD,
                 pl.BlockSpec((None, T, N, N), lambda b: (b, 0, 0, 0)),
                 pl.BlockSpec((None, T * N, 1), lambda b: (b, 0, 0)))

    xm, A_all, tw_flat = pl.pallas_call(
        _precompute_kernel,
        out_shape=out_shapes,
        grid=(B,),
        in_specs=[seqD, seqD, seqD, seqD, seqE, ti_spec,
                  full_spec(e_static.shape),
                  full_spec(W1.shape), full_spec(b1.shape),
                  full_spec(W2.shape), full_spec(b2.shape),
                  full_spec(W3.shape), full_spec(b3.shape)],
        out_specs=out_specs,
        compiler_params=pltpu.CompilerParams(dimension_semantics=("parallel",)),
    )(x, weekly, daily, recent, e_dyn, ti, e_static, W1, b1, W2, b2, W3, b3)
    return xm, A_all, tw_flat.reshape(B, T, N, 1)


# ----------------------------------------------------------------------------
# Kernel 2: one DGCRM recurrent layer (only the GRU recurrence stays serial)
# ----------------------------------------------------------------------------
def _dgcrm_layer_kernel(x_ref, a_ref, tw_ref, h0_ref, gm0_ref, estat_ref,
                        wgp_ref, bgp_ref, wcp_ref, bcp_ref,
                        out_ref, gm_out_ref):
    # refs for one batch element:
    #   x: (T, N, Din)   a: (T, N, N)   tw: (T, N, 1)   h0/gm0: (N, H)
    #   estat: (N, E)
    #   wgp: (K*(Din+H), E*2H)  bgp: (E, 2H)  wcp: (K*(Din+H), E*H)  bcp: (E, H)
    T, N, _ = x_ref.shape
    H = h0_ref.shape[-1]
    E = estat_ref.shape[-1]

    e_static = estat_ref[...]                                        # (N, E)
    Wgp = wgp_ref[...]
    Wcp = wcp_ref[...]
    # Per-node biases from the embedding pool (computed once in the prologue).
    bg = jnp.dot(e_static, bgp_ref[...], preferred_element_type=jnp.float32)
    bc = jnp.dot(e_static, bcp_ref[...], preferred_element_type=jnp.float32)

    def gconv(xg, Wp, b, odim):
        # Pool-factored graph conv: one MXU matmul (N, K*I) @ (K*I, E*odim),
        # then a tiny E-term contraction with e_static on the VPU.  The
        # per-node (N, K, I, odim) weight tensor is never materialized.
        y = jnp.dot(xg, Wp, preferred_element_type=jnp.float32)      # (N, E*odim)
        acc = b
        for e in range(E):
            acc = acc + e_static[:, e:e + 1] * y[:, e * odim:(e + 1) * odim]
        return acc

    state = h0_ref[...].astype(jnp.float32)
    gm = gm0_ref[...].astype(jnp.float32)

    # T is small and static -> fully unrolled recurrence with static stores.
    for t in range(T):
        x_t = x_ref[t]                                               # (N, Din)
        A_t = a_ref[t]                                               # (N, N)
        tw_t = tw_ref[t]                                             # (N, 1)

        # GRU gates with graph convolution (cheb_k = 2: [I, A]).
        xs = jnp.concatenate([x_t, state], axis=-1)                  # (N, Din+H)
        xs_g = jnp.dot(A_t, xs, preferred_element_type=jnp.float32)
        zr = jax.nn.sigmoid(
            gconv(jnp.concatenate([xs, xs_g], axis=-1), Wgp, bg, 2 * H))
        z = zr[:, :H]
        r = zr[:, H:]

        cs = jnp.concatenate([x_t, z * state], axis=-1)
        cs_g = jnp.dot(A_t, cs, preferred_element_type=jnp.float32)
        hc = jnp.tanh(gconv(jnp.concatenate([cs, cs_g], axis=-1), Wcp, bc, H))
        state_c = r * state + (1.0 - r) * hc

        # global-memory blend with the precomputed time weight.
        enhanced = tw_t * state_c + (1.0 - tw_t) * gm
        gm = (1.0 - A_PARAM) * gm + A_PARAM * enhanced
        state = state_c + B_PARAM * enhanced

        out_ref[t] = state.astype(out_ref.dtype)                     # static store

    gm_out_ref[...] = gm.astype(gm_out_ref.dtype)


def dgcrm_layer(x_seq, A_all, tw_all, h0, gm0, e_static, wgp, bg_pool, wcp, bc_pool):
    B, T, N, Din = x_seq.shape
    H = h0.shape[-1]

    def full_spec(shp):
        return pl.BlockSpec(shp, lambda b, _n=len(shp): (0,) * _n)

    state_spec = pl.BlockSpec((None, N, H), lambda b: (b, 0, 0))

    in_specs = [
        pl.BlockSpec((None, T, N, Din), lambda b: (b, 0, 0, 0)),
        pl.BlockSpec((None, T, N, N), lambda b: (b, 0, 0, 0)),
        pl.BlockSpec((None, T, N, 1), lambda b: (b, 0, 0, 0)),
        state_spec, state_spec,
        full_spec(e_static.shape),
        full_spec(wgp.shape), full_spec(bg_pool.shape),
        full_spec(wcp.shape), full_spec(bc_pool.shape),
    ]
    out_specs = (pl.BlockSpec((None, T, N, H), lambda b: (b, 0, 0, 0)), state_spec)
    out_shapes = (jax.ShapeDtypeStruct((B, T, N, H), x_seq.dtype),
                  jax.ShapeDtypeStruct((B, N, H), x_seq.dtype))

    states, gm = pl.pallas_call(
        _dgcrm_layer_kernel,
        out_shape=out_shapes,
        grid=(B,),
        in_specs=in_specs,
        out_specs=out_specs,
        input_output_aliases={4: 1},   # gm0 -> gm_out (same shape/dtype/blocking)
        compiler_params=pltpu.CompilerParams(dimension_semantics=("parallel",)),
    )(x_seq, A_all, tw_all, h0, gm0, e_static, wgp, bg_pool, wcp, bc_pool)
    return states, gm


# ----------------------------------------------------------------------------
# Parameter init (deterministic, synthetic) + full forward
# ----------------------------------------------------------------------------
def init_params(key, node_num, dim_in, dim_out, cheb_k, embed_dim, num_layers):
    ks = jax.random.split(key, 4 * num_layers + 3)
    layers = []
    idx = 0
    for i in range(num_layers):
        in_dim = dim_in if i == 0 else dim_out
        cat = in_dim + dim_out
        layers.append(dict(
            wg_pool=0.1 * jax.random.normal(ks[idx], (embed_dim, cheb_k, cat, 2 * dim_out), jnp.float32),
            bg_pool=0.1 * jax.random.normal(ks[idx + 1], (embed_dim, 2 * dim_out), jnp.float32),
            wc_pool=0.1 * jax.random.normal(ks[idx + 2], (embed_dim, cheb_k, cat, dim_out), jnp.float32),
            bc_pool=0.1 * jax.random.normal(ks[idx + 3], (embed_dim, dim_out), jnp.float32),
        ))
        idx += 4
    time_mlp = dict(
        W1=0.3 * jax.random.normal(ks[idx], (2 * dim_in, 40), jnp.float32),
        b1=jnp.zeros((40,), jnp.float32),
        W2=0.3 * jax.random.normal(ks[idx + 1], (40, 2), jnp.float32),
        b2=jnp.zeros((2,), jnp.float32),
        W3=0.3 * jax.random.normal(ks[idx + 2], (2, 1), jnp.float32),
        b3=jnp.zeros((1,), jnp.float32),
    )
    return dict(layers=layers, time_mlp=time_mlp)


def dgcrm_forward(x, init_state, node_embeddings, time_feat, day_feat,
                  speed, occupy, weekly, daily, recent, params):
    # speed / occupy are part of the call signature (unused by the synthetic cell).
    del speed, occupy
    e_dyn, e_static = node_embeddings        # (B,T,N,E), (N,E)
    B, T, N, _ = x.shape
    H = init_state.shape[-1]

    # All carry-independent work, hoisted and batched; A[t]/tw[t] are reused by
    # every layer (they do not depend on the layer or the recurrent state).
    current, A_all, tw_all = dgcrm_precompute(
        x, weekly, daily, recent, e_dyn, time_feat, day_feat, e_static,
        params["time_mlp"])

    gm = jnp.zeros((B, N, H), x.dtype)       # global memory, carried across time & layers
    output_hidden = []
    for i, lp in enumerate(params["layers"]):
        # MXU-friendly pool weights: (E,K,I,O) -> (K*I, E*O); never materialize
        # the per-node (N,K,I,O) weights.
        Ep, K, Cin, Og = lp["wg_pool"].shape
        Oc = lp["wc_pool"].shape[-1]
        wgp = jnp.transpose(lp["wg_pool"], (1, 2, 0, 3)).reshape(K * Cin, Ep * Og)
        wcp = jnp.transpose(lp["wc_pool"], (1, 2, 0, 3)).reshape(K * Cin, Ep * Oc)
        current, gm = dgcrm_layer(current, A_all, tw_all, init_state[i], gm,
                                  e_static, wgp, lp["bg_pool"], wcp, lp["bc_pool"])
        output_hidden.append(current[:, -1])
    return current, output_hidden


if __name__ == "__main__":
    B, T, N, DIN, H, CHEB_K, E = 2, 8, 16, 2, 8, 2, 4
    NUM_LAYERS = 1
    f32 = jnp.float32

    key = jax.random.PRNGKey(0)
    ks = jax.random.split(key, 12)
    x = jax.random.normal(ks[0], (B, T, N, DIN), f32)
    weekly = jax.random.normal(ks[1], (B, T, N, DIN), f32)
    daily = jax.random.normal(ks[2], (B, T, N, DIN), f32)
    recent = jax.random.normal(ks[3], (B, T, N, DIN), f32)
    time_feat = jax.random.uniform(ks[4], (B, T, N, DIN), f32)
    day_feat = jax.random.uniform(ks[5], (B, T, N, DIN), f32)
    speed = jax.random.normal(ks[6], (B, T, N, DIN), f32)
    occupy = jax.random.normal(ks[7], (B, T, N, DIN), f32)
    e_dyn = 0.5 * jax.random.normal(ks[8], (B, T, N, E), f32)
    e_static = 0.5 * jax.random.normal(ks[9], (N, E), f32)
    init_state = jnp.zeros((NUM_LAYERS, B, N, H), f32)

    params = init_params(ks[10], N, DIN, H, CHEB_K, E, NUM_LAYERS)

    fwd = jax.jit(dgcrm_forward)
    out_seq, output_hidden = fwd(
        x, init_state, (e_dyn, e_static), time_feat, day_feat,
        speed, occupy, weekly, daily, recent, params)

    jax.block_until_ready(out_seq)
    for h in output_hidden:
        jax.block_until_ready(h)

    assert out_seq.shape == (B, T, N, H)
    assert output_hidden[0].shape == (B, N, H)
    print("KERNEL_OK")
</pallas_src>

<mosaic_0001>
module attributes {stable_mosaic.version = 11 : i64} {
  func.func @_precompute_kernel(%arg0: i32, %arg1: memref<1x8x16x2xf32, #tpu.memory_space<vmem>>, %arg2: memref<1x8x16x2xf32, #tpu.memory_space<vmem>>, %arg3: memref<1x8x16x2xf32, #tpu.memory_space<vmem>>, %arg4: memref<1x8x16x2xf32, #tpu.memory_space<vmem>>, %arg5: memref<1x8x16x4xf32, #tpu.memory_space<vmem>>, %arg6: memref<1x128x4xf32, #tpu.memory_space<vmem>>, %arg7: memref<16x4xf32, #tpu.memory_space<vmem>>, %arg8: memref<4x40xf32, #tpu.memory_space<vmem>>, %arg9: memref<1x40xf32, #tpu.memory_space<vmem>>, %arg10: memref<40x2xf32, #tpu.memory_space<vmem>>, %arg11: memref<1x2xf32, #tpu.memory_space<vmem>>, %arg12: memref<2x1xf32, #tpu.memory_space<vmem>>, %arg13: memref<1x1xf32, #tpu.memory_space<vmem>>, %arg14: memref<1x8x16x2xf32, #tpu.memory_space<vmem>>, %arg15: memref<1x8x16x16xf32, #tpu.memory_space<vmem>>, %arg16: memref<1x128x1xf32, #tpu.memory_space<vmem>>) attributes {dimension_semantics = [#tpu.dimension_semantics<parallel>], iteration_bounds = array<i64: 2>, scalar_prefetch = 0 : i64, scratch_operands = 0 : i64, tpu.core_type = #tpu.core_type<tc>, window_params = [{transform_indices = @transform_0, window_bounds = array<i64: 1, 8, 16, 2>}, {transform_indices = @transform_1, window_bounds = array<i64: 1, 8, 16, 2>}, {transform_indices = @transform_2, window_bounds = array<i64: 1, 8, 16, 2>}, {transform_indices = @transform_3, window_bounds = array<i64: 1, 8, 16, 2>}, {transform_indices = @transform_4, window_bounds = array<i64: 1, 8, 16, 4>}, {transform_indices = @transform_5, window_bounds = array<i64: 1, 128, 4>}, {pipeline_mode = #tpu.pipeline_mode<synchronous>, transform_indices = @transform_6, window_bounds = array<i64: 16, 4>}, {pipeline_mode = #tpu.pipeline_mode<synchronous>, transform_indices = @transform_7, window_bounds = array<i64: 4, 40>}, {pipeline_mode = #tpu.pipeline_mode<synchronous>, transform_indices = @transform_8, window_bounds = array<i64: 1, 40>}, {pipeline_mode = #tpu.pipeline_mode<synchronous>, transform_indices = @transform_9, window_bounds = array<i64: 40, 2>}, {pipeline_mode = #tpu.pipeline_mode<synchronous>, transform_indices = @transform_10, window_bounds = array<i64: 1, 2>}, {pipeline_mode = #tpu.pipeline_mode<synchronous>, transform_indices = @transform_11, window_bounds = array<i64: 2, 1>}, {pipeline_mode = #tpu.pipeline_mode<synchronous>, transform_indices = @transform_12, window_bounds = array<i64: 1, 1>}, {transform_indices = @transform_13, window_bounds = array<i64: 1, 8, 16, 2>}, {transform_indices = @transform_14, window_bounds = array<i64: 1, 8, 16, 16>}, {transform_indices = @transform_15, window_bounds = array<i64: 1, 128, 1>}]} {
    %c0 = arith.constant 0 : index
    %c0_0 = arith.constant 0 : index
    %c0_1 = arith.constant 0 : index
    %c0_2 = arith.constant 0 : index
    %0 = vector.load %arg1[%c0, %c0_0, %c0_1, %c0_2] : memref<1x8x16x2xf32, #tpu.memory_space<vmem>>, vector<1x8x16x2xf32>
    %1 = vector.shape_cast %0 : vector<1x8x16x2xf32> to vector<8x16x2xf32>
    %c0_3 = arith.constant 0 : index
    %c0_4 = arith.constant 0 : index
    %c0_5 = arith.constant 0 : index
    %c0_6 = arith.constant 0 : index
    %2 = vector.load %arg2[%c0_3, %c0_4, %c0_5, %c0_6] : memref<1x8x16x2xf32, #tpu.memory_space<vmem>>, vector<1x8x16x2xf32>
    %3 = vector.shape_cast %2 : vector<1x8x16x2xf32> to vector<8x16x2xf32>
    %4 = arith.subf %1, %3 : vector<8x16x2xf32>
    %5 = math.absf %4 : vector<8x16x2xf32>
    %cst = arith.constant 0.000000e+00 : f32
    %6 = vector.broadcast %cst : f32 to vector<8x16x2xf32>
    %7 = arith.subf %6, %5 : vector<8x16x2xf32>
    %cst_7 = arith.constant dense<0.000000e+00> : vector<8x2xf32>
    %8 = vector.multi_reduction <add>, %7, %cst_7 [1] : vector<8x16x2xf32> to vector<8x2xf32>
    %9 = vector.shape_cast %8 : vector<8x2xf32> to vector<8x1x2xf32>
    %cst_8 = arith.constant 1.600000e+01 : f32
    %10 = vector.broadcast %cst_8 : f32 to vector<8x1x2xf32>
    %11 = arith.divf %9, %10 : vector<8x1x2xf32>
    %cst_9 = arith.constant dense<0.000000e+00> : vector<1x2xf32>
    %12 = vector.multi_reduction <add>, %11, %cst_9 [0] : vector<8x1x2xf32> to vector<1x2xf32>
    %13 = vector.shape_cast %12 : vector<1x2xf32> to vector<1x1x2xf32>
    %cst_10 = arith.constant 9.99999997E-7 : f32
    %14 = vector.broadcast %cst_10 : f32 to vector<1x1x2xf32>
    %15 = arith.addf %13, %14 : vector<1x1x2xf32>
    %16 = vector.broadcast %15 : vector<1x1x2xf32> to vector<8x1x2xf32>
    %17 = arith.divf %11, %16 : vector<8x1x2xf32>
    %18 = vector.broadcast %17 : vector<8x1x2xf32> to vector<8x16x2xf32>
    %19 = arith.mulf %1, %18 : vector<8x16x2xf32>
    %20 = arith.addf %1, %19 : vector<8x16x2xf32>
    %c0_11 = arith.constant 0 : index
    %c0_12 = arith.constant 0 : index
    %c0_13 = arith.constant 0 : index
    %c0_14 = arith.constant 0 : index
    %21 = vector.load %arg3[%c0_11, %c0_12, %c0_13, %c0_14] : memref<1x8x16x2xf32, #tpu.memory_space<vmem>>, vector<1x8x16x2xf32>
    %22 = vector.shape_cast %21 : vector<1x8x16x2xf32> to vector<8x16x2xf32>
    %23 = arith.subf %1, %22 : vector<8x16x2xf32>
    %24 = math.absf %23 : vector<8x16x2xf32>
    %cst_15 = arith.constant 0.000000e+00 : f32
    %25 = vector.broadcast %cst_15 : f32 to vector<8x16x2xf32>
    %26 = arith.subf %25, %24 : vector<8x16x2xf32>
    %cst_16 = arith.constant dense<0.000000e+00> : vector<8x2xf32>
    %27 = vector.multi_reduction <add>, %26, %cst_16 [1] : vector<8x16x2xf32> to vector<8x2xf32>
    %28 = vector.shape_cast %27 : vector<8x2xf32> to vector<8x1x2xf32>
    %cst_17 = arith.constant 1.600000e+01 : f32
    %29 = vector.broadcast %cst_17 : f32 to vector<8x1x2xf32>
    %30 = arith.divf %28, %29 : vector<8x1x2xf32>
    %cst_18 = arith.constant dense<0.000000e+00> : vector<1x2xf32>
    %31 = vector.multi_reduction <add>, %30, %cst_18 [0] : vector<8x1x2xf32> to vector<1x2xf32>
    %32 = vector.shape_cast %31 : vector<1x2xf32> to vector<1x1x2xf32>
    %cst_19 = arith.constant 9.99999997E-7 : f32
    %33 = vector.broadcast %cst_19 : f32 to vector<1x1x2xf32>
    %34 = arith.addf %32, %33 : vector<1x1x2xf32>
    %35 = vector.broadcast %34 : vector<1x1x2xf32> to vector<8x1x2xf32>
    %36 = arith.divf %30, %35 : vector<8x1x2xf32>
    %37 = vector.broadcast %36 : vector<8x1x2xf32> to vector<8x16x2xf32>
    %38 = arith.mulf %1, %37 : vector<8x16x2xf32>
    %39 = arith.addf %20, %38 : vector<8x16x2xf32>
    %c0_20 = arith.constant 0 : index
    %c0_21 = arith.constant 0 : index
    %c0_22 = arith.constant 0 : index
    %c0_23 = arith.constant 0 : index
    %40 = vector.load %arg4[%c0_20, %c0_21, %c0_22, %c0_23] : memref<1x8x16x2xf32, #tpu.memory_space<vmem>>, vector<1x8x16x2xf32>
    %41 = vector.shape_cast %40 : vector<1x8x16x2xf32> to vector<8x16x2xf32>
    %42 = arith.subf %1, %41 : vector<8x16x2xf32>
    %43 = math.absf %42 : vector<8x16x2xf32>
    %cst_24 = arith.constant 0.000000e+00 : f32
    %44 = vector.broadcast %cst_24 : f32 to vector<8x16x2xf32>
    %45 = arith.subf %44, %43 : vector<8x16x2xf32>
    %cst_25 = arith.constant dense<0.000000e+00> : vector<8x2xf32>
    %46 = vector.multi_reduction <add>, %45, %cst_25 [1] : vector<8x16x2xf32> to vector<8x2xf32>
    %47 = vector.shape_cast %46 : vector<8x2xf32> to vector<8x1x2xf32>
    %cst_26 = arith.constant 1.600000e+01 : f32
    %48 = vector.broadcast %cst_26 : f32 to vector<8x1x2xf32>
    %49 = arith.divf %47, %48 : vector<8x1x2xf32>
    %cst_27 = arith.constant dense<0.000000e+00> : vector<1x2xf32>
    %50 = vector.multi_reduction <add>, %49, %cst_27 [0] : vector<8x1x2xf32> to vector<1x2xf32>
    %51 = vector.shape_cast %50 : vector<1x2xf32> to vector<1x1x2xf32>
    %cst_28 = arith.constant 9.99999997E-7 : f32
    %52 = vector.broadcast %cst_28 : f32 to vector<1x1x2xf32>
    %53 = arith.addf %51, %52 : vector<1x1x2xf32>
    %54 = vector.broadcast %53 : vector<1x1x2xf32> to vector<8x1x2xf32>
    %55 = arith.divf %49, %54 : vector<8x1x2xf32>
    %56 = vector.broadcast %55 : vector<8x1x2xf32> to vector<8x16x2xf32>
    %57 = arith.mulf %1, %56 : vector<8x16x2xf32>
    %58 = arith.addf %39, %57 : vector<8x16x2xf32>
    %c0_29 = arith.constant 0 : index
    %c0_30 = arith.constant 0 : index
    %c0_31 = arith.constant 0 : index
    %c0_32 = arith.constant 0 : index
    %59 = vector.load %arg14[%c0_29, %c0_30, %c0_31, %c0_32] : memref<1x8x16x2xf32, #tpu.memory_space<vmem>>, vector<1x8x16x2xf32>
    %60 = vector.shape_cast %59 : vector<1x8x16x2xf32> to vector<8x16x2xf32>
    %61 = vector.shape_cast %58 : vector<8x16x2xf32> to vector<1x8x16x2xf32>
    tpu.vector_store %arg14[%c0_29, %c0_30, %c0_31, %c0_32], %61 {strides = array<i32>} : memref<1x8x16x2xf32, #tpu.memory_space<vmem>>, vector<1x8x16x2xf32>,
    %c0_33 = arith.constant 0 : index
    %c0_34 = arith.constant 0 : index
    %c0_35 = arith.constant 0 : index
    %c0_36 = arith.constant 0 : index
    %62 = vector.load %arg5[%c0_33, %c0_34, %c0_35, %c0_36] : memref<1x8x16x4xf32, #tpu.memory_space<vmem>>, vector<1x8x16x4xf32>
    %63 = vector.shape_cast %62 : vector<1x8x16x4xf32> to vector<8x16x4xf32>
    %c0_37 = arith.constant 0 : index
    %c0_38 = arith.constant 0 : index
    %64 = vector.load %arg7[%c0_37, %c0_38] : memref<16x4xf32, #tpu.memory_space<vmem>>, vector<16x4xf32>
    %65 = vector.shape_cast %64 : vector<16x4xf32> to vector<1x16x4xf32>
    %66 = vector.broadcast %65 : vector<1x16x4xf32> to vector<8x16x4xf32>
    %67 = arith.mulf %63, %66 : vector<8x16x4xf32>
    %68 = math.tanh %67 : vector<8x16x4xf32>
    "tpu.trace_start"() <{level = 10 : i32, message = "tne,tme->tnm"}> : () -> ()
    %cst_39 = arith.constant dense<0.000000e+00> : vector<8x16x16xf32>
    %69 = tpu.matmul %68, %68, %cst_39 {dimension_numbers = #tpu.dot_dimension_numbers<[2], [2], [1], [1], [0, 0, 0, 1, 1, 1], [0], [0]>} : vector<8x16x4xf32>, vector<8x16x4xf32>, vector<8x16x16xf32> -> vector<8x16x16xf32>
    "tpu.trace_stop"() : () -> ()
    %cst_40 = arith.constant 0.000000e+00 : f32
    %70 = vector.broadcast %cst_40 : f32 to vector<8x16x16xf32>
    %71 = arith.maximumf %69, %70 : vector<8x16x16xf32>
    %cst_41 = arith.constant dense<0xFF800000> : vector<8x16xf32>
    %72 = vector.multi_reduction <maximumf>, %71, %cst_41 [2] : vector<8x16x16xf32> to vector<8x16xf32>
    %cst_42 = arith.constant 0xFF800000 : f32
    %73 = vector.broadcast %cst_42 : f32 to vector<8x16xf32>
    %74 = arith.maximumf %73, %72 : vector<8x16xf32>
    %75 = vector.shape_cast %74 : vector<8x16xf32> to vector<8x16x1xf32>
    %76 = vector.broadcast %75 : vector<8x16x1xf32> to vector<8x16x16xf32>
    %77 = arith.subf %71, %76 : vector<8x16x16xf32>
    %78 = math.exp %77 : vector<8x16x16xf32>
    %cst_43 = arith.constant dense<0.000000e+00> : vector<8x16xf32>
    %79 = vector.multi_reduction <add>, %78, %cst_43 [2] : vector<8x16x16xf32> to vector<8x16xf32>
    %80 = vector.shape_cast %79 : vector<8x16xf32> to vector<8x16x1xf32>
    %81 = vector.broadcast %80 : vector<8x16x1xf32> to vector<8x16x16xf32>
    %82 = arith.divf %78, %81 : vector<8x16x16xf32>
    %c0_44 = arith.constant 0 : index
    %c0_45 = arith.constant 0 : index
    %c0_46 = arith.constant 0 : index
    %c0_47 = arith.constant 0 : index
    %83 = vector.load %arg15[%c0_44, %c0_45, %c0_46, %c0_47] : memref<1x8x16x16xf32, #tpu.memory_space<vmem>>, vector<1x8x16x16xf32>
    %84 = vector.shape_cast %83 : vector<1x8x16x16xf32> to vector<8x16x16xf32>
    %85 = vector.shape_cast %82 : vector<8x16x16xf32> to vector<1x8x16x16xf32>
    tpu.vector_store %arg15[%c0_44, %c0_45, %c0_46, %c0_47], %85 {strides = array<i32>} : memref<1x8x16x16xf32, #tpu.memory_space<vmem>>, vector<1x8x16x16xf32>,
    %c0_48 = arith.constant 0 : index
    %c0_49 = arith.constant 0 : index
    %c0_50 = arith.constant 0 : index
    %86 = vector.load %arg6[%c0_48, %c0_49, %c0_50] : memref<1x128x4xf32, #tpu.memory_space<vmem>>, vector<1x128x4xf32>
    %87 = vector.shape_cast %86 : vector<1x128x4xf32> to vector<128x4xf32>
    %c0_51 = arith.constant 0 : index
    %c0_52 = arith.constant 0 : index
    %88 = vector.load %arg8[%c0_51, %c0_52] : memref<4x40xf32, #tpu.memory_space<vmem>>, vector<4x40xf32>
    %cst_53 = arith.constant dense<0.000000e+00> : vector<128x40xf32>
    %89 = tpu.matmul %87, %88, %cst_53 {dimension_numbers = #tpu.dot_dimension_numbers<[1], [0], [0], [1], [0, 0, 1, 1], [], []>} : vector<128x4xf32>, vector<4x40xf32>, vector<128x40xf32> -> vector<128x40xf32>
    %c0_54 = arith.constant 0 : index
    %c0_55 = arith.constant 0 : index
    %90 = vector.load %arg9[%c0_54, %c0_55] : memref<1x40xf32, #tpu.memory_space<vmem>>, vector<1x40xf32>
    %91 = vector.broadcast %90 : vector<1x40xf32> to vector<128x40xf32>
    %92 = arith.addf %89, %91 : vector<128x40xf32>
    %cst_56 = arith.constant 0.000000e+00 : f32
    %93 = vector.broadcast %cst_56 : f32 to vector<128x40xf32>
    %94 = arith.maximumf %92, %93 : vector<128x40xf32>
    %c0_57 = arith.constant 0 : index
    %c0_58 = arith.constant 0 : index
    %95 = vector.load %arg10[%c0_57, %c0_58] : memref<40x2xf32, #tpu.memory_space<vmem>>, vector<40x2xf32>
    %cst_59 = arith.constant dense<0.000000e+00> : vector<128x2xf32>
    %96 = tpu.matmul %94, %95, %cst_59 {dimension_numbers = #tpu.dot_dimension_numbers<[1], [0], [0], [1], [0, 0, 1, 1], [], []>} : vector<128x40xf32>, vector<40x2xf32>, vector<128x2xf32> -> vector<128x2xf32>
    %c0_60 = arith.constant 0 : index
    %c0_61 = arith.constant 0 : index
    %97 = vector.load %arg11[%c0_60, %c0_61] : memref<1x2xf32, #tpu.memory_space<vmem>>, vector<1x2xf32>
    %98 = vector.broadcast %97 : vector<1x2xf32> to vector<128x2xf32>
    %99 = arith.addf %96, %98 : vector<128x2xf32>
    %cst_62 = arith.constant 0.000000e+00 : f32
    %100 = vector.broadcast %cst_62 : f32 to vector<128x2xf32>
    %101 = arith.maximumf %99, %100 : vector<128x2xf32>
    %c0_63 = arith.constant 0 : index
    %c0_64 = arith.constant 0 : index
    %102 = vector.load %arg12[%c0_63, %c0_64] : memref<2x1xf32, #tpu.memory_space<vmem>>, vector<2x1xf32>
    %cst_65 = arith.constant dense<0.000000e+00> : vector<128x1xf32>
    %103 = tpu.matmul %101, %102, %cst_65 {dimension_numbers = #tpu.dot_dimension_numbers<[1], [0], [0], [1], [0, 0, 1, 1], [], []>} : vector<128x2xf32>, vector<2x1xf32>, vector<128x1xf32> -> vector<128x1xf32>
    %c0_66 = arith.constant 0 : index
    %c0_67 = arith.constant 0 : index
    %104 = vector.load %arg13[%c0_66, %c0_67] : memref<1x1xf32, #tpu.memory_space<vmem>>, vector<1x1xf32>
    %105 = vector.broadcast %104 : vector<1x1xf32> to vector<128x1xf32>
    %106 = arith.addf %103, %105 : vector<128x1xf32>
    %107 = arith.negf %106 : vector<128x1xf32>
    %108 = math.exp %107 : vector<128x1xf32>
    %cst_68 = arith.constant 1.000000e+00 : f32
    %109 = vector.broadcast %cst_68 : f32 to vector<128x1xf32>
    %110 = arith.addf %109, %108 : vector<128x1xf32>
    %111 = arith.divf %109, %110 : vector<128x1xf32>
    %c0_69 = arith.constant 0 : index
    %c0_70 = arith.constant 0 : index
    %c0_71 = arith.constant 0 : index
    %112 = vector.load %arg16[%c0_69, %c0_70, %c0_71] : memref<1x128x1xf32, #tpu.memory_space<vmem>>, vector<1x128x1xf32>
    %113 = vector.shape_cast %112 : vector<1x128x1xf32> to vector<128x1xf32>
    %114 = vector.shape_cast %111 : vector<128x1xf32> to vector<1x128x1xf32>
    tpu.vector_store %arg16[%c0_69, %c0_70, %c0_71], %114 {strides = array<i32>} : memref<1x128x1xf32, #tpu.memory_space<vmem>>, vector<1x128x1xf32>,
    return
  }
  func.func @transform_0(%arg0: i32) -> (i32, i32, i32, i32) {
    %c0_i32 = arith.constant 0 : i32
    %c0_i32_0 = arith.constant 0 : i32
    %c0_i32_1 = arith.constant 0 : i32
    %c0_i32_2 = arith.constant 0 : i32
    return %arg0, %c0_i32, %c0_i32_0, %c0_i32_1 : i32, i32, i32, i32
  }
  func.func @transform_1(%arg0: i32) -> (i32, i32, i32, i32) {
    %c0_i32 = arith.constant 0 : i32
    %c0_i32_0 = arith.constant 0 : i32
    %c0_i32_1 = arith.constant 0 : i32
    %c0_i32_2 = arith.constant 0 : i32
    return %arg0, %c0_i32, %c0_i32_0, %c0_i32_1 : i32, i32, i32, i32
  }
  func.func @transform_2(%arg0: i32) -> (i32, i32, i32, i32) {
    %c0_i32 = arith.constant 0 : i32
    %c0_i32_0 = arith.constant 0 : i32
    %c0_i32_1 = arith.constant 0 : i32
    %c0_i32_2 = arith.constant 0 : i32
    return %arg0, %c0_i32, %c0_i32_0, %c0_i32_1 : i32, i32, i32, i32
  }
  func.func @transform_3(%arg0: i32) -> (i32, i32, i32, i32) {
    %c0_i32 = arith.constant 0 : i32
    %c0_i32_0 = arith.constant 0 : i32
    %c0_i32_1 = arith.constant 0 : i32
    %c0_i32_2 = arith.constant 0 : i32
    return %arg0, %c0_i32, %c0_i32_0, %c0_i32_1 : i32, i32, i32, i32
  }
  func.func @transform_4(%arg0: i32) -> (i32, i32, i32, i32) {
    %c0_i32 = arith.constant 0 : i32
    %c0_i32_0 = arith.constant 0 : i32
    %c0_i32_1 = arith.constant 0 : i32
    %c0_i32_2 = arith.constant 0 : i32
    return %arg0, %c0_i32, %c0_i32_0, %c0_i32_1 : i32, i32, i32, i32
  }
  func.func @transform_5(%arg0: i32) -> (i32, i32, i32) {
    %c0_i32 = arith.constant 0 : i32
    %c0_i32_0 = arith.constant 0 : i32
    %c0_i32_1 = arith.constant 0 : i32
    return %arg0, %c0_i32, %c0_i32_0 : i32, i32, i32
  }
  func.func @transform_6(%arg0: i32) -> (i32, i32) {
    %c0_i32 = arith.constant 0 : i32
    %c0_i32_0 = arith.constant 0 : i32
    %c0_i32_1 = arith.constant 0 : i32
    return %c0_i32, %c0_i32_0 : i32, i32
  }
  func.func @transform_7(%arg0: i32) -> (i32, i32) {
    %c0_i32 = arith.constant 0 : i32
    %c0_i32_0 = arith.constant 0 : i32
    %c0_i32_1 = arith.constant 0 : i32
    return %c0_i32, %c0_i32_0 : i32, i32
  }
  func.func @transform_8(%arg0: i32) -> (i32, i32) {
    %c0_i32 = arith.constant 0 : i32
    %c0_i32_0 = arith.constant 0 : i32
    %c0_i32_1 = arith.constant 0 : i32
    return %c0_i32, %c0_i32_0 : i32, i32
  }
  func.func @transform_9(%arg0: i32) -> (i32, i32) {
    %c0_i32 = arith.constant 0 : i32
    %c0_i32_0 = arith.constant 0 : i32
    %c0_i32_1 = arith.constant 0 : i32
    return %c0_i32, %c0_i32_0 : i32, i32
  }
  func.func @transform_10(%arg0: i32) -> (i32, i32) {
    %c0_i32 = arith.constant 0 : i32
    %c0_i32_0 = arith.constant 0 : i32
    %c0_i32_1 = arith.constant 0 : i32
    return %c0_i32, %c0_i32_0 : i32, i32
  }
  func.func @transform_11(%arg0: i32) -> (i32, i32) {
    %c0_i32 = arith.constant 0 : i32
    %c0_i32_0 = arith.constant 0 : i32
    %c0_i32_1 = arith.constant 0 : i32
    return %c0_i32, %c0_i32_0 : i32, i32
  }
  func.func @transform_12(%arg0: i32) -> (i32, i32) {
    %c0_i32 = arith.constant 0 : i32
    %c0_i32_0 = arith.constant 0 : i32
    %c0_i32_1 = arith.constant 0 : i32
    return %c0_i32, %c0_i32_0 : i32, i32
  }
  func.func @transform_13(%arg0: i32) -> (i32, i32, i32, i32) {
    %c0_i32 = arith.constant 0 : i32
    %c0_i32_0 = arith.constant 0 : i32
    %c0_i32_1 = arith.constant 0 : i32
    %c0_i32_2 = arith.constant 0 : i32
    return %arg0, %c0_i32, %c0_i32_0, %c0_i32_1 : i32, i32, i32, i32
  }
  func.func @transform_14(%arg0: i32) -> (i32, i32, i32, i32) {
    %c0_i32 = arith.constant 0 : i32
    %c0_i32_0 = arith.constant 0 : i32
    %c0_i32_1 = arith.constant 0 : i32
    %c0_i32_2 = arith.constant 0 : i32
    return %arg0, %c0_i32, %c0_i32_0, %c0_i32_1 : i32, i32, i32, i32
  }
  func.func @transform_15(%arg0: i32) -> (i32, i32, i32) {
    %c0_i32 = arith.constant 0 : i32
    %c0_i32_0 = arith.constant 0 : i32
    %c0_i32_1 = arith.constant 0 : i32
    return %arg0, %c0_i32, %c0_i32_0 : i32, i32, i32
  }
}

module attributes {stable_mosaic.version = 11 : i64} {
  func.func @_dgcrm_layer_kernel(%arg0: i32, %arg1: memref<1x8x16x2xf32, #tpu.memory_space<vmem>>, %arg2: memref<1x8x16x16xf32, #tpu.memory_space<vmem>>, %arg3: memref<1x8x16x1xf32, #tpu.memory_space<vmem>>, %arg4: memref<1x16x8xf32, #tpu.memory_space<vmem>>, %arg5: memref<1x16x8xf32, #tpu.memory_space<vmem>>, %arg6: memref<16x4xf32, #tpu.memory_space<vmem>>, %arg7: memref<20x64xf32, #tpu.memory_space<vmem>>, %arg8: memref<4x16xf32, #tpu.memory_space<vmem>>, %arg9: memref<20x32xf32, #tpu.memory_space<vmem>>, %arg10: memref<4x8xf32, #tpu.memory_space<vmem>>, %arg11: memref<1x8x16x8xf32, #tpu.memory_space<vmem>>, %arg12: memref<1x16x8xf32, #tpu.memory_space<vmem>>) attributes {dimension_semantics = [#tpu.dimension_semantics<parallel>], iteration_bounds = array<i64: 2>, scalar_prefetch = 0 : i64, scratch_operands = 0 : i64, tpu.core_type = #tpu.core_type<tc>, window_params = [{transform_indices = @transform_0, window_bounds = array<i64: 1, 8, 16, 2>}, {transform_indices = @transform_1, window_bounds = array<i64: 1, 8, 16, 16>}, {transform_indices = @transform_2, window_bounds = array<i64: 1, 8, 16, 1>}, {transform_indices = @transform_3, window_bounds = array<i64: 1, 16, 8>}, {transform_indices = @transform_4, window_bounds = array<i64: 1, 16, 8>}, {pipeline_mode = #tpu.pipeline_mode<synchronous>, transform_indices = @transform_5, window_bounds = array<i64: 16, 4>}, {pipeline_mode = #tpu.pipeline_mode<synchronous>, transform_indices = @transform_6, window_bounds = array<i64: 20, 64>}, {pipeline_mode = #tpu.pipeline_mode<synchronous>, transform_indices = @transform_7, window_bounds = array<i64: 4, 16>}, {pipeline_mode = #tpu.pipeline_mode<synchronous>, transform_indices = @transform_8, window_bounds = array<i64: 20, 32>}, {pipeline_mode = #tpu.pipeline_mode<synchronous>, transform_indices = @transform_9, window_bounds = array<i64: 4, 8>}, {transform_indices = @transform_10, window_bounds = array<i64: 1, 8, 16, 8>}, {transform_indices = @transform_11, window_bounds = array<i64: 1, 16, 8>}]} {
    %c0 = arith.constant 0 : index
    %c0_0 = arith.constant 0 : index
    %0 = vector.load %arg6[%c0, %c0_0] : memref<16x4xf32, #tpu.memory_space<vmem>>, vector<16x4xf32>
    %c0_1 = arith.constant 0 : index
    %c0_2 = arith.constant 0 : index
    %1 = vector.load %arg7[%c0_1, %c0_2] : memref<20x64xf32, #tpu.memory_space<vmem>>, vector<20x64xf32>
    %c0_3 = arith.constant 0 : index
    %c0_4 = arith.constant 0 : index
    %2 = vector.load %arg9[%c0_3, %c0_4] : memref<20x32xf32, #tpu.memory_space<vmem>>, vector<20x32xf32>
    %c0_5 = arith.constant 0 : index
    %c0_6 = arith.constant 0 : index
    %3 = vector.load %arg8[%c0_5, %c0_6] : memref<4x16xf32, #tpu.memory_space<vmem>>, vector<4x16xf32>
    %cst = arith.constant dense<0.000000e+00> : vector<16x16xf32>
    %4 = tpu.matmul %0, %3, %cst {dimension_numbers = #tpu.dot_dimension_numbers<[1], [0], [0], [1], [0, 0, 1, 1], [], []>} : vector<16x4xf32>, vector<4x16xf32>, vector<16x16xf32> -> vector<16x16xf32>
    %c0_7 = arith.constant 0 : index
    %c0_8 = arith.constant 0 : index
    %5 = vector.load %arg10[%c0_7, %c0_8] : memref<4x8xf32, #tpu.memory_space<vmem>>, vector<4x8xf32>
    %cst_9 = arith.constant dense<0.000000e+00> : vector<16x8xf32>
    %6 = tpu.matmul %0, %5, %cst_9 {dimension_numbers = #tpu.dot_dimension_numbers<[1], [0], [0], [1], [0, 0, 1, 1], [], []>} : vector<16x4xf32>, vector<4x8xf32>, vector<16x8xf32> -> vector<16x8xf32>
    %c0_10 = arith.constant 0 : index
    %c0_11 = arith.constant 0 : index
    %c0_12 = arith.constant 0 : index
    %7 = vector.load %arg4[%c0_10, %c0_11, %c0_12] : memref<1x16x8xf32, #tpu.memory_space<vmem>>, vector<1x16x8xf32>
    %8 = vector.shape_cast %7 : vector<1x16x8xf32> to vector<16x8xf32>
    %c0_13 = arith.constant 0 : index
    %c0_14 = arith.constant 0 : index
    %c0_15 = arith.constant 0 : index
    %9 = vector.load %arg5[%c0_13, %c0_14, %c0_15] : memref<1x16x8xf32, #tpu.memory_space<vmem>>, vector<1x16x8xf32>
    %10 = vector.shape_cast %9 : vector<1x16x8xf32> to vector<16x8xf32>
    %c0_16 = arith.constant 0 : index
    %c0_17 = arith.constant 0 : index
    %c0_18 = arith.constant 0 : index
    %c0_19 = arith.constant 0 : index
    %11 = vector.load %arg1[%c0_16, %c0_17, %c0_18, %c0_19] : memref<1x8x16x2xf32, #tpu.memory_space<vmem>>, vector<1x1x16x2xf32>
    %12 = vector.shape_cast %11 : vector<1x1x16x2xf32> to vector<16x2xf32>
    %c0_20 = arith.constant 0 : index
    %c0_21 = arith.constant 0 : index
    %c0_22 = arith.constant 0 : index
    %c0_23 = arith.constant 0 : index
    %13 = vector.load %arg2[%c0_20, %c0_21, %c0_22, %c0_23] : memref<1x8x16x16xf32, #tpu.memory_space<vmem>>, vector<1x1x16x16xf32>
    %14 = vector.shape_cast %13 : vector<1x1x16x16xf32> to vector<16x16xf32>
    %c0_24 = arith.constant 0 : index
    %c0_25 = arith.constant 0 : index
    %c0_26 = arith.constant 0 : index
    %c0_27 = arith.constant 0 : index
    %15 = vector.load %arg3[%c0_24, %c0_25, %c0_26, %c0_27] : memref<1x8x16x1xf32, #tpu.memory_space<vmem>>, vector<1x1x16x1xf32>
    %16 = vector.shape_cast %15 : vector<1x1x16x1xf32> to vector<16x1xf32>
    %17 = tpu.concatenate %12, %8 in 1 : vector<16x2xf32>, vector<16x8xf32> -> vector<16x10xf32>
    %cst_28 = arith.constant dense<0.000000e+00> : vector<16x10xf32>
    %18 = tpu.matmul %14, %17, %cst_28 {dimension_numbers = #tpu.dot_dimension_numbers<[1], [0], [0], [1], [0, 0, 1, 1], [], []>} : vector<16x16xf32>, vector<16x10xf32>, vector<16x10xf32> -> vector<16x10xf32>
    %19 = tpu.concatenate %17, %18 in 1 : vector<16x10xf32>, vector<16x10xf32> -> vector<16x20xf32>
    %cst_29 = arith.constant dense<0.000000e+00> : vector<16x64xf32>
    %20 = tpu.matmul %19, %1, %cst_29 {dimension_numbers = #tpu.dot_dimension_numbers<[1], [0], [0], [1], [0, 0, 1, 1], [], []>} : vector<16x20xf32>, vector<20x64xf32>, vector<16x64xf32> -> vector<16x64xf32>
    %21 = vector.extract_strided_slice %0 {offsets = [0, 0], sizes = [16, 1], strides = [1, 1]} : vector<16x4xf32> to vector<16x1xf32>
    %22 = vector.extract_strided_slice %20 {offsets = [0, 0], sizes = [16, 16], strides = [1, 1]} : vector<16x64xf32> to vector<16x16xf32>
    %23 = vector.broadcast %21 : vector<16x1xf32> to vector<16x16xf32>
    %24 = arith.mulf %23, %22 : vector<16x16xf32>
    %25 = arith.addf %4, %24 : vector<16x16xf32>
    %26 = vector.extract_strided_slice %0 {offsets = [0, 1], sizes = [16, 1], strides = [1, 1]} : vector<16x4xf32> to vector<16x1xf32>
    %27 = vector.extract_strided_slice %20 {offsets = [0, 16], sizes = [16, 16], strides = [1, 1]} : vector<16x64xf32> to vector<16x16xf32>
    %28 = vector.broadcast %26 : vector<16x1xf32> to vector<16x16xf32>
    %29 = arith.mulf %28, %27 : vector<16x16xf32>
    %30 = arith.addf %25, %29 : vector<16x16xf32>
    %31 = vector.extract_strided_slice %0 {offsets = [0, 2], sizes = [16, 1], strides = [1, 1]} : vector<16x4xf32> to vector<16x1xf32>
    %32 = vector.extract_strided_slice %20 {offsets = [0, 32], sizes = [16, 16], strides = [1, 1]} : vector<16x64xf32> to vector<16x16xf32>
    %33 = vector.broadcast %31 : vector<16x1xf32> to vector<16x16xf32>
    %34 = arith.mulf %33, %32 : vector<16x16xf32>
    %35 = arith.addf %30, %34 : vector<16x16xf32>
    %36 = vector.extract_strided_slice %0 {offsets = [0, 3], sizes = [16, 1], strides = [1, 1]} : vector<16x4xf32> to vector<16x1xf32>
    %37 = vector.extract_strided_slice %20 {offsets = [0, 48], sizes = [16, 16], strides = [1, 1]} : vector<16x64xf32> to vector<16x16xf32>
    %38 = vector.broadcast %36 : vector<16x1xf32> to vector<16x16xf32>
    %39 = arith.mulf %38, %37 : vector<16x16xf32>
    %40 = arith.addf %35, %39 : vector<16x16xf32>
    %41 = arith.negf %40 : vector<16x16xf32>
    %42 = math.exp %41 : vector<16x16xf32>
    %cst_30 = arith.constant 1.000000e+00 : f32
    %43 = vector.broadcast %cst_30 : f32 to vector<16x16xf32>
    %44 = arith.addf %43, %42 : vector<16x16xf32>
    %45 = arith.divf %43, %44 : vector<16x16xf32>
    %46 = vector.extract_strided_slice %45 {offsets = [0, 0], sizes = [16, 8], strides = [1, 1]} : vector<16x16xf32> to vector<16x8xf32>
    %47 = vector.extract_strided_slice %45 {offsets = [0, 8], sizes = [16, 8], strides = [1, 1]} : vector<16x16xf32> to vector<16x8xf32>
    %48 = arith.mulf %46, %8 : vector<16x8xf32>
    %49 = tpu.concatenate %12, %48 in 1 : vector<16x2xf32>, vector<16x8xf32> -> vector<16x10xf32>
    %cst_31 = arith.constant dense<0.000000e+00> : vector<16x10xf32>
    %50 = tpu.matmul %14, %49, %cst_31 {dimension_numbers = #tpu.dot_dimension_numbers<[1], [0], [0], [1], [0, 0, 1, 1], [], []>} : vector<16x16xf32>, vector<16x10xf32>, vector<16x10xf32> -> vector<16x10xf32>
    %51 = tpu.concatenate %49, %50 in 1 : vector<16x10xf32>, vector<16x10xf32> -> vector<16x20xf32>
    %cst_32 = arith.constant dense<0.000000e+00> : vector<16x32xf32>
    %52 = tpu.matmul %51, %2, %cst_32 {dimension_numbers = #tpu.dot_dimension_numbers<[1], [0], [0], [1], [0, 0, 1, 1], [], []>} : vector<16x20xf32>, vector<20x32xf32>, vector<16x32xf32> -> vector<16x32xf32>
    %53 = vector.extract_strided_slice %0 {offsets = [0, 0], sizes = [16, 1], strides = [1, 1]} : vector<16x4xf32> to vector<16x1xf32>
    %54 = vector.extract_strided_slice %52 {offsets = [0, 0], sizes = [16, 8], strides = [1, 1]} : vector<16x32xf32> to vector<16x8xf32>
    %55 = vector.broadcast %53 : vector<16x1xf32> to vector<16x8xf32>
    %56 = arith.mulf %55, %54 : vector<16x8xf32>
    %57 = arith.addf %6, %56 : vector<16x8xf32>
    %58 = vector.extract_strided_slice %0 {offsets = [0, 1], sizes = [16, 1], strides = [1, 1]} : vector<16x4xf32> to vector<16x1xf32>
    %59 = vector.extract_strided_slice %52 {offsets = [0, 8], sizes = [16, 8], strides = [1, 1]} : vector<16x32xf32> to vector<16x8xf32>
    %60 = vector.broadcast %58 : vector<16x1xf32> to vector<16x8xf32>
    %61 = arith.mulf %60, %59 : vector<16x8xf32>
    %62 = arith.addf %57, %61 : vector<16x8xf32>
    %63 = vector.extract_strided_slice %0 {offsets = [0, 2], sizes = [16, 1], strides = [1, 1]} : vector<16x4xf32> to vector<16x1xf32>
    %64 = vector.extract_strided_slice %52 {offsets = [0, 16], sizes = [16, 8], strides = [1, 1]} : vector<16x32xf32> to vector<16x8xf32>
    %65 = vector.broadcast %63 : vector<16x1xf32> to vector<16x8xf32>
    %66 = arith.mulf %65, %64 : vector<16x8xf32>
    %67 = arith.addf %62, %66 : vector<16x8xf32>
    %68 = vector.extract_strided_slice %0 {offsets = [0, 3], sizes = [16, 1], strides = [1, 1]} : vector<16x4xf32> to vector<16x1xf32>
    %69 = vector.extract_strided_slice %52 {offsets = [0, 24], sizes = [16, 8], strides = [1, 1]} : vector<16x32xf32> to vector<16x8xf32>
    %70 = vector.broadcast %68 : vector<16x1xf32> to vector<16x8xf32>
    %71 = arith.mulf %70, %69 : vector<16x8xf32>
    %72 = arith.addf %67, %71 : vector<16x8xf32>
    %73 = math.tanh %72 : vector<16x8xf32>
    %74 = arith.mulf %47, %8 : vector<16x8xf32>
    %cst_33 = arith.constant 1.000000e+00 : f32
    %75 = vector.broadcast %cst_33 : f32 to vector<16x8xf32>
    %76 = arith.subf %75, %47 : vector<16x8xf32>
    %77 = arith.mulf %76, %73 : vector<16x8xf32>
    %78 = arith.addf %74, %77 : vector<16x8xf32>
    %79 = vector.broadcast %16 : vector<16x1xf32> to vector<16x8xf32>
    %80 = arith.mulf %79, %78 : vector<16x8xf32>
    %cst_34 = arith.constant 1.000000e+00 : f32
    %81 = vector.broadcast %cst_34 : f32 to vector<16x1xf32>
    %82 = arith.subf %81, %16 : vector<16x1xf32>
    %83 = vector.broadcast %82 : vector<16x1xf32> to vector<16x8xf32>
    %84 = arith.mulf %83, %10 : vector<16x8xf32>
    %85 = arith.addf %80, %84 : vector<16x8xf32>
    %cst_35 = arith.constant 8.000000e-01 : f32
    %86 = vector.broadcast %cst_35 : f32 to vector<16x8xf32>
    %87 = arith.mulf %86, %10 : vector<16x8xf32>
    %cst_36 = arith.constant 2.000000e-01 : f32
    %88 = vector.broadcast %cst_36 : f32 to vector<16x8xf32>
    %89 = arith.mulf %88, %85 : vector<16x8xf32>
    %90 = arith.addf %87, %89 : vector<16x8xf32>
    %cst_37 = arith.constant 2.000000e-01 : f32
    %91 = vector.broadcast %cst_37 : f32 to vector<16x8xf32>
    %92 = arith.mulf %91, %85 : vector<16x8xf32>
    %93 = arith.addf %78, %92 : vector<16x8xf32>
    %c0_38 = arith.constant 0 : index
    %c0_39 = arith.constant 0 : index
    %c0_40 = arith.constant 0 : index
    %c0_41 = arith.constant 0 : index
    %94 = vector.load %arg11[%c0_38, %c0_39, %c0_40, %c0_41] : memref<1x8x16x8xf32, #tpu.memory_space<vmem>>, vector<1x1x16x8xf32>
    %95 = vector.shape_cast %94 : vector<1x1x16x8xf32> to vector<16x8xf32>
    %96 = vector.shape_cast %93 : vector<16x8xf32> to vector<1x1x16x8xf32>
    tpu.vector_store %arg11[%c0_38, %c0_39, %c0_40, %c0_41], %96 {strides = array<i32>} : memref<1x8x16x8xf32, #tpu.memory_space<vmem>>, vector<1x1x16x8xf32>,
    %c0_42 = arith.constant 0 : index
    %c1 = arith.constant 1 : index
    %c0_43 = arith.constant 0 : index
    %c0_44 = arith.constant 0 : index
    %97 = vector.load %arg1[%c0_42, %c1, %c0_43, %c0_44] : memref<1x8x16x2xf32, #tpu.memory_space<vmem>>, vector<1x1x16x2xf32>
    %98 = vector.shape_cast %97 : vector<1x1x16x2xf32> to vector<16x2xf32>
    %c0_45 = arith.constant 0 : index
    %c1_46 = arith.constant 1 : index
    %c0_47 = arith.constant 0 : index
    %c0_48 = arith.constant 0 : index
    %99 = vector.load %arg2[%c0_45, %c1_46, %c0_47, %c0_48] : memref<1x8x16x16xf32, #tpu.memory_space<vmem>>, vector<1x1x16x16xf32>
    %100 = vector.shape_cast %99 : vector<1x1x16x16xf32> to vector<16x16xf32>
    %c0_49 = arith.constant 0 : index
    %c1_50 = arith.constant 1 : index
    %c0_51 = arith.constant 0 : index
    %c0_52 = arith.constant 0 : index
    %101 = vector.load %arg3[%c0_49, %c1_50, %c0_51, %c0_52] : memref<1x8x16x1xf32, #tpu.memory_space<vmem>>, vector<1x1x16x1xf32>
    %102 = vector.shape_cast %101 : vector<1x1x16x1xf32> to vector<16x1xf32>
    %103 = tpu.concatenate %98, %93 in 1 : vector<16x2xf32>, vector<16x8xf32> -> vector<16x10xf32>
    %cst_53 = arith.constant dense<0.000000e+00> : vector<16x10xf32>
    %104 = tpu.matmul %100, %103, %cst_53 {dimension_numbers = #tpu.dot_dimension_numbers<[1], [0], [0], [1], [0, 0, 1, 1], [], []>} : vector<16x16xf32>, vector<16x10xf32>, vector<16x10xf32> -> vector<16x10xf32>
    %105 = tpu.concatenate %103, %104 in 1 : vector<16x10xf32>, vector<16x10xf32> -> vector<16x20xf32>
    %cst_54 = arith.constant dense<0.000000e+00> : vector<16x64xf32>
    %106 = tpu.matmul %105, %1, %cst_54 {dimension_numbers = #tpu.dot_dimension_numbers<[1], [0], [0], [1], [0, 0, 1, 1], [], []>} : vector<16x20xf32>, vector<20x64xf32>, vector<16x64xf32> -> vector<16x64xf32>
    %107 = vector.extract_strided_slice %0 {offsets = [0, 0], sizes = [16, 1], strides = [1, 1]} : vector<16x4xf32> to vector<16x1xf32>
    %108 = vector.extract_strided_slice %106 {offsets = [0, 0], sizes = [16, 16], strides = [1, 1]} : vector<16x64xf32> to vector<16x16xf32>
    %109 = vector.broadcast %107 : vector<16x1xf32> to vector<16x16xf32>
    %110 = arith.mulf %109, %108 : vector<16x16xf32>
    %111 = arith.addf %4, %110 : vector<16x16xf32>
    %112 = vector.extract_strided_slice %0 {offsets = [0, 1], sizes = [16, 1], strides = [1, 1]} : vector<16x4xf32> to vector<16x1xf32>
    %113 = vector.extract_strided_slice %106 {offsets = [0, 16], sizes = [16, 16], strides = [1, 1]} : vector<16x64xf32> to vector<16x16xf32>
    %114 = vector.broadcast %112 : vector<16x1xf32> to vector<16x16xf32>
    %115 = arith.mulf %114, %113 : vector<16x16xf32>
    %116 = arith.addf %111, %115 : vector<16x16xf32>
    %117 = vector.extract_strided_slice %0 {offsets = [0, 2], sizes = [16, 1], strides = [1, 1]} : vector<16x4xf32> to vector<16x1xf32>
    %118 = vector.extract_strided_slice %106 {offsets = [0, 32], sizes = [16, 16], strides = [1, 1]} : vector<16x64xf32> to vector<16x16xf32>
    %119 = vector.broadcast %117 : vector<16x1xf32> to vector<16x16xf32>
    %120 = arith.mulf %119, %118 : vector<16x16xf32>
    %121 = arith.addf %116, %120 : vector<16x16xf32>
    %122 = vector.extract_strided_slice %0 {offsets = [0, 3], sizes = [16, 1], strides = [1, 1]} : vector<16x4xf32> to vector<16x1xf32>
    %123 = vector.extract_strided_slice %106 {offsets = [0, 48], sizes = [16, 16], strides = [1, 1]} : vector<16x64xf32> to vector<16x16xf32>
    %124 = vector.broadcast %122 : vector<16x1xf32> to vector<16x16xf32>
    %125 = arith.mulf %124, %123 : vector<16x16xf32>
    %126 = arith.addf %121, %125 : vector<16x16xf32>
    %127 = arith.negf %126 : vector<16x16xf32>
    %128 = math.exp %127 : vector<16x16xf32>
    %cst_55 = arith.constant 1.000000e+00 : f32
    %129 = vector.broadcast %cst_55 : f32 to vector<16x16xf32>
    %130 = arith.addf %129, %128 : vector<16x16xf32>
    %131 = arith.divf %129, %130 : vector<16x16xf32>
    %132 = vector.extract_strided_slice %131 {offsets = [0, 0], sizes = [16, 8], strides = [1, 1]} : vector<16x16xf32> to vector<16x8xf32>
    %133 = vector.extract_strided_slice %131 {offsets = [0, 8], sizes = [16, 8], strides = [1, 1]} : vector<16x16xf32> to vector<16x8xf32>
    %134 = arith.mulf %132, %93 : vector<16x8xf32>
    %135 = tpu.concatenate %98, %134 in 1 : vector<16x2xf32>, vector<16x8xf32> -> vector<16x10xf32>
    %cst_56 = arith.constant dense<0.000000e+00> : vector<16x10xf32>
    %136 = tpu.matmul %100, %135, %cst_56 {dimension_numbers = #tpu.dot_dimension_numbers<[1], [0], [0], [1], [0, 0, 1, 1], [], []>} : vector<16x16xf32>, vector<16x10xf32>, vector<16x10xf32> -> vector<16x10xf32>
    %137 = tpu.concatenate %135, %136 in 1 : vector<16x10xf32>, vector<16x10xf32> -> vector<16x20xf32>
    %cst_57 = arith.constant dense<0.000000e+00> : vector<16x32xf32>
    %138 = tpu.matmul %137, %2, %cst_57 {dimension_numbers = #tpu.dot_dimension_numbers<[1], [0], [0], [1], [0, 0, 1, 1], [], []>} : vector<16x20xf32>, vector<20x32xf32>, vector<16x32xf32> -> vector<16x32xf32>
    %139 = vector.extract_strided_slice %0 {offsets = [0, 0], sizes = [16, 1], strides = [1, 1]} : vector<16x4xf32> to vector<16x1xf32>
    %140 = vector.extract_strided_slice %138 {offsets = [0, 0], sizes = [16, 8], strides = [1, 1]} : vector<16x32xf32> to vector<16x8xf32>
    %141 = vector.broadcast %139 : vector<16x1xf32> to vector<16x8xf32>
    %142 = arith.mulf %141, %140 : vector<16x8xf32>
    %143 = arith.addf %6, %142 : vector<16x8xf32>
    %144 = vector.extract_strided_slice %0 {offsets = [0, 1], sizes = [16, 1], strides = [1, 1]} : vector<16x4xf32> to vector<16x1xf32>
    %145 = vector.extract_strided_slice %138 {offsets = [0, 8], sizes = [16, 8], strides = [1, 1]} : vector<16x32xf32> to vector<16x8xf32>
    %146 = vector.broadcast %144 : vector<16x1xf32> to vector<16x8xf32>
    %147 = arith.mulf %146, %145 : vector<16x8xf32>
    %148 = arith.addf %143, %147 : vector<16x8xf32>
    %149 = vector.extract_strided_slice %0 {offsets = [0, 2], sizes = [16, 1], strides = [1, 1]} : vector<16x4xf32> to vector<16x1xf32>
    %150 = vector.extract_strided_slice %138 {offsets = [0, 16], sizes = [16, 8], strides = [1, 1]} : vector<16x32xf32> to vector<16x8xf32>
    %151 = vector.broadcast %149 : vector<16x1xf32> to vector<16x8xf32>
    %152 = arith.mulf %151, %150 : vector<16x8xf32>
    %153 = arith.addf %148, %152 : vector<16x8xf32>
    %154 = vector.extract_strided_slice %0 {offsets = [0, 3], sizes = [16, 1], strides = [1, 1]} : vector<16x4xf32> to vector<16x1xf32>
    %155 = vector.extract_strided_slice %138 {offsets = [0, 24], sizes = [16, 8], strides = [1, 1]} : vector<16x32xf32> to vector<16x8xf32>
    %156 = vector.broadcast %154 : vector<16x1xf32> to vector<16x8xf32>
    %157 = arith.mulf %156, %155 : vector<16x8xf32>
    %158 = arith.addf %153, %157 : vector<16x8xf32>
    %159 = math.tanh %158 : vector<16x8xf32>
    %160 = arith.mulf %133, %93 : vector<16x8xf32>
    %cst_58 = arith.constant 1.000000e+00 : f32
    %161 = vector.broadcast %cst_58 : f32 to vector<16x8xf32>
    %162 = arith.subf %161, %133 : vector<16x8xf32>
    %163 = arith.mulf %162, %159 : vector<16x8xf32>
    %164 = arith.addf %160, %163 : vector<16x8xf32>
    %165 = vector.broadcast %102 : vector<16x1xf32> to vector<16x8xf32>
    %166 = arith.mulf %165, %164 : vector<16x8xf32>
    %cst_59 = arith.constant 1.000000e+00 : f32
    %167 = vector.broadcast %cst_59 : f32 to vector<16x1xf32>
    %168 = arith.subf %167, %102 : vector<16x1xf32>
    %169 = vector.broadcast %168 : vector<16x1xf32> to vector<16x8xf32>
    %170 = arith.mulf %169, %90 : vector<16x8xf32>
    %171 = arith.addf %166, %170 : vector<16x8xf32>
    %cst_60 = arith.constant 8.000000e-01 : f32
    %172 = vector.broadcast %cst_60 : f32 to vector<16x8xf32>
    %173 = arith.mulf %172, %90 : vector<16x8xf32>
    %cst_61 = arith.constant 2.000000e-01 : f32
    %174 = vector.broadcast %cst_61 : f32 to vector<16x8xf32>
    %175 = arith.mulf %174, %171 : vector<16x8xf32>
    %176 = arith.addf %173, %175 : vector<16x8xf32>
    %cst_62 = arith.constant 2.000000e-01 : f32
    %177 = vector.broadcast %cst_62 : f32 to vector<16x8xf32>
    %178 = arith.mulf %177, %171 : vector<16x8xf32>
    %179 = arith.addf %164, %178 : vector<16x8xf32>
    %c0_63 = arith.constant 0 : index
    %c1_64 = arith.constant 1 : index
    %c0_65 = arith.constant 0 : index
    %c0_66 = arith.constant 0 : index
    %180 = vector.load %arg11[%c0_63, %c1_64, %c0_65, %c0_66] : memref<1x8x16x8xf32, #tpu.memory_space<vmem>>, vector<1x1x16x8xf32>
    %181 = vector.shape_cast %180 : vector<1x1x16x8xf32> to vector<16x8xf32>
    %182 = vector.shape_cast %179 : vector<16x8xf32> to vector<1x1x16x8xf32>
    tpu.vector_store %arg11[%c0_63, %c1_64, %c0_65, %c0_66], %182 {strides = array<i32>} : memref<1x8x16x8xf32, #tpu.memory_space<vmem>>, vector<1x1x16x8xf32>,
    %c0_67 = arith.constant 0 : index
    %c2 = arith.constant 2 : index
    %c0_68 = arith.constant 0 : index
    %c0_69 = arith.constant 0 : index
    %183 = vector.load %arg1[%c0_67, %c2, %c0_68, %c0_69] : memref<1x8x16x2xf32, #tpu.memory_space<vmem>>, vector<1x1x16x2xf32>
    %184 = vector.shape_cast %183 : vector<1x1x16x2xf32> to vector<16x2xf32>
    %c0_70 = arith.constant 0 : index
    %c2_71 = arith.constant 2 : index
    %c0_72 = arith.constant 0 : index
    %c0_73 = arith.constant 0 : index
    %185 = vector.load %arg2[%c0_70, %c2_71, %c0_72, %c0_73] : memref<1x8x16x16xf32, #tpu.memory_space<vmem>>, vector<1x1x16x16xf32>
    %186 = vector.shape_cast %185 : vector<1x1x16x16xf32> to vector<16x16xf32>
    %c0_74 = arith.constant 0 : index
    %c2_75 = arith.constant 2 : index
    %c0_76 = arith.constant 0 : index
    %c0_77 = arith.constant 0 : index
    %187 = vector.load %arg3[%c0_74, %c2_75, %c0_76, %c0_77] : memref<1x8x16x1xf32, #tpu.memory_space<vmem>>, vector<1x1x16x1xf32>
    %188 = vector.shape_cast %187 : vector<1x1x16x1xf32> to vector<16x1xf32>
    %189 = tpu.concatenate %184, %179 in 1 : vector<16x2xf32>, vector<16x8xf32> -> vector<16x10xf32>
    %cst_78 = arith.constant dense<0.000000e+00> : vector<16x10xf32>
    %190 = tpu.matmul %186, %189, %cst_78 {dimension_numbers = #tpu.dot_dimension_numbers<[1], [0], [0], [1], [0, 0, 1, 1], [], []>} : vector<16x16xf32>, vector<16x10xf32>, vector<16x10xf32> -> vector<16x10xf32>
    %191 = tpu.concatenate %189, %190 in 1 : vector<16x10xf32>, vector<16x10xf32> -> vector<16x20xf32>
    %cst_79 = arith.constant dense<0.000000e+00> : vector<16x64xf32>
    %192 = tpu.matmul %191, %1, %cst_79 {dimension_numbers = #tpu.dot_dimension_numbers<[1], [0], [0], [1], [0, 0, 1, 1], [], []>} : vector<16x20xf32>, vector<20x64xf32>, vector<16x64xf32> -> vector<16x64xf32>
    %193 = vector.extract_strided_slice %0 {offsets = [0, 0], sizes = [16, 1], strides = [1, 1]} : vector<16x4xf32> to vector<16x1xf32>
    %194 = vector.extract_strided_slice %192 {offsets = [0, 0], sizes = [16, 16], strides = [1, 1]} : vector<16x64xf32> to vector<16x16xf32>
    %195 = vector.broadcast %193 : vector<16x1xf32> to vector<16x16xf32>
    %196 = arith.mulf %195, %194 : vector<16x16xf32>
    %197 = arith.addf %4, %196 : vector<16x16xf32>
    %198 = vector.extract_strided_slice %0 {offsets = [0, 1], sizes = [16, 1], strides = [1, 1]} : vector<16x4xf32> to vector<16x1xf32>
    %199 = vector.extract_strided_slice %192 {offsets = [0, 16], sizes = [16, 16], strides = [1, 1]} : vector<16x64xf32> to vector<16x16xf32>
    %200 = vector.broadcast %198 : vector<16x1xf32> to vector<16x16xf32>
    %201 = arith.mulf %200, %199 : vector<16x16xf32>
    %202 = arith.addf %197, %201 : vector<16x16xf32>
    %203 = vector.extract_strided_slice %0 {offsets = [0, 2], sizes = [16, 1], strides = [1, 1]} : vector<16x4xf32> to vector<16x1xf32>
    %204 = vector.extract_strided_slice %192 {offsets = [0, 32], sizes = [16, 16], strides = [1, 1]} : vector<16x64xf32> to vector<16x16xf32>
    %205 = vector.broadcast %203 : vector<16x1xf32> to vector<16x16xf32>
    %206 = arith.mulf %205, %204 : vector<16x16xf32>
    %207 = arith.addf %202, %206 : vector<16x16xf32>
    %208 = vector.extract_strided_slice %0 {offsets = [0, 3], sizes = [16, 1], strides = [1, 1]} : vector<16x4xf32> to vector<16x1xf32>
    %209 = vector.extract_strided_slice %192 {offsets = [0, 48], sizes = [16, 16], strides = [1, 1]} : vector<16x64xf32> to vector<16x16xf32>
    %210 = vector.broadcast %208 : vector<16x1xf32> to vector<16x16xf32>
    %211 = arith.mulf %210, %209 : vector<16x16xf32>
    %212 = arith.addf %207, %211 : vector<16x16xf32>
    %213 = arith.negf %212 : vector<16x16xf32>
    %214 = math.exp %213 : vector<16x16xf32>
    %cst_80 = arith.constant 1.000000e+00 : f32
    %215 = vector.broadcast %cst_80 : f32 to vector<16x16xf32>
    %216 = arith.addf %215, %214 : vector<16x16xf32>
    %217 = arith.divf %215, %216 : vector<16x16xf32>
    %218 = vector.extract_strided_slice %217 {offsets = [0, 0], sizes = [16, 8], strides = [1, 1]} : vector<16x16xf32> to vector<16x8xf32>
    %219 = vector.extract_strided_slice %217 {offsets = [0, 8], sizes = [16, 8], strides = [1, 1]} : vector<16x16xf32> to vector<16x8xf32>
    %220 = arith.mulf %218, %179 : vector<16x8xf32>
    %221 = tpu.concatenate %184, %220 in 1 : vector<16x2xf32>, vector<16x8xf32> -> vector<16x10xf32>
    %cst_81 = arith.constant dense<0.000000e+00> : vector<16x10xf32>
    %222 = tpu.matmul %186, %221, %cst_81 {dimension_numbers = #tpu.dot_dimension_numbers<[1], [0], [0], [1], [0, 0, 1, 1], [], []>} : vector<16x16xf32>, vector<16x10xf32>, vector<16x10xf32> -> vector<16x10xf32>
    %223 = tpu.concatenate %221, %222 in 1 : vector<16x10xf32>, vector<16x10xf32> -> vector<16x20xf32>
    %cst_82 = arith.constant dense<0.000000e+00> : vector<16x32xf32>
    %224 = tpu.matmul %223, %2, %cst_82 {dimension_numbers = #tpu.dot_dimension_numbers<[1], [0], [0], [1], [0, 0, 1, 1], [], []>} : vector<16x20xf32>, vector<20x32xf32>, vector<16x32xf32> -> vector<16x32xf32>
    %225 = vector.extract_strided_slice %0 {offsets = [0, 0], sizes = [16, 1], strides = [1, 1]} : vector<16x4xf32> to vector<16x1xf32>
    %226 = vector.extract_strided_slice %224 {offsets = [0, 0], sizes = [16, 8], strides = [1, 1]} : vector<16x32xf32> to vector<16x8xf32>
    %227 = vector.broadcast %225 : vector<16x1xf32> to vector<16x8xf32>
    %228 = arith.mulf %227, %226 : vector<16x8xf32>
    %229 = arith.addf %6, %228 : vector<16x8xf32>
    %230 = vector.extract_strided_slice %0 {offsets = [0, 1], sizes = [16, 1], strides = [1, 1]} : vector<16x4xf32> to vector<16x1xf32>
    %231 = vector.extract_strided_slice %224 {offsets = [0, 8], sizes = [16, 8], strides = [1, 1]} : vector<16x32xf32> to vector<16x8xf32>
    %232 = vector.broadcast %230 : vector<16x1xf32> to vector<16x8xf32>
    %233 = arith.mulf %232, %231 : vector<16x8xf32>
    %234 = arith.addf %229, %233 : vector<16x8xf32>
    %235 = vector.extract_strided_slice %0 {offsets = [0, 2], sizes = [16, 1], strides = [1, 1]} : vector<16x4xf32> to vector<16x1xf32>
    %236 = vector.extract_strided_slice %224 {offsets = [0, 16], sizes = [16, 8], strides = [1, 1]} : vector<16x32xf32> to vector<16x8xf32>
    %237 = vector.broadcast %235 : vector<16x1xf32> to vector<16x8xf32>
    %238 = arith.mulf %237, %236 : vector<16x8xf32>
    %239 = arith.addf %234, %238 : vector<16x8xf32>
    %240 = vector.extract_strided_slice %0 {offsets = [0, 3], sizes = [16, 1], strides = [1, 1]} : vector<16x4xf32> to vector<16x1xf32>
    %241 = vector.extract_strided_slice %224 {offsets = [0, 24], sizes = [16, 8], strides = [1, 1]} : vector<16x32xf32> to vector<16x8xf32>
    %242 = vector.broadcast %240 : vector<16x1xf32> to vector<16x8xf32>
    %243 = arith.mulf %242, %241 : vector<16x8xf32>
    %244 = arith.addf %239, %243 : vector<16x8xf32>
    %245 = math.tanh %244 : vector<16x8xf32>
    %246 = arith.mulf %219, %179 : vector<16x8xf32>
    %cst_83 = arith.constant 1.000000e+00 : f32
    %247 = vector.broadcast %cst_83 : f32 to vector<16x8xf32>
    %248 = arith.subf %247, %219 : vector<16x8xf32>
    %249 = arith.mulf %248, %245 : vector<16x8xf32>
    %250 = arith.addf %246, %249 : vector<16x8xf32>
    %251 = vector.broadcast %188 : vector<16x1xf32> to vector<16x8xf32>
    %252 = arith.mulf %251, %250 : vector<16x8xf32>
    %cst_84 = arith.constant 1.000000e+00 : f32
    %253 = vector.broadcast %cst_84 : f32 to vector<16x1xf32>
    %254 = arith.subf %253, %188 : vector<16x1xf32>
    %255 = vector.broadcast %254 : vector<16x1xf32> to vector<16x8xf32>
    %256 = arith.mulf %255, %176 : vector<16x8xf32>
    %257 = arith.addf %252, %256 : vector<16x8xf32>
    %cst_85 = arith.constant 8.000000e-01 : f32
    %258 = vector.broadcast %cst_85 : f32 to vector<16x8xf32>
    %259 = arith.mulf %258, %176 : vector<16x8xf32>
    %cst_86 = arith.constant 2.000000e-01 : f32
    %260 = vector.broadcast %cst_86 : f32 to vector<16x8xf32>
    %261 = arith.mulf %260, %257 : vector<16x8xf32>
    %262 = arith.addf %259, %261 : vector<16x8xf32>
    %cst_87 = arith.constant 2.000000e-01 : f32
    %263 = vector.broadcast %cst_87 : f32 to vector<16x8xf32>
    %264 = arith.mulf %263, %257 : vector<16x8xf32>
    %265 = arith.addf %250, %264 : vector<16x8xf32>
    %c0_88 = arith.constant 0 : index
    %c2_89 = arith.constant 2 : index
    %c0_90 = arith.constant 0 : index
    %c0_91 = arith.constant 0 : index
    %266 = vector.load %arg11[%c0_88, %c2_89, %c0_90, %c0_91] : memref<1x8x16x8xf32, #tpu.memory_space<vmem>>, vector<1x1x16x8xf32>
    %267 = vector.shape_cast %266 : vector<1x1x16x8xf32> to vector<16x8xf32>
    %268 = vector.shape_cast %265 : vector<16x8xf32> to vector<1x1x16x8xf32>
    tpu.vector_store %arg11[%c0_88, %c2_89, %c0_90, %c0_91], %268 {strides = array<i32>} : memref<1x8x16x8xf32, #tpu.memory_space<vmem>>, vector<1x1x16x8xf32>,
    %c0_92 = arith.constant 0 : index
    %c3 = arith.constant 3 : index
    %c0_93 = arith.constant 0 : index
    %c0_94 = arith.constant 0 : index
    %269 = vector.load %arg1[%c0_92, %c3, %c0_93, %c0_94] : memref<1x8x16x2xf32, #tpu.memory_space<vmem>>, vector<1x1x16x2xf32>
    %270 = vector.shape_cast %269 : vector<1x1x16x2xf32> to vector<16x2xf32>
    %c0_95 = arith.constant 0 : index
    %c3_96 = arith.constant 3 : index
    %c0_97 = arith.constant 0 : index
    %c0_98 = arith.constant 0 : index
    %271 = vector.load %arg2[%c0_95, %c3_96, %c0_97, %c0_98] : memref<1x8x16x16xf32, #tpu.memory_space<vmem>>, vector<1x1x16x16xf32>
    %272 = vector.shape_cast %271 : vector<1x1x16x16xf32> to vector<16x16xf32>
    %c0_99 = arith.constant 0 : index
    %c3_100 = arith.constant 3 : index
    %c0_101 = arith.constant 0 : index
    %c0_102 = arith.constant 0 : index
    %273 = vector.load %arg3[%c0_99, %c3_100, %c0_101, %c0_102] : memref<1x8x16x1xf32, #tpu.memory_space<vmem>>, vector<1x1x16x1xf32>
    %274 = vector.shape_cast %273 : vector<1x1x16x1xf32> to vector<16x1xf32>
    %275 = tpu.concatenate %270, %265 in 1 : vector<16x2xf32>, vector<16x8xf32> -> vector<16x10xf32>
    %cst_103 = arith.constant dense<0.000000e+00> : vector<16x10xf32>
    %276 = tpu.matmul %272, %275, %cst_103 {dimension_numbers = #tpu.dot_dimension_numbers<[1], [0], [0], [1], [0, 0, 1, 1], [], []>} : vector<16x16xf32>, vector<16x10xf32>, vector<16x10xf32> -> vector<16x10xf32>
    %277 = tpu.concatenate %275, %276 in 1 : vector<16x10xf32>, vector<16x10xf32> -> vector<16x20xf32>
    %cst_104 = arith.constant dense<0.000000e+00> : vector<16x64xf32>
    %278 = tpu.matmul %277, %1, %cst_104 {dimension_numbers = #tpu.dot_dimension_numbers<[1], [0], [0], [1], [0, 0, 1, 1], [], []>} : vector<16x20xf32>, vector<20x64xf32>, vector<16x64xf32> -> vector<16x64xf32>
    %279 = vector.extract_strided_slice %0 {offsets = [0, 0], sizes = [16, 1], strides = [1, 1]} : vector<16x4xf32> to vector<16x1xf32>
    %280 = vector.extract_strided_slice %278 {offsets = [0, 0], sizes = [16, 16], strides = [1, 1]} : vector<16x64xf32> to vector<16x16xf32>
    %281 = vector.broadcast %279 : vector<16x1xf32> to vector<16x16xf32>
    %282 = arith.mulf %281, %280 : vector<16x16xf32>
    %283 = arith.addf %4, %282 : vector<16x16xf32>
    %284 = vector.extract_strided_slice %0 {offsets = [0, 1], sizes = [16, 1], strides = [1, 1]} : vector<16x4xf32> to vector<16x1xf32>
    %285 = vector.extract_strided_slice %278 {offsets = [0, 16], sizes = [16, 16], strides = [1, 1]} : vector<16x64xf32> to vector<16x16xf32>
    %286 = vector.broadcast %284 : vector<16x1xf32> to vector<16x16xf32>
    %287 = arith.mulf %286, %285 : vector<16x16xf32>
    %288 = arith.addf %283, %287 : vector<16x16xf32>
    %289 = vector.extract_strided_slice %0 {offsets = [0, 2], sizes = [16, 1], strides = [1, 1]} : vector<16x4xf32> to vector<16x1xf32>
    %290 = vector.extract_strided_slice %278 {offsets = [0, 32], sizes = [16, 16], strides = [1, 1]} : vector<16x64xf32> to vector<16x16xf32>
    %291 = vector.broadcast %289 : vector<16x1xf32> to vector<16x16xf32>
    %292 = arith.mulf %291, %290 : vector<16x16xf32>
    %293 = arith.addf %288, %292 : vector<16x16xf32>
    %294 = vector.extract_strided_slice %0 {offsets = [0, 3], sizes = [16, 1], strides = [1, 1]} : vector<16x4xf32> to vector<16x1xf32>
    %295 = vector.extract_strided_slice %278 {offsets = [0, 48], sizes = [16, 16], strides = [1, 1]} : vector<16x64xf32> to vector<16x16xf32>
    %296 = vector.broadcast %294 : vector<16x1xf32> to vector<16x16xf32>
    %297 = arith.mulf %296, %295 : vector<16x16xf32>
    %298 = arith.addf %293, %297 : vector<16x16xf32>
    %299 = arith.negf %298 : vector<16x16xf32>
    %300 = math.exp %299 : vector<16x16xf32>
    %cst_105 = arith.constant 1.000000e+00 : f32
    %301 = vector.broadcast %cst_105 : f32 to vector<16x16xf32>
    %302 = arith.addf %301, %300 : vector<16x16xf32>
    %303 = arith.divf %301, %302 : vector<16x16xf32>
    %304 = vector.extract_strided_slice %303 {offsets = [0, 0], sizes = [16, 8], strides = [1, 1]} : vector<16x16xf32> to vector<16x8xf32>
    %305 = vector.extract_strided_slice %303 {offsets = [0, 8], sizes = [16, 8], strides = [1, 1]} : vector<16x16xf32> to vector<16x8xf32>
    %306 = arith.mulf %304, %265 : vector<16x8xf32>
    %307 = tpu.concatenate %270, %306 in 1 : vector<16x2xf32>, vector<16x8xf32> -> vector<16x10xf32>
    %cst_106 = arith.constant dense<0.000000e+00> : vector<16x10xf32>
    %308 = tpu.matmul %272, %307, %cst_106 {dimension_numbers = #tpu.dot_dimension_numbers<[1], [0], [0], [1], [0, 0, 1, 1], [], []>} : vector<16x16xf32>, vector<16x10xf32>, vector<16x10xf32> -> vector<16x10xf32>
    %309 = tpu.concatenate %307, %308 in 1 : vector<16x10xf32>, vector<16x10xf32> -> vector<16x20xf32>
    %cst_107 = arith.constant dense<0.000000e+00> : vector<16x32xf32>
    %310 = tpu.matmul %309, %2, %cst_107 {dimension_numbers = #tpu.dot_dimension_numbers<[1], [0], [0], [1], [0, 0, 1, 1], [], []>} : vector<16x20xf32>, vector<20x32xf32>, vector<16x32xf32> -> vector<16x32xf32>
    %311 = vector.extract_strided_slice %0 {offsets = [0, 0], sizes = [16, 1], strides = [1, 1]} : vector<16x4xf32> to vector<16x1xf32>
    %312 = vector.extract_strided_slice %310 {offsets = [0, 0], sizes = [16, 8], strides = [1, 1]} : vector<16x32xf32> to vector<16x8xf32>
    %313 = vector.broadcast %311 : vector<16x1xf32> to vector<16x8xf32>
    %314 = arith.mulf %313, %312 : vector<16x8xf32>
    %315 = arith.addf %6, %314 : vector<16x8xf32>
    %316 = vector.extract_strided_slice %0 {offsets = [0, 1], sizes = [16, 1], strides = [1, 1]} : vector<16x4xf32> to vector<16x1xf32>
    %317 = vector.extract_strided_slice %310 {offsets = [0, 8], sizes = [16, 8], strides = [1, 1]} : vector<16x32xf32> to vector<16x8xf32>
    %318 = vector.broadcast %316 : vector<16x1xf32> to vector<16x8xf32>
    %319 = arith.mulf %318, %317 : vector<16x8xf32>
    %320 = arith.addf %315, %319 : vector<16x8xf32>
    %321 = vector.extract_strided_slice %0 {offsets = [0, 2], sizes = [16, 1], strides = [1, 1]} : vector<16x4xf32> to vector<16x1xf32>
    %322 = vector.extract_strided_slice %310 {offsets = [0, 16], sizes = [16, 8], strides = [1, 1]} : vector<16x32xf32> to vector<16x8xf32>
    %323 = vector.broadcast %321 : vector<16x1xf32> to vector<16x8xf32>
    %324 = arith.mulf %323, %322 : vector<16x8xf32>
    %325 = arith.addf %320, %324 : vector<16x8xf32>
    %326 = vector.extract_strided_slice %0 {offsets = [0, 3], sizes = [16, 1], strides = [1, 1]} : vector<16x4xf32> to vector<16x1xf32>
    %327 = vector.extract_strided_slice %310 {offsets = [0, 24], sizes = [16, 8], strides = [1, 1]} : vector<16x32xf32> to vector<16x8xf32>
    %328 = vector.broadcast %326 : vector<16x1xf32> to vector<16x8xf32>
    %329 = arith.mulf %328, %327 : vector<16x8xf32>
    %330 = arith.addf %325, %329 : vector<16x8xf32>
    %331 = math.tanh %330 : vector<16x8xf32>
    %332 = arith.mulf %305, %265 : vector<16x8xf32>
    %cst_108 = arith.constant 1.000000e+00 : f32
    %333 = vector.broadcast %cst_108 : f32 to vector<16x8xf32>
    %334 = arith.subf %333, %305 : vector<16x8xf32>
    %335 = arith.mulf %334, %331 : vector<16x8xf32>
    %336 = arith.addf %332, %335 : vector<16x8xf32>
    %337 = vector.broadcast %274 : vector<16x1xf32> to vector<16x8xf32>
    %338 = arith.mulf %337, %336 : vector<16x8xf32>
    %cst_109 = arith.constant 1.000000e+00 : f32
    %339 = vector.broadcast %cst_109 : f32 to vector<16x1xf32>
    %340 = arith.subf %339, %274 : vector<16x1xf32>
    %341 = vector.broadcast %340 : vector<16x1xf32> to vector<16x8xf32>
    %342 = arith.mulf %341, %262 : vector<16x8xf32>
    %343 = arith.addf %338, %342 : vector<16x8xf32>
    %cst_110 = arith.constant 8.000000e-01 : f32
    %344 = vector.broadcast %cst_110 : f32 to vector<16x8xf32>
    %345 = arith.mulf %344, %262 : vector<16x8xf32>
    %cst_111 = arith.constant 2.000000e-01 : f32
    %346 = vector.broadcast %cst_111 : f32 to vector<16x8xf32>
    %347 = arith.mulf %346, %343 : vector<16x8xf32>
    %348 = arith.addf %345, %347 : vector<16x8xf32>
    %cst_112 = arith.constant 2.000000e-01 : f32
    %349 = vector.broadcast %cst_112 : f32 to vector<16x8xf32>
    %350 = arith.mulf %349, %343 : vector<16x8xf32>
    %351 = arith.addf %336, %350 : vector<16x8xf32>
    %c0_113 = arith.constant 0 : index
    %c3_114 = arith.constant 3 : index
    %c0_115 = arith.constant 0 : index
    %c0_116 = arith.constant 0 : index
    %352 = vector.load %arg11[%c0_113, %c3_114, %c0_115, %c0_116] : memref<1x8x16x8xf32, #tpu.memory_space<vmem>>, vector<1x1x16x8xf32>
    %353 = vector.shape_cast %352 : vector<1x1x16x8xf32> to vector<16x8xf32>
    %354 = vector.shape_cast %351 : vector<16x8xf32> to vector<1x1x16x8xf32>
    tpu.vector_store %arg11[%c0_113, %c3_114, %c0_115, %c0_116], %354 {strides = array<i32>} : memref<1x8x16x8xf32, #tpu.memory_space<vmem>>, vector<1x1x16x8xf32>,
    %c0_117 = arith.constant 0 : index
    %c4 = arith.constant 4 : index
    %c0_118 = arith.constant 0 : index
    %c0_119 = arith.constant 0 : index
    %355 = vector.load %arg1[%c0_117, %c4, %c0_118, %c0_119] : memref<1x8x16x2xf32, #tpu.memory_space<vmem>>, vector<1x1x16x2xf32>
    %356 = vector.shape_cast %355 : vector<1x1x16x2xf32> to vector<16x2xf32>
    %c0_120 = arith.constant 0 : index
    %c4_121 = arith.constant 4 : index
    %c0_122 = arith.constant 0 : index
    %c0_123 = arith.constant 0 : index
    %357 = vector.load %arg2[%c0_120, %c4_121, %c0_122, %c0_123] : memref<1x8x16x16xf32, #tpu.memory_space<vmem>>, vector<1x1x16x16xf32>
    %358 = vector.shape_cast %357 : vector<1x1x16x16xf32> to vector<16x16xf32>
    %c0_124 = arith.constant 0 : index
    %c4_125 = arith.constant 4 : index
    %c0_126 = arith.constant 0 : index
    %c0_127 = arith.constant 0 : index
    %359 = vector.load %arg3[%c0_124, %c4_125, %c0_126, %c0_127] : memref<1x8x16x1xf32, #tpu.memory_space<vmem>>, vector<1x1x16x1xf32>
    %360 = vector.shape_cast %359 : vector<1x1x16x1xf32> to vector<16x1xf32>
    %361 = tpu.concatenate %356, %351 in 1 : vector<16x2xf32>, vector<16x8xf32> -> vector<16x10xf32>
    %cst_128 = arith.constant dense<0.000000e+00> : vector<16x10xf32>
    %362 = tpu.matmul %358, %361, %cst_128 {dimension_numbers = #tpu.dot_dimension_numbers<[1], [0], [0], [1], [0, 0, 1, 1], [], []>} : vector<16x16xf32>, vector<16x10xf32>, vector<16x10xf32> -> vector<16x10xf32>
    %363 = tpu.concatenate %361, %362 in 1 : vector<16x10xf32>, vector<16x10xf32> -> vector<16x20xf32>
    %cst_129 = arith.constant dense<0.000000e+00> : vector<16x64xf32>
    %364 = tpu.matmul %363, %1, %cst_129 {dimension_numbers = #tpu.dot_dimension_numbers<[1], [0], [0], [1], [0, 0, 1, 1], [], []>} : vector<16x20xf32>, vector<20x64xf32>, vector<16x64xf32> -> vector<16x64xf32>
    %365 = vector.extract_strided_slice %0 {offsets = [0, 0], sizes = [16, 1], strides = [1, 1]} : vector<16x4xf32> to vector<16x1xf32>
    %366 = vector.extract_strided_slice %364 {offsets = [0, 0], sizes = [16, 16], strides = [1, 1]} : vector<16x64xf32> to vector<16x16xf32>
    %367 = vector.broadcast %365 : vector<16x1xf32> to vector<16x16xf32>
    %368 = arith.mulf %367, %366 : vector<16x16xf32>
    %369 = arith.addf %4, %368 : vector<16x16xf32>
    %370 = vector.extract_strided_slice %0 {offsets = [0, 1], sizes = [16, 1], strides = [1, 1]} : vector<16x4xf32> to vector<16x1xf32>
    %371 = vector.extract_strided_slice %364 {offsets = [0, 16], sizes = [16, 16], strides = [1, 1]} : vector<16x64xf32> to vector<16x16xf32>
    %372 = vector.broadcast %370 : vector<16x1xf32> to vector<16x16xf32>
    %373 = arith.mulf %372, %371 : vector<16x16xf32>
    %374 = arith.addf %369, %373 : vector<16x16xf32>
    %375 = vector.extract_strided_slice %0 {offsets = [0, 2], sizes = [16, 1], strides = [1, 1]} : vector<16x4xf32> to vector<16x1xf32>
    %376 = vector.extract_strided_slice %364 {offsets = [0, 32], sizes = [16, 16], strides = [1, 1]} : vector<16x64xf32> to vector<16x16xf32>
    %377 = vector.broadcast %375 : vector<16x1xf32> to vector<16x16xf32>
    %378 = arith.mulf %377, %376 : vector<16x16xf32>
    %379 = arith.addf %374, %378 : vector<16x16xf32>
    %380 = vector.extract_strided_slice %0 {offsets = [0, 3], sizes = [16, 1], strides = [1, 1]} : vector<16x4xf32> to vector<16x1xf32>
    %381 = vector.extract_strided_slice %364 {offsets = [0, 48], sizes = [16, 16], strides = [1, 1]} : vector<16x64xf32> to vector<16x16xf32>
    %382 = vector.broadcast %380 : vector<16x1xf32> to vector<16x16xf32>
    %383 = arith.mulf %382, %381 : vector<16x16xf32>
    %384 = arith.addf %379, %383 : vector<16x16xf32>
    %385 = arith.negf %384 : vector<16x16xf32>
    %386 = math.exp %385 : vector<16x16xf32>
    %cst_130 = arith.constant 1.000000e+00 : f32
    %387 = vector.broadcast %cst_130 : f32 to vector<16x16xf32>
    %388 = arith.addf %387, %386 : vector<16x16xf32>
    %389 = arith.divf %387, %388 : vector<16x16xf32>
    %390 = vector.extract_strided_slice %389 {offsets = [0, 0], sizes = [16, 8], strides = [1, 1]} : vector<16x16xf32> to vector<16x8xf32>
    %391 = vector.extract_strided_slice %389 {offsets = [0, 8], sizes = [16, 8], strides = [1, 1]} : vector<16x16xf32> to vector<16x8xf32>
    %392 = arith.mulf %390, %351 : vector<16x8xf32>
    %393 = tpu.concatenate %356, %392 in 1 : vector<16x2xf32>, vector<16x8xf32> -> vector<16x10xf32>
    %cst_131 = arith.constant dense<0.000000e+00> : vector<16x10xf32>
    %394 = tpu.matmul %358, %393, %cst_131 {dimension_numbers = #tpu.dot_dimension_numbers<[1], [0], [0], [1], [0, 0, 1, 1], [], []>} : vector<16x16xf32>, vector<16x10xf32>, vector<16x10xf32> -> vector<16x10xf32>
    %395 = tpu.concatenate %393, %394 in 1 : vector<16x10xf32>, vector<16x10xf32> -> vector<16x20xf32>
    %cst_132 = arith.constant dense<0.000000e+00> : vector<16x32xf32>
    %396 = tpu.matmul %395, %2, %cst_132 {dimension_numbers = #tpu.dot_dimension_numbers<[1], [0], [0], [1], [0, 0, 1, 1], [], []>} : vector<16x20xf32>, vector<20x32xf32>, vector<16x32xf32> -> vector<16x32xf32>
    %397 = vector.extract_strided_slice %0 {offsets = [0, 0], sizes = [16, 1], strides = [1, 1]} : vector<16x4xf32> to vector<16x1xf32>
    %398 = vector.extract_strided_slice %396 {offsets = [0, 0], sizes = [16, 8], strides = [1, 1]} : vector<16x32xf32> to vector<16x8xf32>
    %399 = vector.broadcast %397 : vector<16x1xf32> to vector<16x8xf32>
    %400 = arith.mulf %399, %398 : vector<16x8xf32>
    %401 = arith.addf %6, %400 : vector<16x8xf32>
    %402 = vector.extract_strided_slice %0 {offsets = [0, 1], sizes = [16, 1], strides = [1, 1]} : vector<16x4xf32> to vector<16x1xf32>
    %403 = vector.extract_strided_slice %396 {offsets = [0, 8], sizes = [16, 8], strides = [1, 1]} : vector<16x32xf32> to vector<16x8xf32>
    %404 = vector.broadcast %402 : vector<16x1xf32> to vector<16x8xf32>
    %405 = arith.mulf %404, %403 : vector<16x8xf32>
    %406 = arith.addf %401, %405 : vector<16x8xf32>
    %407 = vector.extract_strided_slice %0 {offsets = [0, 2], sizes = [16, 1], strides = [1, 1]} : vector<16x4xf32> to vector<16x1xf32>
    %408 = vector.extract_strided_slice %396 {offsets = [0, 16], sizes = [16, 8], strides = [1, 1]} : vector<16x32xf32> to vector<16x8xf32>
    %409 = vector.broadcast %407 : vector<16x1xf32> to vector<16x8xf32>
    %410 = arith.mulf %409, %408 : vector<16x8xf32>
    %411 = arith.addf %406, %410 : vector<16x8xf32>
    %412 = vector.extract_strided_slice %0 {offsets = [0, 3], sizes = [16, 1], strides = [1, 1]} : vector<16x4xf32> to vector<16x1xf32>
    %413 = vector.extract_strided_slice %396 {offsets = [0, 24], sizes = [16, 8], strides = [1, 1]} : vector<16x32xf32> to vector<16x8xf32>
    %414 = vector.broadcast %412 : vector<16x1xf32> to vector<16x8xf32>
    %415 = arith.mulf %414, %413 : vector<16x8xf32>
    %416 = arith.addf %411, %415 : vector<16x8xf32>
    %417 = math.tanh %416 : vector<16x8xf32>
    %418 = arith.mulf %391, %351 : vector<16x8xf32>
    %cst_133 = arith.constant 1.000000e+00 : f32
    %419 = vector.broadcast %cst_133 : f32 to vector<16x8xf32>
    %420 = arith.subf %419, %391 : vector<16x8xf32>
    %421 = arith.mulf %420, %417 : vector<16x8xf32>
    %422 = arith.addf %418, %421 : vector<16x8xf32>
    %423 = vector.broadcast %360 : vector<16x1xf32> to vector<16x8xf32>
    %424 = arith.mulf %423, %422 : vector<16x8xf32>
    %cst_134 = arith.constant 1.000000e+00 : f32
    %425 = vector.broadcast %cst_134 : f32 to vector<16x1xf32>
    %426 = arith.subf %425, %360 : vector<16x1xf32>
    %427 = vector.broadcast %426 : vector<16x1xf32> to vector<16x8xf32>
    %428 = arith.mulf %427, %348 : vector<16x8xf32>
    %429 = arith.addf %424, %428 : vector<16x8xf32>
    %cst_135 = arith.constant 8.000000e-01 : f32
    %430 = vector.broadcast %cst_135 : f32 to vector<16x8xf32>
    %431 = arith.mulf %430, %348 : vector<16x8xf32>
    %cst_136 = arith.constant 2.000000e-01 : f32
    %432 = vector.broadcast %cst_136 : f32 to vector<16x8xf32>
    %433 = arith.mulf %432, %429 : vector<16x8xf32>
    %434 = arith.addf %431, %433 : vector<16x8xf32>
    %cst_137 = arith.constant 2.000000e-01 : f32
    %435 = vector.broadcast %cst_137 : f32 to vector<16x8xf32>
    %436 = arith.mulf %435, %429 : vector<16x8xf32>
    %437 = arith.addf %422, %436 : vector<16x8xf32>
    %c0_138 = arith.constant 0 : index
    %c4_139 = arith.constant 4 : index
    %c0_140 = arith.constant 0 : index
    %c0_141 = arith.constant 0 : index
    %438 = vector.load %arg11[%c0_138, %c4_139, %c0_140, %c0_141] : memref<1x8x16x8xf32, #tpu.memory_space<vmem>>, vector<1x1x16x8xf32>
    %439 = vector.shape_cast %438 : vector<1x1x16x8xf32> to vector<16x8xf32>
    %440 = vector.shape_cast %437 : vector<16x8xf32> to vector<1x1x16x8xf32>
    tpu.vector_store %arg11[%c0_138, %c4_139, %c0_140, %c0_141], %440 {strides = array<i32>} : memref<1x8x16x8xf32, #tpu.memory_space<vmem>>, vector<1x1x16x8xf32>,
    %c0_142 = arith.constant 0 : index
    %c5 = arith.constant 5 : index
    %c0_143 = arith.constant 0 : index
    %c0_144 = arith.constant 0 : index
    %441 = vector.load %arg1[%c0_142, %c5, %c0_143, %c0_144] : memref<1x8x16x2xf32, #tpu.memory_space<vmem>>, vector<1x1x16x2xf32>
    %442 = vector.shape_cast %441 : vector<1x1x16x2xf32> to vector<16x2xf32>
    %c0_145 = arith.constant 0 : index
    %c5_146 = arith.constant 5 : index
    %c0_147 = arith.constant 0 : index
    %c0_148 = arith.constant 0 : index
    %443 = vector.load %arg2[%c0_145, %c5_146, %c0_147, %c0_148] : memref<1x8x16x16xf32, #tpu.memory_space<vmem>>, vector<1x1x16x16xf32>
    %444 = vector.shape_cast %443 : vector<1x1x16x16xf32> to vector<16x16xf32>
    %c0_149 = arith.constant 0 : index
    %c5_150 = arith.constant 5 : index
    %c0_151 = arith.constant 0 : index
    %c0_152 = arith.constant 0 : index
    %445 = vector.load %arg3[%c0_149, %c5_150, %c0_151, %c0_152] : memref<1x8x16x1xf32, #tpu.memory_space<vmem>>, vector<1x1x16x1xf32>
    %446 = vector.shape_cast %445 : vector<1x1x16x1xf32> to vector<16x1xf32>
    %447 = tpu.concatenate %442, %437 in 1 : vector<16x2xf32>, vector<16x8xf32> -> vector<16x10xf32>
    %cst_153 = arith.constant dense<0.000000e+00> : vector<16x10xf32>
    %448 = tpu.matmul %444, %447, %cst_153 {dimension_numbers = #tpu.dot_dimension_numbers<[1], [0], [0], [1], [0, 0, 1, 1], [], []>} : vector<16x16xf32>, vector<16x10xf32>, vector<16x10xf32> -> vector<16x10xf32>
    %449 = tpu.concatenate %447, %448 in 1 : vector<16x10xf32>, vector<16x10xf32> -> vector<16x20xf32>
    %cst_154 = arith.constant dense<0.000000e+00> : vector<16x64xf32>
    %450 = tpu.matmul %449, %1, %cst_154 {dimension_numbers = #tpu.dot_dimension_numbers<[1], [0], [0], [1], [0, 0, 1, 1], [], []>} : vector<16x20xf32>, vector<20x64xf32>, vector<16x64xf32> -> vector<16x64xf32>
    %451 = vector.extract_strided_slice %0 {offsets = [0, 0], sizes = [16, 1], strides = [1, 1]} : vector<16x4xf32> to vector<16x1xf32>
    %452 = vector.extract_strided_slice %450 {offsets = [0, 0], sizes = [16, 16], strides = [1, 1]} : vector<16x64xf32> to vector<16x16xf32>
    %453 = vector.broadcast %451 : vector<16x1xf32> to vector<16x16xf32>
    %454 = arith.mulf %453, %452 : vector<16x16xf32>
    %455 = arith.addf %4, %454 : vector<16x16xf32>
    %456 = vector.extract_strided_slice %0 {offsets = [0, 1], sizes = [16, 1], strides = [1, 1]} : vector<16x4xf32> to vector<16x1xf32>
    %457 = vector.extract_strided_slice %450 {offsets = [0, 16], sizes = [16, 16], strides = [1, 1]} : vector<16x64xf32> to vector<16x16xf32>
    %458 = vector.broadcast %456 : vector<16x1xf32> to vector<16x16xf32>
    %459 = arith.mulf %458, %457 : vector<16x16xf32>
    %460 = arith.addf %455, %459 : vector<16x16xf32>
    %461 = vector.extract_strided_slice %0 {offsets = [0, 2], sizes = [16, 1], strides = [1, 1]} : vector<16x4xf32> to vector<16x1xf32>
    %462 = vector.extract_strided_slice %450 {offsets = [0, 32], sizes = [16, 16], strides = [1, 1]} : vector<16x64xf32> to vector<16x16xf32>
    %463 = vector.broadcast %461 : vector<16x1xf32> to vector<16x16xf32>
    %464 = arith.mulf %463, %462 : vector<16x16xf32>
    %465 = arith.addf %460, %464 : vector<16x16xf32>
    %466 = vector.extract_strided_slice %0 {offsets = [0, 3], sizes = [16, 1], strides = [1, 1]} : vector<16x4xf32> to vector<16x1xf32>
    %467 = vector.extract_strided_slice %450 {offsets = [0, 48], sizes = [16, 16], strides = [1, 1]} : vector<16x64xf32> to vector<16x16xf32>
    %468 = vector.broadcast %466 : vector<16x1xf32> to vector<16x16xf32>
    %469 = arith.mulf %468, %467 : vector<16x16xf32>
    %470 = arith.addf %465, %469 : vector<16x16xf32>
    %471 = arith.negf %470 : vector<16x16xf32>
    %472 = math.exp %471 : vector<16x16xf32>
    %cst_155 = arith.constant 1.000000e+00 : f32
    %473 = vector.broadcast %cst_155 : f32 to vector<16x16xf32>
    %474 = arith.addf %473, %472 : vector<16x16xf32>
    %475 = arith.divf %473, %474 : vector<16x16xf32>
    %476 = vector.extract_strided_slice %475 {offsets = [0, 0], sizes = [16, 8], strides = [1, 1]} : vector<16x16xf32> to vector<16x8xf32>
    %477 = vector.extract_strided_slice %475 {offsets = [0, 8], sizes = [16, 8], strides = [1, 1]} : vector<16x16xf32> to vector<16x8xf32>
    %478 = arith.mulf %476, %437 : vector<16x8xf32>
    %479 = tpu.concatenate %442, %478 in 1 : vector<16x2xf32>, vector<16x8xf32> -> vector<16x10xf32>
    %cst_156 = arith.constant dense<0.000000e+00> : vector<16x10xf32>
    %480 = tpu.matmul %444, %479, %cst_156 {dimension_numbers = #tpu.dot_dimension_numbers<[1], [0], [0], [1], [0, 0, 1, 1], [], []>} : vector<16x16xf32>, vector<16x10xf32>, vector<16x10xf32> -> vector<16x10xf32>
    %481 = tpu.concatenate %479, %480 in 1 : vector<16x10xf32>, vector<16x10xf32> -> vector<16x20xf32>
    %cst_157 = arith.constant dense<0.000000e+00> : vector<16x32xf32>
    %482 = tpu.matmul %481, %2, %cst_157 {dimension_numbers = #tpu.dot_dimension_numbers<[1], [0], [0], [1], [0, 0, 1, 1], [], []>} : vector<16x20xf32>, vector<20x32xf32>, vector<16x32xf32> -> vector<16x32xf32>
    %483 = vector.extract_strided_slice %0 {offsets = [0, 0], sizes = [16, 1], strides = [1, 1]} : vector<16x4xf32> to vector<16x1xf32>
    %484 = vector.extract_strided_slice %482 {offsets = [0, 0], sizes = [16, 8], strides = [1, 1]} : vector<16x32xf32> to vector<16x8xf32>
    %485 = vector.broadcast %483 : vector<16x1xf32> to vector<16x8xf32>
    %486 = arith.mulf %485, %484 : vector<16x8xf32>
    %487 = arith.addf %6, %486 : vector<16x8xf32>
    %488 = vector.extract_strided_slice %0 {offsets = [0, 1], sizes = [16, 1], strides = [1, 1]} : vector<16x4xf32> to vector<16x1xf32>
    %489 = vector.extract_strided_slice %482 {offsets = [0, 8], sizes = [16, 8], strides = [1, 1]} : vector<16x32xf32> to vector<16x8xf32>
    %490 = vector.broadcast %488 : vector<16x1xf32> to vector<16x8xf32>
    %491 = arith.mulf %490, %489 : vector<16x8xf32>
    %492 = arith.addf %487, %491 : vector<16x8xf32>
    %493 = vector.extract_strided_slice %0 {offsets = [0, 2], sizes = [16, 1], strides = [1, 1]} : vector<16x4xf32> to vector<16x1xf32>
    %494 = vector.extract_strided_slice %482 {offsets = [0, 16], sizes = [16, 8], strides = [1, 1]} : vector<16x32xf32> to vector<16x8xf32>
    %495 = vector.broadcast %493 : vector<16x1xf32> to vector<16x8xf32>
    %496 = arith.mulf %495, %494 : vector<16x8xf32>
    %497 = arith.addf %492, %496 : vector<16x8xf32>
    %498 = vector.extract_strided_slice %0 {offsets = [0, 3], sizes = [16, 1], strides = [1, 1]} : vector<16x4xf32> to vector<16x1xf32>
    %499 = vector.extract_strided_slice %482 {offsets = [0, 24], sizes = [16, 8], strides = [1, 1]} : vector<16x32xf32> to vector<16x8xf32>
    %500 = vector.broadcast %498 : vector<16x1xf32> to vector<16x8xf32>
    %501 = arith.mulf %500, %499 : vector<16x8xf32>
    %502 = arith.addf %497, %501 : vector<16x8xf32>
    %503 = math.tanh %502 : vector<16x8xf32>
    %504 = arith.mulf %477, %437 : vector<16x8xf32>
    %cst_158 = arith.constant 1.000000e+00 : f32
    %505 = vector.broadcast %cst_158 : f32 to vector<16x8xf32>
    %506 = arith.subf %505, %477 : vector<16x8xf32>
    %507 = arith.mulf %506, %503 : vector<16x8xf32>
    %508 = arith.addf %504, %507 : vector<16x8xf32>
    %509 = vector.broadcast %446 : vector<16x1xf32> to vector<16x8xf32>
    %510 = arith.mulf %509, %508 : vector<16x8xf32>
    %cst_159 = arith.constant 1.000000e+00 : f32
    %511 = vector.broadcast %cst_159 : f32 to vector<16x1xf32>
    %512 = arith.subf %511, %446 : vector<16x1xf32>
    %513 = vector.broadcast %512 : vector<16x1xf32> to vector<16x8xf32>
    %514 = arith.mulf %513, %434 : vector<16x8xf32>
    %515 = arith.addf %510, %514 : vector<16x8xf32>
    %cst_160 = arith.constant 8.000000e-01 : f32
    %516 = vector.broadcast %cst_160 : f32 to vector<16x8xf32>
    %517 = arith.mulf %516, %434 : vector<16x8xf32>
    %cst_161 = arith.constant 2.000000e-01 : f32
    %518 = vector.broadcast %cst_161 : f32 to vector<16x8xf32>
    %519 = arith.mulf %518, %515 : vector<16x8xf32>
    %520 = arith.addf %517, %519 : vector<16x8xf32>
    %cst_162 = arith.constant 2.000000e-01 : f32
    %521 = vector.broadcast %cst_162 : f32 to vector<16x8xf32>
    %522 = arith.mulf %521, %515 : vector<16x8xf32>
    %523 = arith.addf %508, %522 : vector<16x8xf32>
    %c0_163 = arith.constant 0 : index
    %c5_164 = arith.constant 5 : index
    %c0_165 = arith.constant 0 : index
    %c0_166 = arith.constant 0 : index
    %524 = vector.load %arg11[%c0_163, %c5_164, %c0_165, %c0_166] : memref<1x8x16x8xf32, #tpu.memory_space<vmem>>, vector<1x1x16x8xf32>
    %525 = vector.shape_cast %524 : vector<1x1x16x8xf32> to vector<16x8xf32>
    %526 = vector.shape_cast %523 : vector<16x8xf32> to vector<1x1x16x8xf32>
    tpu.vector_store %arg11[%c0_163, %c5_164, %c0_165, %c0_166], %526 {strides = array<i32>} : memref<1x8x16x8xf32, #tpu.memory_space<vmem>>, vector<1x1x16x8xf32>,
    %c0_167 = arith.constant 0 : index
    %c6 = arith.constant 6 : index
    %c0_168 = arith.constant 0 : index
    %c0_169 = arith.constant 0 : index
    %527 = vector.load %arg1[%c0_167, %c6, %c0_168, %c0_169] : memref<1x8x16x2xf32, #tpu.memory_space<vmem>>, vector<1x1x16x2xf32>
    %528 = vector.shape_cast %527 : vector<1x1x16x2xf32> to vector<16x2xf32>
    %c0_170 = arith.constant 0 : index
    %c6_171 = arith.constant 6 : index
    %c0_172 = arith.constant 0 : index
    %c0_173 = arith.constant 0 : index
    %529 = vector.load %arg2[%c0_170, %c6_171, %c0_172, %c0_173] : memref<1x8x16x16xf32, #tpu.memory_space<vmem>>, vector<1x1x16x16xf32>
    %530 = vector.shape_cast %529 : vector<1x1x16x16xf32> to vector<16x16xf32>
    %c0_174 = arith.constant 0 : index
    %c6_175 = arith.constant 6 : index
    %c0_176 = arith.constant 0 : index
    %c0_177 = arith.constant 0 : index
    %531 = vector.load %arg3[%c0_174, %c6_175, %c0_176, %c0_177] : memref<1x8x16x1xf32, #tpu.memory_space<vmem>>, vector<1x1x16x1xf32>
    %532 = vector.shape_cast %531 : vector<1x1x16x1xf32> to vector<16x1xf32>
    %533 = tpu.concatenate %528, %523 in 1 : vector<16x2xf32>, vector<16x8xf32> -> vector<16x10xf32>
    %cst_178 = arith.constant dense<0.000000e+00> : vector<16x10xf32>
    %534 = tpu.matmul %530, %533, %cst_178 {dimension_numbers = #tpu.dot_dimension_numbers<[1], [0], [0], [1], [0, 0, 1, 1], [], []>} : vector<16x16xf32>, vector<16x10xf32>, vector<16x10xf32> -> vector<16x10xf32>
    %535 = tpu.concatenate %533, %534 in 1 : vector<16x10xf32>, vector<16x10xf32> -> vector<16x20xf32>
    %cst_179 = arith.constant dense<0.000000e+00> : vector<16x64xf32>
    %536 = tpu.matmul %535, %1, %cst_179 {dimension_numbers = #tpu.dot_dimension_numbers<[1], [0], [0], [1], [0, 0, 1, 1], [], []>} : vector<16x20xf32>, vector<20x64xf32>, vector<16x64xf32> -> vector<16x64xf32>
    %537 = vector.extract_strided_slice %0 {offsets = [0, 0], sizes = [16, 1], strides = [1, 1]} : vector<16x4xf32> to vector<16x1xf32>
    %538 = vector.extract_strided_slice %536 {offsets = [0, 0], sizes = [16, 16], strides = [1, 1]} : vector<16x64xf32> to vector<16x16xf32>
    %539 = vector.broadcast %537 : vector<16x1xf32> to vector<16x16xf32>
    %540 = arith.mulf %539, %538 : vector<16x16xf32>
    %541 = arith.addf %4, %540 : vector<16x16xf32>
    %542 = vector.extract_strided_slice %0 {offsets = [0, 1], sizes = [16, 1], strides = [1, 1]} : vector<16x4xf32> to vector<16x1xf32>
    %543 = vector.extract_strided_slice %536 {offsets = [0, 16], sizes = [16, 16], strides = [1, 1]} : vector<16x64xf32> to vector<16x16xf32>
    %544 = vector.broadcast %542 : vector<16x1xf32> to vector<16x16xf32>
    %545 = arith.mulf %544, %543 : vector<16x16xf32>
    %546 = arith.addf %541, %545 : vector<16x16xf32>
    %547 = vector.extract_strided_slice %0 {offsets = [0, 2], sizes = [16, 1], strides = [1, 1]} : vector<16x4xf32> to vector<16x1xf32>
    %548 = vector.extract_strided_slice %536 {offsets = [0, 32], sizes = [16, 16], strides = [1, 1]} : vector<16x64xf32> to vector<16x16xf32>
    %549 = vector.broadcast %547 : vector<16x1xf32> to vector<16x16xf32>
    %550 = arith.mulf %549, %548 : vector<16x16xf32>
    %551 = arith.addf %546, %550 : vector<16x16xf32>
    %552 = vector.extract_strided_slice %0 {offsets = [0, 3], sizes = [16, 1], strides = [1, 1]} : vector<16x4xf32> to vector<16x1xf32>
    %553 = vector.extract_strided_slice %536 {offsets = [0, 48], sizes = [16, 16], strides = [1, 1]} : vector<16x64xf32> to vector<16x16xf32>
    %554 = vector.broadcast %552 : vector<16x1xf32> to vector<16x16xf32>
    %555 = arith.mulf %554, %553 : vector<16x16xf32>
    %556 = arith.addf %551, %555 : vector<16x16xf32>
    %557 = arith.negf %556 : vector<16x16xf32>
    %558 = math.exp %557 : vector<16x16xf32>
    %cst_180 = arith.constant 1.000000e+00 : f32
    %559 = vector.broadcast %cst_180 : f32 to vector<16x16xf32>
    %560 = arith.addf %559, %558 : vector<16x16xf32>
    %561 = arith.divf %559, %560 : vector<16x16xf32>
    %562 = vector.extract_strided_slice %561 {offsets = [0, 0], sizes = [16, 8], strides = [1, 1]} : vector<16x16xf32> to vector<16x8xf32>
    %563 = vector.extract_strided_slice %561 {offsets = [0, 8], sizes = [16, 8], strides = [1, 1]} : vector<16x16xf32> to vector<16x8xf32>
    %564 = arith.mulf %562, %523 : vector<16x8xf32>
    %565 = tpu.concatenate %528, %564 in 1 : vector<16x2xf32>, vector<16x8xf32> -> vector<16x10xf32>
    %cst_181 = arith.constant dense<0.000000e+00> : vector<16x10xf32>
    %566 = tpu.matmul %530, %565, %cst_181 {dimension_numbers = #tpu.dot_dimension_numbers<[1], [0], [0], [1], [0, 0, 1, 1], [], []>} : vector<16x16xf32>, vector<16x10xf32>, vector<16x10xf32> -> vector<16x10xf32>
    %567 = tpu.concatenate %565, %566 in 1 : vector<16x10xf32>, vector<16x10xf32> -> vector<16x20xf32>
    %cst_182 = arith.constant dense<0.000000e+00> : vector<16x32xf32>
    %568 = tpu.matmul %567, %2, %cst_182 {dimension_numbers = #tpu.dot_dimension_numbers<[1], [0], [0], [1], [0, 0, 1, 1], [], []>} : vector<16x20xf32>, vector<20x32xf32>, vector<16x32xf32> -> vector<16x32xf32>
    %569 = vector.extract_strided_slice %0 {offsets = [0, 0], sizes = [16, 1], strides = [1, 1]} : vector<16x4xf32> to vector<16x1xf32>
    %570 = vector.extract_strided_slice %568 {offsets = [0, 0], sizes = [16, 8], strides = [1, 1]} : vector<16x32xf32> to vector<16x8xf32>
    %571 = vector.broadcast %569 : vector<16x1xf32> to vector<16x8xf32>
    %572 = arith.mulf %571, %570 : vector<16x8xf32>
    %573 = arith.addf %6, %572 : vector<16x8xf32>
    %574 = vector.extract_strided_slice %0 {offsets = [0, 1], sizes = [16, 1], strides = [1, 1]} : vector<16x4xf32> to vector<16x1xf32>
    %575 = vector.extract_strided_slice %568 {offsets = [0, 8], sizes = [16, 8], strides = [1, 1]} : vector<16x32xf32> to vector<16x8xf32>
    %576 = vector.broadcast %574 : vector<16x1xf32> to vector<16x8xf32>
    %577 = arith.mulf %576, %575 : vector<16x8xf32>
    %578 = arith.addf %573, %577 : vector<16x8xf32>
    %579 = vector.extract_strided_slice %0 {offsets = [0, 2], sizes = [16, 1], strides = [1, 1]} : vector<16x4xf32> to vector<16x1xf32>
    %580 = vector.extract_strided_slice %568 {offsets = [0, 16], sizes = [16, 8], strides = [1, 1]} : vector<16x32xf32> to vector<16x8xf32>
    %581 = vector.broadcast %579 : vector<16x1xf32> to vector<16x8xf32>
    %582 = arith.mulf %581, %580 : vector<16x8xf32>
    %583 = arith.addf %578, %582 : vector<16x8xf32>
    %584 = vector.extract_strided_slice %0 {offsets = [0, 3], sizes = [16, 1], strides = [1, 1]} : vector<16x4xf32> to vector<16x1xf32>
    %585 = vector.extract_strided_slice %568 {offsets = [0, 24], sizes = [16, 8], strides = [1, 1]} : vector<16x32xf32> to vector<16x8xf32>
    %586 = vector.broadcast %584 : vector<16x1xf32> to vector<16x8xf32>
    %587 = arith.mulf %586, %585 : vector<16x8xf32>
    %588 = arith.addf %583, %587 : vector<16x8xf32>
    %589 = math.tanh %588 : vector<16x8xf32>
    %590 = arith.mulf %563, %523 : vector<16x8xf32>
    %cst_183 = arith.constant 1.000000e+00 : f32
    %591 = vector.broadcast %cst_183 : f32 to vector<16x8xf32>
    %592 = arith.subf %591, %563 : vector<16x8xf32>
    %593 = arith.mulf %592, %589 : vector<16x8xf32>
    %594 = arith.addf %590, %593 : vector<16x8xf32>
    %595 = vector.broadcast %532 : vector<16x1xf32> to vector<16x8xf32>
    %596 = arith.mulf %595, %594 : vector<16x8xf32>
    %cst_184 = arith.constant 1.000000e+00 : f32
    %597 = vector.broadcast %cst_184 : f32 to vector<16x1xf32>
    %598 = arith.subf %597, %532 : vector<16x1xf32>
    %599 = vector.broadcast %598 : vector<16x1xf32> to vector<16x8xf32>
    %600 = arith.mulf %599, %520 : vector<16x8xf32>
    %601 = arith.addf %596, %600 : vector<16x8xf32>
    %cst_185 = arith.constant 8.000000e-01 : f32
    %602 = vector.broadcast %cst_185 : f32 to vector<16x8xf32>
    %603 = arith.mulf %602, %520 : vector<16x8xf32>
    %cst_186 = arith.constant 2.000000e-01 : f32
    %604 = vector.broadcast %cst_186 : f32 to vector<16x8xf32>
    %605 = arith.mulf %604, %601 : vector<16x8xf32>
    %606 = arith.addf %603, %605 : vector<16x8xf32>
    %cst_187 = arith.constant 2.000000e-01 : f32
    %607 = vector.broadcast %cst_187 : f32 to vector<16x8xf32>
    %608 = arith.mulf %607, %601 : vector<16x8xf32>
    %609 = arith.addf %594, %608 : vector<16x8xf32>
    %c0_188 = arith.constant 0 : index
    %c6_189 = arith.constant 6 : index
    %c0_190 = arith.constant 0 : index
    %c0_191 = arith.constant 0 : index
    %610 = vector.load %arg11[%c0_188, %c6_189, %c0_190, %c0_191] : memref<1x8x16x8xf32, #tpu.memory_space<vmem>>, vector<1x1x16x8xf32>
    %611 = vector.shape_cast %610 : vector<1x1x16x8xf32> to vector<16x8xf32>
    %612 = vector.shape_cast %609 : vector<16x8xf32> to vector<1x1x16x8xf32>
    tpu.vector_store %arg11[%c0_188, %c6_189, %c0_190, %c0_191], %612 {strides = array<i32>} : memref<1x8x16x8xf32, #tpu.memory_space<vmem>>, vector<1x1x16x8xf32>,
    %c0_192 = arith.constant 0 : index
    %c7 = arith.constant 7 : index
    %c0_193 = arith.constant 0 : index
    %c0_194 = arith.constant 0 : index
    %613 = vector.load %arg1[%c0_192, %c7, %c0_193, %c0_194] : memref<1x8x16x2xf32, #tpu.memory_space<vmem>>, vector<1x1x16x2xf32>
    %614 = vector.shape_cast %613 : vector<1x1x16x2xf32> to vector<16x2xf32>
    %c0_195 = arith.constant 0 : index
    %c7_196 = arith.constant 7 : index
    %c0_197 = arith.constant 0 : index
    %c0_198 = arith.constant 0 : index
    %615 = vector.load %arg2[%c0_195, %c7_196, %c0_197, %c0_198] : memref<1x8x16x16xf32, #tpu.memory_space<vmem>>, vector<1x1x16x16xf32>
    %616 = vector.shape_cast %615 : vector<1x1x16x16xf32> to vector<16x16xf32>
    %c0_199 = arith.constant 0 : index
    %c7_200 = arith.constant 7 : index
    %c0_201 = arith.constant 0 : index
    %c0_202 = arith.constant 0 : index
    %617 = vector.load %arg3[%c0_199, %c7_200, %c0_201, %c0_202] : memref<1x8x16x1xf32, #tpu.memory_space<vmem>>, vector<1x1x16x1xf32>
    %618 = vector.shape_cast %617 : vector<1x1x16x1xf32> to vector<16x1xf32>
    %619 = tpu.concatenate %614, %609 in 1 : vector<16x2xf32>, vector<16x8xf32> -> vector<16x10xf32>
    %cst_203 = arith.constant dense<0.000000e+00> : vector<16x10xf32>
    %620 = tpu.matmul %616, %619, %cst_203 {dimension_numbers = #tpu.dot_dimension_numbers<[1], [0], [0], [1], [0, 0, 1, 1], [], []>} : vector<16x16xf32>, vector<16x10xf32>, vector<16x10xf32> -> vector<16x10xf32>
    %621 = tpu.concatenate %619, %620 in 1 : vector<16x10xf32>, vector<16x10xf32> -> vector<16x20xf32>
    %cst_204 = arith.constant dense<0.000000e+00> : vector<16x64xf32>
    %622 = tpu.matmul %621, %1, %cst_204 {dimension_numbers = #tpu.dot_dimension_numbers<[1], [0], [0], [1], [0, 0, 1, 1], [], []>} : vector<16x20xf32>, vector<20x64xf32>, vector<16x64xf32> -> vector<16x64xf32>
    %623 = vector.extract_strided_slice %0 {offsets = [0, 0], sizes = [16, 1], strides = [1, 1]} : vector<16x4xf32> to vector<16x1xf32>
    %624 = vector.extract_strided_slice %622 {offsets = [0, 0], sizes = [16, 16], strides = [1, 1]} : vector<16x64xf32> to vector<16x16xf32>
    %625 = vector.broadcast %623 : vector<16x1xf32> to vector<16x16xf32>
    %626 = arith.mulf %625, %624 : vector<16x16xf32>
    %627 = arith.addf %4, %626 : vector<16x16xf32>
    %628 = vector.extract_strided_slice %0 {offsets = [0, 1], sizes = [16, 1], strides = [1, 1]} : vector<16x4xf32> to vector<16x1xf32>
    %629 = vector.extract_strided_slice %622 {offsets = [0, 16], sizes = [16, 16], strides = [1, 1]} : vector<16x64xf32> to vector<16x16xf32>
    %630 = vector.broadcast %628 : vector<16x1xf32> to vector<16x16xf32>
    %631 = arith.mulf %630, %629 : vector<16x16xf32>
    %632 = arith.addf %627, %631 : vector<16x16xf32>
    %633 = vector.extract_strided_slice %0 {offsets = [0, 2], sizes = [16, 1], strides = [1, 1]} : vector<16x4xf32> to vector<16x1xf32>
    %634 = vector.extract_strided_slice %622 {offsets = [0, 32], sizes = [16, 16], strides = [1, 1]} : vector<16x64xf32> to vector<16x16xf32>
    %635 = vector.broadcast %633 : vector<16x1xf32> to vector<16x16xf32>
    %636 = arith.mulf %635, %634 : vector<16x16xf32>
    %637 = arith.addf %632, %636 : vector<16x16xf32>
    %638 = vector.extract_strided_slice %0 {offsets = [0, 3], sizes = [16, 1], strides = [1, 1]} : vector<16x4xf32> to vector<16x1xf32>
    %639 = vector.extract_strided_slice %622 {offsets = [0, 48], sizes = [16, 16], strides = [1, 1]} : vector<16x64xf32> to vector<16x16xf32>
    %640 = vector.broadcast %638 : vector<16x1xf32> to vector<16x16xf32>
    %641 = arith.mulf %640, %639 : vector<16x16xf32>
    %642 = arith.addf %637, %641 : vector<16x16xf32>
    %643 = arith.negf %642 : vector<16x16xf32>
    %644 = math.exp %643 : vector<16x16xf32>
    %cst_205 = arith.constant 1.000000e+00 : f32
    %645 = vector.broadcast %cst_205 : f32 to vector<16x16xf32>
    %646 = arith.addf %645, %644 : vector<16x16xf32>
    %647 = arith.divf %645, %646 : vector<16x16xf32>
    %648 = vector.extract_strided_slice %647 {offsets = [0, 0], sizes = [16, 8], strides = [1, 1]} : vector<16x16xf32> to vector<16x8xf32>
    %649 = vector.extract_strided_slice %647 {offsets = [0, 8], sizes = [16, 8], strides = [1, 1]} : vector<16x16xf32> to vector<16x8xf32>
    %650 = arith.mulf %648, %609 : vector<16x8xf32>
    %651 = tpu.concatenate %614, %650 in 1 : vector<16x2xf32>, vector<16x8xf32> -> vector<16x10xf32>
    %cst_206 = arith.constant dense<0.000000e+00> : vector<16x10xf32>
    %652 = tpu.matmul %616, %651, %cst_206 {dimension_numbers = #tpu.dot_dimension_numbers<[1], [0], [0], [1], [0, 0, 1, 1], [], []>} : vector<16x16xf32>, vector<16x10xf32>, vector<16x10xf32> -> vector<16x10xf32>
    %653 = tpu.concatenate %651, %652 in 1 : vector<16x10xf32>, vector<16x10xf32> -> vector<16x20xf32>
    %cst_207 = arith.constant dense<0.000000e+00> : vector<16x32xf32>
    %654 = tpu.matmul %653, %2, %cst_207 {dimension_numbers = #tpu.dot_dimension_numbers<[1], [0], [0], [1], [0, 0, 1, 1], [], []>} : vector<16x20xf32>, vector<20x32xf32>, vector<16x32xf32> -> vector<16x32xf32>
    %655 = vector.extract_strided_slice %0 {offsets = [0, 0], sizes = [16, 1], strides = [1, 1]} : vector<16x4xf32> to vector<16x1xf32>
    %656 = vector.extract_strided_slice %654 {offsets = [0, 0], sizes = [16, 8], strides = [1, 1]} : vector<16x32xf32> to vector<16x8xf32>
    %657 = vector.broadcast %655 : vector<16x1xf32> to vector<16x8xf32>
    %658 = arith.mulf %657, %656 : vector<16x8xf32>
    %659 = arith.addf %6, %658 : vector<16x8xf32>
    %660 = vector.extract_strided_slice %0 {offsets = [0, 1], sizes = [16, 1], strides = [1, 1]} : vector<16x4xf32> to vector<16x1xf32>
    %661 = vector.extract_strided_slice %654 {offsets = [0, 8], sizes = [16, 8], strides = [1, 1]} : vector<16x32xf32> to vector<16x8xf32>
    %662 = vector.broadcast %660 : vector<16x1xf32> to vector<16x8xf32>
    %663 = arith.mulf %662, %661 : vector<16x8xf32>
    %664 = arith.addf %659, %663 : vector<16x8xf32>
    %665 = vector.extract_strided_slice %0 {offsets = [0, 2], sizes = [16, 1], strides = [1, 1]} : vector<16x4xf32> to vector<16x1xf32>
    %666 = vector.extract_strided_slice %654 {offsets = [0, 16], sizes = [16, 8], strides = [1, 1]} : vector<16x32xf32> to vector<16x8xf32>
    %667 = vector.broadcast %665 : vector<16x1xf32> to vector<16x8xf32>
    %668 = arith.mulf %667, %666 : vector<16x8xf32>
    %669 = arith.addf %664, %668 : vector<16x8xf32>
    %670 = vector.extract_strided_slice %0 {offsets = [0, 3], sizes = [16, 1], strides = [1, 1]} : vector<16x4xf32> to vector<16x1xf32>
    %671 = vector.extract_strided_slice %654 {offsets = [0, 24], sizes = [16, 8], strides = [1, 1]} : vector<16x32xf32> to vector<16x8xf32>
    %672 = vector.broadcast %670 : vector<16x1xf32> to vector<16x8xf32>
    %673 = arith.mulf %672, %671 : vector<16x8xf32>
    %674 = arith.addf %669, %673 : vector<16x8xf32>
    %675 = math.tanh %674 : vector<16x8xf32>
    %676 = arith.mulf %649, %609 : vector<16x8xf32>
    %cst_208 = arith.constant 1.000000e+00 : f32
    %677 = vector.broadcast %cst_208 : f32 to vector<16x8xf32>
    %678 = arith.subf %677, %649 : vector<16x8xf32>
    %679 = arith.mulf %678, %675 : vector<16x8xf32>
    %680 = arith.addf %676, %679 : vector<16x8xf32>
    %681 = vector.broadcast %618 : vector<16x1xf32> to vector<16x8xf32>
    %682 = arith.mulf %681, %680 : vector<16x8xf32>
    %cst_209 = arith.constant 1.000000e+00 : f32
    %683 = vector.broadcast %cst_209 : f32 to vector<16x1xf32>
    %684 = arith.subf %683, %618 : vector<16x1xf32>
    %685 = vector.broadcast %684 : vector<16x1xf32> to vector<16x8xf32>
    %686 = arith.mulf %685, %606 : vector<16x8xf32>
    %687 = arith.addf %682, %686 : vector<16x8xf32>
    %cst_210 = arith.constant 8.000000e-01 : f32
    %688 = vector.broadcast %cst_210 : f32 to vector<16x8xf32>
    %689 = arith.mulf %688, %606 : vector<16x8xf32>
    %cst_211 = arith.constant 2.000000e-01 : f32
    %690 = vector.broadcast %cst_211 : f32 to vector<16x8xf32>
    %691 = arith.mulf %690, %687 : vector<16x8xf32>
    %692 = arith.addf %689, %691 : vector<16x8xf32>
    %cst_212 = arith.constant 2.000000e-01 : f32
    %693 = vector.broadcast %cst_212 : f32 to vector<16x8xf32>
    %694 = arith.mulf %693, %687 : vector<16x8xf32>
    %695 = arith.addf %680, %694 : vector<16x8xf32>
    %c0_213 = arith.constant 0 : index
    %c7_214 = arith.constant 7 : index
    %c0_215 = arith.constant 0 : index
    %c0_216 = arith.constant 0 : index
    %696 = vector.load %arg11[%c0_213, %c7_214, %c0_215, %c0_216] : memref<1x8x16x8xf32, #tpu.memory_space<vmem>>, vector<1x1x16x8xf32>
    %697 = vector.shape_cast %696 : vector<1x1x16x8xf32> to vector<16x8xf32>
    %698 = vector.shape_cast %695 : vector<16x8xf32> to vector<1x1x16x8xf32>
    tpu.vector_store %arg11[%c0_213, %c7_214, %c0_215, %c0_216], %698 {strides = array<i32>} : memref<1x8x16x8xf32, #tpu.memory_space<vmem>>, vector<1x1x16x8xf32>,
    %c0_217 = arith.constant 0 : index
    %c0_218 = arith.constant 0 : index
    %c0_219 = arith.constant 0 : index
    %699 = vector.load %arg12[%c0_217, %c0_218, %c0_219] : memref<1x16x8xf32, #tpu.memory_space<vmem>>, vector<1x16x8xf32>
    %700 = vector.shape_cast %699 : vector<1x16x8xf32> to vector<16x8xf32>
    %701 = vector.shape_cast %692 : vector<16x8xf32> to vector<1x16x8xf32>
    tpu.vector_store %arg12[%c0_217, %c0_218, %c0_219], %701 {strides = array<i32>} : memref<1x16x8xf32, #tpu.memory_space<vmem>>, vector<1x16x8xf32>,
    return
  }
  func.func @transform_0(%arg0: i32) -> (i32, i32, i32, i32) {
    %c0_i32 = arith.constant 0 : i32
    %c0_i32_0 = arith.constant 0 : i32
    %c0_i32_1 = arith.constant 0 : i32
    %c0_i32_2 = arith.constant 0 : i32
    return %arg0, %c0_i32, %c0_i32_0, %c0_i32_1 : i32, i32, i32, i32
  }
  func.func @transform_1(%arg0: i32) -> (i32, i32, i32, i32) {
    %c0_i32 = arith.constant 0 : i32
    %c0_i32_0 = arith.constant 0 : i32
    %c0_i32_1 = arith.constant 0 : i32
    %c0_i32_2 = arith.constant 0 : i32
    return %arg0, %c0_i32, %c0_i32_0, %c0_i32_1 : i32, i32, i32, i32
  }
  func.func @transform_2(%arg0: i32) -> (i32, i32, i32, i32) {
    %c0_i32 = arith.constant 0 : i32
    %c0_i32_0 = arith.constant 0 : i32
    %c0_i32_1 = arith.constant 0 : i32
    %c0_i32_2 = arith.constant 0 : i32
    return %arg0, %c0_i32, %c0_i32_0, %c0_i32_1 : i32, i32, i32, i32
  }
  func.func @transform_3(%arg0: i32) -> (i32, i32, i32) {
    %c0_i32 = arith.constant 0 : i32
    %c0_i32_0 = arith.constant 0 : i32
    %c0_i32_1 = arith.constant 0 : i32
    return %arg0, %c0_i32, %c0_i32_0 : i32, i32, i32
  }
  func.func @transform_4(%arg0: i32) -> (i32, i32, i32) {
    %c0_i32 = arith.constant 0 : i32
    %c0_i32_0 = arith.constant 0 : i32
    %c0_i32_1 = arith.constant 0 : i32
    return %arg0, %c0_i32, %c0_i32_0 : i32, i32, i32
  }
  func.func @transform_5(%arg0: i32) -> (i32, i32) {
    %c0_i32 = arith.constant 0 : i32
    %c0_i32_0 = arith.constant 0 : i32
    %c0_i32_1 = arith.constant 0 : i32
    return %c0_i32, %c0_i32_0 : i32, i32
  }
  func.func @transform_6(%arg0: i32) -> (i32, i32) {
    %c0_i32 = arith.constant 0 : i32
    %c0_i32_0 = arith.constant 0 : i32
    %c0_i32_1 = arith.constant 0 : i32
    return %c0_i32, %c0_i32_0 : i32, i32
  }
  func.func @transform_7(%arg0: i32) -> (i32, i32) {
    %c0_i32 = arith.constant 0 : i32
    %c0_i32_0 = arith.constant 0 : i32
    %c0_i32_1 = arith.constant 0 : i32
    return %c0_i32, %c0_i32_0 : i32, i32
  }
  func.func @transform_8(%arg0: i32) -> (i32, i32) {
    %c0_i32 = arith.constant 0 : i32
    %c0_i32_0 = arith.constant 0 : i32
    %c0_i32_1 = arith.constant 0 : i32
    return %c0_i32, %c0_i32_0 : i32, i32
  }
  func.func @transform_9(%arg0: i32) -> (i32, i32) {
    %c0_i32 = arith.constant 0 : i32
    %c0_i32_0 = arith.constant 0 : i32
    %c0_i32_1 = arith.constant 0 : i32
    return %c0_i32, %c0_i32_0 : i32, i32
  }
  func.func @transform_10(%arg0: i32) -> (i32, i32, i32, i32) {
    %c0_i32 = arith.constant 0 : i32
    %c0_i32_0 = arith.constant 0 : i32
    %c0_i32_1 = arith.constant 0 : i32
    %c0_i32_2 = arith.constant 0 : i32
    return %arg0, %c0_i32, %c0_i32_0, %c0_i32_1 : i32, i32, i32, i32
  }
  func.func @transform_11(%arg0: i32) -> (i32, i32, i32) {
    %c0_i32 = arith.constant 0 : i32
    %c0_i32_0 = arith.constant 0 : i32
    %c0_i32_1 = arith.constant 0 : i32
    return %arg0, %c0_i32, %c0_i32_0 : i32, i32, i32
  }
}

</mosaic_0001>

<bundles_post_ra>
// kernel: dgcrm_forward.2
= control target key start
LH: loop header
LB: loop body
LE: loop exit
PB: predicated region body
PF: predicated region fallthrough
CT: control target
= control target key end

     0   :  { %s3772_s20 = smov 0   ;;  %s4957_s0 = inlined_call_operand.vmem [shape: f32[2,8,16,2], index: 0, kind: input, shape index: {}]   ;;  %s4958_s1 = inlined_call_operand.vmem [shape: f32[2,8,16,2], index: 1, kind: input, shape index: {}]   ;;  %s4959_s2 = inlined_call_operand.vmem [shape: f32[2,8,16,2], index: 2, kind: input, shape index: {}]   ;;  %s4960_s3 = inlined_call_operand.vmem [shape: f32[2,8,16,2], index: 3, kind: input, shape index: {}]   ;;  %s4961_s4 = inlined_call_operand.vmem [shape: f32[2,8,16,4], index: 4, kind: input, shape index: {}]   ;;  %s4962_s5 = inlined_call_operand.vmem [shape: f32[2,128,4], index: 5, kind: input, shape index: {}]   ;;  %s4963_s6 = inlined_call_operand.vmem [shape: f32[16,4], index: 6, kind: input, shape index: {}]   ;;  %s4964_s7 = inlined_call_operand.vmem [shape: f32[4,40], index: 7, kind: input, shape index: {}]   ;;  %s4965_s8 = inlined_call_operand.vmem [shape: f32[1,40], index: 8, kind: input, shape index: {}]   ;;  %s4966_s9 = inlined_call_operand.vmem [shape: f32[40,2], index: 9, kind: input, shape index: {}]   ;;  %s4967_s10 = inlined_call_operand.vmem [shape: f32[1,2], index: 10, kind: input, shape index: {}]   ;;  %s4968_s11 = inlined_call_operand.vmem [shape: f32[2,1], index: 11, kind: input, shape index: {}]   ;;  %s4969_s12 = inlined_call_operand.<no memory space> [shape: f32[1,1], index: 12, kind: input, shape index: {}]   ;;  %s4970_s13 = inlined_call_operand.vmem [shape: f32[2,8,16,2], index: 13, kind: output, shape index: {0}]   ;;  %s4971_s14 = inlined_call_operand.vmem [shape: f32[2,8,16,16], index: 14, kind: output, shape index: {1}]   ;;  %s4972_s15 = inlined_call_operand.vmem [shape: f32[2,128,1], index: 15, kind: output, shape index: {2}]  }
   0x1   :  { %v21_v0 = vstv %s4969_s12 }
   0x2   :  { %22 = vst [vmem:[#allocation2] sm:$0x1] %v21_v0 }
   0x3 LB: > { %s3125_s21 = sadd.s32 4294967295, %s3687_s20   ;;  %p3129_p0 = scmp.ge.s32.totalorder %s3687_s20, 1  ;;  %s3687_s20 = sphi %s3772_s20, %s28_s20  }
   0x4   : > { %p494_p1 = scmp.lt.s32.totalorder %s3687_s20, 3 }
   0x6   : > { %p495_p2 = pnand %p3129_p0, %p494_p1 }
   0x8   : > { %498 = sbr.rel (%p495_p2) target bundleno = 845 (0x34d), region = 72 }
   0xd   : > { %p577_p3 = scmp.lt.s32.totalorder %s3125_s21, 1  ;;  %vm702_vm0 = vcmask 15360   ;;  %vm1309_vm1 = vcmask 31744   ;;  %vm2239_vm2 = vcmask 1043456   ;;  %vm1974_vm3 = vcmask 130048  }
   0xe   : > { %vm2416_vm4 = vcmask 326656   ;;  %vm2682_vm5 = vcmask 1041408   ;;  %vm2927_vm6 = vcmask 7168  }
   0xf   : > { %s5019_s21 = smov (!%p577_p3, %s3125_s21), 1 }
  0x10   : > { %s3780_s22 = sshll.u32 %s5019_s21, 7 }
  0x11   : > { %s3786_s24 = scalar_lea.vmem %s4957_s0, %s3780_s22  ;;  %s3792_s27 = scalar_lea.vmem %s4958_s1, %s3780_s22 }
  0x12   : > { %v3795_v1 = vld [vmem:[%s3786_s24] sm:$0xff]  ;;  %v3798_v2 = vld [vmem:[%s3786_s24 + $0x8] sm:$0xff]  ;;  %v3801_v3 = vld [vmem:[%s3786_s24 + $0x10] sm:$0xff]  ;;  %s3894_s30 = scalar_lea.vmem %s4959_s2, %s3780_s22  ;;  %s3996_s18 = scalar_lea.vmem %s4960_s3, %s3780_s22 }
  0x13   : > { %v3804_v4 = vld [vmem:[%s3786_s24 + $0x18] sm:$0xff]  ;;  %v3807_v5 = vld [vmem:[%s3786_s24 + $0x20] sm:$0xff]  ;;  %v3810_v6 = vld [vmem:[%s3786_s24 + $0x28] sm:$0xff]  ;;  %s4090_s12 = scalar_lea.vmem %s4961_s4, %s3780_s22  ;;  %s4463_s29 = scalar_lea.vmem %s4970_s13, %s3780_s22 }
  0x14   : > { %v3813_v7 = vld [vmem:[%s3786_s24 + $0x30] sm:$0xff]  ;;  %v3816_v8 = vld [vmem:[%s3786_s24 + $0x38] sm:$0xff]  ;;  %v3819_v9 = vld [vmem:[%s3786_s24 + $0x40] sm:$0xff]  ;;  %s4533_s19 = scalar_lea.vmem %s4962_s5, %s3780_s22  ;;  %s4848_s26 = scalar_lea.vmem %s4971_s14, %s3780_s22 }
  0x15   : > { %v3822_v10 = vld [vmem:[%s3786_s24 + $0x48] sm:$0xff]  ;;  %v3825_v11 = vld [vmem:[%s3786_s24 + $0x50] sm:$0xff]  ;;  %v3828_v12 = vld [vmem:[%s3786_s24 + $0x58] sm:$0xff]  ;;  %s4920_s28 = scalar_lea.vmem %s4972_s15, %s3780_s22 }
  0x16   : > { %v638_v13 = vld [vmem:[%s3792_s27] sm:$0xff]  ;;  %v639_v14 = vld [vmem:[%s3792_s27 + $0x8] sm:$0xff]  ;;  %v640_v17 = vld [vmem:[%s3792_s27 + $0x10] sm:$0xff] }
  0x17   : > { %v3833_v15 = vld [vmem:[%s3786_s24 + $0x60] sm:$0xff]  ;;  %v3836_v16 = vld [vmem:[%s3786_s24 + $0x68] sm:$0xff]  ;;  %v641_v18 = vld [vmem:[%s3792_s27 + $0x18] sm:$0xff]  ;;  %v654_v20 = vsub.f32 %v3795_v1, %v638_v13  ;;  %v655_v25 = vsub.f32 %v3798_v2, %v639_v14  ;;  %v656_v26 = vsub.f32 %v3801_v3, %v640_v17 }
  0x18   : > { %v642_v19 = vld [vmem:[%s3792_s27 + $0x20] sm:$0xff]  ;;  %v3843_v21 = vld [vmem:[%s3786_s24 + $0x70] sm:$0xff]  ;;  %v643_v22 = vld [vmem:[%s3792_s27 + $0x28] sm:$0xff]  ;;  %v657_v30 = vsub.f32 %v3804_v4, %v641_v18 }
  0x19   : > { %v644_v23 = vld [vmem:[%s3792_s27 + $0x30] sm:$0xff]  ;;  %v645_v24 = vld [vmem:[%s3792_s27 + $0x38] sm:$0xff]  ;;  %v646_v27 = vld [vmem:[%s3792_s27 + $0x40] sm:$0xff]  ;;  %v658_v31 = vsub.f32 %v3807_v5, %v642_v19  ;;  %v659_v32 = vsub.f32 %v3810_v6, %v643_v22  ;;  %v670_v45 = vand.u32 2147483647, %v654_v20 }
  0x1a   : > { %v647_v28 = vld [vmem:[%s3792_s27 + $0x48] sm:$0xff]  ;;  %v648_v29 = vld [vmem:[%s3792_s27 + $0x50] sm:$0xff]  ;;  %v649_v33 = vld [vmem:[%s3792_s27 + $0x58] sm:$0xff]  ;;  %v660_v36 = vsub.f32 %v3813_v7, %v644_v23  ;;  %v661_v37 = vsub.f32 %v3816_v8, %v645_v24  ;;  %v662_v38 = vsub.f32 %v3819_v9, %v646_v27  ;;  %v671_v48 = vand.u32 2147483647, %v655_v25 }
  0x1b   : > { %v650_v34 = vld [vmem:[%s3792_s27 + $0x60] sm:$0xff]  ;;  %v651_v35 = vld [vmem:[%s3792_s27 + $0x68] sm:$0xff]  ;;  %v3863_v39 = vld [vmem:[%s3786_s24 + $0x78] sm:$0xff]  ;;  %v663_v42 = vsub.f32 %v3822_v10, %v647_v28  ;;  %v664_v43 = vsub.f32 %v3825_v11, %v648_v29  ;;  %v665_v44 = vsub.f32 %v3828_v12, %v649_v33  ;;  %v672_v49 = vand.u32 2147483647, %v656_v26 }
  0x1c   : > { %v652_v40 = vld [vmem:[%s3792_s27 + $0x70] sm:$0xff]  ;;  %v653_v41 = vld [vmem:[%s3792_s27 + $0x78] sm:$0xff]  ;;  %v666_v46 = vsub.f32 %v3833_v15, %v650_v34  ;;  %v667_v47 = vsub.f32 %v3836_v16, %v651_v35  ;;  %v673_v51 = vand.u32 2147483647, %v657_v30  ;;  %v674_v52 = vand.u32 2147483647, %v658_v31 }
  0x1d   : > { %v668_v50 = vsub.f32 %v3843_v21, %v652_v40  ;;  %v675_v53 = vand.u32 2147483647, %v659_v32  ;;  %v669_v54 = vsub.f32 %v3863_v39, %v653_v41  ;;  %v676_v55 = vand.u32 2147483647, %v660_v36 }
  0x1e   : > { %v677_v56 = vand.u32 2147483647, %v661_v37  ;;  %v678_v57 = vand.u32 2147483647, %v662_v38  ;;  %v679_v58 = vand.u32 2147483647, %v663_v42 }
  0x1f   : > { %v680_v59 = vand.u32 2147483647, %v664_v43  ;;  %v681_v60 = vand.u32 2147483647, %v665_v44  ;;  %v682_v61 = vand.u32 2147483647, %v666_v46 }
  0x20   : > { %v683_v62 = vand.u32 2147483647, %v667_v47  ;;  %v686_v63 = vsub.f32 0.0, %v670_v45  ;;  %v687_v0 = vsub.f32 0.0, %v671_v48  ;;  %v684_v13 = vand.u32 2147483647, %v668_v50 }
  0x21   : > { %v688_v14 = vsub.f32 0.0, %v672_v49  ;;  %v689_v17 = vsub.f32 0.0, %v673_v51  ;;  %v690_v18 = vsub.f32 0.0, %v674_v52  ;;  %v685_v19 = vand.u32 2147483647, %v669_v54 }
  0x22   : > { %v691_v20 = vsub.f32 0.0, %v675_v53  ;;  %v692_v22 = vsub.f32 0.0, %v676_v55  ;;  %v693_v23 = vsub.f32 0.0, %v677_v56  ;;  %v694_v24 = vsub.f32 0.0, %v678_v57 }
  0x23   : > { %v695_v25 = vsub.f32 0.0, %v679_v58  ;;  %v696_v26 = vsub.f32 0.0, %v680_v59  ;;  %v697_v27 = vsub.f32 0.0, %v681_v60  ;;  %v698_v28 = vsub.f32 0.0, %v682_v61 }
  0x24   : > { %v699_v29 = vsub.f32 0.0, %v683_v62  ;;  %v703_v30 = vsel %vm702_vm0, %v686_v63, 0.0  ;;  %v704_v31 = vsel %vm702_vm0, %v687_v0, 0.0  ;;  %v712_v33 = vsel %vm702_vm0, %v688_v14, 0.0 }
  0x25   : > { %v705_v32 = vadd.f32 %v704_v31, %v703_v30  ;;  %v713_v34 = vsel %vm702_vm0, %v689_v17, 0.0  ;;  %v721_v35 = vsel %vm702_vm0, %v690_v18, 0.0  ;;  %v722_v37 = vsel %vm702_vm0, %v691_v20, 0.0 }
  0x26   : > { %v714_v36 = vadd.f32 %v713_v34, %v712_v33  ;;  %v730_v38 = vsel %vm702_vm0, %v692_v22, 0.0  ;;  %v731_v40 = vsel %vm702_vm0, %v693_v23, 0.0  ;;  %v723_v42 = vadd.f32 %v722_v37, %v721_v35 }
  0x27   : > { %v706_v41 = vrot.slane %v705_v32, 4  ;;  %v732_v43 = vadd.f32 %v731_v40, %v730_v38  ;;  %v739_v44 = vsel %vm702_vm0, %v694_v24, 0.0  ;;  %v740_v46 = vsel %vm702_vm0, %v695_v25, 0.0 }
  0x28   : > { %v715_v45 = vrot.slane %v714_v36, 4  ;;  %v748_v47 = vsel %vm702_vm0, %v696_v26, 0.0  ;;  %v749_v48 = vsel %vm702_vm0, %v697_v27, 0.0  ;;  %v724_v50 = vrot.slane %v723_v42, 4 }
  0x29   : > { %v707_v49 = vadd.f32 %v706_v41, %v705_v32  ;;  %v733_v51 = vrot.slane %v732_v43, 4  ;;  %v741_v52 = vadd.f32 %v740_v46, %v739_v44  ;;  %v700_v53 = vsub.f32 0.0, %v684_v13  ;;  %v842_v46 = vld [vmem:[%s3894_s30 + $0x8] sm:$0xff] }
  0x2a   : > { %v701_v54 = vsub.f32 0.0, %v685_v19  ;;  %v716_v55 = vadd.f32 %v715_v45, %v714_v36  ;;  %v750_v56 = vadd.f32 %v749_v48, %v748_v47  ;;  %v725_v58 = vadd.f32 %v724_v50, %v723_v42  ;;  %v841_v45 = vld [vmem:[%s3894_s30] sm:$0xff]  ;;  %v843_v47 = vld [vmem:[%s3894_s30 + $0x10] sm:$0xff] }
  0x2b   : > { %v708_v57 = vrot.slane %v707_v49, 2  ;;  %v734_v59 = vadd.f32 %v733_v51, %v732_v43  ;;  %v742_v60 = vrot.slane %v741_v52, 4  ;;  %v757_v63 = vsel %vm702_vm0, %v698_v28, 0.0  ;;  %v844_v51 = vld [vmem:[%s3894_s30 + $0x18] sm:$0xff] }
  0x2c   : > { %v717_v61 = vrot.slane %v716_v55, 2  ;;  %v751_v62 = vrot.slane %v750_v56, 4  ;;  %v758_v0 = vsel %vm702_vm0, %v699_v29, 0.0  ;;  %v726_v17 = vrot.slane %v725_v58, 2 }
  0x2d   : > { %v709_v14 = vadd.f32 %v708_v57, %v707_v49  ;;  %v735_v18 = vrot.slane %v734_v59, 2  ;;  %v743_v20 = vadd.f32 %v742_v60, %v741_v52  ;;  %v766_v19 = vsel %vm702_vm0, %v700_v53, 0.0  ;;  %v845_v52 = vld [vmem:[%s3894_s30 + $0x20] sm:$0xff]  ;;  %v846_v53 = vld [vmem:[%s3894_s30 + $0x28] sm:$0xff] }
  0x2e   : > { %v718_v22 = vadd.f32 %v717_v61, %v716_v55  ;;  %v767_v23 = vsel %vm702_vm0, %v701_v54, 0.0  ;;  %v727_v24 = vadd.f32 %v726_v17, %v725_v58  ;;  %v752_v26 = vadd.f32 %v751_v62, %v750_v56  ;;  %v847_v55 = vld [vmem:[%s3894_s30 + $0x30] sm:$0xff]  ;;  %v848_v56 = vld [vmem:[%s3894_s30 + $0x38] sm:$0xff]  ;;  %v849_v57 = vld [vmem:[%s3894_s30 + $0x40] sm:$0xff] }
  0x2f   : > { %v744_v13 = vrot.slane %v743_v20, 2  ;;  %v736_v25 = vadd.f32 %v735_v18, %v734_v59  ;;  %v759_v27 = vadd.f32 %v758_v0, %v757_v63  ;;  %v710_v30 = vrot.slane %v709_v14, 1  ;;  %v851_v17 = vld [vmem:[%s3894_s30 + $0x50] sm:$0xff] }
  0x30   : > { %v719_v31 = vrot.slane %v718_v22, 1  ;;  %v768_v28 = vadd.f32 %v767_v23, %v766_v19  ;;  %v728_v29 = vrot.slane %v727_v24, 1  ;;  %v753_v34 = vrot.slane %v752_v26, 2 }
  0x31   : > { %v745_v32 = vadd.f32 %v744_v13, %v743_v20  ;;  %v737_v33 = vrot.slane %v736_v25, 1  ;;  %v760_v35 = vrot.slane %v759_v27, 4  ;;  %v711_v36 = vadd.f32 %v710_v30, %v709_v14  ;;  %v850_v14 = vld [vmem:[%s3894_s30 + $0x48] sm:$0xff]  ;;  %v852_v20 = vld [vmem:[%s3894_s30 + $0x58] sm:$0xff] }
  0x32   : > { %v720_v37 = vadd.f32 %v719_v31, %v718_v22  ;;  %v769_v38 = vrot.slane %v768_v28, 4  ;;  %v729_v41 = vadd.f32 %v728_v29, %v727_v24  ;;  %v3896_v43 = vadd.f32 %v753_v34, %v752_v26 }
  0x33   : > { %v746_v40 = vrot.slane %v745_v32, 1  ;;  %v738_v42 = vadd.f32 %v737_v33, %v736_v25  ;;  %v761_v44 = vadd.f32 %v760_v35, %v759_v27  ;;  %v3901_v48 = vmul.f32 0.0625, %v711_v36  ;;  %v853_v36 = vld [vmem:[%s3894_s30 + $0x60] sm:$0xff] }
  0x34   : > { %v3903_v49 = vadd.f32 %v769_v38, %v768_v28  ;;  %v3905_v50 = vmul.f32 0.0625, %v720_v37  ;;  %v857_v58 = vsub.f32 %v3795_v1, %v841_v45  ;;  %v858_v59 = vsub.f32 %v3798_v2, %v842_v46  ;;  %v854_v37 = vld [vmem:[%s3894_s30 + $0x68] sm:$0xff] }
  0x35   : > { %v747_v54 = vadd.f32 %v746_v40, %v745_v32  ;;  %v859_v60 = vsub.f32 %v3801_v3, %v843_v47  ;;  %v755_v61 = vrot.slane %v3896_v43, 1  ;;  %v762_v62 = vrot.slane %v761_v44, 2 }
  0x36   : > { %v3917_v63 = vmul.f32 0.0625, %v729_v41  ;;  %v3919_v0 = vmul.f32 0.0625, %v738_v42  ;;  %v784_v18 = vsel %vm702_vm0, %v3901_v48, 0.0  ;;  %v860_v22 = vsub.f32 %v3804_v4, %v844_v51 }
  0x37   : > { %v861_v13 = vsub.f32 %v3807_v5, %v845_v52  ;;  %v862_v19 = vsub.f32 %v3810_v6, %v846_v53  ;;  %v771_v23 = vrot.slane %v3903_v49, 2  ;;  %v785_v24 = vsel %vm702_vm0, %v3905_v50, 0.0 }
  0x38   : > { %v863_v25 = vsub.f32 %v3813_v7, %v847_v55  ;;  %v864_v26 = vsub.f32 %v3816_v8, %v848_v56  ;;  %v3934_v27 = vmul.f32 0.0625, %v747_v54  ;;  %v865_v30 = vsub.f32 %v3819_v9, %v849_v57  ;;  %v855_v55 = vld [vmem:[%s3894_s30 + $0x70] sm:$0xff] }
  0x39   : > { %v866_v31 = vsub.f32 %v3822_v10, %v850_v14  ;;  %v867_v28 = vsub.f32 %v3825_v11, %v851_v17  ;;  %v868_v32 = vsub.f32 %v3828_v12, %v852_v20  ;;  %v873_v29 = vand.u32 2147483647, %v857_v58 }
  0x3a   : > { %v874_v33 = vand.u32 2147483647, %v858_v59  ;;  %v875_v34 = vand.u32 2147483647, %v859_v60  ;;  %v786_v35 = vadd.f32 %v785_v24, %v784_v18  ;;  %v876_v38 = vand.u32 2147483647, %v860_v22 }
  0x3b   : > { %v877_v40 = vand.u32 2147483647, %v861_v13  ;;  %v878_v41 = vand.u32 2147483647, %v862_v19  ;;  %v787_v42 = vsel %vm702_vm0, %v3917_v63, 0.0  ;;  %v789_v45 = vsel %vm702_vm0, %v3919_v0, 0.0 }
  0x3c   : > { %v879_v46 = vand.u32 2147483647, %v863_v25  ;;  %v880_v47 = vand.u32 2147483647, %v864_v26  ;;  %v763_v51 = vadd.f32 %v762_v62, %v761_v44  ;;  %v881_v52 = vand.u32 2147483647, %v865_v30 }
  0x3d   : > { %v882_v53 = vand.u32 2147483647, %v866_v31  ;;  %v883_v54 = vand.u32 2147483647, %v867_v28  ;;  %v884_v56 = vand.u32 2147483647, %v868_v32  ;;  %v788_v60 = vadd.f32 %v787_v42, %v786_v35 }
  0x3e   : > { %v889_v57 = vsub.f32 0.0, %v873_v29  ;;  %v890_v58 = vsub.f32 0.0, %v874_v33  ;;  %v891_v59 = vsub.f32 0.0, %v875_v34  ;;  %v892_v14 = vsub.f32 0.0, %v876_v38  ;;  %v856_v32 = vld [vmem:[%s3894_s30 + $0x78] sm:$0xff] }
  0x3f   : > { %v893_v17 = vsub.f32 0.0, %v877_v40  ;;  %v894_v18 = vsub.f32 0.0, %v878_v41  ;;  %v869_v20 = vsub.f32 %v3833_v15, %v853_v36  ;;  %v870_v22 = vsub.f32 %v3836_v16, %v854_v37 }
  0x40   : > { %v895_v13 = vsub.f32 0.0, %v879_v46  ;;  %v896_v19 = vsub.f32 0.0, %v880_v47  ;;  %v871_v44 = vsub.f32 %v3843_v21, %v855_v55  ;;  %v897_v62 = vsub.f32 0.0, %v881_v52 }
  0x41   : > { %v898_v24 = vsub.f32 0.0, %v882_v53  ;;  %v899_v25 = vsub.f32 0.0, %v883_v54  ;;  %v900_v26 = vsub.f32 0.0, %v884_v56  ;;  %v905_v30 = vsel %vm702_vm0, %v889_v57, 0.0 }
  0x42   : > { %v906_v31 = vsel %vm702_vm0, %v890_v58, 0.0  ;;  %v914_v28 = vsel %vm702_vm0, %v891_v59, 0.0  ;;  %v915_v33 = vsel %vm702_vm0, %v892_v14, 0.0  ;;  %v923_v34 = vsel %vm702_vm0, %v893_v17, 0.0 }
  0x43   : > { %v907_v29 = vadd.f32 %v906_v31, %v905_v30  ;;  %v924_v35 = vsel %vm702_vm0, %v894_v18, 0.0  ;;  %v916_v36 = vadd.f32 %v915_v33, %v914_v28  ;;  %v932_v38 = vsel %vm702_vm0, %v895_v13, 0.0 }
  0x44   : > { %v925_v37 = vadd.f32 %v924_v35, %v923_v34  ;;  %v933_v40 = vsel %vm702_vm0, %v896_v19, 0.0  ;;  %v941_v46 = vsel %vm702_vm0, %v897_v62, 0.0  ;;  %v942_v47 = vsel %vm702_vm0, %v898_v24, 0.0 }
  0x45   : > { %v908_v41 = vrot.slane %v907_v29, 4  ;;  %v934_v42 = vadd.f32 %v933_v40, %v932_v38  ;;  %v872_v52 = vsub.f32 %v3863_v39, %v856_v32  ;;  %v917_v53 = vrot.slane %v916_v36, 4 }
  0x46   : > { %v926_v54 = vrot.slane %v925_v37, 4  ;;  %v943_v55 = vadd.f32 %v942_v47, %v941_v46  ;;  %v885_v56 = vand.u32 2147483647, %v869_v20  ;;  %v886_v57 = vand.u32 2147483647, %v870_v22 }
  0x47   : > { %v950_v58 = vsel %vm702_vm0, %v899_v25, 0.0  ;;  %v951_v59 = vsel %vm702_vm0, %v900_v26, 0.0  ;;  %v756_v14 = vadd.f32 %v755_v61, %v3896_v43  ;;  %v764_v17 = vrot.slane %v763_v51, 1 }
  0x48   : > { %v772_v18 = vadd.f32 %v771_v23, %v3903_v49  ;;  %v909_v13 = vadd.f32 %v908_v41, %v907_v29  ;;  %v918_v19 = vadd.f32 %v917_v53, %v916_v36  ;;  %v927_v62 = vadd.f32 %v926_v54, %v925_v37 }
  0x49   : > { %v935_v24 = vrot.slane %v934_v42, 4  ;;  %v790_v30 = vadd.f32 %v789_v45, %v788_v60  ;;  %v791_v20 = vsel %vm702_vm0, %v3934_v27, 0.0  ;;  %v944_v22 = vrot.slane %v943_v55, 4 }
  0x4a   : > { %v952_v25 = vadd.f32 %v951_v59, %v950_v58  ;;  %v887_v26 = vand.u32 2147483647, %v871_v44  ;;  %v888_v31 = vand.u32 2147483647, %v872_v52  ;;  %v901_v28 = vsub.f32 0.0, %v885_v56 }
  0x4b   : > { %v902_v32 = vsub.f32 0.0, %v886_v57  ;;  %v765_v43 = vadd.f32 %v764_v17, %v763_v51  ;;  %v773_v61 = vrot.slane %v772_v18, 1  ;;  %v3972_v33 = vmul.f32 0.0625, %v756_v14 }
  0x4c   : > { %v910_v34 = vrot.slane %v909_v13, 2  ;;  %v919_v49 = vrot.slane %v918_v19, 2  ;;  %v928_v23 = vrot.slane %v927_v62, 2  ;;  %v936_v29 = vadd.f32 %v935_v24, %v934_v42 }
  0x4d   : > { %v792_v35 = vadd.f32 %v791_v20, %v790_v30  ;;  %v945_v36 = vadd.f32 %v944_v22, %v943_v55  ;;  %v953_v45 = vrot.slane %v952_v25, 4  ;;  %v903_v60 = vsub.f32 0.0, %v887_v26 }
  0x4e   : > { %v904_v37 = vsub.f32 0.0, %v888_v31  ;;  %v959_v38 = vsel %vm702_vm0, %v901_v28, 0.0  ;;  %v960_v44 = vsel %vm702_vm0, %v902_v32, 0.0  ;;  %v774_v40 = vadd.f32 %v773_v61, %v772_v18 }
  0x4f   : > { %v3976_v41 = vmul.f32 0.0625, %v765_v43  ;;  %v793_v51 = vsel %vm702_vm0, %v3972_v33, 0.0  ;;  %v911_v46 = vadd.f32 %v910_v34, %v909_v13  ;;  %v920_v47 = vadd.f32 %v919_v49, %v918_v19 }
  0x50   : > { %v929_v52 = vadd.f32 %v928_v23, %v927_v62  ;;  %v937_v53 = vrot.slane %v936_v29, 2  ;;  %v946_v42 = vrot.slane %v945_v36, 2  ;;  %v954_v54 = vadd.f32 %v953_v45, %v952_v25 }
  0x51   : > { %v961_v55 = vadd.f32 %v960_v44, %v959_v38  ;;  %v794_v56 = vadd.f32 %v793_v51, %v792_v35  ;;  %v968_v57 = vsel %vm702_vm0, %v903_v60, 0.0  ;;  %v969_v58 = vsel %vm702_vm0, %v904_v37, 0.0 }
  0x52   : > { %v3982_v59 = vmul.f32 0.0625, %v774_v40  ;;  %v795_v14 = vsel %vm702_vm0, %v3976_v41, 0.0  ;;  %v912_v17 = vrot.slane %v911_v46, 1  ;;  %v921_v18 = vrot.slane %v920_v47, 1 }
  0x53   : > { %v930_v24 = vrot.slane %v929_v52, 1  ;;  %v938_v13 = vadd.f32 %v937_v53, %v936_v29  ;;  %v947_v19 = vadd.f32 %v946_v42, %v945_v36  ;;  %v955_v62 = vrot.slane %v954_v54, 2 }
  0x54   : > { %v962_v30 = vrot.slane %v961_v55, 4  ;;  %v970_v20 = vadd.f32 %v969_v58, %v968_v57  ;;  %v796_v22 = vadd.f32 %v795_v14, %v794_v56  ;;  %v797_v25 = vsel %vm702_vm0, %v3982_v59, 0.0  ;;  %v1043_v57 = vld [vmem:[%s3996_s18 + $0x8] sm:$0xff]  ;;  %v1044_v58 = vld [vmem:[%s3996_s18 + $0x10] sm:$0xff] }
  0x55   : > { %v913_v26 = vadd.f32 %v912_v17, %v911_v46  ;;  %v922_v31 = vadd.f32 %v921_v18, %v920_v47  ;;  %v931_v28 = vadd.f32 %v930_v24, %v929_v52  ;;  %v939_v32 = vrot.slane %v938_v13, 1  ;;  %v1045_v18 = vld [vmem:[%s3996_s18 + $0x18] sm:$0xff]  ;;  %v1046_v24 = vld [vmem:[%s3996_s18 + $0x20] sm:$0xff] }
  0x56   : > { %v948_v43 = vrot.slane %v947_v19, 1  ;;  %v956_v61 = vadd.f32 %v955_v62, %v954_v54  ;;  %v963_v34 = vadd.f32 %v962_v30, %v961_v55  ;;  %v971_v49 = vrot.slane %v970_v20, 4  ;;  %v1042_v54 = vld [vmem:[%s3996_s18] sm:$0xff]  ;;  %v1047_v62 = vld [vmem:[%s3996_s18 + $0x28] sm:$0xff]  ;;  %v1048_v30 = vld [vmem:[%s3996_s18 + $0x30] sm:$0xff] }
  0x57   : > { %v798_v23 = vadd.f32 %v797_v25, %v796_v22  ;;  %v3988_v35 = vmul.f32 0.0625, %v913_v26  ;;  %v3990_v29 = vmul.f32 0.0625, %v922_v31  ;;  %v940_v36 = vadd.f32 %v939_v32, %v938_v13  ;;  %v1050_v26 = vld [vmem:[%s3996_s18 + $0x40] sm:$0xff]  ;;  %v1051_v31 = vld [vmem:[%s3996_s18 + $0x48] sm:$0xff] }
  0x58   : > { %v957_v45 = vrot.slane %v956_v61, 1  ;;  %v964_v60 = vrot.slane %v963_v34, 2  ;;  %v972_v37 = vadd.f32 %v971_v49, %v970_v20  ;;  %v949_v38 = vadd.f32 %v948_v43, %v947_v19  ;;  %v1049_v20 = vld [vmem:[%s3996_s18 + $0x38] sm:$0xff] }
  0x59   : > { %v3998_v40 = vmul.f32 0.0625, %v931_v28  ;;  %v985_v51 = vsel %vm702_vm0, %v3988_v35, 0.0  ;;  %v986_v46 = vsel %vm702_vm0, %v3990_v29, 0.0  ;;  %v799_v53 = vadd.f32 1e-06, %v798_v23  ;;  %v1053_v49 = vld [vmem:[%s3996_s18 + $0x58] sm:$0xff] }
  0x5a   : > { %v973_v44 = vrot.slane %v972_v37, 2  ;;  %v958_v47 = vadd.f32 %v957_v45, %v956_v61  ;;  %v965_v52 = vadd.f32 %v964_v60, %v963_v34  ;;  %v4004_v42 = vmul.f32 0.0625, %v940_v36  ;;  %v1052_v34 = vld [vmem:[%s3996_s18 + $0x50] sm:$0xff] }
  0x5b   : > { %4988 = vst [vmem:[#allocation3_spill] sm:$0xff] %v3998_v40  ;;  %v4007_v55 = vmul.f32 0.0625, %v949_v38  ;;  %v987_v56 = vadd.f32 %v986_v46, %v985_v51  ;;  %v988_v17 = vsel %vm702_vm0, %v3998_v40, 0.0  ;;  %v1058_v22 = vsub.f32 %v3795_v1, %v1042_v54  ;;  %v1055_v54 = vld [vmem:[%s3996_s18 + $0x68] sm:$0xff] }
  0x5c   : > { %4989 = vst [vmem:[#allocation4_spill] sm:$0xff] %v4004_v42  ;;  %v974_v14 = vadd.f32 %v973_v44, %v972_v37  ;;  %v966_v13 = vrot.slane %v965_v52, 1  ;;  %v4015_v19 = vmul.f32 0.0625, %v958_v47  ;;  %3499 = vrcp.f32 %v799_v53  ;;  %v1054_v53 = vld [vmem:[%s3996_s18 + $0x60] sm:$0xff] }
  0x5d   : > { %4990 = vst [vmem:[#allocation5_spill] sm:$0xff] %v4007_v55  ;;  %v990_v25 = vsel %vm702_vm0, %v4004_v42, 0.0  ;;  %v1059_v28 = vsub.f32 %v3798_v2, %v1043_v57  ;;  %v1060_v32 = vsub.f32 %v3801_v3, %v1044_v58  ;;  %v989_v43 = vadd.f32 %v988_v17, %v987_v56 }
  0x5e   : > { %4991 = vst [vmem:[#allocation6_spill] sm:$0xff] %v4015_v19  ;;  %v992_v61 = vsel %vm702_vm0, %v4007_v55, 0.0  ;;  %v1061_v23 = vsub.f32 %v3804_v4, %v1045_v18  ;;  %v1062_v36 = vsub.f32 %v3807_v5, %v1046_v24  ;;  %v975_v45 = vrot.slane %v974_v14, 1 }
  0x5f   : > { %v1063_v60 = vsub.f32 %v3810_v6, %v1047_v62  ;;  %v1064_v37 = vsub.f32 %v3813_v7, %v1048_v30  ;;  %v1065_v38 = vsub.f32 %v3816_v8, %v1049_v20  ;;  %v967_v44 = vadd.f32 %v966_v13, %v965_v52 }
  0x60   : > { %v4038_v51 = vsel %vm702_vm0, %v4015_v19, 0.0  ;;  %v1066_v46 = vsub.f32 %v3819_v9, %v1050_v26  ;;  %v1067_v47 = vsub.f32 %v3822_v10, %v1051_v31  ;;  %v1068_v56 = vsub.f32 %v3825_v11, %v1052_v34 }
  0x61   : > { %v1069_v57 = vsub.f32 %v3828_v12, %v1053_v49  ;;  %v1074_v58 = vand.u32 2147483647, %v1058_v22  ;;  %v1075_v17 = vand.u32 2147483647, %v1059_v28  ;;  %v991_v18 = vadd.f32 %v990_v25, %v989_v43 }
  0x62   : > { %v1076_v24 = vand.u32 2147483647, %v1060_v32  ;;  %v1077_v62 = vand.u32 2147483647, %v1061_v23  ;;  %v1078_v52 = vand.u32 2147483647, %v1062_v36  ;;  %v976_v13 = vadd.f32 %v975_v45, %v974_v14 }
  0x63   : > { %v1079_v30 = vand.u32 2147483647, %v1063_v60  ;;  %v1080_v20 = vand.u32 2147483647, %v1064_v37  ;;  %v1081_v19 = vand.u32 2147483647, %v1065_v38  ;;  %v1070_v26 = vsub.f32 %v3833_v15, %v1054_v53 }
  0x64   : > { %v1071_v31 = vsub.f32 %v3836_v16, %v1055_v54  ;;  %v1082_v55 = vand.u32 2147483647, %v1066_v46  ;;  %v1083_v42 = vand.u32 2147483647, %v1067_v47  ;;  %v1084_v40 = vand.u32 2147483647, %v1068_v56 }
  0x65   : > { %v1085_v34 = vand.u32 2147483647, %v1069_v57  ;;  %v1090_v49 = vsub.f32 0.0, %v1074_v58  ;;  %v1091_v22 = vsub.f32 0.0, %v1075_v17  ;;  %v4048_v28 = vmul.f32 0.0625, %v967_v44  ;;  %v1056_v46 = vld [vmem:[%s3996_s18 + $0x70] sm:$0xff] }
  0x66   : > { %v1092_v25 = vsub.f32 0.0, %v1076_v24  ;;  %v1093_v32 = vsub.f32 0.0, %v1077_v62  ;;  %v1094_v14 = vsub.f32 0.0, %v1078_v52  ;;  %v993_v43 = vadd.f32 %v992_v61, %v991_v18  ;;  %v1057_v57 = vld [vmem:[%s3996_s18 + $0x78] sm:$0xff] }
  0x67   : > { %v1095_v23 = vsub.f32 0.0, %v1079_v30  ;;  %v1096_v36 = vsub.f32 0.0, %v1080_v20  ;;  %v1097_v45 = vsub.f32 0.0, %v1081_v19  ;;  %v1086_v60 = vand.u32 2147483647, %v1070_v26 }
  0x68   : > { %v1087_v37 = vand.u32 2147483647, %v1071_v31  ;;  %v1098_v16 = vsub.f32 0.0, %v1082_v55  ;;  %v1099_v38 = vsub.f32 0.0, %v1083_v42  ;;  %v1100_v47 = vsub.f32 0.0, %v1084_v40 }
  0x69   : > { %v1101_v53 = vsub.f32 0.0, %v1085_v34  ;;  %v1106_v54 = vsel %vm702_vm0, %v1090_v49, 0.0  ;;  %v1107_v44 = vsel %vm702_vm0, %v1091_v22, 0.0  ;;  %v3500_v56 = vpop.eup %3499  ;;  %v1115_v17 = vsel %vm702_vm0, %v1092_v25, 0.0 }
  0x6a   : > { %v1108_v58 = vadd.f32 %v1107_v44, %v1106_v54  ;;  %v1116_v61 = vsel %vm702_vm0, %v1093_v32, 0.0  ;;  %v1124_v19 = vsel %vm702_vm0, %v1094_v14, 0.0  ;;  %v1125_v55 = vsel %vm702_vm0, %v1095_v23, 0.0 }
  0x6b   : > { %v1117_v18 = vadd.f32 %v1116_v61, %v1115_v17  ;;  %v1133_v42 = vsel %vm702_vm0, %v1096_v36, 0.0  ;;  %v1134_v40 = vsel %vm702_vm0, %v1097_v45, 0.0  ;;  %v1072_v24 = vsub.f32 %v3843_v21, %v1056_v46 }
  0x6c   : > { %v1109_v62 = vrot.slane %v1108_v58, 4  ;;  %v1126_v52 = vadd.f32 %v1125_v55, %v1124_v19  ;;  %v1135_v30 = vadd.f32 %v1134_v40, %v1133_v42  ;;  %v1073_v20 = vsub.f32 %v3863_v39, %v1057_v57 }
  0x6d   : > { %v1102_v26 = vsub.f32 0.0, %v1086_v60  ;;  %v1103_v31 = vsub.f32 0.0, %v1087_v37  ;;  %v1118_v34 = vrot.slane %v1117_v18, 4  ;;  %v1142_v49 = vsel %vm702_vm0, %v1098_v16, 0.0 }
  0x6e   : > { %v1143_v22 = vsel %vm702_vm0, %v1099_v38, 0.0  ;;  %v1151_v25 = vsel %vm702_vm0, %v1100_v47, 0.0  ;;  %v1152_v32 = vsel %vm702_vm0, %v1101_v53, 0.0  ;;  %v4066_v14 = vmul.f32 0.0625, %v976_v13 }
  0x6f   : > { %v995_v21 = vadd.f32 %v4038_v51, %v993_v43  ;;  %v996_v23 = vsel %vm702_vm0, %v4048_v28, 0.0  ;;  %v1110_v36 = vadd.f32 %v1109_v62, %v1108_v58  ;;  %v1119_v45 = vadd.f32 %v1118_v34, %v1117_v18 }
  0x70   : > { %v1127_v60 = vrot.slane %v1126_v52, 4  ;;  %v1136_v37 = vrot.slane %v1135_v30, 4  ;;  %v1144_v46 = vadd.f32 %v1143_v22, %v1142_v49  ;;  %v1153_v54 = vadd.f32 %v1152_v32, %v1151_v25 }
  0x71   : > { %v1088_v16 = vand.u32 2147483647, %v1072_v24  ;;  %v1089_v44 = vand.u32 2147483647, %v1073_v20  ;;  %v1160_v38 = vsel %vm702_vm0, %v1102_v26, 0.0  ;;  %v1161_v47 = vsel %vm702_vm0, %v1103_v31, 0.0 }
  0x72   : > { %v801_v13 = vmul.f32 %v3500_v56, %v3901_v48  ;;  %v997_v53 = vadd.f32 %v996_v23, %v995_v21  ;;  %v998_v51 = vsel %vm702_vm0, %v4066_v14, 0.0  ;;  %v1111_v43 = vrot.slane %v1110_v36, 2 }
  0x73   : > { %v1120_v57 = vrot.slane %v1119_v45, 2  ;;  %v1128_v58 = vadd.f32 %v1127_v60, %v1126_v52  ;;  %v1137_v17 = vadd.f32 %v1136_v37, %v1135_v30  ;;  %v802_v61 = vmul.f32 %v3500_v56, %v3905_v50  ;;  %v4116_v60 = vld [vmem:[%s4963_s6 + $0x8] sm:$0xff] }
  0x74   : > { %v1145_v19 = vrot.slane %v1144_v46, 4  ;;  %v1154_v18 = vrot.slane %v1153_v54, 4  ;;  %v1162_v55 = vadd.f32 %v1161_v47, %v1160_v38  ;;  %v803_v42 = vmul.f32 %v3500_v56, %v3917_v63 }
  0x75   : > { %v804_v40 = vmul.f32 %v3500_v56, %v3919_v0  ;;  %v1104_v24 = vsub.f32 0.0, %v1088_v16  ;;  %v1105_v48 = vsub.f32 0.0, %v1089_v44  ;;  %v805_v62 = vmul.f32 %v3500_v56, %v3934_v27 }
  0x76   : > { %v4081_v20 = vmul.f32 %v3500_v56, %v3972_v33  ;;  %v4084_v52 = vmul.f32 %v3500_v56, %v3976_v41  ;;  %v999_v30 = vadd.f32 %v998_v51, %v997_v53  ;;  %v1112_v50 = vadd.f32 %v1111_v43, %v1110_v36 }
  0x77   : > { %v1121_v26 = vadd.f32 %v1120_v57, %v1119_v45  ;;  %v1129_v31 = vrot.slane %v1128_v58, 2  ;;  %v1138_v34 = vrot.slane %v1137_v17, 2  ;;  %v4093_v63 = vmul.f32 %v3500_v56, %v3982_v59 }
  0x78   : > { %v1146_v0 = vadd.f32 %v1145_v19, %v1144_v46  ;;  %v1155_v27 = vadd.f32 %v1154_v18, %v1153_v54  ;;  %v1163_v33 = vrot.slane %v1162_v55, 4  ;;  %v4096_v41 = vmul.f32 %v801_v13, %v3795_v1 }
  0x79   : > { %v4099_v49 = vmul.f32 %v801_v13, %v3798_v2  ;;  %v1169_v22 = vsel %vm702_vm0, %v1104_v24, 0.0  ;;  %v1170_v25 = vsel %vm702_vm0, %v1105_v48, 0.0  ;;  %v4104_v32 = vmul.f32 %v802_v61, %v3801_v3  ;;  %v1260_v2 = vld [vmem:[%s4090_s12 + $0x8] sm:$0xff] }
  0x7a   : > { %v4107_v59 = vmul.f32 %v802_v61, %v3804_v4  ;;  %v4110_v56 = vmul.f32 %v803_v42, %v3807_v5  ;;  %v1000_v21 = vadd.f32 1e-06, %v999_v30  ;;  %v1113_v23 = vrot.slane %v1112_v50, 1 }
  0x7b   : > { %v1122_v1 = vrot.slane %v1121_v26, 1  ;;  %v1130_v36 = vadd.f32 %v1129_v31, %v1128_v58  ;;  %v1139_v45 = vadd.f32 %v1138_v34, %v1137_v17  ;;  %v1147_v37 = vrot.slane %v1146_v0, 2  ;;  %v1262_v31 = vld [vmem:[%s4090_s12 + $0x18] sm:$0xff]  ;;  %v1259_v34 = vld [vmem:[%s4090_s12] sm:$0xff] }
  0x7c   : > { %v1156_v3 = vrot.slane %v1155_v27, 2  ;;  %v1164_v46 = vadd.f32 %v1163_v33, %v1162_v55  ;;  %v1171_v54 = vadd.f32 %v1170_v25, %v1169_v22  ;;  %v4119_v4 = vmul.f32 %v803_v42, %v3810_v6 }
  0x7d   : > { %v4122_v5 = vmul.f32 %v804_v40, %v3813_v7  ;;  %v4125_v16 = vmul.f32 %v804_v40, %v3816_v8  ;;  %v4128_v44 = vmul.f32 %v805_v62, %v3819_v9  ;;  %v4131_v38 = vmul.f32 %v805_v62, %v3822_v10 }
  0x7e   : > { %v4135_v47 = vmul.f32 %v4081_v20, %v3825_v11  ;;  %3501 = vrcp.f32 %v1000_v21  ;;  %v1278_v6 = vmul.f32 %v4116_v60, %v1260_v2  ;;  %v1114_v13 = vadd.f32 %v1113_v23, %v1112_v50 }
  0x7f   : > { %v1123_v53 = vadd.f32 %v1122_v1, %v1121_v26  ;;  %v1131_v7 = vrot.slane %v1130_v36, 1  ;;  %v1140_v51 = vrot.slane %v1139_v45, 1  ;;  %v1148_v43 = vadd.f32 %v1147_v37, %v1146_v0  ;;  %v4155_v0 = vld [vmem:[%s4963_s6] sm:$0xff] }
  0x80   : > { %v1157_v8 = vadd.f32 %v1156_v3, %v1155_v27  ;;  %v1165_v57 = vrot.slane %v1164_v46, 2  ;;  %v1172_v58 = vrot.slane %v1171_v54, 4  ;;  %v4138_v10 = vmul.f32 0.0625, %v1114_v13 }
  0x81   : > { %v1132_v9 = vadd.f32 %v1131_v7, %v1130_v36  ;;  %v1141_v17 = vadd.f32 %v1140_v51, %v1139_v45  ;;  %v4140_v61 = vmul.f32 0.0625, %v1123_v53  ;;  %v1149_v11 = vrot.slane %v1148_v43, 1  ;;  %v1261_v36 = vld [vmem:[%s4090_s12 + $0x10] sm:$0xff]  ;;  %v1264_v45 = vld [vmem:[%s4090_s12 + $0x28] sm:$0xff] }
  0x82   : > { %v1158_v19 = vrot.slane %v1157_v8, 1  ;;  %v1166_v18 = vadd.f32 %v1165_v57, %v1164_v46  ;;  %v1173_v55 = vadd.f32 %v1172_v58, %v1171_v54  ;;  %v1186_v24 = vsel %vm702_vm0, %v4138_v10, 0.0  ;;  %v1263_v54 = vld [vmem:[%s4090_s12 + $0x20] sm:$0xff]  ;;  %v1265_v58 = vld [vmem:[%s4090_s12 + $0x30] sm:$0xff] }
  0x83   : > { %v4142_v42 = vmul.f32 0.0625, %v1132_v9  ;;  %v4144_v40 = vmul.f32 0.0625, %v1141_v17  ;;  %v1187_v48 = vsel %vm702_vm0, %v4140_v61, 0.0  ;;  %v1150_v62 = vadd.f32 %v1149_v11, %v1148_v43  ;;  %v4192_v17 = vld [vmem:[%s3786_s24 + $0x68] sm:$0xff] }
  0x84   : > { %v1159_v30 = vadd.f32 %v1158_v19, %v1157_v8  ;;  %v1167_v50 = vrot.slane %v1166_v18, 1  ;;  %v1174_v26 = vrot.slane %v1173_v55, 2  ;;  %v1188_v27 = vadd.f32 %v1187_v48, %v1186_v24  ;;  %v4199_v24 = vld [vmem:[%s3786_s24 + $0x70] sm:$0xff] }
  0x85   : > { %v1189_v33 = vsel %vm702_vm0, %v4142_v42, 0.0  ;;  %v1191_v22 = vsel %vm702_vm0, %v4144_v40, 0.0  ;;  %3503 = vtanh.f32 %v1278_v6  ;;  %v4161_v23 = vmul.f32 0.0625, %v1150_v62 }
  0x86   : > { %v1168_v25 = vadd.f32 %v1167_v50, %v1166_v18  ;;  %v1175_v21 = vadd.f32 %v1174_v26, %v1173_v55  ;;  %v4163_v1 = vmul.f32 0.0625, %v1159_v30  ;;  %v4169_v2 = vmul.f32 %v4081_v20, %v3828_v12  ;;  %v1266_v12 = vld [vmem:[%s4090_s12 + $0x38] sm:$0xff]  ;;  %v1268_v55 = vld [vmem:[%s4090_s12 + $0x48] sm:$0xff] }
  0x87   : > { %v1190_v37 = vadd.f32 %v1189_v33, %v1188_v27  ;;  %v1280_v3 = vmul.f32 %v4116_v60, %v1262_v31  ;;  %v1277_v46 = vmul.f32 %v4155_v0, %v1259_v34  ;;  %v4176_v6 = vmul.f32 %v4084_v52, %v3833_v15  ;;  %v4211_v31 = vld [vmem:[%s3786_s24] sm:$0xff] }
  0x88   : > { %v1176_v13 = vrot.slane %v1175_v21, 1  ;;  %v4178_v53 = vmul.f32 0.0625, %v1168_v25  ;;  %v1193_v7 = vsel %vm702_vm0, %v4161_v23, 0.0  ;;  %v1279_v51 = vmul.f32 %v4155_v0, %v1261_v36  ;;  %v4235_v25 = vld [vmem:[%s3786_s24 + $0x18] sm:$0xff] }
  0x89   : > { %v1192_v20 = vadd.f32 %v1191_v22, %v1190_v37  ;;  %3505 = vtanh.f32 %v1280_v3  ;;  %v1282_v43 = vmul.f32 %v4116_v60, %v1264_v45  ;;  %v1195_v15 = vsel %vm702_vm0, %v4163_v1, 0.0  ;;  %v4228_v22 = vld [vmem:[%s3786_s24 + $0x10] sm:$0xff]  ;;  %4994 = vst [vmem:[#allocation9_spill] sm:$0xff] %v4235_v25  ;;  %v4242_v45 = vld [vmem:[%s3786_s24 + $0x20] sm:$0xff]  ;;  %v4249_v37 = vld [vmem:[%s3786_s24 + $0x28] sm:$0xff] }
  0x8a   : > { %v1177_v8 = vadd.f32 %v1176_v13, %v1175_v21  ;;  %3507 = vtanh.f32 %v1277_v46  ;;  %v1281_v57 = vmul.f32 %v4155_v0, %v1263_v54  ;;  %v822_v11 = vmul.f32 %v4192_v17, %v4084_v52  ;;  %4993 = vst [vmem:[#allocation8_spill] sm:$0xff] %v4228_v22  ;;  %4995 = vst [vmem:[#allocation10_spill] sm:$0xff] %v4242_v45  ;;  %v4256_v3 = vld [vmem:[%s3786_s24 + $0x30] sm:$0xff]  ;;  %v1267_v46 = vld [vmem:[%s4090_s12 + $0x40] sm:$0xff] }
  0x8b   : > { %v4189_v9 = vpop.eup %3501  ;;  %v1194_v19 = vadd.f32 %v1193_v7, %v1192_v20  ;;  %3509 = vtanh.f32 %v1279_v51  ;;  %v1284_v18 = vmul.f32 %v4116_v60, %v1266_v12  ;;  %v823_v48 = vmul.f32 %v4199_v24, %v4093_v63  ;;  %4996 = vst [vmem:[#allocation11_spill] sm:$0xff] %v4249_v37  ;;  %4997 = vst [vmem:[#allocation12_spill] sm:$0xff] %v4256_v3  ;;  %v4264_v54 = vld [vmem:[%s3786_s24 + $0x38] sm:$0xff]  ;;  %v4271_v13 = vld [vmem:[%s3786_s24 + $0x40] sm:$0xff] }
  0x8c   : > { %v4203_v62 = vmul.f32 0.0625, %v1177_v8  ;;  %v1197_v30 = vsel %vm702_vm0, %v4178_v53, 0.0  ;;  %3511 = vtanh.f32 %v1282_v43  ;;  %v824_v52 = vmul.f32 %v4093_v63, %v3863_v39  ;;  %v4221_v63 = vld [vmem:[%s3786_s24 + $0x8] sm:$0xff]  ;;  %4998 = vst [vmem:[#allocation13_spill] sm:$0xff] %v4264_v54  ;;  %4999 = vst [vmem:[#allocation14_spill] sm:$0xff] %v4271_v13  ;;  %v4287_v51 = vld [vmem:[%s3786_s24 + $0x50] sm:$0xff] }
  0x8d   : > { %v1196_v50 = vadd.f32 %v1195_v15, %v1194_v19  ;;  %3513 = vtanh.f32 %v1281_v57  ;;  %v1283_v26 = vmul.f32 %v4155_v0, %v1265_v58  ;;  %v4215_v34 = vadd.f32 %v4211_v31, %v4096_v41  ;;  %v4280_v12 = vld [vmem:[%s3786_s24 + $0x48] sm:$0xff]  ;;  %v1270_v8 = vld [vmem:[%s4090_s12 + $0x58] sm:$0xff]  ;;  %v4309_v58 = vld [vmem:[%s3786_s24 + $0x60] sm:$0xff] }
  0x8e   : > { %4992 = vst [vmem:[#allocation7_spill] sm:$0xff] %v4203_v62  ;;  %v1199_v27 = vsel %vm702_vm0, %v4203_v62, 0.0  ;;  %3515 = vtanh.f32 %v1284_v18  ;;  %v1286_v39 = vmul.f32 %v4116_v60, %v1268_v55  ;;  %v4225_v33 = vadd.f32 %v4221_v63, %v4099_v49  ;;  %5000 = vst [vmem:[#allocation15_spill] sm:$0xff] %v4280_v12  ;;  %v4326_v55 = vld [vmem:[%s3786_s24 + $0x78] sm:$0xff] }
  0x8f   : > { %v4232_v41 = vadd.f32 %v4228_v22, %v4104_v32  ;;  %v4239_v21 = vadd.f32 %v4235_v25, %v4107_v59  ;;  %v1198_v36 = vadd.f32 %v1197_v30, %v1196_v50  ;;  %v4246_v49 = vadd.f32 %v4242_v45, %v4110_v56  ;;  %5002 = vst [vmem:[#allocation17_spill] sm:$0xff] %v4309_v58  ;;  %v5004_v50 = vld [vmem:[#allocation4_spill] sm:$0xff] }
  0x90   : > { %v4253_v32 = vadd.f32 %v4249_v37, %v4119_v4  ;;  %v4260_v59 = vadd.f32 %v4256_v3, %v4122_v5  ;;  %v4268_v56 = vadd.f32 %v4264_v54, %v4125_v16  ;;  %v4275_v4 = vadd.f32 %v4271_v13, %v4128_v44  ;;  %v4294_v44 = vld [vmem:[%s3786_s24 + $0x58] sm:$0xff] }
  0x91   : > { %v1200_v7 = vadd.f32 %v1199_v27, %v1198_v36  ;;  %3517 = vtanh.f32 %v1283_v26  ;;  %v4284_v20 = vadd.f32 %v4280_v12, %v4131_v38  ;;  %v4291_v16 = vadd.f32 %v4287_v51, %v4135_v47  ;;  %5001 = vst [vmem:[#allocation16_spill] sm:$0xff] %v4294_v44  ;;  %v5005_v26 = vld [vmem:[#allocation5_spill] sm:$0xff] }
  0x92   : > { %v4277_v5 = vpop.eup %3503  ;;  %v4298_v43 = vadd.f32 %v4294_v44, %v4169_v2  ;;  %3519 = vtanh.f32 %v1286_v39  ;;  %v1002_v15 = vmul.f32 %v4189_v9, %v3988_v35  ;;  %v1003_v38 = vmul.f32 %v4189_v9, %v3990_v29  ;;  %v5003_v29 = vld [vmem:[#allocation3_spill] sm:$0xff]  ;;  %v5006_v39 = vld [vmem:[#allocation6_spill] sm:$0xff] }
  0x93   : > { %v1201_v57 = vadd.f32 1e-06, %v1200_v7  ;;  %3347 = vmatprep.subr.msk.mxu0 %vm1309_vm1, %v4277_v5  ;;  %v1285_v47 = vmul.f32 %v4155_v0, %v1267_v46  ;;  %v4313_v2 = vadd.f32 %v4309_v58, %v4176_v6  ;;  %v4316_v19 = vadd.f32 %v4192_v17, %v822_v11  ;;  %v1269_v7 = vld [vmem:[%s4090_s12 + $0x50] sm:$0xff] }
  0x94   : > { %v4319_v35 = vadd.f32 %v4199_v24, %v823_v48  ;;  %v1004_v18 = vmul.f32 %v4189_v9, %v5003_v29  ;;  %3348 = vmatpush3.xpose.msk.msra.mxu0 %vm1309_vm1, %v4277_v5  ;;  %v4329_v30 = vadd.f32 %v4326_v55, %v824_v52  ;;  %v1005_v6 = vmul.f32 %v4189_v9, %v5004_v50 }
  0x95   : > { %3521 = vrcp.f32 %v1201_v57  ;;  %v1288_v11 = vmul.f32 %v4116_v60, %v1270_v8  ;;  %v1006_v27 = vmul.f32 %v4189_v9, %v5005_v26  ;;  %v1007_v36 = vmul.f32 %v4189_v9, %v5006_v39  ;;  %v1272_v26 = vld [vmem:[%s4090_s12 + $0x68] sm:$0xff] }
  0x96   : > { %v4334_v48 = vpop.eup %3505  ;;  %v1008_v46 = vmul.f32 %v4189_v9, %v4048_v28  ;;  %v1009_v52 = vmul.f32 %v4189_v9, %v4066_v14  ;;  %v1010_v57 = vmul.f32 %v4211_v31, %v1002_v15  ;;  %v1011_v8 = vmul.f32 %v4221_v63, %v1002_v15  ;;  %v1271_v9 = vld [vmem:[%s4090_s12 + $0x60] sm:$0xff] }
  0x97   : > { %v3508_v29 = vpop.eup %3507  ;;  %v1012_v50 = vmul.f32 %v4228_v22, %v1003_v38  ;;  %3354 = vmatprep.subr.msk.mxu1 %vm1309_vm1, %v4334_v48  ;;  %3523 = vtanh.f32 %v1285_v47  ;;  %v1013_v28 = vmul.f32 %v4235_v25, %v1003_v38  ;;  %v1014_v62 = vmul.f32 %v4242_v45, %v1004_v18 }
  0x98   : > { %v3510_v39 = vpop.eup %3509  ;;  %v1015_v14 = vmul.f32 %v4249_v37, %v1004_v18  ;;  %3355 = vmatpush3.xpose.msk.msra.mxu1 %vm1309_vm1, %v4334_v48  ;;  %3349 = vmatprep.subr.msk.mxu0 %vm1309_vm1, %v3508_v29  ;;  %v1016_v22 = vmul.f32 %v4256_v3, %v1005_v6  ;;  %v1017_v47 = vmul.f32 %v4264_v54, %v1005_v6  ;;  %3525 = vtanh.f32 %v1288_v11  ;;  %v1274_v18 = vld [vmem:[%s4090_s12 + $0x78] sm:$0xff] }
  0x99   : > { %v4358_v15 = vpop.eup %3511  ;;  %3356 = vmatprep.subr.msk.mxu1 %vm1309_vm1, %v3510_v39  ;;  %3350 = vmatpush3.xpose.msk.msra.mxu0 %vm1309_vm1, %v3508_v29  ;;  %v1287_v38 = vmul.f32 %v4155_v0, %v1269_v7  ;;  %v1018_v45 = vmul.f32 %v4271_v13, %v1006_v27  ;;  %v1019_v25 = vmul.f32 %v4280_v12, %v1006_v27  ;;  %v1273_v27 = vld [vmem:[%s4090_s12 + $0x70] sm:$0xff] }
  0x9a   : > { %v3514_v37 = vpop.eup %3513  ;;  %3351 = vmatprep.mubr.msk.f32.mxu0 %vm1309_vm1, %v3508_v29  ;;  %3358 = vmatprep.mubr.msk.f32.mxu1 %vm1309_vm1, %v3510_v39  ;;  %v1290_v6 = vmul.f32 %v4116_v60, %v1272_v26  ;;  %v1020_v3 = vmul.f32 %v4287_v51, %v1007_v36  ;;  %v1021_v11 = vmul.f32 %v4294_v44, %v1007_v36 }
  0x9b   : > { %v4371_v54 = vpop.eup %3515  ;;  %v1022_v7 = vmul.f32 %v4309_v58, %v1008_v46  ;;  %3361 = vmatprep.subr.msk.mxu0 %vm1309_vm1, %v4358_v15  ;;  %v1289_v13 = vmul.f32 %v4155_v0, %v1271_v9  ;;  %v1023_v29 = vmul.f32 %v4192_v17, %v1008_v46  ;;  %v1024_v12 = vmul.f32 %v4199_v24, %v1009_v52  ;;  %v5015_v9 = vld [vmem:[#allocation15_spill] sm:$0xff] }
  0x9c   : > { %3357 = vmatpush3.xpose.msk.msra.mxu1 %vm1309_vm1, %v3510_v39  ;;  %3352 = vmatmul.mubr.msk.f32.vlgmr.msra.gmra.mxu0 %vm1309_vm1, %v4277_v5  ;;  %v1292_v26 = vmul.f32 %v4116_v60, %v1274_v18  ;;  %v1025_v36 = vmul.f32 %v4326_v55, %v1009_v52  ;;  %v4388_v58 = vadd.f32 %v1010_v57, %v4215_v34  ;;  %3527 = vtanh.f32 %v1287_v38  ;;  %v5016_v38 = vld [vmem:[#allocation16_spill] sm:$0xff] }
  0x9d   : > { %v4391_v44 = vadd.f32 %v1011_v8, %v4225_v33  ;;  %3362 = vmatpush3.xpose.msk.msra.mxu0 %vm1309_vm1, %v4358_v15  ;;  %3368 = vmatprep.subr.msk.mxu1 %vm1309_vm1, %v4371_v54  ;;  %v4398_v5 = vadd.f32 %v1012_v50, %v4232_v41  ;;  %v4401_v60 = vadd.f32 %v1013_v28, %v4239_v21  ;;  %3529 = vtanh.f32 %v1290_v6  ;;  %v5013_v28 = vld [vmem:[#allocation13_spill] sm:$0xff] }
  0x9e   : > { %v3518_v46 = vpop.eup %3517  ;;  %3363 = vmatprep.subr.msk.mxu0 %vm1309_vm1, %v3514_v37  ;;  %3365 = vmatprep.mubr.msk.f32.mxu0 %vm1309_vm1, %v3514_v37  ;;  %v1291_v34 = vmul.f32 %v4155_v0, %v1273_v27  ;;  %v1030_v52 = vadd.f32 %v1014_v62, %v4246_v49  ;;  %v1031_v57 = vadd.f32 %v1015_v14, %v4253_v32  ;;  %3531 = vtanh.f32 %v1289_v13  ;;  %v5017_v6 = vld [vmem:[#allocation17_spill] sm:$0xff] }
  0x9f   : > { %v4406_v33 = vpop.eup %3519  ;;  %v1032_v8 = vadd.f32 %v1016_v22, %v4260_v59  ;;  %3359 = vmatmul.mubr.msk.f32.vlgmr.msra.gmra.mxu1 %vm1309_vm1, %v4334_v48  ;;  %v1033_v41 = vadd.f32 %v1017_v47, %v4268_v56  ;;  %v1034_v21 = vadd.f32 %v1018_v45, %v4275_v4  ;;  %v1035_v50 = vadd.f32 %v1019_v25, %v4284_v20  ;;  %v5012_v48 = vld [vmem:[#allocation12_spill] sm:$0xff] }
  0xa0   : > { %3369 = vmatpush3.xpose.msk.msra.mxu1 %vm1309_vm1, %v4371_v54  ;;  %3372 = vmatprep.mubr.msk.f32.mxu1 %vm1309_vm1, %v3518_v46  ;;  %3533 = vtanh.f32 %v1292_v26  ;;  %v1036_v0 = vadd.f32 %v1020_v3, %v4291_v16  ;;  %v1037_v62 = vadd.f32 %v1021_v11, %v4298_v43  ;;  %v4422_v22 = vadd.f32 %v1022_v7, %v4313_v2  ;;  %v5007_v16 = vld [vmem:[#allocation7_spill] sm:$0xff] }
  0xa1   : > { %3364 = vmatpush3.xpose.msk.msra.mxu0 %vm1309_vm1, %v3514_v37  ;;  %3370 = vmatprep.subr.msk.mxu1 %vm1309_vm1, %v3518_v46  ;;  %v1039_v25 = vadd.f32 %v1023_v29, %v4316_v19  ;;  %v1040_v49 = vadd.f32 %v1024_v12, %v4319_v35  ;;  %v1041_v32 = vadd.f32 %v1025_v36, %v4329_v30  ;;  %3535 = vtanh.f32 %v1291_v34  ;;  %v5011_v35 = vld [vmem:[#allocation11_spill] sm:$0xff] }
  0xa2   : > { %v3522_v45 = vpop.eup %3521  ;;  %3375 = vmatprep.subr.msk.mxu0 %vm1309_vm1, %v4406_v33 }
  0xa3   : > { %v1203_v3 = vmul.f32 %v3522_v45, %v4138_v10  ;;  %v1204_v59 = vmul.f32 %v3522_v45, %v4140_v61  ;;  %v1205_v56 = vmul.f32 %v3522_v45, %v4142_v42  ;;  %v1206_v37 = vmul.f32 %v3522_v45, %v4144_v40  ;;  %v5008_v42 = vld [vmem:[#allocation8_spill] sm:$0xff]  ;;  %v5009_v40 = vld [vmem:[#allocation9_spill] sm:$0xff] }
  0xa4   : > { %v3524_v13 = vpop.eup %3523  ;;  %v1207_v4 = vmul.f32 %v3522_v45, %v4161_v23  ;;  %v1208_v20 = vmul.f32 %v3522_v45, %v4163_v1  ;;  %v1209_v12 = vmul.f32 %v3522_v45, %v4178_v53  ;;  %v1210_v43 = vmul.f32 %v3522_v45, %v5007_v16  ;;  %3366 = vmatmul.mubr.msk.f32.vlgmr.msra.gmra.mxu0 %vm1309_vm1, %v4358_v15  ;;  %v5010_v1 = vld [vmem:[#allocation10_spill] sm:$0xff]  ;;  %v2180_v16 = vld [vmem:[%s4533_s19 + $0x68] sm:$0xff] }
  0xa5   : > { %v1211_v10 = vmul.f32 %v4211_v31, %v1203_v3  ;;  %v1212_v61 = vmul.f32 %v4221_v63, %v1203_v3  ;;  %v1213_v2 = vmul.f32 %v5008_v42, %v1204_v59  ;;  %v1214_v19 = vmul.f32 %v5009_v40, %v1204_v59  ;;  %3371 = vmatpush3.xpose.msk.msra.mxu1 %vm1309_vm1, %v3518_v46  ;;  %v4446_v23 = vpop.eup %3525  ;;  %v5014_v31 = vld [vmem:[#allocation14_spill] sm:$0xff]  ;;  %v2176_v3 = vld [vmem:[%s4533_s19 + $0x48] sm:$0xff] }
  0xa6   : > { %v1215_v53 = vmul.f32 %v5010_v1, %v1205_v56  ;;  %v1216_v30 = vmul.f32 %v5011_v35, %v1205_v56  ;;  %v1217_v39 = vmul.f32 %v5012_v48, %v1206_v37  ;;  %v1218_v14 = vmul.f32 %v5013_v28, %v1206_v37  ;;  %3376 = vmatpush3.xpose.msk.msra.mxu0 %vm1309_vm1, %v4406_v33  ;;  %v2171_v59 = vld [vmem:[%s4533_s19 + $0x20] sm:$0xff]  ;;  %v2177_v56 = vld [vmem:[%s4533_s19 + $0x50] sm:$0xff]  ;;  %v2172_v37 = vld [vmem:[%s4533_s19 + $0x28] sm:$0xff] }
  0xa7   : > { %v1219_v63 = vmul.f32 %v5014_v31, %v1207_v4  ;;  %v1220_v15 = vmul.f32 %v5015_v9, %v1207_v4  ;;  %v1221_v47 = vmul.f32 %v4287_v51, %v1208_v20  ;;  %v1222_v18 = vmul.f32 %v5016_v38, %v1208_v20  ;;  %3377 = vmatprep.subr.msk.mxu0 %vm1309_vm1, %v3524_v13  ;;  %v2173_v4 = vld [vmem:[%s4533_s19 + $0x30] sm:$0xff]  ;;  %v2179_v20 = vld [vmem:[%s4533_s19 + $0x60] sm:$0xff]  ;;  %v2407_v42 = vld [vmem:[%s4966_s9 + $0x18] sm:$0xff] }
  0xa8   : > { %v1223_v11 = vmul.f32 %v5017_v6, %v1209_v12  ;;  %v1224_v7 = vmul.f32 %v4192_v17, %v1209_v12  ;;  %v1225_v27 = vmul.f32 %v4199_v24, %v1210_v43  ;;  %v1226_v29 = vmul.f32 %v4326_v55, %v1210_v43  ;;  %3373 = vmatmul.mubr.msk.f32.vlgmr.msra.gmra.mxu1 %vm1309_vm1, %v4371_v54  ;;  %v2174_v12 = vld [vmem:[%s4533_s19 + $0x38] sm:$0xff]  ;;  %v2181_v43 = vld [vmem:[%s4533_s19 + $0x70] sm:$0xff]  ;;  %v2405_v40 = vld [vmem:[%s4966_s9 + $0x8] sm:$0xff] }
  0xa9   : > { %v1227_v51 = vadd.f32 %v1211_v10, %v4388_v58  ;;  %v1228_v26 = vadd.f32 %v1212_v61, %v4391_v44  ;;  %v1229_v36 = vadd.f32 %v1213_v2, %v4398_v5  ;;  %v1230_v46 = vadd.f32 %v1214_v19, %v4401_v60  ;;  %3382 = vmatprep.subr.msk.mxu1 %vm1309_vm1, %v4446_v23  ;;  %v3528_v17 = vpop.eup %3527  ;;  %v2182_v10 = vld [vmem:[%s4533_s19 + $0x78] sm:$0xff]  ;;  %v2408_v61 = vld [vmem:[%s4966_s9 + $0x20] sm:$0xff]  ;;  %v2406_v2 = vld [vmem:[%s4966_s9 + $0x10] sm:$0xff] }
  0xaa   : > { %v1231_v24 = vadd.f32 %v1215_v53, %v1030_v52  ;;  %v1232_v55 = vadd.f32 %v1216_v30, %v1031_v57  ;;  %v1233_v34 = vadd.f32 %v1217_v39, %v1032_v8  ;;  %v1234_v54 = vadd.f32 %v1218_v14, %v1033_v41  ;;  %3378 = vmatpush3.xpose.msk.msra.mxu0 %vm1309_vm1, %v3524_v13  ;;  %v3530_v58 = vpop.eup %3529  ;;  %v2404_v19 = vld [vmem:[%s4966_s9] sm:$0xff] }
  0xab   : > { %v1235_v44 = vadd.f32 %v1219_v63, %v1034_v21  ;;  %v1236_v5 = vadd.f32 %v1220_v15, %v1035_v50  ;;  %v1237_v45 = vadd.f32 %v1221_v47, %v1036_v0  ;;  %v1238_v60 = vadd.f32 %v1222_v18, %v1037_v62  ;;  %1243 = vst.msk [vmem:[%s4463_s29] sm:$0xff] %vm702_vm0, %v1227_v51  ;;  %v3532_v52 = vpop.eup %3531  ;;  %v2167_v62 = vld [vmem:[%s4533_s19] sm:$0xff] }
  0xac   : > { %1244 = vst.msk [vmem:[%s4463_s29 + $0x8] sm:$0xff] %vm702_vm0, %v1228_v26  ;;  %1245 = vst.msk [vmem:[%s4463_s29 + $0x10] sm:$0xff] %vm702_vm0, %v1229_v36  ;;  %3383 = vmatpush3.xpose.msk.msra.mxu1 %vm1309_vm1, %v4446_v23  ;;  %v1239_v57 = vadd.f32 %v1223_v11, %v4422_v22  ;;  %v1240_v8 = vadd.f32 %v1224_v7, %v1039_v25  ;;  %v1241_v41 = vadd.f32 %v1225_v27, %v1040_v49  ;;  %v2168_v22 = vld [vmem:[%s4533_s19 + $0x8] sm:$0xff]  ;;  %v2169_v25 = vld [vmem:[%s4533_s19 + $0x10] sm:$0xff] }
  0xad   : > { %1246 = vst.msk [vmem:[%s4463_s29 + $0x18] sm:$0xff] %vm702_vm0, %v1230_v46  ;;  %v1242_v21 = vadd.f32 %v1226_v29, %v1041_v32  ;;  %1247 = vst.msk [vmem:[%s4463_s29 + $0x20] sm:$0xff] %vm702_vm0, %v1231_v24  ;;  %3379 = vmatprep.mubr.msk.f32.mxu0 %vm1309_vm1, %v3524_v13  ;;  %v3534_v50 = vpop.eup %3533  ;;  %3384 = vmatprep.subr.msk.mxu1 %vm1309_vm1, %v3528_v17  ;;  %v2175_v49 = vld [vmem:[%s4533_s19 + $0x40] sm:$0xff]  ;;  %v2170_v32 = vld [vmem:[%s4533_s19 + $0x18] sm:$0xff] }
  0xae   : > { %1248 = vst.msk [vmem:[%s4463_s29 + $0x28] sm:$0xff] %vm702_vm0, %v1232_v55  ;;  %1249 = vst.msk [vmem:[%s4463_s29 + $0x30] sm:$0xff] %vm702_vm0, %v1233_v34  ;;  %3380 = vmatmul.mubr.msk.f32.vlgmr.msra.gmra.mxu0 %vm1309_vm1, %v4406_v33  ;;  %3389 = vmatprep.subr.msk.mxu0 %vm1309_vm1, %v3530_v58  ;;  %v3536_v0 = vpop.eup %3535  ;;  %v2183_v33 = vld [vmem:[%s4964_s7] sm:$0xf]  ;;  %v2178_v13 = vld [vmem:[%s4533_s19 + $0x58] sm:$0xff] }
  0xaf   : > { %1250 = vst.msk [vmem:[%s4463_s29 + $0x38] sm:$0xff] %vm702_vm0, %v1234_v54  ;;  %1251 = vst.msk [vmem:[%s4463_s29 + $0x40] sm:$0xff] %vm702_vm0, %v1235_v44  ;;  %3386 = vmatprep.mubr.msk.f32.mxu1 %vm1309_vm1, %v3528_v17  ;;  %3390 = vmatpush3.xpose.msk.msra.mxu0 %vm1309_vm1, %v3530_v58 }
  0xb0   : > { %1252 = vst.msk [vmem:[%s4463_s29 + $0x48] sm:$0xff] %vm702_vm0, %v1236_v5  ;;  %1253 = vst.msk [vmem:[%s4463_s29 + $0x50] sm:$0xff] %vm702_vm0, %v1237_v45  ;;  %3385 = vmatpush3.xpose.msk.msra.mxu1 %vm1309_vm1, %v3528_v17  ;;  %3391 = vmatprep.subr.msk.mxu0 %vm1309_vm1, %v3532_v52 }
  0xb1   : > { %1254 = vst.msk [vmem:[%s4463_s29 + $0x58] sm:$0xff] %vm702_vm0, %v1238_v60  ;;  %1255 = vst.msk [vmem:[%s4463_s29 + $0x60] sm:$0xff] %vm702_vm0, %v1239_v57  ;;  %3396 = vmatprep.subr.msk.mxu1 %vm1309_vm1, %v3534_v50  ;;  %3393 = vmatprep.mubr.msk.f32.mxu0 %vm1309_vm1, %v3532_v52 }
  0xb2   : > { %1256 = vst.msk [vmem:[%s4463_s29 + $0x68] sm:$0xff] %vm702_vm0, %v1240_v8  ;;  %1257 = vst.msk [vmem:[%s4463_s29 + $0x70] sm:$0xff] %vm702_vm0, %v1241_v41 }
  0xb3   : > { %1258 = vst.msk [vmem:[%s4463_s29 + $0x78] sm:$0xff] %vm702_vm0, %v1242_v21  ;;  %3387 = vmatmul.mubr.msk.f32.vlgmr.msra.gmra.mxu1 %vm1309_vm1, %v4446_v23  ;;  %3392 = vmatpush3.xpose.msk.msra.mxu0 %vm1309_vm1, %v3532_v52 }
  0xb4   : > { %3397 = vmatpush3.xpose.msk.msra.mxu1 %vm1309_vm1, %v3534_v50  ;;  %3403 = vmatprep.subr.msk.mxu0 %vm2239_vm2, %v2183_v33 }
  0xb5   : > { %3398 = vmatprep.subr.msk.mxu1 %vm1309_vm1, %v3536_v0  ;;  %3400 = vmatprep.mubr.msk.f32.mxu1 %vm1309_vm1, %v3536_v0 }
  0xb6   : > { %3394 = vmatmul.mubr.msk.f32.vlgmr.msra.gmra.mxu0 %vm1309_vm1, %v3530_v58 }
  0xb7   : > { %3404 = vmatpush3.msk.msra.mxu0 %vm2239_vm2, %v2183_v33  ;;  %3405 = vmatprep.mubr.msk.f32.mxu0 %vm1309_vm1, %v2167_v62 }
  0xb8   : > { %3399 = vmatpush3.xpose.msk.msra.mxu1 %vm1309_vm1, %v3536_v0  ;;  %v4677_v0 = vld [vmem:[%s4965_s8] ss:$0 sm:$0xff] }
  0xb9   : > { %3489 = vmatprep.subr.msk.mxu1 %vm2239_vm2, %v2183_v33 }
  0xba   : > { %3406 = vmatmul.mubr.msk.f32.vlgmr.msra.gmra.mxu0 %vm1309_vm1, %v2168_v22 }
  0xbb   : > { %3401 = vmatmul.mubr.msk.f32.vlgmr.msra.gmra.mxu1 %vm1309_vm1, %v3534_v50  ;;  %3408 = vmatprep.mubr.msk.f32.mxu0 %vm1309_vm1, %v2169_v25 }
  0xbc   : > { %3490 = vmatpush3.msk.msra.mxu1 %vm2239_vm2, %v2183_v33  ;;  %3417 = vmatprep.mubr.msk.f32.mxu1 %vm1309_vm1, %v2175_v49 }
  0xbd   : > { %3429 = vmatprep.subr.mxu1 %v2408_v61 }
  0xbe   : > { %3409 = vmatmul.mubr.msk.f32.gmra.mxu0 %vm1309_vm1, %v2170_v32 }
  0xbf   : > { %3418 = vmatmul.mubr.msk.f32.vlgmr.msra.gmra.mxu1 %vm1309_vm1, %v2176_v3  ;;  %3411 = vmatprep.mubr.msk.f32.mxu0 %vm1309_vm1, %v2171_v59 }
  0xc0   : > { %3420 = vmatprep.mubr.msk.f32.mxu1 %vm1309_vm1, %v2177_v56  ;;  %3430 = vmatpush3.msra.mxu1 %v2408_v61 }
  0xc1   : > { %3431 = vmatprep.subr.mxu1 %v2407_v42 }
  0xc2   : > { %3412 = vmatmul.mubr.msk.f32.gmra.mxu0 %vm1309_vm1, %v2172_v37  ;;  %3432 = vmatpush3.msra.mxu1 %v2407_v42 }
  0xc3   : > { %3421 = vmatmul.mubr.msk.f32.gmra.mxu1 %vm1309_vm1, %v2178_v13  ;;  %3414 = vmatprep.mubr.msk.f32.mxu0 %vm1309_vm1, %v2173_v4 }
  0xc4   : > { %3423 = vmatprep.mubr.msk.f32.mxu1 %vm1309_vm1, %v2179_v20  ;;  %3433 = vmatprep.subr.mxu1 %v2406_v2 }
  0xc5   : > { %3434 = vmatpush3.msra.mxu1 %v2406_v2 }
  0xc6   : > { %3415 = vmatmul.mubr.msk.f32.gmra.mxu0 %vm1309_vm1, %v2174_v12  ;;  %3435 = vmatprep.subr.mxu1 %v2405_v40 }
  0xc7   : > { %3424 = vmatmul.mubr.msk.f32.gmra.mxu1 %vm1309_vm1, %v2180_v16 }
  0xc8   : > { %3426 = vmatprep.mubr.msk.f32.mxu1 %vm1309_vm1, %v2181_v43  ;;  %3436 = vmatpush3.msra.mxu1 %v2405_v40 }
  0xc9   : > { %3437 = vmatprep.subr.mxu1 %v2404_v19 }
  0xca   : > { %3438 = vmatpush3.msra.mxu1 %v2404_v19 }
  0xcb   : > { %3427 = vmatmul.mubr.msk.f32.gmra.mxu1 %vm1309_vm1, %v2182_v10 }
 0x15c   : > { %v4593_v23 = vpop.f32.mrf.mxu0 }
 0x15d   : > { %v1959_v1 = vmax.f32 %v4593_v23, 0.0 }
 0x15e   : > { %v4596_v53 = vpop.f32.mrf.mxu0 }
 0x15f   : > { %v4598_v35 = vpop.f32.mrf.mxu1  ;;  %v1958_v30 = vmax.f32 %v4596_v53, 0.0  ;;  %v1978_v48 = vsel %vm1974_vm3, %v1959_v1, -inf }
 0x160   : > { %v1961_v39 = vmax.f32 %v4598_v35, 0.0  ;;  %1979 = vmax.xlane.f32.xlu0 %v1978_v48 }
 0x161   : > { %v4605_v28 = vpop.f32.mrf.mxu1  ;;  %v1975_v63 = vsel %vm1974_vm3, %v1958_v30, -inf }
 0x162   : > { %v1984_v14 = vsel %vm1974_vm3, %v1961_v39, -inf  ;;  %v1960_v31 = vmax.f32 %v4605_v28, 0.0 }
 0x163   : > { %1985 = vmax.xlane.f32.xlu1 %v1984_v14 }
 0x164   : > { %v1981_v9 = vsel %vm1974_vm3, %v1960_v31, -inf  ;;  %1976 = vmax.xlane.f32.xlu0 %v1975_v63  ;;  %v4617_v15 = vpop.f32.mrf.mxu0 }
 0x165   : > { %v1963_v47 = vmax.f32 %v4617_v15, 0.0 }
 0x166   : > { %v4620_v38 = vpop.f32.mrf.mxu0 }
 0x167   : > { %1982 = vmax.xlane.f32.xlu1 %v1981_v9  ;;  %v1962_v18 = vmax.f32 %v4620_v38, 0.0  ;;  %v1990_v11 = vsel %vm1974_vm3, %v1963_v47, -inf }
 0x168   : > { %v4623_v6 = vpop.f32.mrf.mxu1 }
 0x169   : > { %v1965_v7 = vmax.f32 %v4623_v6, 0.0  ;;  %v1987_v27 = vsel %vm1974_vm3, %v1962_v18, -inf }
 0x16a   : > { %v4632_v29 = vpop.f32.mrf.mxu1  ;;  %1988 = vmax.xlane.f32.xlu0 %v1987_v27 }
 0x16b   : > { %1991 = vmax.xlane.f32.xlu1 %v1990_v11  ;;  %v1964_v51 = vmax.f32 %v4632_v29, 0.0  ;;  %v1996_v26 = vsel %vm1974_vm3, %v1965_v7, -inf }
 0x16d   : > { %v1993_v46 = vsel %vm1974_vm3, %v1964_v51, -inf }
 0x16e   : > { %v4638_v36 = vpop.f32.mrf.mxu0  ;;  %1994 = vmax.xlane.f32.xlu0 %v1993_v46 }
 0x16f   : > { %v1967_v17 = vmax.f32 %v4638_v36, 0.0  ;;  %1997 = vmax.xlane.f32.xlu1 %v1996_v26 }
 0x170   : > { %v4644_v24 = vpop.f32.mrf.mxu0 }
 0x171   : > { %v1966_v55 = vmax.f32 %v4644_v24, 0.0  ;;  %v2002_v34 = vsel %vm1974_vm3, %v1967_v17, -inf }
 0x173   : > { %v4650_v54 = vpop.f32.mrf.mxu1  ;;  %v1999_v58 = vsel %vm1974_vm3, %v1966_v55, -inf  ;;  %2003 = vmax.xlane.f32.xlu1 %v2002_v34 }
 0x174   : > { %v1969_v44 = vmax.f32 %v4650_v54, 0.0  ;;  %2000 = vmax.xlane.f32.xlu0 %v1999_v58 }
 0x175   : > { %v4656_v5 = vpop.f32.mrf.mxu1 }
 0x176   : > { %v1968_v45 = vmax.f32 %v4656_v5, 0.0  ;;  %v2008_v60 = vsel %vm1974_vm3, %v1969_v44, -inf  ;;  %v4662_v52 = vpop.f32.mrf.mxu0 }
 0x177   : > { %2009 = vmax.xlane.f32.xlu1 %v2008_v60  ;;  %v1971_v57 = vmax.f32 %v4662_v52, 0.0 }
 0x178   : > { %v2005_v8 = vsel %vm1974_vm3, %v1968_v45, -inf  ;;  %v4668_v41 = vpop.f32.mrf.mxu0 }
 0x179   : > { %2006 = vmax.xlane.f32.xlu0 %v2005_v8  ;;  %v1970_v21 = vmax.f32 %v4668_v41, 0.0  ;;  %v2014_v50 = vsel %vm1974_vm3, %v1971_v57, -inf }
 0x17a   : > { %v3407_v62 = vpop.f32.mrf.mxu0 }
 0x17b   : > { %v4679_v33 = vpop.f32.mrf.mxu1  ;;  %2015 = vmax.xlane.f32.xlu1 %v2014_v50  ;;  %v2011_v25 = vsel %vm1974_vm3, %v1970_v21, -inf  ;;  %v2315_v49 = vadd.f32 %v3407_v62, %v4677_v0 }
 0x17c   : > { %v1973_v22 = vmax.f32 %v4679_v33, 0.0  ;;  %v2309_v3 = vpop.f32.mrf.mxu0 }
 0x17d   : > { %v4686_v32 = vpop.f32.mrf.mxu1  ;;  %2012 = vmax.xlane.f32.xlu0 %v2011_v25  ;;  %v2310_v56 = vadd.f32 %v4677_v0, %v2309_v3  ;;  %v2389_v16 = vmax.f32 %v2315_v49, 0.0 }
 0x17e   : > { %v1972_v59 = vmax.f32 %v4686_v32, 0.0  ;;  %v2020_v37 = vsel %vm1974_vm3, %v1973_v22, -inf  ;;  %v3410_v13 = vpop.f32.mrf.mxu0 }
 0x17f   : > { %v3419_v4 = vpop.f32.mrf.mxu1  ;;  %v2388_v20 = vmax.f32 %v2310_v56, 0.0  ;;  %2021 = vmax.xlane.f32.xlu1 %v2020_v37  ;;  %v2325_v43 = vadd.f32 %v3410_v13, %v4677_v0 }
 0x180   : > { %v2017_v12 = vsel %vm1974_vm3, %v1972_v59, -inf  ;;  %v2319_v10 = vpop.f32.mrf.mxu0  ;;  %v2355_v37 = vadd.f32 %v3419_v4, %v4677_v0 }
 0x181   : > { %2018 = vmax.xlane.f32.xlu0 %v2017_v12  ;;  %v2349_v61 = vpop.f32.mrf.mxu1  ;;  %v2320_v42 = vadd.f32 %v4677_v0, %v2319_v10  ;;  %3439 = vmatprep.mubr.msk.f32.mxu1 %vm2416_vm4, %v2388_v20  ;;  %v2391_v48 = vmax.f32 %v2325_v43, 0.0 }
 0x182   : > { %v3413_v2 = vpop.f32.mrf.mxu0  ;;  %3440 = vmatmul.mubr.msk.f32.vlgmr.msra.gmra.mxu1 %vm2416_vm4, %v2389_v16  ;;  %v2350_v34 = vadd.f32 %v4677_v0, %v2349_v61  ;;  %v2397_v16 = vmax.f32 %v2355_v37, 0.0 }
 0x183   : > { %v3422_v40 = vpop.f32.mrf.mxu1  ;;  %v2390_v19 = vmax.f32 %v2320_v42, 0.0  ;;  %v2335_v14 = vadd.f32 %v3413_v2, %v4677_v0 }
 0x184   : > { %v2329_v63 = vpop.f32.mrf.mxu0  ;;  %v2396_v49 = vmax.f32 %v2350_v34, 0.0  ;;  %v2365_v43 = vadd.f32 %v3422_v40, %v4677_v0 }
 0x185   : > { %v2359_v9 = vpop.f32.mrf.mxu1  ;;  %v2330_v11 = vadd.f32 %v4677_v0, %v2329_v63  ;;  %3442 = vmatprep.mubr.msk.f32.mxu1 %vm2416_vm4, %v2390_v19  ;;  %v2393_v58 = vmax.f32 %v2335_v14, 0.0  ;;  %v2626_v63 = vld [vmem:[%s4968_s11] sm:$0x3] }
 0x186   : > { %v3416_v27 = vpop.f32.mrf.mxu0  ;;  %3443 = vmatmul.mubr.msk.f32.gmra.mxu1 %vm2416_vm4, %v2391_v48  ;;  %v2360_v3 = vadd.f32 %v4677_v0, %v2359_v9  ;;  %v2399_v42 = vmax.f32 %v2365_v43, 0.0  ;;  %3463 = vmatprep.subr.msk.mxu0 %vm2682_vm5, %v2626_v63 }
 0x187   : > { %v3425_v26 = vpop.f32.mrf.mxu1  ;;  %v2392_v46 = vmax.f32 %v2330_v11, 0.0  ;;  %v2345_v60 = vadd.f32 %v3416_v27, %v4677_v0  ;;  %3464 = vmatpush3.msk.msra.mxu0 %vm2682_vm5, %v2626_v63 }
 0x188   : > { %v2339_v8 = vpop.f32.mrf.mxu0  ;;  %v2398_v20 = vmax.f32 %v2360_v3, 0.0  ;;  %v2375_v2 = vadd.f32 %v3425_v26, %v4677_v0 }
 0x189   : > { %v2369_v50 = vpop.f32.mrf.mxu1  ;;  %v2340_v62 = vadd.f32 %v4677_v0, %v2339_v8  ;;  %3445 = vmatprep.mubr.msk.f32.mxu1 %vm2416_vm4, %v2392_v46  ;;  %v2395_v56 = vmax.f32 %v2345_v60, 0.0 }
 0x18a   : > { %3446 = vmatmul.mubr.msk.f32.gmra.mxu1 %vm2416_vm4, %v2393_v58  ;;  %v2370_v12 = vadd.f32 %v4677_v0, %v2369_v50  ;;  %v2401_v48 = vmax.f32 %v2375_v2, 0.0 }
 0x18b   : > { %v2394_v25 = vmax.f32 %v2340_v62, 0.0  ;;  %v3428_v13 = vpop.f32.mrf.mxu1 }
 0x18c   : > { %v2400_v61 = vmax.f32 %v2370_v12, 0.0  ;;  %v2385_v14 = vadd.f32 %v3428_v13, %v4677_v0 }
 0x18d   : > { %3448 = vmatprep.mubr.msk.f32.mxu1 %vm2416_vm4, %v2394_v25  ;;  %v2379_v10 = vpop.f32.mrf.mxu1 }
 0x18e   : > { %3449 = vmatmul.mubr.msk.f32.gmra.mxu1 %vm2416_vm4, %v2395_v56  ;;  %v2380_v4 = vadd.f32 %v4677_v0, %v2379_v10  ;;  %v2403_v40 = vmax.f32 %v2385_v14, 0.0 }
 0x18f   : > { %3451 = vmatprep.mubr.msk.f32.mxu1 %vm2416_vm4, %v2396_v49 }
 0x190   : > { %v2402_v19 = vmax.f32 %v2380_v4, 0.0 }
 0x192   : > { %3452 = vmatmul.mubr.msk.f32.gmra.mxu1 %vm2416_vm4, %v2397_v16 }
 0x193   : > { %3454 = vmatprep.mubr.msk.f32.mxu1 %vm2416_vm4, %v2398_v20 }
 0x196   : > { %3455 = vmatmul.mubr.msk.f32.gmra.mxu1 %vm2416_vm4, %v2399_v42 }
 0x197   : > { %3457 = vmatprep.mubr.msk.f32.mxu1 %vm2416_vm4, %v2400_v61 }
 0x19a   : > { %3458 = vmatmul.mubr.msk.f32.gmra.mxu1 %vm2416_vm4, %v2401_v48 }
 0x19b   : > { %3460 = vmatprep.mubr.msk.f32.mxu1 %vm2416_vm4, %v2402_v19 }
 0x19e   : > { %3461 = vmatmul.mubr.msk.f32.gmra.mxu1 %vm2416_vm4, %v2403_v40 }
 0x1e9   : > { %v1980_v9 = vpop.xlane.xlu0 %1979 }
 0x1ea   : > { %v2024_v11 = vsub.f32 %v1959_v1, %v1980_v9 }
 0x1ec   : > { %v1986_v27 = vpop.xlane.xlu1 %1985  ;;  %v2041_v0 = vmul.f32 1.442695, %v2024_v11 }
 0x1ed   : > { %v2026_v26 = vsub.f32 %v1961_v39, %v1986_v27  ;;  %v1977_v46 = vpop.xlane.xlu0 %1976 }
 0x1ee   : > { %3537 = vpow2.f32 %v2041_v0  ;;  %v2023_v34 = vsub.f32 %v1958_v30, %v1977_v46 }
 0x1ef   : > { %v2045_v58 = vmul.f32 1.442695, %v2026_v26 }
 0x1f0   : > { %v1983_v60 = vpop.xlane.xlu1 %1982  ;;  %v2039_v8 = vmul.f32 1.442695, %v2023_v34 }
 0x1f1   : > { %3539 = vpow2.f32 %v2045_v58  ;;  %v2025_v50 = vsub.f32 %v1960_v31, %v1983_v60 }
 0x1f2   : > { %3541 = vpow2.f32 %v2039_v8 }
 0x1f3   : > { %v2043_v23 = vmul.f32 1.442695, %v2025_v50  ;;  %v1989_v1 = vpop.xlane.xlu0 %1988 }
 0x1f4   : > { %v1992_v62 = vpop.xlane.xlu1 %1991  ;;  %v2027_v35 = vsub.f32 %v1962_v18, %v1989_v1 }
 0x1f5   : > { %3543 = vpow2.f32 %v2043_v23  ;;  %v2028_v39 = vsub.f32 %v1963_v47, %v1992_v62 }
 0x1f6   : > { %v2047_v53 = vmul.f32 1.442695, %v2027_v35 }
 0x1f7   : > { %v2049_v30 = vmul.f32 1.442695, %v2028_v39  ;;  %v1995_v25 = vpop.xlane.xlu0 %1994 }
 0x1f8   : > { %3545 = vpow2.f32 %v2047_v53  ;;  %v1998_v49 = vpop.xlane.xlu1 %1997  ;;  %v2029_v28 = vsub.f32 %v1964_v51, %v1995_v25  ;;  %v3198_v53 = vld [vmem:[%s4967_s10] ss:$0 sm:$0xff] }
 0x1f9   : > { %3547 = vpow2.f32 %v2049_v30  ;;  %v2030_v31 = vsub.f32 %v1965_v7, %v1998_v49 }
 0x1fa   : > { %v2051_v3 = vmul.f32 1.442695, %v2029_v28 }
 0x1fb   : > { %v4745_v56 = vpop.eup %3537  ;;  %v2053_v38 = vmul.f32 1.442695, %v2030_v31 }
 0x1fc   : > { %3549 = vpow2.f32 %v2051_v3  ;;  %v2004_v18 = vpop.xlane.xlu1 %2003  ;;  %v2074_v47 = vsel %vm1974_vm3, %v4745_v56, 0.0 }
 0x1fd   : > { %v2001_v15 = vpop.xlane.xlu0 %2000  ;;  %3551 = vpow2.f32 %v2053_v38  ;;  %v2032_v37 = vsub.f32 %v1967_v17, %v2004_v18  ;;  %2075 = vadd.xlane.f32.xlu1 %v2074_v47 }
 0x1fe   : > { %v2031_v29 = vsub.f32 %v1966_v55, %v2001_v15  ;;  %v4753_v6 = vpop.eup %3539 }
 0x1ff   : > { %v4755_v7 = vpop.eup %3541  ;;  %v2057_v51 = vmul.f32 1.442695, %v2032_v37  ;;  %v2080_v12 = vsel %vm1974_vm3, %v4753_v6, 0.0 }
 0x200   : > { %v2055_v13 = vmul.f32 1.442695, %v2031_v29  ;;  %v2010_v20 = vpop.xlane.xlu1 %2009  ;;  %v2071_v16 = vsel %vm1974_vm3, %v4755_v7, 0.0 }
 0x201   : > { %3553 = vpow2.f32 %v2057_v51  ;;  %v2034_v36 = vsub.f32 %v1969_v44, %v2010_v20  ;;  %2081 = vadd.xlane.f32.xlu1 %v2080_v12  ;;  %2072 = vadd.xlane.f32.xlu0 %v2071_v16 }
 0x202   : > { %v2007_v17 = vpop.xlane.xlu0 %2006  ;;  %v4763_v24 = vpop.eup %3543  ;;  %3555 = vpow2.f32 %v2055_v13 }
 0x203   : > { %v2033_v55 = vsub.f32 %v1968_v45, %v2007_v17  ;;  %v2061_v43 = vmul.f32 1.442695, %v2034_v36  ;;  %v2077_v4 = vsel %vm1974_vm3, %v4763_v24, 0.0 }
 0x204   : > { %v2016_v61 = vpop.xlane.xlu1 %2015 }
 0x205   : > { %v2059_v10 = vmul.f32 1.442695, %v2033_v55  ;;  %v4769_v42 = vpop.eup %3545  ;;  %3557 = vpow2.f32 %v2061_v43  ;;  %v2036_v54 = vsub.f32 %v1971_v57, %v2016_v61  ;;  %2078 = vadd.xlane.f32.xlu0 %v2077_v4 }
 0x206   : > { %v2013_v44 = vpop.xlane.xlu0 %2012  ;;  %v4773_v2 = vpop.eup %3547  ;;  %v2083_v40 = vsel %vm1974_vm3, %v4769_v42, 0.0 }
 0x207   : > { %3559 = vpow2.f32 %v2059_v10  ;;  %v2035_v5 = vsub.f32 %v1970_v21, %v2013_v44  ;;  %v2065_v45 = vmul.f32 1.442695, %v2036_v54  ;;  %v2086_v19 = vsel %vm1974_vm3, %v4773_v2, 0.0 }
 0x208   : > { %2087 = vadd.xlane.f32.xlu1 %v2086_v19  ;;  %v2022_v14 = vpop.xlane.xlu1 %2021 }
 0x209   : > { %v2063_v48 = vmul.f32 1.442695, %v2035_v5  ;;  %v4781_v52 = vpop.eup %3549  ;;  %3561 = vpow2.f32 %v2065_v45  ;;  %v2038_v57 = vsub.f32 %v1973_v22, %v2022_v14  ;;  %2084 = vadd.xlane.f32.xlu0 %v2083_v40 }
 0x20a   : > { %v2019_v63 = vpop.xlane.xlu0 %2018  ;;  %v4785_v41 = vpop.eup %3551  ;;  %v2089_v0 = vsel %vm1974_vm3, %v4781_v52, 0.0 }
 0x20b   : > { %3563 = vpow2.f32 %v2063_v48  ;;  %v2037_v21 = vsub.f32 %v1972_v59, %v2019_v63  ;;  %v2069_v9 = vmul.f32 1.442695, %v2038_v57  ;;  %v2092_v11 = vsel %vm1974_vm3, %v4785_v41, 0.0 }
 0x20c   : > { %2093 = vadd.xlane.f32.xlu1 %v2092_v11 }
 0x20d   : > { %v2067_v27 = vmul.f32 1.442695, %v2037_v21  ;;  %3565 = vpow2.f32 %v2069_v9  ;;  %2090 = vadd.xlane.f32.xlu0 %v2089_v0 }
 0x20e   : > { %v4793_v33 = vpop.eup %3553 }
 0x20f   : > { %3567 = vpow2.f32 %v2067_v27  ;;  %v4795_v22 = vpop.eup %3555  ;;  %v2098_v32 = vsel %vm1974_vm3, %v4793_v33, 0.0 }
 0x210   : > { %2099 = vadd.xlane.f32.xlu1 %v2098_v32  ;;  %v2095_v59 = vsel %vm1974_vm3, %v4795_v22, 0.0 }
 0x211   : > { %2096 = vadd.xlane.f32.xlu0 %v2095_v59 }
 0x212   : > { %v4801_v26 = vpop.eup %3557 }
 0x213   : > { %v2104_v34 = vsel %vm1974_vm3, %v4801_v26, 0.0 }
 0x214   : > { %v4803_v46 = vpop.eup %3559  ;;  %2105 = vadd.xlane.f32.xlu1 %v2104_v34 }
 0x215   : > { %v2101_v58 = vsel %vm1974_vm3, %v4803_v46, 0.0 }
 0x216   : > { %2102 = vadd.xlane.f32.xlu0 %v2101_v58  ;;  %v4809_v60 = vpop.eup %3561 }
 0x217   : > { %v2110_v50 = vsel %vm1974_vm3, %v4809_v60, 0.0 }
 0x218   : > { %v4811_v8 = vpop.eup %3563  ;;  %2111 = vadd.xlane.f32.xlu1 %v2110_v50 }
 0x219   : > { %v2107_v23 = vsel %vm1974_vm3, %v4811_v8, 0.0 }
 0x21a   : > { %2108 = vadd.xlane.f32.xlu0 %v2107_v23  ;;  %v4817_v1 = vpop.eup %3565 }
 0x21b   : > { %v2116_v35 = vsel %vm1974_vm3, %v4817_v1, 0.0 }
 0x21c   : > { %v4819_v62 = vpop.eup %3567  ;;  %2117 = vadd.xlane.f32.xlu1 %v2116_v35 }
 0x21d   : > { %v2113_v39 = vsel %vm1974_vm3, %v4819_v62, 0.0 }
 0x21e   : > { %2114 = vadd.xlane.f32.xlu0 %v2113_v39 }
 0x242   : > { %v3441_v30 = vpop.f32.mrf.mxu1 }
 0x243   : > { %v2537_v25 = vadd.f32 %v3441_v30, %v3198_v53 }
 0x244   : > { %v2531_v49 = vpop.f32.mrf.mxu1 }
 0x245   : > { %v2532_v28 = vadd.f32 %v3198_v53, %v2531_v49  ;;  %v2611_v38 = vmax.f32 %v2537_v25, 0.0 }
 0x246   : > { %v3444_v31 = vpop.f32.mrf.mxu1 }
 0x247   : > { %v2610_v3 = vmax.f32 %v2532_v28, 0.0  ;;  %v2547_v18 = vadd.f32 %v3444_v31, %v3198_v53 }
 0x248   : > { %v2541_v15 = vpop.f32.mrf.mxu1 }
 0x249   : > { %v2542_v47 = vadd.f32 %v3198_v53, %v2541_v15  ;;  %3465 = vmatprep.mubr.msk.f32.mxu0 %vm702_vm0, %v2610_v3  ;;  %v2613_v51 = vmax.f32 %v2547_v18, 0.0 }
 0x24a   : > { %v3447_v37 = vpop.f32.mrf.mxu1  ;;  %3466 = vmatmul.mubr.msk.f32.vlgmr.msra.gmra.mxu0 %vm702_vm0, %v2611_v38 }
 0x24b   : > { %v2612_v29 = vmax.f32 %v2542_v47, 0.0  ;;  %v2557_v13 = vadd.f32 %v3447_v37, %v3198_v53 }
 0x24c   : > { %v2551_v20 = vpop.f32.mrf.mxu1 }
 0x24d   : > { %v2552_v12 = vadd.f32 %v3198_v53, %v2551_v20  ;;  %3468 = vmatprep.mubr.msk.f32.mxu0 %vm702_vm0, %v2612_v29  ;;  %v2615_v17 = vmax.f32 %v2557_v13, 0.0 }
 0x24e   : > { %v3450_v16 = vpop.f32.mrf.mxu1  ;;  %3469 = vmatmul.mubr.msk.f32.gmra.mxu0 %vm702_vm0, %v2613_v51 }
 0x24f   : > { %v2614_v36 = vmax.f32 %v2552_v12, 0.0  ;;  %v2567_v55 = vadd.f32 %v3450_v16, %v3198_v53 }
 0x250   : > { %v2561_v43 = vpop.f32.mrf.mxu1 }
 0x251   : > { %v2562_v10 = vadd.f32 %v3198_v53, %v2561_v43  ;;  %3471 = vmatprep.mubr.msk.f32.mxu0 %vm702_vm0, %v2614_v36  ;;  %v2617_v54 = vmax.f32 %v2567_v55, 0.0 }
 0x252   : > { %v3453_v61 = vpop.f32.mrf.mxu1  ;;  %3472 = vmatmul.mubr.msk.f32.gmra.mxu0 %vm702_vm0, %v2615_v17 }
 0x253   : > { %v2616_v4 = vmax.f32 %v2562_v10, 0.0  ;;  %v2577_v44 = vadd.f32 %v3453_v61, %v3198_v53 }
 0x254   : > { %v2571_v5 = vpop.f32.mrf.mxu1 }
 0x255   : > { %v2572_v45 = vadd.f32 %v3198_v53, %v2571_v5  ;;  %3474 = vmatprep.mubr.msk.f32.mxu0 %vm702_vm0, %v2616_v4  ;;  %v2619_v14 = vmax.f32 %v2577_v44, 0.0 }
 0x256   : > { %v3456_v19 = vpop.f32.mrf.mxu1  ;;  %3475 = vmatmul.mubr.msk.f32.gmra.mxu0 %vm702_vm0, %v2617_v54 }
 0x257   : > { %v2618_v48 = vmax.f32 %v2572_v45, 0.0  ;;  %v2587_v40 = vadd.f32 %v3456_v19, %v3198_v53 }
 0x258   : > { %v2581_v57 = vpop.f32.mrf.mxu1 }
 0x259   : > { %v2582_v63 = vadd.f32 %v3198_v53, %v2581_v57  ;;  %3477 = vmatprep.mubr.msk.f32.mxu0 %vm702_vm0, %v2618_v48  ;;  %v2621_v11 = vmax.f32 %v2587_v40, 0.0 }
 0x25a   : > { %v3459_v21 = vpop.f32.mrf.mxu1  ;;  %3478 = vmatmul.mubr.msk.f32.gmra.mxu0 %vm702_vm0, %v2619_v14 }
 0x25b   : > { %v2620_v9 = vmax.f32 %v2582_v63, 0.0  ;;  %v2597_v27 = vadd.f32 %v3459_v21, %v3198_v53 }
 0x25c   : > { %v2591_v0 = vpop.f32.mrf.mxu1 }
 0x25d   : > { %v2592_v32 = vadd.f32 %v3198_v53, %v2591_v0  ;;  %3480 = vmatprep.mubr.msk.f32.mxu0 %vm702_vm0, %v2620_v9  ;;  %v2623_v58 = vmax.f32 %v2597_v27, 0.0 }
 0x25e   : > { %v3462_v59 = vpop.f32.mrf.mxu1  ;;  %3481 = vmatmul.mubr.msk.f32.gmra.mxu0 %vm702_vm0, %v2621_v11  ;;  %v4898_v11 = vld [vmem:[#allocation2] ss:$0 sm:$0xff] }
 0x25f   : > { %v2622_v34 = vmax.f32 %v2592_v32, 0.0  ;;  %v2607_v50 = vadd.f32 %v3462_v59, %v3198_v53 }
 0x260   : > { %v2601_v23 = vpop.f32.mrf.mxu1 }
 0x261   : > { %v2602_v35 = vadd.f32 %v3198_v53, %v2601_v23  ;;  %3483 = vmatprep.mubr.msk.f32.mxu0 %vm702_vm0, %v2622_v34  ;;  %v2625_v30 = vmax.f32 %v2607_v50, 0.0 }
 0x262   : > { %3484 = vmatmul.mubr.msk.f32.gmra.mxu0 %vm702_vm0, %v2623_v58 }
 0x263   : > { %v2624_v39 = vmax.f32 %v2602_v35, 0.0 }
 0x265   : > { %3486 = vmatprep.mubr.msk.f32.mxu0 %vm702_vm0, %v2624_v39 }
 0x266   : > { %3487 = vmatmul.mubr.msk.f32.gmra.mxu0 %vm702_vm0, %v2625_v30 }
 0x286   : > { %v2076_v25 = vpop.xlane.xlu1 %2075 }
 0x287   : > { %3569 = vrcp.f32 %v2076_v25 }
 0x28a   : > { %v2082_v49 = vpop.xlane.xlu1 %2081  ;;  %v2073_v28 = vpop.xlane.xlu0 %2072 }
 0x28b   : > { %3571 = vrcp.f32 %v2082_v49 }
 0x28c   : > { %3573 = vrcp.f32 %v2073_v28 }
 0x28e   : > { %v2079_v31 = vpop.xlane.xlu0 %2078 }
 0x28f   : > { %3575 = vrcp.f32 %v2079_v31 }
 0x291   : > { %v2088_v53 = vpop.xlane.xlu1 %2087 }
 0x292   : > { %3577 = vrcp.f32 %v2088_v53  ;;  %v2085_v3 = vpop.xlane.xlu0 %2084 }
 0x293   : > { %3579 = vrcp.f32 %v2085_v3 }
 0x294   : > { %v3570_v38 = vpop.eup %3569 }
 0x295   : > { %v2122_v18 = vmul.f32 %v3570_v38, %v4745_v56  ;;  %v2094_v15 = vpop.xlane.xlu1 %2093 }
 0x296   : > { %3581 = vrcp.f32 %v2094_v15  ;;  %v2091_v47 = vpop.xlane.xlu0 %2090 }
 0x297   : > { %2152 = vst.msk [vmem:[%s4848_s26 + $0x8] sm:$0xff] %vm1974_vm3, %v2122_v18  ;;  %3583 = vrcp.f32 %v2091_v47 }
 0x298   : > { %v3572_v37 = vpop.eup %3571 }
 0x299   : > { %v3574_v29 = vpop.eup %3573  ;;  %v2126_v51 = vmul.f32 %v3572_v37, %v4753_v6  ;;  %v2100_v13 = vpop.xlane.xlu1 %2099 }
 0x29a   : > { %v2120_v20 = vmul.f32 %v3574_v29, %v4755_v7  ;;  %3585 = vrcp.f32 %v2100_v13  ;;  %v2097_v12 = vpop.xlane.xlu0 %2096 }
 0x29b   : > { %2154 = vst.msk [vmem:[%s4848_s26 + $0x18] sm:$0xff] %vm1974_vm3, %v2126_v51  ;;  %3587 = vrcp.f32 %v2097_v12 }
 0x29c   : > { %v3576_v56 = vpop.eup %3575  ;;  %2151 = vst.msk [vmem:[%s4848_s26] sm:$0xff] %vm1974_vm3, %v2120_v20 }
 0x29d   : > { %v2124_v16 = vmul.f32 %v3576_v56, %v4763_v24  ;;  %v2106_v36 = vpop.xlane.xlu1 %2105 }
 0x29e   : > { %3589 = vrcp.f32 %v2106_v36 }
 0x29f   : > { %v2103_v17 = vpop.xlane.xlu0 %2102  ;;  %v3578_v55 = vpop.eup %3577  ;;  %2153 = vst.msk [vmem:[%s4848_s26 + $0x10] sm:$0xff] %vm1974_vm3, %v2124_v16 }
 0x2a0   : > { %3591 = vrcp.f32 %v2103_v17  ;;  %v3580_v6 = vpop.eup %3579  ;;  %v2130_v7 = vmul.f32 %v3578_v55, %v4773_v2 }
 0x2a1   : > { %v2128_v43 = vmul.f32 %v3580_v6, %v4769_v42  ;;  %v2112_v10 = vpop.xlane.xlu1 %2111 }
 0x2a2   : > { %2156 = vst.msk [vmem:[%s4848_s26 + $0x28] sm:$0xff] %vm1974_vm3, %v2130_v7  ;;  %3593 = vrcp.f32 %v2112_v10 }
 0x2a3   : > { %v2109_v61 = vpop.xlane.xlu0 %2108  ;;  %v3582_v24 = vpop.eup %3581  ;;  %2155 = vst.msk [vmem:[%s4848_s26 + $0x20] sm:$0xff] %vm1974_vm3, %v2128_v43 }
 0x2a4   : > { %3595 = vrcp.f32 %v2109_v61  ;;  %v3584_v4 = vpop.eup %3583  ;;  %v2134_v54 = vmul.f32 %v3582_v24, %v4785_v41 }
 0x2a5   : > { %v2132_v44 = vmul.f32 %v3584_v4, %v4781_v52  ;;  %v2118_v2 = vpop.xlane.xlu1 %2117 }
 0x2a6   : > { %2158 = vst.msk [vmem:[%s4848_s26 + $0x38] sm:$0xff] %vm1974_vm3, %v2134_v54  ;;  %3597 = vrcp.f32 %v2118_v2 }
 0x2a7   : > { %v2115_v42 = vpop.xlane.xlu0 %2114  ;;  %v3586_v5 = vpop.eup %3585  ;;  %2157 = vst.msk [vmem:[%s4848_s26 + $0x30] sm:$0xff] %vm1974_vm3, %v2132_v44 }
 0x2a8   : > { %3599 = vrcp.f32 %v2115_v42  ;;  %v3588_v45 = vpop.eup %3587  ;;  %v2138_v19 = vmul.f32 %v3586_v5, %v4793_v33 }
 0x2a9   : > { %v2136_v41 = vmul.f32 %v3588_v45, %v4795_v22 }
 0x2aa   : > { %2160 = vst.msk [vmem:[%s4848_s26 + $0x48] sm:$0xff] %vm1974_vm3, %v2138_v19 }
 0x2ab   : > { %v3590_v52 = vpop.eup %3589  ;;  %2159 = vst.msk [vmem:[%s4848_s26 + $0x40] sm:$0xff] %vm1974_vm3, %v2136_v41 }
 0x2ac   : > { %v2142_v14 = vmul.f32 %v3590_v52, %v4801_v26 }
 0x2ad   : > { %v3592_v48 = vpop.eup %3591 }
 0x2ae   : > { %v2140_v40 = vmul.f32 %v3592_v48, %v4803_v46  ;;  %2162 = vst.msk [vmem:[%s4848_s26 + $0x58] sm:$0xff] %vm1974_vm3, %v2142_v14 }
 0x2af   : > { %v3594_v57 = vpop.eup %3593 }
 0x2b0   : > { %2161 = vst.msk [vmem:[%s4848_s26 + $0x50] sm:$0xff] %vm1974_vm3, %v2140_v40  ;;  %v2146_v22 = vmul.f32 %v3594_v57, %v4809_v60 }
 0x2b1   : > { %v3596_v33 = vpop.eup %3595 }
 0x2b2   : > { %v2144_v63 = vmul.f32 %v3596_v33, %v4811_v8  ;;  %2164 = vst.msk [vmem:[%s4848_s26 + $0x68] sm:$0xff] %vm1974_vm3, %v2146_v22 }
 0x2b3   : > { %v3598_v21 = vpop.eup %3597 }
 0x2b4   : > { %2163 = vst.msk [vmem:[%s4848_s26 + $0x60] sm:$0xff] %vm1974_vm3, %v2144_v63  ;;  %v2150_v26 = vmul.f32 %v3598_v21, %v4817_v1 }
 0x2b5   : > { %v3600_v9 = vpop.eup %3599 }
 0x2b6   : > { %v2148_v46 = vmul.f32 %v3600_v9, %v4819_v62  ;;  %2166 = vst.msk [vmem:[%s4848_s26 + $0x78] sm:$0xff] %vm1974_vm3, %v2150_v26 }
 0x2b8   : > { %2165 = vst.msk [vmem:[%s4848_s26 + $0x70] sm:$0xff] %vm1974_vm3, %v2148_v46 }
 0x30a   : > { %v3467_v27 = vpop.f32.mrf.mxu0 }
 0x30b   : > { %v2758_v60 = vadd.f32 %v3467_v27, %v4898_v11 }
 0x30c   : > { %v2752_v8 = vpop.f32.mrf.mxu0 }
 0x30d   : > { %v3234_v0 = vmul.f32 -1.442695, %v2758_v60  ;;  %v2753_v32 = vadd.f32 %v4898_v11, %v2752_v8 }
 0x30e   : > { %v3470_v59 = vpop.f32.mrf.mxu0 }
 0x30f   : > { %3601 = vpow2.f32 %v3234_v0  ;;  %v3233_v34 = vmul.f32 -1.442695, %v2753_v32  ;;  %v2768_v1 = vadd.f32 %v3470_v59, %v4898_v11 }
 0x310   : > { %v2762_v58 = vpop.f32.mrf.mxu0 }
 0x311   : > { %3603 = vpow2.f32 %v3233_v34  ;;  %v3236_v62 = vmul.f32 -1.442695, %v2768_v1  ;;  %v2763_v50 = vadd.f32 %v4898_v11, %v2762_v58 }
 0x312   : > { %v3473_v23 = vpop.f32.mrf.mxu0 }
 0x313   : > { %3605 = vpow2.f32 %v3236_v62  ;;  %v3235_v35 = vmul.f32 -1.442695, %v2763_v50  ;;  %v2778_v39 = vadd.f32 %v3473_v23, %v4898_v11 }
 0x314   : > { %v2772_v30 = vpop.f32.mrf.mxu0 }
 0x315   : > { %3607 = vpow2.f32 %v3235_v35  ;;  %v3238_v25 = vmul.f32 -1.442695, %v2778_v39  ;;  %v2773_v49 = vadd.f32 %v4898_v11, %v2772_v30 }
 0x316   : > { %v3476_v28 = vpop.f32.mrf.mxu0 }
 0x317   : > { %3609 = vpow2.f32 %v3238_v25  ;;  %v3237_v31 = vmul.f32 -1.442695, %v2773_v49  ;;  %v2788_v53 = vadd.f32 %v3476_v28, %v4898_v11 }
 0x318   : > { %v2782_v3 = vpop.f32.mrf.mxu0 }
 0x319   : > { %3611 = vpow2.f32 %v3237_v31  ;;  %v3240_v38 = vmul.f32 -1.442695, %v2788_v53  ;;  %v2783_v18 = vadd.f32 %v4898_v11, %v2782_v3 }
 0x31a   : > { %v3479_v15 = vpop.f32.mrf.mxu0 }
 0x31b   : > { %3613 = vpow2.f32 %v3240_v38  ;;  %v3239_v47 = vmul.f32 -1.442695, %v2783_v18  ;;  %v2798_v37 = vadd.f32 %v3479_v15, %v4898_v11 }
 0x31c   : > { %v3602_v29 = vpop.eup %3601  ;;  %v2792_v51 = vpop.f32.mrf.mxu0 }
 0x31d   : > { %v2880_v13 = vadd.f32 1.0, %v3602_v29  ;;  %3615 = vpow2.f32 %v3239_v47  ;;  %v3242_v20 = vmul.f32 -1.442695, %v2798_v37  ;;  %v2793_v12 = vadd.f32 %v4898_v11, %v2792_v51 }
 0x31e   : > { %v3604_v56 = vpop.eup %3603  ;;  %v3482_v16 = vpop.f32.mrf.mxu0 }
 0x31f   : > { %3617 = vrcp.f32 %v2880_v13  ;;  %v2879_v36 = vadd.f32 1.0, %v3604_v56  ;;  %v3241_v17 = vmul.f32 -1.442695, %v2793_v12  ;;  %v2808_v55 = vadd.f32 %v3482_v16, %v4898_v11 }
 0x320   : > { %v3606_v6 = vpop.eup %3605  ;;  %3619 = vpow2.f32 %v3242_v20  ;;  %v2802_v7 = vpop.f32.mrf.mxu0 }
 0x321   : > { %3621 = vrcp.f32 %v2879_v36  ;;  %v2882_v43 = vadd.f32 1.0, %v3606_v6  ;;  %v3244_v10 = vmul.f32 -1.442695, %v2808_v55  ;;  %v2803_v61 = vadd.f32 %v4898_v11, %v2802_v7 }
 0x322   : > { %v3608_v24 = vpop.eup %3607  ;;  %3623 = vpow2.f32 %v3241_v17  ;;  %v3485_v4 = vpop.f32.mrf.mxu0 }
 0x323   : > { %3625 = vrcp.f32 %v2882_v43  ;;  %v2881_v54 = vadd.f32 1.0, %v3608_v24  ;;  %v3243_v44 = vmul.f32 -1.442695, %v2803_v61  ;;  %v2818_v2 = vadd.f32 %v3485_v4, %v4898_v11 }
 0x324   : > { %v3610_v42 = vpop.eup %3609  ;;  %3627 = vpow2.f32 %v3244_v10  ;;  %v2812_v5 = vpop.f32.mrf.mxu0 }
 0x325   : > { %3629 = vrcp.f32 %v2881_v54  ;;  %v2884_v45 = vadd.f32 1.0, %v3610_v42  ;;  %v3246_v19 = vmul.f32 -1.442695, %v2818_v2  ;;  %v2813_v41 = vadd.f32 %v4898_v11, %v2812_v5 }
 0x326   : > { %v3612_v52 = vpop.eup %3611  ;;  %3631 = vpow2.f32 %v3243_v44  ;;  %v3488_v48 = vpop.f32.mrf.mxu0 }
 0x327   : > { %3633 = vrcp.f32 %v2884_v45  ;;  %v2883_v14 = vadd.f32 1.0, %v3612_v52  ;;  %v3245_v40 = vmul.f32 -1.442695, %v2813_v41  ;;  %v2828_v57 = vadd.f32 %v3488_v48, %v4898_v11 }
 0x328   : > { %v3614_v33 = vpop.eup %3613  ;;  %3635 = vpow2.f32 %v3246_v19  ;;  %v2822_v22 = vpop.f32.mrf.mxu0 }
 0x329   : > { %3637 = vrcp.f32 %v2883_v14  ;;  %v2886_v63 = vadd.f32 1.0, %v3614_v33  ;;  %v3248_v21 = vmul.f32 -1.442695, %v2828_v57  ;;  %v2823_v9 = vadd.f32 %v4898_v11, %v2822_v22 }
 0x32a   : > { %v3616_v26 = vpop.eup %3615  ;;  %3639 = vpow2.f32 %v3245_v40 }
 0x32b   : > { %3641 = vrcp.f32 %v2886_v63  ;;  %v2885_v46 = vadd.f32 1.0, %v3616_v26  ;;  %v3247_v27 = vmul.f32 -1.442695, %v2823_v9 }
 0x32c   : > { %v3618_v60 = vpop.eup %3617  ;;  %3643 = vpow2.f32 %v3248_v21 }
 0x32d   : > { %v3620_v8 = vpop.eup %3619  ;;  %2929 = vst.msk [vmem:[%s4920_s28 + $0x8] sm:$0xff] %vm2927_vm6, %v3618_v60  ;;  %3645 = vrcp.f32 %v2885_v46 }
 0x32e   : > { %v3622_v11 = vpop.eup %3621  ;;  %v2888_v0 = vadd.f32 1.0, %v3620_v8  ;;  %3647 = vpow2.f32 %v3247_v27 }
 0x32f   : > { %v3624_v32 = vpop.eup %3623  ;;  %2928 = vst.msk [vmem:[%s4920_s28] sm:$0xff] %vm2927_vm6, %v3622_v11 }
 0x330   : > { %v3626_v59 = vpop.eup %3625  ;;  %3649 = vrcp.f32 %v2888_v0  ;;  %v2887_v34 = vadd.f32 1.0, %v3624_v32 }
 0x331   : > { %v3628_v1 = vpop.eup %3627  ;;  %2931 = vst.msk [vmem:[%s4920_s28 + $0x18] sm:$0xff] %vm2927_vm6, %v3626_v59 }
 0x332   : > { %v3630_v58 = vpop.eup %3629  ;;  %3651 = vrcp.f32 %v2887_v34  ;;  %v2890_v62 = vadd.f32 1.0, %v3628_v1 }
 0x333   : > { %v3632_v50 = vpop.eup %3631  ;;  %2930 = vst.msk [vmem:[%s4920_s28 + $0x10] sm:$0xff] %vm2927_vm6, %v3630_v58 }
 0x334   : > { %v3634_v23 = vpop.eup %3633  ;;  %3653 = vrcp.f32 %v2890_v62  ;;  %v2889_v35 = vadd.f32 1.0, %v3632_v50 }
 0x335   : > { %v3636_v39 = vpop.eup %3635  ;;  %2933 = vst.msk [vmem:[%s4920_s28 + $0x28] sm:$0xff] %vm2927_vm6, %v3634_v23 }
 0x336   : > { %v3638_v30 = vpop.eup %3637  ;;  %3655 = vrcp.f32 %v2889_v35  ;;  %v2892_v25 = vadd.f32 1.0, %v3636_v39 }
 0x337   : > { %v3640_v49 = vpop.eup %3639  ;;  %2932 = vst.msk [vmem:[%s4920_s28 + $0x20] sm:$0xff] %vm2927_vm6, %v3638_v30 }
 0x338   : > { %v3642_v28 = vpop.eup %3641  ;;  %3657 = vrcp.f32 %v2892_v25  ;;  %v2891_v31 = vadd.f32 1.0, %v3640_v49 }
 0x339   : > { %v3644_v53 = vpop.eup %3643  ;;  %2935 = vst.msk [vmem:[%s4920_s28 + $0x38] sm:$0xff] %vm2927_vm6, %v3642_v28 }
 0x33a   : > { %v3646_v3 = vpop.eup %3645  ;;  %3659 = vrcp.f32 %v2891_v31  ;;  %v2894_v38 = vadd.f32 1.0, %v3644_v53 }
 0x33b   : > { %v3648_v18 = vpop.eup %3647  ;;  %2934 = vst.msk [vmem:[%s4920_s28 + $0x30] sm:$0xff] %vm2927_vm6, %v3646_v3 }
 0x33c   : > { %3661 = vrcp.f32 %v2894_v38  ;;  %v2893_v15 = vadd.f32 1.0, %v3648_v18 }
 0x33d   : > { %v3650_v47 = vpop.eup %3649 }
 0x33e   : > { %2937 = vst.msk [vmem:[%s4920_s28 + $0x48] sm:$0xff] %vm2927_vm6, %v3650_v47  ;;  %3663 = vrcp.f32 %v2893_v15 }
 0x33f   : > { %v3652_v37 = vpop.eup %3651 }
 0x340   : > { %2936 = vst.msk [vmem:[%s4920_s28 + $0x40] sm:$0xff] %vm2927_vm6, %v3652_v37 }
 0x341   : > { %v3654_v29 = vpop.eup %3653 }
 0x342   : > { %2939 = vst.msk [vmem:[%s4920_s28 + $0x58] sm:$0xff] %vm2927_vm6, %v3654_v29 }
 0x343   : > { %v3656_v51 = vpop.eup %3655 }
 0x344   : > { %2938 = vst.msk [vmem:[%s4920_s28 + $0x50] sm:$0xff] %vm2927_vm6, %v3656_v51 }
 0x345   : > { %v3658_v13 = vpop.eup %3657 }
 0x346   : > { %2941 = vst.msk [vmem:[%s4920_s28 + $0x68] sm:$0xff] %vm2927_vm6, %v3658_v13 }
 0x347   : > { %v3660_v20 = vpop.eup %3659 }
 0x348   : > { %2940 = vst.msk [vmem:[%s4920_s28 + $0x60] sm:$0xff] %vm2927_vm6, %v3660_v20 }
 0x349   : > { %v3662_v12 = vpop.eup %3661 }
 0x34a   : > { %2943 = vst.msk [vmem:[%s4920_s28 + $0x78] sm:$0xff] %vm2927_vm6, %v3662_v12 }
 0x34b   : > { %v3664_v56 = vpop.eup %3663 }
 0x34c   : > { %2942 = vst.msk [vmem:[%s4920_s28 + $0x70] sm:$0xff] %vm2927_vm6, %v3664_v56 }
 0x34d PF: > { %s28_s20 = sadd.s32 1, %s3687_s20  }
 0x34e   : > { %p25_p4 = scmp.ge.s32.totalorder %s28_s20, 4  }
 0x350   :  { %27 = sbr.rel (!%p25_p4) target bundleno = 3 (0x3), region = 141 }

// kernel: dgcrm_forward.3
= control target key start
LH: loop header
LB: loop body
LE: loop exit
PB: predicated region body
PF: predicated region fallthrough
CT: control target
= control target key end

     0   :  { %s5982_s17 = smov 0   ;;  %s7275_s0 = inlined_call_operand.vmem [shape: f32[2,8,16,2], index: 0, kind: input, shape index: {}]   ;;  %s7276_s1 = inlined_call_operand.vmem [shape: f32[2,8,16,16], index: 1, kind: input, shape index: {}]   ;;  %s7277_s2 = inlined_call_operand.vmem [shape: f32[2,8,16,1], index: 2, kind: input, shape index: {}]   ;;  %s7278_s3 = inlined_call_operand.vmem [shape: f32[2,16,8], index: 3, kind: input, shape index: {}]   ;;  %s7279_s4 = inlined_call_operand.vmem [shape: f32[2,16,8], index: 4, kind: input, shape index: {}, may-alias: {4,11}]   ;;  %s7280_s5 = inlined_call_operand.vmem [shape: f32[16,4], index: 5, kind: input, shape index: {}]   ;;  %s7281_s6 = inlined_call_operand.vmem [shape: f32[20,64], index: 6, kind: input, shape index: {}]   ;;  %s7282_s7 = inlined_call_operand.vmem [shape: f32[4,16], index: 7, kind: input, shape index: {}]   ;;  %s7283_s8 = inlined_call_operand.vmem [shape: f32[20,32], index: 8, kind: input, shape index: {}]   ;;  %s7284_s9 = inlined_call_operand.vmem [shape: f32[4,8], index: 9, kind: input, shape index: {}]   ;;  %s7285_s10 = inlined_call_operand.vmem [shape: f32[2,8,16,8], index: 10, kind: output, shape index: {0}]   ;;  %s7286_s11 = inlined_call_operand.vmem [shape: f32[2,16,8], index: 11, kind: output, shape index: {1}, may-alias: {4,11}]  }
   0x1 LB: > { %s5163_s18 = sadd.s32 4294967295, %s5907_s17   ;;  %p5167_p0 = scmp.ge.s32.totalorder %s5907_s17, 1  ;;  %s5907_s17 = sphi %s5982_s17, %s22_s17  }
   0x2   : > { %p380_p1 = scmp.lt.s32.totalorder %s5907_s17, 3 }
   0x4   : > { %p381_p2 = pnand %p5167_p0, %p380_p1 }
   0x5   : > { %p445_p3 = scmp.lt.s32.totalorder (!%p381_p2), %s5163_s18, 1  ;;  %s7293_s14 = smov (!%p381_p2), 2  }
   0x6   : > { %384 = sbr.rel (%p381_p2) target bundleno = 13586 (0x3512), region = 60  ;;  %s5915_s30 = smov (!%p381_p2), 112  }
   0x7   : > { %s5916_s12 = smov (!%p381_p2), 96   ;;  %s7295_s15 = smov (!%p381_p2), 80  }
   0x8   : > { %s5918_s24 = smov (!%p381_p2), 120   ;;  %s7291_s19 = smov (!%p381_p2), 104  }
   0x9   : > { %s7289_s20 = smov (!%p381_p2), 8   ;;  %s7287_s26 = smov (!%p381_p2), 122  }
   0xb   : > { %v488_v0 = vld [vmem:[%s7282_s7] sm:$0xf]  ;;  %vm496_vm0 = vcmask 1043456   ;;  %vm489_vm1 = vcmask 31744   ;;  %v6002_v2 = vld [vmem:[%s7280_s5 + $0x8] sm:$0xff]  ;;  %s7303_s18 = smov (!%p445_p3, %s5163_s18), 1 }
   0xc   : > { %v5996_v1 = vld [vmem:[%s7280_s5] sm:$0xff]  ;;  %5499 = vmatprep.subr.msk.mxu0 %vm496_vm0, %v488_v0  ;;  %s6011_s25 = sshll.u32 %s7303_s18, 4  ;;  %s6017_s29 = sshll.u32 %s7303_s18, 7  ;;  %vm675_vm2 = vcmask 130048   ;;  %vm672_vm3 = vcmask 15360   ;;  %v6076_v15 = vld [vmem:[%s7281_s6 + $0x8] sm:$0xff] }
   0xd   : > { %5500 = vmatpush3.msk.msra.mxu0 %vm496_vm0, %v488_v0  ;;  %5501 = vmatprep.mubr.msk.f32.mxu0 %vm489_vm1, %v5996_v1  ;;  %s464_s28 = scalar_lea.vmem %s7278_s3, %s6011_s25  ;;  %s6025_s13 = scalar_lea.vmem %s7276_s1, %s6017_s29  ;;  %v575_v13 = vld [vmem:[%s7284_s9] sm:$0xf]  ;;  %v6063_v14 = vld [vmem:[%s7281_s6 + $0x10] sm:$0xf]  ;;  %v5910_v18 = vmov 1   ;;  %v5911_v21 = vmov 2  }
   0xe   : > { %5502 = vmatmul.mubr.msk.f32.vlgmr.msra.gmra.mxu0 %vm489_vm1, %v6002_v2  ;;  %5506 = vmatprep.mubr.msk.f32.mxu1 %vm489_vm1, %v5996_v1  ;;  %v6019_v3 = vld [vmem:[%s464_s28 + $0x8] sm:$0xff]  ;;  %v660_v4 = vld [vmem:[%s6025_s13] sm:$0xff]  ;;  %s6039_s18 = scalar_lea.vmem %s7275_s0, %s6017_s29  ;;  %v5913_v23 = vmov 0   ;;  %v5914_v24 = vmov 3   ;;  %vm765_vm4 = vcmask 80896   ;;  %vm768_vm5 = vcmask 162816   ;;  %s6193_s16 = scalar_lea.vmem %s7277_s2, %s6017_s29 }
   0xf   : > { %668 = vrot.lane.b32.xlu0 %v6019_v3, %s7293_s14  ;;  %v6030_v5 = vld [vmem:[%s464_s28] sm:$0xff]  ;;  %5513 = vmatprep.mubr.msk.f32.mxu0 %vm675_vm2, %v660_v4  ;;  %v6042_v6 = vld [vmem:[%s6039_s18 + $0x8] sm:$0xff]  ;;  %s5912_s28 = smov 10   ;;  %s469_s23 = scalar_lea.vmem %s7279_s4, %s6011_s25  ;;  %vm1242_vm6 = vcmask 64512  }
  0x10   : > { %v6047_v9 = vld [vmem:[%s6039_s18] sm:$0xff]  ;;  %v6052_v12 = vld [vmem:[%s6025_s13 + $0x8] sm:$0xff]  ;;  %5504 = vmatprep.subr.msk.mxu1 %vm496_vm0, %v575_v13  ;;  %5787 = vset.pattern.permute.xlu1 %v5910_v18  ;;  %s6302_s22 = scalar_lea.vmem %s7285_s10, %s6017_s29 }
  0x11   : > { %5505 = vmatpush3.msk.msra.mxu1 %vm496_vm0, %v575_v13  ;;  %v6082_v16 = vld [vmem:[%s7281_s6] sm:$0xff]  ;;  %5786 = vset.pattern.permute.xlu0 %v5910_v18 }
  0x12   : > { %5507 = vmatmul.mubr.msk.f32.vlgmr.msra.gmra.mxu1 %vm489_vm1, %v6002_v2  ;;  %5516 = vmatprep.subr.msk.mxu1 %vm496_vm0, %v6063_v14 }
  0x13   : > { %666 = vrot.lane.b32.xlu0 %v6030_v5, %s7293_s14  ;;  %5517 = vmatpush3.msk.msra.mxu1 %vm496_vm0, %v6063_v14 }
  0x14   : > { %5518 = vmatprep.subr.mxu1 %v6076_v15 }
  0x15   : > { %5519 = vmatpush3.msra.mxu1 %v6076_v15 }
  0x16   : > { %5520 = vmatprep.subr.mxu1 %v6082_v16 }
  0x17   : > { %5521 = vmatpush3.msra.mxu1 %v6082_v16  ;;  %870 = vperm.xlu0 %5786, %v6002_v2  }
  0x1b   : > { %5789 = vset.pattern.permute.xlu0 %v5911_v21 }
  0x1c   : > { %886 = vperm.xlu0 %5789, %v5996_v1  }
  0x20   : > { %5791 = vset.pattern.permute.xlu0 %v5913_v23 }
  0x21   : > { %858 = vperm.xlu0 %5791, %v6002_v2  }
  0x81   : > { %v669_v7 = vpop.permute.xlu0 %668 }
  0x82   : > { %v674_v8 = vsel %vm672_vm3, %v6042_v6, %v669_v7 }
  0x83   : > { %5509 = vmatprep.subr.mxu0 %v674_v8 }
  0x84   : > { %5510 = vmatpush3.msra.mxu0 %v674_v8 }
  0x85   : > { %v667_v10 = vpop.permute.xlu0 %666 }
  0x86   : > { %v673_v11 = vsel %vm672_vm3, %v6047_v9, %v667_v10 }
  0x87   : > { %5511 = vmatprep.subr.mxu0 %v673_v11 }
  0x88   : > { %5512 = vmatpush3.msra.mxu0 %v673_v11 }
  0x89   : > { %5514 = vmatmul.mubr.msk.f32.vlgmr.msra.gmra.mxu0 %vm675_vm2, %v6052_v12 }
  0x8a   : > { %5529 = vmatprep.mubr.msk.f32.mxu0 %vm675_vm2, %v660_v4 }
  0x92   : > { %v6113_v33 = vpop.permute.xlu0 %870 }
  0x97   : > { %v6122_v40 = vpop.permute.xlu0 %886 }
  0x9c   : > { %v6133_v45 = vpop.permute.xlu0 %858 }
  0xce   : > { %v6086_v17 = vpop.f32.mrf.mxu0 }
  0xd0   : > { %v6090_v19 = vpop.f32.mrf.mxu0 }
  0xd2   : > { %v6107_v30 = vpop.f32.mrf.mxu1 }
  0xd4   : > { %v6111_v32 = vpop.f32.mrf.mxu1 }
 0x149   : > { %v5515_v20 = vpop.f32.mrf.mxu0 }
 0x14b   : > { %v748_v22 = vpop.f32.mrf.mxu0 }
 0x14c   : > { %759 = vrot.lane.b32.xlu1 %v748_v22, %s5912_s28 }
 0x150   : > { %761 = vrot.lane.b32.xlu1 %v5515_v20, %s5912_s28 }
 0x154   : > { %866 = vperm.xlu1 %5787, %v5996_v1  }
 0x158   : > { %5788 = vset.pattern.permute.xlu1 %v5911_v21 }
 0x159   : > { %890 = vperm.xlu1 %5788, %v6002_v2  }
 0x15d   : > { %5790 = vset.pattern.permute.xlu1 %v5914_v24 }
 0x15e   : > { %910 = vperm.xlu1 %5790, %v6002_v2  }
 0x162   : > { %906 = vperm.xlu1 %5790, %v5996_v1  }
 0x166   : > { %5792 = vset.pattern.permute.xlu1 %v5913_v23  ;;  %v6160_v23 = vld [vmem:[%s7283_s8 + $0x10] sm:$0xf] }
 0x167   : > { %854 = vperm.xlu1 %5792, %v5996_v1   ;;  %5532 = vmatprep.subr.msk.mxu1 %vm496_vm0, %v6160_v23 }
 0x1be   : > { %v760_v25 = vpop.permute.xlu1 %759 }
 0x1bf   : > { %v766_v26 = vsel %vm765_vm4, %v673_v11, %v760_v25 }
 0x1c0   : > { %5522 = vmatprep.mubr.msk.f32.mxu1 %vm768_vm5, %v766_v26 }
 0x1c2   : > { %v762_v27 = vpop.permute.xlu1 %761 }
 0x1c3   : > { %v767_v28 = vsel %vm765_vm4, %v674_v8, %v762_v27 }
 0x1c4   : > { %5523 = vmatmul.mubr.msk.f32.vlgmr.msra.gmra.mxu1 %vm768_vm5, %v767_v28 }
 0x1c5   : > { %5533 = vmatpush3.msk.msra.mxu1 %vm496_vm0, %v6160_v23 }
 0x1cf   : > { %v6105_v29 = vpop.permute.xlu1 %866 }
 0x1d4   : > { %v6109_v31 = vpop.permute.xlu1 %890 }
 0x1d9   : > { %v6118_v38 = vpop.permute.xlu1 %910 }
 0x1dd   : > { %v6128_v43 = vpop.permute.xlu1 %906 }
 0x1e2   : > { %v6135_v46 = vpop.permute.xlu1 %854 }
 0x284   : > { %v5524_v34 = vpop.f32.mrf.mxu1 }
 0x285   : > { %v874_v35 = vmul.f32 %v5524_v34, %v6113_v33  ;;  %v894_v39 = vmul.f32 %v5524_v34, %v6109_v31  ;;  %v914_v42 = vmul.f32 %v5524_v34, %v6118_v38  ;;  %v862_v47 = vmul.f32 %v5524_v34, %v6133_v45 }
 0x286   : > { %v844_v36 = vpop.f32.mrf.mxu1 }
 0x287   : > { %879 = vrot.lane.b32.xlu1 %v874_v35, %s5915_s30  ;;  %v873_v37 = vmul.f32 %v6105_v29, %v844_v36  ;;  %v893_v41 = vmul.f32 %v6122_v40, %v844_v36  ;;  %v913_v44 = vmul.f32 %v6128_v43, %v844_v36  ;;  %v861_v49 = vmul.f32 %v6135_v46, %v844_v36 }
 0x288   : > { %v864_v51 = vadd.f32 %v6086_v17, %v862_v47  ;;  %v662_v47 = vld [vmem:[%s6193_s16] sm:$0xff] }
 0x289   : > { %877 = vrot.lane.b32.xlu0 %v873_v37, %s5915_s30  ;;  %v863_v54 = vadd.f32 %v861_v49, %v6090_v19 }
 0x28b   : > { %899 = vrot.lane.b32.xlu1 %v894_v39, %s5916_s12 }
 0x28d   : > { %897 = vrot.lane.b32.xlu0 %v893_v41, %s5916_s12 }
 0x28f   : > { %919 = vrot.lane.b32.xlu1 %v914_v42, %s7295_s15  ;;  %v663_v42 = vld [vmem:[%s6193_s16 + $0x8] sm:$0xff] }
 0x290   : > { %v1195_v49 = vsub.f32 1.0, %v663_v42 }
 0x291   : > { %917 = vrot.lane.b32.xlu0 %v913_v44, %s7295_s15 }
 0x2f9   : > { %v880_v48 = vpop.permute.xlu1 %879 }
 0x2fa   : > { %v884_v53 = vadd.f32 %v880_v48, %v864_v51 }
 0x2fb   : > { %v878_v50 = vpop.permute.xlu0 %877 }
 0x2fc   : > { %v883_v56 = vadd.f32 %v878_v50, %v863_v54  ;;  %v1194_v50 = vsub.f32 1.0, %v662_v47 }
 0x2fd   : > { %v900_v52 = vpop.permute.xlu1 %899 }
 0x2fe   : > { %v904_v57 = vadd.f32 %v900_v52, %v884_v53 }
 0x2ff   : > { %v898_v55 = vpop.permute.xlu0 %897 }
 0x300   : > { %v903_v59 = vadd.f32 %v898_v55, %v883_v56 }
 0x301   : > { %v920_v58 = vpop.permute.xlu1 %919 }
 0x302   : > { %v924_v60 = vadd.f32 %v920_v58, %v904_v57 }
 0x303   : > { %v918_v61 = vpop.permute.xlu0 %917 }
 0x304   : > { %v5194_v62 = vmul.f32 -1.442695, %v924_v60  ;;  %v923_v63 = vadd.f32 %v918_v61, %v903_v59 }
 0x306   : > { %5793 = vpow2.f32 %v5194_v62  ;;  %v5193_v0 = vmul.f32 -1.442695, %v923_v63 }
 0x308   : > { %5795 = vpow2.f32 %v5193_v0 }
 0x313   : > { %v5794_v1 = vpop.eup %5793 }
 0x314   : > { %v932_v2 = vadd.f32 1.0, %v5794_v1 }
 0x315   : > { %v5796_v4 = vpop.eup %5795 }
 0x316   : > { %5797 = vrcp.f32 %v932_v2  ;;  %v931_v7 = vadd.f32 1.0, %v5796_v4 }
 0x318   : > { %5799 = vrcp.f32 %v931_v7  ;;  %v6217_v7 = vld [vmem:[%s469_s23] sm:$0xff] }
 0x323   : > { %v6141_v8 = vpop.eup %5797 }
 0x324   : > { %v938_v10 = vmul.f32 %v6141_v8, %v6019_v3 }
 0x325   : > { %v6145_v11 = vpop.eup %5799 }
 0x326   : > { %943 = vrot.lane.b32.xlu1 %v938_v10, %s7293_s14  ;;  %v937_v13 = vmul.f32 %v6145_v11, %v6030_v5 }
 0x328   : > { %941 = vrot.lane.b32.xlu0 %v937_v13, %s7293_s14  ;;  %v6220_v13 = vld [vmem:[%s469_s23 + $0x8] sm:$0xff] }
 0x398   : > { %v944_v18 = vpop.permute.xlu1 %943 }
 0x399   : > { %v948_v20 = vsel %vm672_vm3, %v6042_v6, %v944_v18  ;;  %v6169_v6 = vld [vmem:[%s7283_s8 + $0x8] sm:$0xff] }
 0x39a   : > { %v942_v21 = vpop.permute.xlu0 %941  ;;  %5525 = vmatprep.subr.mxu0 %v948_v20  ;;  %5534 = vmatprep.subr.mxu1 %v6169_v6 }
 0x39b   : > { %5526 = vmatpush3.msra.mxu0 %v948_v20  ;;  %v947_v22 = vsel %vm672_vm3, %v6047_v9, %v942_v21  ;;  %5535 = vmatpush3.msra.mxu1 %v6169_v6  ;;  %v6176_v9 = vld [vmem:[%s7283_s8] sm:$0xff] }
 0x39c   : > { %5527 = vmatprep.subr.mxu0 %v947_v22  ;;  %5536 = vmatprep.subr.mxu1 %v6176_v9 }
 0x39d   : > { %5528 = vmatpush3.msra.mxu0 %v947_v22  ;;  %5537 = vmatpush3.msra.mxu1 %v6176_v9 }
 0x39e   : > { %5530 = vmatmul.mubr.msk.f32.vlgmr.msra.gmra.mxu0 %vm675_vm2, %v6052_v12 }
 0x45e   : > { %v5531_v12 = vpop.f32.mrf.mxu0 }
 0x45f   : > { %1028 = vrot.lane.b32.xlu0 %v5531_v12, %s5912_s28 }
 0x460   : > { %v1015_v24 = vpop.f32.mrf.mxu0 }
 0x461   : > { %1026 = vrot.lane.b32.xlu1 %v1015_v24, %s5912_s28 }
 0x4d1   : > { %v1029_v25 = vpop.permute.xlu0 %1028 }
 0x4d2   : > { %v1033_v28 = vsel %vm765_vm4, %v948_v20, %v1029_v25  ;;  %v1169_v25 = vsub.f32 1.0, %v6141_v8 }
 0x4d3   : > { %v1027_v26 = vpop.permute.xlu1 %1026 }
 0x4d4   : > { %v1032_v27 = vsel %vm765_vm4, %v947_v22, %v1027_v26 }
 0x4d5   : > { %5538 = vmatprep.mubr.msk.f32.mxu1 %vm768_vm5, %v1032_v27 }
 0x4d6   : > { %5539 = vmatmul.mubr.msk.f32.vlgmr.msra.gmra.mxu1 %vm768_vm5, %v1033_v28 }
 0x596   : > { %v5540_v34 = vpop.f32.mrf.mxu1 }
 0x597   : > { %v1123_v35 = vmul.f32 %v5540_v34, %v6113_v33  ;;  %v1135_v39 = vmul.f32 %v5540_v34, %v6109_v31  ;;  %v1147_v44 = vmul.f32 %v5540_v34, %v6118_v38  ;;  %v1119_v51 = vmul.f32 %v5540_v34, %v6133_v45 }
 0x598   : > { %v1109_v36 = vpop.f32.mrf.mxu1 }
 0x599   : > { %1128 = vrot.lane.b32.xlu1 %v1123_v35, %s5918_s24  ;;  %v1122_v37 = vmul.f32 %v1109_v36, %v6105_v29  ;;  %v1134_v41 = vmul.f32 %v1109_v36, %v6122_v40  ;;  %v1146_v48 = vmul.f32 %v1109_v36, %v6128_v43  ;;  %v1118_v53 = vmul.f32 %v1109_v36, %v6135_v46 }
 0x59a   : > { %v1121_v55 = vadd.f32 %v6107_v30, %v1119_v51 }
 0x59b   : > { %1126 = vrot.lane.b32.xlu0 %v1122_v37, %s5918_s24  ;;  %v1120_v58 = vadd.f32 %v1118_v53, %v6111_v32 }
 0x59d   : > { %1140 = vrot.lane.b32.xlu1 %v1135_v39, %s5915_s30 }
 0x59f   : > { %1138 = vrot.lane.b32.xlu0 %v1134_v41, %s5915_s30  ;;  %v5202_v41 = vld [vmem:[%s6025_s13 + $0x10] sm:$0xff] }
 0x5a0   : > { %5545 = vmatprep.mubr.msk.f32.mxu0 %vm675_vm2, %v5202_v41  ;;  %5561 = vmatprep.mubr.msk.f32.mxu1 %vm675_vm2, %v5202_v41 }
 0x5a1   : > { %1152 = vrot.lane.b32.xlu1 %v1147_v44, %s7291_s19 }
 0x5a3   : > { %1150 = vrot.lane.b32.xlu0 %v1146_v48, %s7291_s19 }
 0x5a5   : > { %1203 = vperm.xlu1 %5792, %v1195_v49  }
 0x5a7   : > { %1198 = vperm.xlu0 %5791, %v1194_v50  }
 0x5a9   : > { %1189 = vperm.xlu1 %5792, %v663_v42  }
 0x5ab   : > { %1162 = vrot.lane.b32.xlu0 %v6019_v3, %s7289_s20 }
 0x5af   : > { %1184 = vperm.xlu0 %5791, %v662_v47  }
 0x60b   : > { %v1129_v52 = vpop.permute.xlu1 %1128 }
 0x60c   : > { %v1133_v57 = vadd.f32 %v1129_v52, %v1121_v55 }
 0x60d   : > { %v1127_v54 = vpop.permute.xlu0 %1126 }
 0x60e   : > { %v1132_v60 = vadd.f32 %v1127_v54, %v1120_v58  ;;  %v6250_v54 = vld [vmem:[%s6039_s18 + $0x18] sm:$0xff] }
 0x60f   : > { %v1141_v56 = vpop.permute.xlu1 %1140 }
 0x610   : > { %v1145_v61 = vadd.f32 %v1141_v56, %v1133_v57  ;;  %v6253_v56 = vld [vmem:[%s6039_s18 + $0x10] sm:$0xff] }
 0x611   : > { %v1139_v59 = vpop.permute.xlu0 %1138 }
 0x612   : > { %v1144_v63 = vadd.f32 %v1139_v59, %v1132_v60  ;;  %v6260_v60 = vld [vmem:[%s6025_s13 + $0x18] sm:$0xff] }
 0x613   : > { %v1153_v62 = vpop.permute.xlu1 %1152 }
 0x614   : > { %v1157_v3 = vadd.f32 %v1153_v62, %v1145_v61 }
 0x615   : > { %v1151_v0 = vpop.permute.xlu0 %1150 }
 0x616   : > { %5801 = vtanh.f32 %v1157_v3  ;;  %v1156_v1 = vadd.f32 %v1151_v0, %v1144_v63 }
 0x618   : > { %5803 = vtanh.f32 %v1156_v1 }
 0x620   : > { %v1204_v18 = vpop.permute.xlu1 %1203 }
 0x621   : > { %v1207_v21 = vmul.f32 %v1204_v18, %v6220_v13 }
 0x622   : > { %v1199_v10 = vpop.permute.xlu0 %1198 }
 0x623   : > { %v5802_v2 = vpop.eup %5801  ;;  %v1206_v20 = vmul.f32 %v1199_v10, %v6217_v7 }
 0x624   : > { %1174 = vrot.lane.b32.xlu1 %v5802_v2, %s7289_s20  ;;  %v1190_v12 = vpop.permute.xlu1 %1189 }
 0x625   : > { %v5804_v4 = vpop.eup %5803 }
 0x626   : > { %1172 = vrot.lane.b32.xlu0 %v5804_v4, %s7289_s20  ;;  %v1163_v22 = vpop.permute.xlu0 %1162 }
 0x627   : > { %v1167_v27 = vmul.f32 %v6141_v8, %v1163_v22 }
 0x628   : > { %1160 = vrot.lane.b32.xlu1 %v6030_v5, %s7289_s20  ;;  %v1168_v5 = vsub.f32 1.0, %v6145_v11 }
 0x62a   : > { %1210 = vrot.lane.b32.xlu0 %v1206_v20, %s7289_s20  ;;  %v1185_v24 = vpop.permute.xlu0 %1184 }
 0x62c   : > { %1212 = vrot.lane.b32.xlu1 %v1207_v21, %s7289_s20 }
 0x696   : > { %v1175_v26 = vpop.permute.xlu1 %1174 }
 0x697   : > { %v1179_v28 = vmul.f32 %v1175_v26, %v1169_v25 }
 0x698   : > { %v1173_v34 = vpop.permute.xlu0 %1172 }
 0x699   : > { %v1181_v35 = vadd.f32 %v1179_v28, %v1167_v27  ;;  %v1178_v37 = vmul.f32 %v1173_v34, %v1168_v5 }
 0x69a   : > { %v1161_v36 = vpop.permute.xlu1 %1160 }
 0x69b   : > { %v1166_v39 = vmul.f32 %v6145_v11, %v1161_v36  ;;  %v1193_v44 = vmul.f32 %v1190_v12, %v1181_v35 }
 0x69c   : > { %v1211_v49 = vpop.permute.xlu0 %1210 }
 0x69d   : > { %v1180_v42 = vadd.f32 %v1178_v37, %v1166_v39 }
 0x69e   : > { %v1213_v47 = vpop.permute.xlu1 %1212 }
 0x69f   : > { %v1192_v8 = vmul.f32 %v1185_v24, %v1180_v42  ;;  %v1217_v48 = vadd.f32 %v1213_v47, %v1193_v44 }
 0x6a1   : > { %v1216_v50 = vadd.f32 %v1211_v49, %v1192_v8  ;;  %v6235_v51 = vmul.f32 0.2, %v1217_v48 }
 0x6a3   : > { %v6237_v52 = vmul.f32 0.2, %v1216_v50  ;;  %v6240_v11 = vadd.f32 %v6235_v51, %v1181_v35 }
 0x6a5   : > { %1256 = vrot.lane.b32.xlu1 %v6240_v11, %s7287_s26  ;;  %v6245_v53 = vadd.f32 %v6237_v52, %v1180_v42 }
 0x6a7   : > { %1254 = vrot.lane.b32.xlu0 %v6245_v53, %s7287_s26 }
 0x717   : > { %v1257_v55 = vpop.permute.xlu1 %1256 }
 0x718   : > { %v1261_v57 = vsel %vm672_vm3, %v6250_v54, %v1257_v55 }
 0x719   : > { %5541 = vmatprep.subr.mxu0 %v1261_v57  ;;  %v1255_v58 = vpop.permute.xlu0 %1254 }
 0x71a   : > { %5542 = vmatpush3.msra.mxu0 %v1261_v57  ;;  %v1260_v59 = vsel %vm672_vm3, %v6253_v56, %v1255_v58 }
 0x71b   : > { %5543 = vmatprep.subr.mxu0 %v1260_v59 }
 0x71c   : > { %5544 = vmatpush3.msra.mxu0 %v1260_v59 }
 0x71d   : > { %5546 = vmatmul.mubr.msk.f32.vlgmr.msra.gmra.mxu0 %vm675_vm2, %v6260_v60  ;;  %5548 = vmatprep.subr.msk.mxu0 %vm496_vm0, %v6063_v14 }
 0x71e   : > { %5549 = vmatpush3.msk.msra.mxu0 %vm496_vm0, %v6063_v14 }
 0x71f   : > { %5550 = vmatprep.subr.mxu0 %v6076_v15 }
 0x720   : > { %5551 = vmatpush3.msra.mxu0 %v6076_v15 }
 0x721   : > { %5552 = vmatprep.subr.mxu0 %v6082_v16 }
 0x722   : > { %5553 = vmatpush3.msra.mxu0 %v6082_v16 }
 0x7dd   : > { %v5547_v61 = vpop.f32.mrf.mxu0 }
 0x7de   : > { %1347 = vrot.lane.b32.xlu0 %v5547_v61, %s5912_s28 }
 0x7df   : > { %v1334_v62 = vpop.f32.mrf.mxu0 }
 0x7e0   : > { %1345 = vrot.lane.b32.xlu1 %v1334_v62, %s5912_s28 }
 0x850   : > { %v1348_v63 = vpop.permute.xlu0 %1347 }
 0x851   : > { %v1352_v1 = vsel %vm765_vm4, %v1261_v57, %v1348_v63 }
 0x852   : > { %v1346_v3 = vpop.permute.xlu1 %1345 }
 0x853   : > { %v1351_v0 = vsel %vm765_vm4, %v1260_v59, %v1346_v3 }
 0x854   : > { %5554 = vmatprep.mubr.msk.f32.mxu0 %vm768_vm5, %v1351_v0 }
 0x855   : > { %5555 = vmatmul.mubr.msk.f32.vlgmr.msra.gmra.mxu0 %vm768_vm5, %v1352_v1 }
 0x915   : > { %v5556_v2 = vpop.f32.mrf.mxu0 }
 0x916   : > { %v1439_v4 = vmul.f32 %v5556_v2, %v6113_v33  ;;  %v1451_v20 = vmul.f32 %v5556_v2, %v6109_v31  ;;  %v1463_v22 = vmul.f32 %v5556_v2, %v6118_v38  ;;  %v1435_v24 = vmul.f32 %v5556_v2, %v6133_v45 }
 0x917   : > { %v1425_v10 = vpop.f32.mrf.mxu0 }
 0x918   : > { %1444 = vrot.lane.b32.xlu1 %v1439_v4, %s5915_s30  ;;  %v1438_v18 = vmul.f32 %v1425_v10, %v6105_v29  ;;  %v1450_v21 = vmul.f32 %v1425_v10, %v6122_v40  ;;  %v1462_v12 = vmul.f32 %v1425_v10, %v6128_v43  ;;  %v1434_v26 = vmul.f32 %v1425_v10, %v6135_v46 }
 0x919   : > { %v1437_v28 = vadd.f32 %v6086_v17, %v1435_v24 }
 0x91a   : > { %1442 = vrot.lane.b32.xlu0 %v1438_v18, %s5915_s30  ;;  %v1436_v5 = vadd.f32 %v1434_v26, %v6090_v19 }
 0x91c   : > { %1456 = vrot.lane.b32.xlu1 %v1451_v20, %s5916_s12 }
 0x91e   : > { %1454 = vrot.lane.b32.xlu0 %v1450_v21, %s5916_s12 }
 0x920   : > { %1468 = vrot.lane.b32.xlu1 %v1463_v22, %s7295_s15 }
 0x922   : > { %1466 = vrot.lane.b32.xlu0 %v1462_v12, %s7295_s15 }
 0x924   : > { %1238 = vrot.lane.b32.xlu1 %v6240_v11, %s5918_s24 }
 0x926   : > { %1236 = vrot.lane.b32.xlu0 %v6245_v53, %s5918_s24 }
 0x98a   : > { %v1445_v25 = vpop.permute.xlu1 %1444 }
 0x98b   : > { %v1449_v35 = vadd.f32 %v1445_v25, %v1437_v28  ;;  %v5205_v28 = vld [vmem:[%s6193_s16 + $0x18] sm:$0xff] }
 0x98c   : > { %v1443_v27 = vpop.permute.xlu0 %1442 }
 0x98d   : > { %v1448_v37 = vadd.f32 %v1443_v27, %v1436_v5 }
 0x98e   : > { %v1457_v34 = vpop.permute.xlu1 %1456 }
 0x98f   : > { %v1461_v39 = vadd.f32 %v1457_v34, %v1449_v35  ;;  %v5204_v35 = vld [vmem:[%s6193_s16 + $0x10] sm:$0xff] }
 0x990   : > { %v1455_v36 = vpop.permute.xlu0 %1454 }
 0x991   : > { %v1460_v42 = vadd.f32 %v1455_v36, %v1448_v37  ;;  %v1735_v36 = vsub.f32 1.0, %v5205_v28  ;;  %v1734_v37 = vsub.f32 1.0, %v5204_v35 }
 0x992   : > { %v1469_v41 = vpop.permute.xlu1 %1468 }
 0x993   : > { %v1473_v44 = vadd.f32 %v1469_v41, %v1461_v39 }
 0x994   : > { %v1467_v47 = vpop.permute.xlu0 %1466 }
 0x995   : > { %v5212_v8 = vmul.f32 -1.442695, %v1473_v44  ;;  %v1472_v48 = vadd.f32 %v1467_v47, %v1460_v42 }
 0x996   : > { %v1239_v49 = vpop.permute.xlu1 %1238 }
 0x997   : > { %5805 = vpow2.f32 %v5212_v8  ;;  %v5211_v50 = vmul.f32 -1.442695, %v1472_v48  ;;  %1244 = vst.msk [vmem:[%s6302_s22 + $0x8] sm:$0xff] %vm1242_vm6, %v1239_v49 }
 0x998   : > { %v1237_v55 = vpop.permute.xlu0 %1236 }
 0x999   : > { %5807 = vpow2.f32 %v5211_v50  ;;  %1243 = vst.msk [vmem:[%s6302_s22] sm:$0xff] %vm1242_vm6, %v1237_v55 }
 0x9a4   : > { %v5806_v57 = vpop.eup %5805 }
 0x9a5   : > { %v1481_v58 = vadd.f32 1.0, %v5806_v57 }
 0x9a6   : > { %v5808_v59 = vpop.eup %5807 }
 0x9a7   : > { %5809 = vrcp.f32 %v1481_v58  ;;  %v1480_v61 = vadd.f32 1.0, %v5808_v59 }
 0x9a9   : > { %5811 = vrcp.f32 %v1480_v61 }
 0x9b4   : > { %v6308_v62 = vpop.eup %5809 }
 0x9b5   : > { %v1487_v63 = vmul.f32 %v6308_v62, %v1239_v49 }
 0x9b6   : > { %v6311_v3 = vpop.eup %5811 }
 0x9b7   : > { %v1486_v0 = vmul.f32 %v6311_v3, %v1237_v55  ;;  %1492 = vrot.lane.b32.xlu1 %v1487_v63, %s7293_s14 }
 0x9b9   : > { %1490 = vrot.lane.b32.xlu0 %v1486_v0, %s7293_s14  ;;  %v1219_v0 = vmul.f32 0.8, %v6220_v13  ;;  %v1709_v13 = vsub.f32 1.0, %v6308_v62 }
 0xa29   : > { %v1493_v1 = vpop.permute.xlu1 %1492 }
 0xa2a   : > { %v1497_v2 = vsel %vm672_vm3, %v6250_v54, %v1493_v1 }
 0xa2b   : > { %5557 = vmatprep.subr.mxu1 %v1497_v2  ;;  %v1491_v4 = vpop.permute.xlu0 %1490 }
 0xa2c   : > { %5558 = vmatpush3.msra.mxu1 %v1497_v2  ;;  %v1496_v10 = vsel %vm672_vm3, %v6253_v56, %v1491_v4  ;;  %v1218_v4 = vmul.f32 0.8, %v6217_v7 }
 0xa2d   : > { %5559 = vmatprep.subr.mxu1 %v1496_v10 }
 0xa2e   : > { %5560 = vmatpush3.msra.mxu1 %v1496_v10 }
 0xa2f   : > { %5562 = vmatmul.mubr.msk.f32.vlgmr.msra.gmra.mxu1 %vm675_vm2, %v6260_v60  ;;  %5564 = vmatprep.subr.msk.mxu1 %vm496_vm0, %v6160_v23 }
 0xa30   : > { %5565 = vmatpush3.msk.msra.mxu1 %vm496_vm0, %v6160_v23 }
 0xa31   : > { %5566 = vmatprep.subr.mxu1 %v6169_v6 }
 0xa32   : > { %5567 = vmatpush3.msra.mxu1 %v6169_v6 }
 0xa33   : > { %5568 = vmatprep.subr.mxu1 %v6176_v9 }
 0xa34   : > { %5569 = vmatpush3.msra.mxu1 %v6176_v9 }
 0xaef   : > { %v5563_v54 = vpop.f32.mrf.mxu1 }
 0xaf0   : > { %1577 = vrot.lane.b32.xlu0 %v5563_v54, %s5912_s28 }
 0xaf1   : > { %v1564_v56 = vpop.f32.mrf.mxu1 }
 0xaf2   : > { %1575 = vrot.lane.b32.xlu1 %v1564_v56, %s5912_s28 }
 0xb62   : > { %v1578_v60 = vpop.permute.xlu0 %1577 }
 0xb63   : > { %v1582_v21 = vsel %vm765_vm4, %v1497_v2, %v1578_v60 }
 0xb64   : > { %v1576_v18 = vpop.permute.xlu1 %1575 }
 0xb65   : > { %v1581_v20 = vsel %vm765_vm4, %v1496_v10, %v1576_v18 }
 0xb66   : > { %5570 = vmatprep.mubr.msk.f32.mxu1 %vm768_vm5, %v1581_v20 }
 0xb67   : > { %5571 = vmatmul.mubr.msk.f32.vlgmr.msra.gmra.mxu1 %vm768_vm5, %v1582_v21 }
 0xc27   : > { %v5572_v22 = vpop.f32.mrf.mxu1 }
 0xc28   : > { %v1669_v12 = vmul.f32 %v5572_v22, %v6113_v33  ;;  %v1681_v26 = vmul.f32 %v5572_v22, %v6109_v31  ;;  %v1693_v34 = vmul.f32 %v5572_v22, %v6118_v38  ;;  %v1665_v39 = vmul.f32 %v5572_v22, %v6133_v45 }
 0xc29   : > { %v1655_v24 = vpop.f32.mrf.mxu1 }
 0xc2a   : > { %1674 = vrot.lane.b32.xlu1 %v1669_v12, %s5918_s24  ;;  %v1668_v25 = vmul.f32 %v1655_v24, %v6105_v29  ;;  %v1680_v27 = vmul.f32 %v1655_v24, %v6122_v40  ;;  %v1692_v5 = vmul.f32 %v1655_v24, %v6128_v43  ;;  %v1664_v42 = vmul.f32 %v1655_v24, %v6135_v46 }
 0xc2b   : > { %v1667_v47 = vadd.f32 %v6107_v30, %v1665_v39  ;;  %v1707_v24 = vmul.f32 %v6308_v62, %v6240_v11 }
 0xc2c   : > { %1672 = vrot.lane.b32.xlu0 %v1668_v25, %s5918_s24  ;;  %v1666_v49 = vadd.f32 %v1664_v42, %v6111_v32 }
 0xc2e   : > { %1686 = vrot.lane.b32.xlu1 %v1681_v26, %s5915_s30 }
 0xc30   : > { %1684 = vrot.lane.b32.xlu0 %v1680_v27, %s5915_s30  ;;  %v1708_v27 = vsub.f32 1.0, %v6311_v3 }
 0xc32   : > { %1698 = vrot.lane.b32.xlu1 %v1693_v34, %s7291_s19  ;;  %v1706_v34 = vmul.f32 %v6311_v3, %v6245_v53 }
 0xc34   : > { %1696 = vrot.lane.b32.xlu0 %v1692_v5, %s7291_s19 }
 0xc36   : > { %1743 = vperm.xlu1 %5792, %v1735_v36  }
 0xc38   : > { %1738 = vperm.xlu0 %5791, %v1734_v37   ;;  %v5222_v37 = vld [vmem:[%s6025_s13 + $0x20] sm:$0xff] }
 0xc39   : > { %5577 = vmatprep.mubr.msk.f32.mxu0 %vm675_vm2, %v5222_v37  ;;  %5593 = vmatprep.mubr.msk.f32.mxu1 %vm675_vm2, %v5222_v37 }
 0xc3a   : > { %1226 = vrot.lane.b32.xlu1 %v6235_v51, %s5918_s24 }
 0xc3c   : > { %1224 = vrot.lane.b32.xlu0 %v6237_v52, %s5918_s24 }
 0xc3e   : > { %1729 = vperm.xlu1 %5792, %v5205_v28  }
 0xc42   : > { %1724 = vperm.xlu1 %5792, %v5204_v35  }
 0xc9c   : > { %v1675_v41 = vpop.permute.xlu1 %1674 }
 0xc9d   : > { %v1679_v48 = vadd.f32 %v1675_v41, %v1667_v47 }
 0xc9e   : > { %v1673_v44 = vpop.permute.xlu0 %1672 }
 0xc9f   : > { %v1678_v55 = vadd.f32 %v1673_v44, %v1666_v49 }
 0xca0   : > { %v1687_v8 = vpop.permute.xlu1 %1686 }
 0xca1   : > { %v1691_v51 = vadd.f32 %v1687_v8, %v1679_v48  ;;  %v6394_v8 = vld [vmem:[%s6039_s18 + $0x28] sm:$0xff] }
 0xca2   : > { %v1685_v50 = vpop.permute.xlu0 %1684 }
 0xca3   : > { %v1690_v58 = vadd.f32 %v1685_v50, %v1678_v55  ;;  %v6399_v50 = vld [vmem:[%s6039_s18 + $0x20] sm:$0xff] }
 0xca4   : > { %v1699_v57 = vpop.permute.xlu1 %1698 }
 0xca5   : > { %v1703_v52 = vadd.f32 %v1699_v57, %v1691_v51  ;;  %v6404_v57 = vld [vmem:[%s6025_s13 + $0x28] sm:$0xff] }
 0xca6   : > { %v1697_v59 = vpop.permute.xlu0 %1696 }
 0xca7   : > { %5813 = vtanh.f32 %v1703_v52  ;;  %v1702_v61 = vadd.f32 %v1697_v59, %v1690_v58 }
 0xca9   : > { %5815 = vtanh.f32 %v1702_v61 }
 0xcb1   : > { %v1744_v63 = vpop.permute.xlu1 %1743 }
 0xcb3   : > { %v1739_v1 = vpop.permute.xlu0 %1738 }
 0xcb4   : > { %v5814_v2 = vpop.eup %5813 }
 0xcb5   : > { %v1227_v10 = vpop.permute.xlu1 %1226  ;;  %1714 = vrot.lane.b32.xlu0 %v5814_v2, %s7289_s20 }
 0xcb6   : > { %v6361_v54 = vadd.f32 %v1227_v10, %v1219_v0  ;;  %v5816_v60 = vpop.eup %5815 }
 0xcb7   : > { %v1225_v56 = vpop.permute.xlu0 %1224 }
 0xcb8   : > { %v1747_v18 = vmul.f32 %v1744_v63, %v6361_v54  ;;  %v6364_v20 = vadd.f32 %v1225_v56, %v1218_v4 }
 0xcb9   : > { %1712 = vrot.lane.b32.xlu0 %v5816_v60, %s7289_s20  ;;  %v1730_v7 = vpop.permute.xlu1 %1729 }
 0xcba   : > { %v1746_v21 = vmul.f32 %v1739_v1, %v6364_v20  ;;  %1752 = vrot.lane.b32.xlu1 %v1747_v18, %s7289_s20 }
 0xcbd   : > { %1750 = vrot.lane.b32.xlu0 %v1746_v21, %s7289_s20  ;;  %v1725_v12 = vpop.permute.xlu1 %1724 }
 0xd27   : > { %v1715_v22 = vpop.permute.xlu0 %1714 }
 0xd28   : > { %v1719_v25 = vmul.f32 %v1715_v22, %v1709_v13 }
 0xd2a   : > { %v1721_v26 = vadd.f32 %v1719_v25, %v1707_v24 }
 0xd2b   : > { %v1713_v28 = vpop.permute.xlu0 %1712 }
 0xd2c   : > { %v1718_v35 = vmul.f32 %v1713_v28, %v1708_v27  ;;  %v1753_v5 = vpop.permute.xlu1 %1752  ;;  %v1733_v36 = vmul.f32 %v1730_v7, %v1721_v26 }
 0xd2e   : > { %v1720_v39 = vadd.f32 %v1718_v35, %v1706_v34  ;;  %v1757_v41 = vadd.f32 %v1753_v5, %v1733_v36 }
 0xd2f   : > { %v1751_v42 = vpop.permute.xlu0 %1750 }
 0xd30   : > { %v6379_v11 = vmul.f32 0.2, %v1757_v41  ;;  %v1732_v62 = vmul.f32 %v1725_v12, %v1720_v39 }
 0xd32   : > { %v1756_v44 = vadd.f32 %v1751_v42, %v1732_v62  ;;  %v6382_v53 = vadd.f32 %v6379_v11, %v1721_v26 }
 0xd34   : > { %v6384_v3 = vmul.f32 0.2, %v1756_v44  ;;  %1796 = vrot.lane.b32.xlu1 %v6382_v53, %s7287_s26 }
 0xd36   : > { %v6389_v47 = vadd.f32 %v6384_v3, %v1720_v39 }
 0xd38   : > { %1794 = vrot.lane.b32.xlu0 %v6389_v47, %s7287_s26 }
 0xda6   : > { %v1797_v48 = vpop.permute.xlu1 %1796 }
 0xda7   : > { %v1801_v49 = vsel %vm672_vm3, %v6394_v8, %v1797_v48 }
 0xda8   : > { %5573 = vmatprep.subr.mxu0 %v1801_v49 }
 0xda9   : > { %5574 = vmatpush3.msra.mxu0 %v1801_v49 }
 0xdaa   : > { %v1795_v55 = vpop.permute.xlu0 %1794 }
 0xdab   : > { %v1800_v51 = vsel %vm672_vm3, %v6399_v50, %v1795_v55 }
 0xdac   : > { %5575 = vmatprep.subr.mxu0 %v1800_v51 }
 0xdad   : > { %5576 = vmatpush3.msra.mxu0 %v1800_v51 }
 0xdae   : > { %5578 = vmatmul.mubr.msk.f32.vlgmr.msra.gmra.mxu0 %vm675_vm2, %v6404_v57  ;;  %5580 = vmatprep.subr.msk.mxu0 %vm496_vm0, %v6063_v14 }
 0xdaf   : > { %5581 = vmatpush3.msk.msra.mxu0 %vm496_vm0, %v6063_v14 }
 0xdb0   : > { %5582 = vmatprep.subr.mxu0 %v6076_v15 }
 0xdb1   : > { %5583 = vmatpush3.msra.mxu0 %v6076_v15 }
 0xdb2   : > { %5584 = vmatprep.subr.mxu0 %v6082_v16 }
 0xdb3   : > { %5585 = vmatpush3.msra.mxu0 %v6082_v16 }
 0xe6e   : > { %v5579_v58 = vpop.f32.mrf.mxu0 }
 0xe6f   : > { %1887 = vrot.lane.b32.xlu0 %v5579_v58, %s5912_s28 }
 0xe70   : > { %v1874_v52 = vpop.f32.mrf.mxu0 }
 0xe71   : > { %1885 = vrot.lane.b32.xlu1 %v1874_v52, %s5912_s28 }
 0xee1   : > { %v1888_v59 = vpop.permute.xlu0 %1887 }
 0xee2   : > { %v1892_v14 = vsel %vm765_vm4, %v1801_v49, %v1888_v59 }
 0xee3   : > { %v1886_v61 = vpop.permute.xlu1 %1885 }
 0xee4   : > { %v1891_v63 = vsel %vm765_vm4, %v1800_v51, %v1886_v61 }
 0xee5   : > { %5586 = vmatprep.mubr.msk.f32.mxu0 %vm768_vm5, %v1891_v63 }
 0xee6   : > { %5587 = vmatmul.mubr.msk.f32.vlgmr.msra.gmra.mxu0 %vm768_vm5, %v1892_v14 }
 0xfa6   : > { %v5588_v15 = vpop.f32.mrf.mxu0 }
 0xfa7   : > { %v1979_v0 = vmul.f32 %v5588_v15, %v6113_v33  ;;  %v1991_v2 = vmul.f32 %v5588_v15, %v6109_v31  ;;  %v2003_v10 = vmul.f32 %v5588_v15, %v6118_v38  ;;  %v1975_v60 = vmul.f32 %v5588_v15, %v6133_v45 }
 0xfa8   : > { %v1965_v16 = vpop.f32.mrf.mxu0 }
 0xfa9   : > { %1984 = vrot.lane.b32.xlu1 %v1979_v0, %s5915_s30  ;;  %v1978_v1 = vmul.f32 %v1965_v16, %v6105_v29  ;;  %v1990_v4 = vmul.f32 %v1965_v16, %v6122_v40  ;;  %v2002_v56 = vmul.f32 %v1965_v16, %v6128_v43  ;;  %v1974_v21 = vmul.f32 %v1965_v16, %v6135_v46 }
 0xfaa   : > { %v1977_v13 = vadd.f32 %v6086_v17, %v1975_v60  ;;  %v5224_v60 = vld [vmem:[%s6193_s16 + $0x20] sm:$0xff] }
 0xfab   : > { %1982 = vrot.lane.b32.xlu0 %v1978_v1, %s5915_s30  ;;  %v1976_v24 = vadd.f32 %v1974_v21, %v6090_v19 }
 0xfad   : > { %1996 = vrot.lane.b32.xlu1 %v1991_v2, %s5916_s12 }
 0xfaf   : > { %1994 = vrot.lane.b32.xlu0 %v1990_v4, %s5916_s12 }
 0xfb1   : > { %2008 = vrot.lane.b32.xlu1 %v2003_v10, %s7295_s15  ;;  %v5225_v10 = vld [vmem:[%s6193_s16 + $0x28] sm:$0xff] }
 0xfb2   : > { %v2275_v21 = vsub.f32 1.0, %v5225_v10 }
 0xfb3   : > { %2006 = vrot.lane.b32.xlu0 %v2002_v56, %s7295_s15 }
 0xfb5   : > { %1778 = vrot.lane.b32.xlu1 %v6382_v53, %s5918_s24 }
 0xfb7   : > { %1776 = vrot.lane.b32.xlu0 %v6389_v47, %s5918_s24 }
0x101b   : > { %v1985_v18 = vpop.permute.xlu1 %1984 }
0x101c   : > { %v1989_v12 = vadd.f32 %v1985_v18, %v1977_v13 }
0x101d   : > { %v1983_v7 = vpop.permute.xlu0 %1982 }
0x101e   : > { %v1988_v26 = vadd.f32 %v1983_v7, %v1976_v24  ;;  %v2274_v7 = vsub.f32 1.0, %v5224_v60 }
0x101f   : > { %v1997_v22 = vpop.permute.xlu1 %1996 }
0x1020   : > { %v2001_v27 = vadd.f32 %v1997_v22, %v1989_v12 }
0x1021   : > { %v1995_v25 = vpop.permute.xlu0 %1994 }
0x1022   : > { %v2000_v34 = vadd.f32 %v1995_v25, %v1988_v26 }
0x1023   : > { %v2009_v28 = vpop.permute.xlu1 %2008 }
0x1024   : > { %v2013_v35 = vadd.f32 %v2009_v28, %v2001_v27 }
0x1025   : > { %v2007_v5 = vpop.permute.xlu0 %2006 }
0x1026   : > { %v5232_v36 = vmul.f32 -1.442695, %v2013_v35  ;;  %v2012_v37 = vadd.f32 %v2007_v5, %v2000_v34 }
0x1027   : > { %v1779_v39 = vpop.permute.xlu1 %1778 }
0x1028   : > { %5817 = vpow2.f32 %v5232_v36  ;;  %v5231_v41 = vmul.f32 -1.442695, %v2012_v37  ;;  %5219 = vst.msk [vmem:[%s6302_s22 + $0x18] sm:$0xff] %vm1242_vm6, %v1779_v39 }
0x1029   : > { %v1777_v62 = vpop.permute.xlu0 %1776 }
0x102a   : > { %5819 = vpow2.f32 %v5231_v41  ;;  %5218 = vst.msk [vmem:[%s6302_s22 + $0x10] sm:$0xff] %vm1242_vm6, %v1777_v62 }
0x1035   : > { %v5818_v42 = vpop.eup %5817 }
0x1036   : > { %v2021_v44 = vadd.f32 1.0, %v5818_v42 }
0x1037   : > { %v5820_v48 = vpop.eup %5819 }
0x1038   : > { %5821 = vrcp.f32 %v2021_v44  ;;  %v2020_v49 = vadd.f32 1.0, %v5820_v48  ;;  %v1759_v44 = vmul.f32 0.8, %v6361_v54 }
0x103a   : > { %5823 = vrcp.f32 %v2020_v49 }
0x1045   : > { %v6446_v55 = vpop.eup %5821 }
0x1046   : > { %v2027_v51 = vmul.f32 %v6446_v55, %v1779_v39 }
0x1047   : > { %v6449_v58 = vpop.eup %5823 }
0x1048   : > { %v2026_v52 = vmul.f32 %v6449_v58, %v1777_v62  ;;  %2032 = vrot.lane.b32.xlu1 %v2027_v51, %s7293_s14  ;;  %v1758_v51 = vmul.f32 0.8, %v6364_v20 }
0x104a   : > { %2030 = vrot.lane.b32.xlu0 %v2026_v52, %s7293_s14 }
0x10ba   : > { %v2033_v59 = vpop.permute.xlu1 %2032 }
0x10bb   : > { %v2037_v61 = vsel %vm672_vm3, %v6394_v8, %v2033_v59 }
0x10bc   : > { %5589 = vmatprep.subr.mxu1 %v2037_v61  ;;  %v2031_v63 = vpop.permute.xlu0 %2030 }
0x10bd   : > { %5590 = vmatpush3.msra.mxu1 %v2037_v61  ;;  %v2036_v14 = vsel %vm672_vm3, %v6399_v50, %v2031_v63 }
0x10be   : > { %5591 = vmatprep.subr.mxu1 %v2036_v14 }
0x10bf   : > { %5592 = vmatpush3.msra.mxu1 %v2036_v14 }
0x10c0   : > { %5594 = vmatmul.mubr.msk.f32.vlgmr.msra.gmra.mxu1 %vm675_vm2, %v6404_v57  ;;  %5596 = vmatprep.subr.msk.mxu1 %vm496_vm0, %v6160_v23 }
0x10c1   : > { %5597 = vmatpush3.msk.msra.mxu1 %vm496_vm0, %v6160_v23 }
0x10c2   : > { %5598 = vmatprep.subr.mxu1 %v6169_v6 }
0x10c3   : > { %5599 = vmatpush3.msra.mxu1 %v6169_v6 }
0x10c4   : > { %5600 = vmatprep.subr.mxu1 %v6176_v9 }
0x10c5   : > { %5601 = vmatpush3.msra.mxu1 %v6176_v9 }
0x1180   : > { %v5595_v8 = vpop.f32.mrf.mxu1 }
0x1181   : > { %2117 = vrot.lane.b32.xlu0 %v5595_v8, %s5912_s28  ;;  %v2249_v8 = vsub.f32 1.0, %v6446_v55 }
0x1182   : > { %v2104_v50 = vpop.f32.mrf.mxu1 }
0x1183   : > { %2115 = vrot.lane.b32.xlu1 %v2104_v50, %s5912_s28 }
0x11f3   : > { %v2118_v57 = vpop.permute.xlu0 %2117 }
0x11f4   : > { %v2122_v23 = vsel %vm765_vm4, %v2037_v61, %v2118_v57  ;;  %v2247_v57 = vmul.f32 %v6446_v55, %v6382_v53 }
0x11f5   : > { %v2116_v15 = vpop.permute.xlu1 %2115 }
0x11f6   : > { %v2121_v0 = vsel %vm765_vm4, %v2036_v14, %v2116_v15 }
0x11f7   : > { %5602 = vmatprep.mubr.msk.f32.mxu1 %vm768_vm5, %v2121_v0 }
0x11f8   : > { %5603 = vmatmul.mubr.msk.f32.vlgmr.msra.gmra.mxu1 %vm768_vm5, %v2122_v23  ;;  %v2248_v23 = vsub.f32 1.0, %v6449_v58 }
0x12b8   : > { %v5604_v6 = vpop.f32.mrf.mxu1 }
0x12b9   : > { %v2209_v9 = vmul.f32 %v5604_v6, %v6113_v33  ;;  %v2221_v2 = vmul.f32 %v5604_v6, %v6109_v31  ;;  %v2233_v56 = vmul.f32 %v5604_v6, %v6118_v38  ;;  %v2205_v13 = vmul.f32 %v5604_v6, %v6133_v45 }
0x12ba   : > { %v2195_v16 = vpop.f32.mrf.mxu1 }
0x12bb   : > { %2214 = vrot.lane.b32.xlu1 %v2209_v9, %s5918_s24  ;;  %v2208_v1 = vmul.f32 %v2195_v16, %v6105_v29  ;;  %v2220_v4 = vmul.f32 %v2195_v16, %v6122_v40  ;;  %v2232_v18 = vmul.f32 %v2195_v16, %v6128_v43  ;;  %v2204_v12 = vmul.f32 %v2195_v16, %v6135_v46 }
0x12bc   : > { %v2207_v25 = vadd.f32 %v6107_v30, %v2205_v13  ;;  %v2246_v9 = vmul.f32 %v6449_v58, %v6389_v47 }
0x12bd   : > { %2212 = vrot.lane.b32.xlu0 %v2208_v1, %s5918_s24  ;;  %v2206_v28 = vadd.f32 %v2204_v12, %v6111_v32  ;;  %v6537_v12 = vld [vmem:[%s6039_s18 + $0x30] sm:$0xff] }
0x12bf   : > { %2226 = vrot.lane.b32.xlu1 %v2221_v2, %s5915_s30 }
0x12c1   : > { %2224 = vrot.lane.b32.xlu0 %v2220_v4, %s5915_s30  ;;  %v5242_v4 = vld [vmem:[%s6025_s13 + $0x30] sm:$0xff] }
0x12c2   : > { %5609 = vmatprep.mubr.msk.f32.mxu0 %vm675_vm2, %v5242_v4  ;;  %5625 = vmatprep.mubr.msk.f32.mxu1 %vm675_vm2, %v5242_v4 }
0x12c3   : > { %2238 = vrot.lane.b32.xlu1 %v2233_v56, %s7291_s19 }
0x12c5   : > { %2236 = vrot.lane.b32.xlu0 %v2232_v18, %s7291_s19 }
0x12c7   : > { %2283 = vperm.xlu1 %5792, %v2275_v21  }
0x12c9   : > { %2278 = vperm.xlu0 %5791, %v2274_v7   ;;  %v6532_v7 = vld [vmem:[%s6039_s18 + $0x38] sm:$0xff] }
0x12cb   : > { %1766 = vrot.lane.b32.xlu1 %v6379_v11, %s5918_s24 }
0x12cd   : > { %1764 = vrot.lane.b32.xlu0 %v6384_v3, %s5918_s24 }
0x12cf   : > { %2269 = vperm.xlu1 %5792, %v5225_v10  }
0x12d3   : > { %2264 = vperm.xlu1 %5792, %v5224_v60  }
0x132d   : > { %v2215_v22 = vpop.permute.xlu1 %2214 }
0x132e   : > { %v2219_v27 = vadd.f32 %v2215_v22, %v2207_v25 }
0x132f   : > { %v2213_v24 = vpop.permute.xlu0 %2212 }
0x1330   : > { %v2218_v35 = vadd.f32 %v2213_v24, %v2206_v28  ;;  %v6558_v28 = vld [vmem:[%s7281_s6 + $0x8] sm:$0xff] }
0x1331   : > { %v2227_v26 = vpop.permute.xlu1 %2226 }
0x1332   : > { %v2231_v11 = vadd.f32 %v2227_v26, %v2219_v27  ;;  %v6542_v26 = vld [vmem:[%s6025_s13 + $0x38] sm:$0xff]  ;;  %v6549_v27 = vld [vmem:[%s7281_s6 + $0x10] sm:$0xf] }
0x1333   : > { %v2225_v34 = vpop.permute.xlu0 %2224 }
0x1334   : > { %v2230_v36 = vadd.f32 %v2225_v34, %v2218_v35  ;;  %v6565_v34 = vld [vmem:[%s7281_s6] sm:$0xff] }
0x1335   : > { %v2239_v5 = vpop.permute.xlu1 %2238 }
0x1336   : > { %v2243_v3 = vadd.f32 %v2239_v5, %v2231_v11 }
0x1337   : > { %v2237_v37 = vpop.permute.xlu0 %2236 }
0x1338   : > { %5825 = vtanh.f32 %v2243_v3  ;;  %v2242_v39 = vadd.f32 %v2237_v37, %v2230_v36 }
0x133a   : > { %5827 = vtanh.f32 %v2242_v39 }
0x1342   : > { %v2284_v41 = vpop.permute.xlu1 %2283 }
0x1344   : > { %v2279_v62 = vpop.permute.xlu0 %2278 }
0x1345   : > { %v5826_v42 = vpop.eup %5825 }
0x1346   : > { %v1767_v48 = vpop.permute.xlu1 %1766  ;;  %2254 = vrot.lane.b32.xlu0 %v5826_v42, %s7289_s20 }
0x1347   : > { %v6498_v49 = vadd.f32 %v1767_v48, %v1759_v44  ;;  %v5828_v59 = vpop.eup %5827 }
0x1348   : > { %v1765_v52 = vpop.permute.xlu0 %1764 }
0x1349   : > { %v2287_v61 = vmul.f32 %v2284_v41, %v6498_v49  ;;  %v6502_v63 = vadd.f32 %v1765_v52, %v1758_v51 }
0x134a   : > { %2252 = vrot.lane.b32.xlu0 %v5828_v59, %s7289_s20  ;;  %v2270_v54 = vpop.permute.xlu1 %2269 }
0x134b   : > { %v2286_v14 = vmul.f32 %v2279_v62, %v6502_v63  ;;  %2292 = vrot.lane.b32.xlu1 %v2287_v61, %s7289_s20 }
0x134e   : > { %2290 = vrot.lane.b32.xlu0 %v2286_v14, %s7289_s20  ;;  %v2265_v20 = vpop.permute.xlu1 %2264  ;;  %s7297_s20 = smov 8  }
0x13b8   : > { %v2255_v50 = vpop.permute.xlu0 %2254 }
0x13b9   : > { %v2259_v15 = vmul.f32 %v2255_v50, %v2249_v8 }
0x13bb   : > { %v2261_v0 = vadd.f32 %v2259_v15, %v2247_v57 }
0x13bc   : > { %v2253_v6 = vpop.permute.xlu0 %2252 }
0x13bd   : > { %v2258_v16 = vmul.f32 %v2253_v6, %v2248_v23  ;;  %v2293_v1 = vpop.permute.xlu1 %2292  ;;  %v2273_v2 = vmul.f32 %v2270_v54, %v2261_v0 }
0x13bf   : > { %v2260_v10 = vadd.f32 %v2258_v16, %v2246_v9  ;;  %v2297_v56 = vadd.f32 %v2293_v1, %v2273_v2 }
0x13c0   : > { %v2291_v60 = vpop.permute.xlu0 %2290 }
0x13c1   : > { %v6517_v53 = vmul.f32 0.2, %v2297_v56  ;;  %v2272_v55 = vmul.f32 %v2265_v20, %v2260_v10 }
0x13c3   : > { %v6520_v18 = vadd.f32 %v6517_v53, %v2261_v0  ;;  %v2296_v47 = vadd.f32 %v2291_v60, %v2272_v55 }
0x13c5   : > { %v6522_v58 = vmul.f32 0.2, %v2296_v47  ;;  %2336 = vrot.lane.b32.xlu1 %v6520_v18, %s7287_s26 }
0x13c7   : > { %v6527_v21 = vadd.f32 %v6522_v58, %v2260_v10 }
0x13c9   : > { %2334 = vrot.lane.b32.xlu0 %v6527_v21, %s7287_s26  ;;  %s7298_s26 = smov 122  }
0x1437   : > { %v2337_v13 = vpop.permute.xlu1 %2336 }
0x1438   : > { %v2341_v22 = vsel %vm672_vm3, %v6532_v7, %v2337_v13 }
0x1439   : > { %5605 = vmatprep.subr.mxu0 %v2341_v22 }
0x143a   : > { %5606 = vmatpush3.msra.mxu0 %v2341_v22 }
0x143b   : > { %v2335_v24 = vpop.permute.xlu0 %2334 }
0x143c   : > { %v2340_v25 = vsel %vm672_vm3, %v6537_v12, %v2335_v24 }
0x143d   : > { %5607 = vmatprep.subr.mxu0 %v2340_v25 }
0x143e   : > { %5608 = vmatpush3.msra.mxu0 %v2340_v25 }
0x143f   : > { %5610 = vmatmul.mubr.msk.f32.vlgmr.msra.gmra.mxu0 %vm675_vm2, %v6542_v26  ;;  %5612 = vmatprep.subr.msk.mxu0 %vm496_vm0, %v6549_v27 }
0x1440   : > { %5613 = vmatpush3.msk.msra.mxu0 %vm496_vm0, %v6549_v27 }
0x1441   : > { %5614 = vmatprep.subr.mxu0 %v6558_v28 }
0x1442   : > { %5615 = vmatpush3.msra.mxu0 %v6558_v28 }
0x1443   : > { %5616 = vmatprep.subr.mxu0 %v6565_v34 }
0x1444   : > { %5617 = vmatpush3.msra.mxu0 %v6565_v34 }
0x14ff   : > { %v5611_v35 = vpop.f32.mrf.mxu0 }
0x1500   : > { %2427 = vrot.lane.b32.xlu0 %v5611_v35, %s5912_s28 }
0x1501   : > { %v2414_v11 = vpop.f32.mrf.mxu0 }
0x1502   : > { %2425 = vrot.lane.b32.xlu1 %v2414_v11, %s5912_s28 }
0x1572   : > { %v2428_v5 = vpop.permute.xlu0 %2427 }
0x1573   : > { %v2432_v37 = vsel %vm765_vm4, %v2341_v22, %v2428_v5 }
0x1574   : > { %v2426_v36 = vpop.permute.xlu1 %2425 }
0x1575   : > { %v2431_v3 = vsel %vm765_vm4, %v2340_v25, %v2426_v36 }
0x1576   : > { %5618 = vmatprep.mubr.msk.f32.mxu0 %vm768_vm5, %v2431_v3 }
0x1577   : > { %5619 = vmatmul.mubr.msk.f32.vlgmr.msra.gmra.mxu0 %vm768_vm5, %v2432_v37 }
0x1637   : > { %v5620_v39 = vpop.f32.mrf.mxu0 }
0x1638   : > { %v2519_v41 = vmul.f32 %v5620_v39, %v6113_v33  ;;  %v2531_v44 = vmul.f32 %v5620_v39, %v6109_v31  ;;  %v2543_v51 = vmul.f32 %v5620_v39, %v6118_v38  ;;  %v2515_v59 = vmul.f32 %v5620_v39, %v6133_v45  ;;  %v6616_v39 = vld [vmem:[%s7283_s8 + $0x10] sm:$0xf] }
0x1639   : > { %v2505_v62 = vpop.f32.mrf.mxu0 }
0x163a   : > { %v2518_v42 = vmul.f32 %v2505_v62, %v6105_v29  ;;  %2524 = vrot.lane.b32.xlu1 %v2519_v41, %s5915_s30  ;;  %v2530_v48 = vmul.f32 %v2505_v62, %v6122_v40  ;;  %v2542_v52 = vmul.f32 %v2505_v62, %v6128_v43  ;;  %v2514_v14 = vmul.f32 %v2505_v62, %v6135_v46 }
0x163b   : > { %v2517_v8 = vadd.f32 %v6086_v17, %v2515_v59 }
0x163c   : > { %2522 = vrot.lane.b32.xlu0 %v2518_v42, %s5915_s30  ;;  %v2516_v57 = vadd.f32 %v2514_v14, %v6090_v19 }
0x163e   : > { %2536 = vrot.lane.b32.xlu1 %v2531_v44, %s5916_s12 }
0x1640   : > { %2534 = vrot.lane.b32.xlu0 %v2530_v48, %s5916_s12 }
0x1642   : > { %2548 = vrot.lane.b32.xlu1 %v2543_v51, %s7295_s15 }
0x1644   : > { %2546 = vrot.lane.b32.xlu0 %v2542_v52, %s7295_s15 }
0x1646   : > { %2318 = vrot.lane.b32.xlu1 %v6520_v18, %s5918_s24 }
0x1648   : > { %2316 = vrot.lane.b32.xlu0 %v6527_v21, %s5918_s24 }
0x16ac   : > { %v2525_v61 = vpop.permute.xlu1 %2524 }
0x16ad   : > { %v2529_v20 = vadd.f32 %v2525_v61, %v2517_v8  ;;  %v5245_v8 = vld [vmem:[%s6193_s16 + $0x38] sm:$0xff] }
0x16ae   : > { %v2523_v54 = vpop.permute.xlu0 %2522 }
0x16af   : > { %v2528_v0 = vadd.f32 %v2523_v54, %v2516_v57 }
0x16b0   : > { %v2537_v50 = vpop.permute.xlu1 %2536 }
0x16b1   : > { %v2541_v23 = vadd.f32 %v2537_v50, %v2529_v20  ;;  %v5244_v20 = vld [vmem:[%s6193_s16 + $0x30] sm:$0xff] }
0x16b2   : > { %v2535_v15 = vpop.permute.xlu0 %2534 }
0x16b3   : > { %v2540_v9 = vadd.f32 %v2535_v15, %v2528_v0  ;;  %v2815_v15 = vsub.f32 1.0, %v5245_v8  ;;  %v2814_v0 = vsub.f32 1.0, %v5244_v20 }
0x16b4   : > { %v2549_v6 = vpop.permute.xlu1 %2548 }
0x16b5   : > { %v2553_v16 = vadd.f32 %v2549_v6, %v2541_v23 }
0x16b6   : > { %v2547_v1 = vpop.permute.xlu0 %2546 }
0x16b7   : > { %v5252_v2 = vmul.f32 -1.442695, %v2553_v16  ;;  %v2552_v4 = vadd.f32 %v2547_v1, %v2540_v9 }
0x16b8   : > { %v2319_v10 = vpop.permute.xlu1 %2318 }
0x16b9   : > { %5829 = vpow2.f32 %v5252_v2  ;;  %v5251_v56 = vmul.f32 -1.442695, %v2552_v4  ;;  %5239 = vst.msk [vmem:[%s6302_s22 + $0x28] sm:$0xff] %vm1242_vm6, %v2319_v10 }
0x16ba   : > { %v2317_v55 = vpop.permute.xlu0 %2316 }
0x16bb   : > { %5831 = vpow2.f32 %v5251_v56  ;;  %5238 = vst.msk [vmem:[%s6302_s22 + $0x20] sm:$0xff] %vm1242_vm6, %v2317_v55 }
0x16c6   : > { %v5830_v60 = vpop.eup %5829 }
0x16c7   : > { %v2561_v47 = vadd.f32 1.0, %v5830_v60 }
0x16c8   : > { %v5832_v13 = vpop.eup %5831 }
0x16c9   : > { %5833 = vrcp.f32 %v2561_v47  ;;  %v2560_v22 = vadd.f32 1.0, %v5832_v13 }
0x16cb   : > { %5835 = vrcp.f32 %v2560_v22 }
0x16d6   : > { %v6599_v24 = vpop.eup %5833 }
0x16d7   : > { %v2567_v25 = vmul.f32 %v6599_v24, %v2319_v10 }
0x16d8   : > { %v6602_v35 = vpop.eup %5835 }
0x16d9   : > { %v2566_v11 = vmul.f32 %v6602_v35, %v2317_v55  ;;  %2572 = vrot.lane.b32.xlu1 %v2567_v25, %s7293_s14 }
0x16db   : > { %2570 = vrot.lane.b32.xlu0 %v2566_v11, %s7293_s14 }
0x174b   : > { %v2573_v5 = vpop.permute.xlu1 %2572 }
0x174c   : > { %v2577_v36 = vsel %vm672_vm3, %v6532_v7, %v2573_v5  ;;  %v6625_v7 = vld [vmem:[%s7283_s8 + $0x8] sm:$0xff] }
0x174d   : > { %5621 = vmatprep.subr.mxu1 %v2577_v36  ;;  %v2571_v3 = vpop.permute.xlu0 %2570 }
0x174e   : > { %5622 = vmatpush3.msra.mxu1 %v2577_v36  ;;  %v2576_v37 = vsel %vm672_vm3, %v6537_v12, %v2571_v3  ;;  %v6632_v12 = vld [vmem:[%s7283_s8] sm:$0xff] }
0x174f   : > { %5623 = vmatprep.subr.mxu1 %v2576_v37 }
0x1750   : > { %5624 = vmatpush3.msra.mxu1 %v2576_v37 }
0x1751   : > { %5626 = vmatmul.mubr.msk.f32.vlgmr.msra.gmra.mxu1 %vm675_vm2, %v6542_v26  ;;  %5628 = vmatprep.subr.msk.mxu1 %vm496_vm0, %v6616_v39 }
0x1752   : > { %5629 = vmatpush3.msk.msra.mxu1 %vm496_vm0, %v6616_v39 }
0x1753   : > { %5630 = vmatprep.subr.mxu1 %v6625_v7 }
0x1754   : > { %5631 = vmatpush3.msra.mxu1 %v6625_v7 }
0x1755   : > { %5632 = vmatprep.subr.mxu1 %v6632_v12 }
0x1756   : > { %5633 = vmatpush3.msra.mxu1 %v6632_v12 }
0x1811   : > { %v5627_v26 = vpop.f32.mrf.mxu1 }
0x1812   : > { %2657 = vrot.lane.b32.xlu0 %v5627_v26, %s5912_s28  ;;  %v2298_v26 = vmul.f32 0.8, %v6502_v63 }
0x1813   : > { %v2644_v41 = vpop.f32.mrf.mxu1 }
0x1814   : > { %2655 = vrot.lane.b32.xlu1 %v2644_v41, %s5912_s28 }
0x1884   : > { %v2658_v62 = vpop.permute.xlu0 %2657 }
0x1885   : > { %v2662_v48 = vsel %vm765_vm4, %v2577_v36, %v2658_v62  ;;  %v2299_v36 = vmul.f32 0.8, %v6498_v49 }
0x1886   : > { %v2656_v42 = vpop.permute.xlu1 %2655 }
0x1887   : > { %v2661_v44 = vsel %vm765_vm4, %v2576_v37, %v2656_v42 }
0x1888   : > { %5634 = vmatprep.mubr.msk.f32.mxu1 %vm768_vm5, %v2661_v44 }
0x1889   : > { %5635 = vmatmul.mubr.msk.f32.vlgmr.msra.gmra.mxu1 %vm768_vm5, %v2662_v48 }
0x1949   : > { %v5636_v51 = vpop.f32.mrf.mxu1 }
0x194a   : > { %v2749_v52 = vmul.f32 %v5636_v51, %v6113_v33  ;;  %v2761_v14 = vmul.f32 %v5636_v51, %v6109_v31  ;;  %v2773_v50 = vmul.f32 %v5636_v51, %v6118_v38  ;;  %v2745_v23 = vmul.f32 %v5636_v51, %v6133_v45 }
0x194b   : > { %v2735_v59 = vpop.f32.mrf.mxu1  ;;  %v2789_v51 = vsub.f32 1.0, %v6599_v24 }
0x194c   : > { %v2748_v61 = vmul.f32 %v2735_v59, %v6105_v29  ;;  %2754 = vrot.lane.b32.xlu1 %v2749_v52, %s5918_s24  ;;  %v2760_v54 = vmul.f32 %v2735_v59, %v6122_v40  ;;  %v2772_v57 = vmul.f32 %v2735_v59, %v6128_v43  ;;  %v2744_v9 = vmul.f32 %v2735_v59, %v6135_v46 }
0x194d   : > { %v2747_v1 = vadd.f32 %v6107_v30, %v2745_v23  ;;  %v2787_v59 = vmul.f32 %v6599_v24, %v6520_v18 }
0x194e   : > { %2752 = vrot.lane.b32.xlu0 %v2748_v61, %s5918_s24  ;;  %v2746_v10 = vadd.f32 %v2744_v9, %v6111_v32 }
0x1950   : > { %2766 = vrot.lane.b32.xlu1 %v2761_v14, %s5915_s30 }
0x1952   : > { %2764 = vrot.lane.b32.xlu0 %v2760_v54, %s5915_s30  ;;  %v2788_v54 = vsub.f32 1.0, %v6602_v35 }
0x1954   : > { %2778 = vrot.lane.b32.xlu1 %v2773_v50, %s7291_s19  ;;  %v2786_v50 = vmul.f32 %v6602_v35, %v6527_v21 }
0x1956   : > { %2776 = vrot.lane.b32.xlu0 %v2772_v57, %s7291_s19 }
0x1958   : > { %2823 = vperm.xlu1 %5792, %v2815_v15  }
0x195a   : > { %2818 = vperm.xlu0 %5791, %v2814_v0   ;;  %v5262_v0 = vld [vmem:[%s6025_s13 + $0x40] sm:$0xff] }
0x195b   : > { %5641 = vmatprep.mubr.msk.f32.mxu0 %vm675_vm2, %v5262_v0  ;;  %5657 = vmatprep.mubr.msk.f32.mxu1 %vm675_vm2, %v5262_v0 }
0x195c   : > { %2306 = vrot.lane.b32.xlu1 %v6517_v53, %s5918_s24 }
0x195e   : > { %2304 = vrot.lane.b32.xlu0 %v6522_v58, %s5918_s24 }
0x1960   : > { %2809 = vperm.xlu1 %5792, %v5245_v8  }
0x1964   : > { %2804 = vperm.xlu1 %5792, %v5244_v20  }
0x19be   : > { %v2755_v6 = vpop.permute.xlu1 %2754 }
0x19bf   : > { %v2759_v4 = vadd.f32 %v2755_v6, %v2747_v1 }
0x19c0   : > { %v2753_v16 = vpop.permute.xlu0 %2752 }
0x19c1   : > { %v2758_v55 = vadd.f32 %v2753_v16, %v2746_v10 }
0x19c2   : > { %v2767_v2 = vpop.permute.xlu1 %2766 }
0x19c3   : > { %v2771_v53 = vadd.f32 %v2767_v2, %v2759_v4  ;;  %v6700_v2 = vld [vmem:[%s6039_s18 + $0x48] sm:$0xff] }
0x19c4   : > { %v2765_v56 = vpop.permute.xlu0 %2764 }
0x19c5   : > { %v2770_v47 = vadd.f32 %v2765_v56, %v2758_v55  ;;  %v6705_v56 = vld [vmem:[%s6039_s18 + $0x40] sm:$0xff] }
0x19c6   : > { %v2779_v60 = vpop.permute.xlu1 %2778 }
0x19c7   : > { %v2783_v58 = vadd.f32 %v2779_v60, %v2771_v53  ;;  %v6710_v60 = vld [vmem:[%s6025_s13 + $0x48] sm:$0xff] }
0x19c8   : > { %v2777_v13 = vpop.permute.xlu0 %2776 }
0x19c9   : > { %5837 = vtanh.f32 %v2783_v58  ;;  %v2782_v22 = vadd.f32 %v2777_v13, %v2770_v47 }
0x19cb   : > { %5839 = vtanh.f32 %v2782_v22 }
0x19d3   : > { %v2824_v25 = vpop.permute.xlu1 %2823 }
0x19d5   : > { %v2819_v11 = vpop.permute.xlu0 %2818 }
0x19d6   : > { %v5838_v5 = vpop.eup %5837 }
0x19d7   : > { %v2307_v3 = vpop.permute.xlu1 %2306  ;;  %2794 = vrot.lane.b32.xlu0 %v5838_v5, %s7297_s20 }
0x19d8   : > { %v6666_v37 = vadd.f32 %v2307_v3, %v2299_v36  ;;  %v5840_v62 = vpop.eup %5839 }
0x19d9   : > { %v2305_v41 = vpop.permute.xlu0 %2304 }
0x19da   : > { %v2827_v42 = vmul.f32 %v2824_v25, %v6666_v37  ;;  %v6670_v44 = vadd.f32 %v2305_v41, %v2298_v26 }
0x19db   : > { %2792 = vrot.lane.b32.xlu0 %v5840_v62, %s7297_s20  ;;  %v2810_v49 = vpop.permute.xlu1 %2809 }
0x19dc   : > { %v2826_v48 = vmul.f32 %v2819_v11, %v6670_v44  ;;  %2832 = vrot.lane.b32.xlu1 %v2827_v42, %s7297_s20 }
0x19df   : > { %2830 = vrot.lane.b32.xlu0 %v2826_v48, %s7297_s20  ;;  %v2805_v63 = vpop.permute.xlu1 %2804 }
0x1a49   : > { %v2795_v52 = vpop.permute.xlu0 %2794 }
0x1a4a   : > { %v2799_v61 = vmul.f32 %v2795_v52, %v2789_v51 }
0x1a4c   : > { %v2801_v14 = vadd.f32 %v2799_v61, %v2787_v59 }
0x1a4d   : > { %v2793_v8 = vpop.permute.xlu0 %2792 }
0x1a4e   : > { %v2798_v20 = vmul.f32 %v2793_v8, %v2788_v54  ;;  %v2833_v57 = vpop.permute.xlu1 %2832  ;;  %v2813_v15 = vmul.f32 %v2810_v49, %v2801_v14 }
0x1a50   : > { %v2800_v23 = vadd.f32 %v2798_v20, %v2786_v50  ;;  %v2837_v6 = vadd.f32 %v2833_v57, %v2813_v15 }
0x1a51   : > { %v2831_v9 = vpop.permute.xlu0 %2830 }
0x1a52   : > { %v6685_v18 = vmul.f32 0.2, %v2837_v6  ;;  %v2812_v24 = vmul.f32 %v2805_v63, %v2800_v23 }
0x1a54   : > { %v6688_v16 = vadd.f32 %v6685_v18, %v2801_v14  ;;  %v2836_v21 = vadd.f32 %v2831_v9, %v2812_v24 }
0x1a56   : > { %v6690_v35 = vmul.f32 0.2, %v2836_v21  ;;  %2876 = vrot.lane.b32.xlu1 %v6688_v16, %s7298_s26 }
0x1a58   : > { %v6695_v1 = vadd.f32 %v6690_v35, %v2800_v23 }
0x1a5a   : > { %2874 = vrot.lane.b32.xlu0 %v6695_v1, %s7298_s26 }
0x1ac8   : > { %v2877_v4 = vpop.permute.xlu1 %2876 }
0x1ac9   : > { %v2881_v10 = vsel %vm672_vm3, %v6700_v2, %v2877_v4 }
0x1aca   : > { %5637 = vmatprep.subr.mxu0 %v2881_v10 }
0x1acb   : > { %5638 = vmatpush3.msra.mxu0 %v2881_v10 }
0x1acc   : > { %v2875_v55 = vpop.permute.xlu0 %2874 }
0x1acd   : > { %v2880_v53 = vsel %vm672_vm3, %v6705_v56, %v2875_v55 }
0x1ace   : > { %5639 = vmatprep.subr.mxu0 %v2880_v53 }
0x1acf   : > { %5640 = vmatpush3.msra.mxu0 %v2880_v53 }
0x1ad0   : > { %5642 = vmatmul.mubr.msk.f32.vlgmr.msra.gmra.mxu0 %vm675_vm2, %v6710_v60  ;;  %5644 = vmatprep.subr.msk.mxu0 %vm496_vm0, %v6549_v27 }
0x1ad1   : > { %5645 = vmatpush3.msk.msra.mxu0 %vm496_vm0, %v6549_v27 }
0x1ad2   : > { %5646 = vmatprep.subr.mxu0 %v6558_v28 }
0x1ad3   : > { %5647 = vmatpush3.msra.mxu0 %v6558_v28 }
0x1ad4   : > { %5648 = vmatprep.subr.mxu0 %v6565_v34 }
0x1ad5   : > { %5649 = vmatpush3.msra.mxu0 %v6565_v34 }
0x1b90   : > { %v5643_v47 = vpop.f32.mrf.mxu0 }
0x1b91   : > { %2967 = vrot.lane.b32.xlu0 %v5643_v47, %s5912_s28 }
0x1b92   : > { %v2954_v58 = vpop.f32.mrf.mxu0 }
0x1b93   : > { %2965 = vrot.lane.b32.xlu1 %v2954_v58, %s5912_s28 }
0x1c03   : > { %v2968_v13 = vpop.permute.xlu0 %2967 }
0x1c04   : > { %v2972_v11 = vsel %vm765_vm4, %v2881_v10, %v2968_v13 }
0x1c05   : > { %v2966_v22 = vpop.permute.xlu1 %2965 }
0x1c06   : > { %v2971_v25 = vsel %vm765_vm4, %v2880_v53, %v2966_v22 }
0x1c07   : > { %5650 = vmatprep.mubr.msk.f32.mxu0 %vm768_vm5, %v2971_v25 }
0x1c08   : > { %5651 = vmatmul.mubr.msk.f32.vlgmr.msra.gmra.mxu0 %vm768_vm5, %v2972_v11 }
0x1cc8   : > { %v5652_v5 = vpop.f32.mrf.mxu0 }
0x1cc9   : > { %v3059_v36 = vmul.f32 %v5652_v5, %v6113_v33  ;;  %v3071_v41 = vmul.f32 %v5652_v5, %v6109_v31  ;;  %v3083_v42 = vmul.f32 %v5652_v5, %v6118_v38  ;;  %v3055_v49 = vmul.f32 %v5652_v5, %v6133_v45 }
0x1cca   : > { %v3045_v3 = vpop.f32.mrf.mxu0 }
0x1ccb   : > { %v3058_v26 = vmul.f32 %v3045_v3, %v6105_v29  ;;  %3064 = vrot.lane.b32.xlu1 %v3059_v36, %s5915_s30  ;;  %v3070_v62 = vmul.f32 %v3045_v3, %v6122_v40  ;;  %v3082_v48 = vmul.f32 %v3045_v3, %v6128_v43  ;;  %v3054_v52 = vmul.f32 %v3045_v3, %v6135_v46 }
0x1ccc   : > { %v3057_v59 = vadd.f32 %v6086_v17, %v3055_v49 }
0x1ccd   : > { %3062 = vrot.lane.b32.xlu0 %v3058_v26, %s5915_s30  ;;  %v3056_v54 = vadd.f32 %v3054_v52, %v6090_v19 }
0x1ccf   : > { %3076 = vrot.lane.b32.xlu1 %v3071_v41, %s5916_s12 }
0x1cd1   : > { %3074 = vrot.lane.b32.xlu0 %v3070_v62, %s5916_s12 }
0x1cd3   : > { %3088 = vrot.lane.b32.xlu1 %v3083_v42, %s7295_s15 }
0x1cd5   : > { %3086 = vrot.lane.b32.xlu0 %v3082_v48, %s7295_s15 }
0x1cd7   : > { %2858 = vrot.lane.b32.xlu1 %v6688_v16, %s5918_s24 }
0x1cd9   : > { %2856 = vrot.lane.b32.xlu0 %v6695_v1, %s5918_s24 }
0x1d3d   : > { %v3065_v51 = vpop.permute.xlu1 %3064 }
0x1d3e   : > { %v3069_v14 = vadd.f32 %v3065_v51, %v3057_v59  ;;  %v5265_v59 = vld [vmem:[%s6193_s16 + $0x48] sm:$0xff] }
0x1d3f   : > { %v3063_v63 = vpop.permute.xlu0 %3062 }
0x1d40   : > { %v3068_v50 = vadd.f32 %v3063_v63, %v3056_v54 }
0x1d41   : > { %v3077_v61 = vpop.permute.xlu1 %3076 }
0x1d42   : > { %v3081_v20 = vadd.f32 %v3077_v61, %v3069_v14  ;;  %v5264_v14 = vld [vmem:[%s6193_s16 + $0x40] sm:$0xff] }
0x1d43   : > { %v3075_v8 = vpop.permute.xlu0 %3074 }
0x1d44   : > { %v3080_v15 = vadd.f32 %v3075_v8, %v3068_v50  ;;  %v3355_v8 = vsub.f32 1.0, %v5265_v59  ;;  %v3354_v50 = vsub.f32 1.0, %v5264_v14 }
0x1d45   : > { %v3089_v57 = vpop.permute.xlu1 %3088 }
0x1d46   : > { %v3093_v0 = vadd.f32 %v3089_v57, %v3081_v20 }
0x1d47   : > { %v3087_v23 = vpop.permute.xlu0 %3086 }
0x1d48   : > { %v5272_v6 = vmul.f32 -1.442695, %v3093_v0  ;;  %v3092_v24 = vadd.f32 %v3087_v23, %v3080_v15 }
0x1d49   : > { %v2859_v9 = vpop.permute.xlu1 %2858 }
0x1d4a   : > { %5841 = vpow2.f32 %v5272_v6  ;;  %v5271_v21 = vmul.f32 -1.442695, %v3092_v24  ;;  %5259 = vst.msk [vmem:[%s6302_s22 + $0x38] sm:$0xff] %vm1242_vm6, %v2859_v9 }
0x1d4b   : > { %v2857_v4 = vpop.permute.xlu0 %2856 }
0x1d4c   : > { %5843 = vpow2.f32 %v5271_v21  ;;  %5258 = vst.msk [vmem:[%s6302_s22 + $0x30] sm:$0xff] %vm1242_vm6, %v2857_v4 }
0x1d57   : > { %v5842_v10 = vpop.eup %5841 }
0x1d58   : > { %v3101_v55 = vadd.f32 1.0, %v5842_v10 }
0x1d59   : > { %v5844_v53 = vpop.eup %5843 }
0x1d5a   : > { %5845 = vrcp.f32 %v3101_v55  ;;  %v3100_v47 = vadd.f32 1.0, %v5844_v53 }
0x1d5c   : > { %5847 = vrcp.f32 %v3100_v47 }
0x1d67   : > { %v6752_v58 = vpop.eup %5845 }
0x1d68   : > { %v3107_v13 = vmul.f32 %v6752_v58, %v2859_v9 }
0x1d69   : > { %v6755_v22 = vpop.eup %5847 }
0x1d6a   : > { %v3106_v25 = vmul.f32 %v6755_v22, %v2857_v4  ;;  %3112 = vrot.lane.b32.xlu1 %v3107_v13, %s7293_s14 }
0x1d6c   : > { %3110 = vrot.lane.b32.xlu0 %v3106_v25, %s7293_s14 }
0x1ddc   : > { %v3113_v11 = vpop.permute.xlu1 %3112 }
0x1ddd   : > { %v3117_v5 = vsel %vm672_vm3, %v6700_v2, %v3113_v11 }
0x1dde   : > { %5653 = vmatprep.subr.mxu1 %v3117_v5  ;;  %v3111_v36 = vpop.permute.xlu0 %3110 }
0x1ddf   : > { %5654 = vmatpush3.msra.mxu1 %v3117_v5  ;;  %v3116_v3 = vsel %vm672_vm3, %v6705_v56, %v3111_v36 }
0x1de0   : > { %5655 = vmatprep.subr.mxu1 %v3116_v3 }
0x1de1   : > { %5656 = vmatpush3.msra.mxu1 %v3116_v3 }
0x1de2   : > { %5658 = vmatmul.mubr.msk.f32.vlgmr.msra.gmra.mxu1 %vm675_vm2, %v6710_v60  ;;  %5660 = vmatprep.subr.msk.mxu1 %vm496_vm0, %v6616_v39 }
0x1de3   : > { %5661 = vmatpush3.msk.msra.mxu1 %vm496_vm0, %v6616_v39 }
0x1de4   : > { %5662 = vmatprep.subr.mxu1 %v6625_v7 }
0x1de5   : > { %5663 = vmatpush3.msra.mxu1 %v6625_v7 }
0x1de6   : > { %5664 = vmatprep.subr.mxu1 %v6632_v12 }
0x1de7   : > { %5665 = vmatpush3.msra.mxu1 %v6632_v12 }
0x1ea2   : > { %v5659_v2 = vpop.f32.mrf.mxu1 }
0x1ea3   : > { %3197 = vrot.lane.b32.xlu0 %v5659_v2, %s5912_s28  ;;  %v2838_v2 = vmul.f32 0.8, %v6670_v44 }
0x1ea4   : > { %v3184_v56 = vpop.f32.mrf.mxu1 }
0x1ea5   : > { %3195 = vrot.lane.b32.xlu1 %v3184_v56, %s5912_s28 }
0x1f15   : > { %v3198_v60 = vpop.permute.xlu0 %3197 }
0x1f16   : > { %v3202_v62 = vsel %vm765_vm4, %v3117_v5, %v3198_v60  ;;  %v2839_v5 = vmul.f32 0.8, %v6666_v37 }
0x1f17   : > { %v3196_v26 = vpop.permute.xlu1 %3195 }
0x1f18   : > { %v3201_v41 = vsel %vm765_vm4, %v3116_v3, %v3196_v26 }
0x1f19   : > { %5666 = vmatprep.mubr.msk.f32.mxu1 %vm768_vm5, %v3201_v41 }
0x1f1a   : > { %5667 = vmatmul.mubr.msk.f32.vlgmr.msra.gmra.mxu1 %vm768_vm5, %v3202_v62 }
0x1fda   : > { %v5668_v42 = vpop.f32.mrf.mxu1 }
0x1fdb   : > { %v3289_v48 = vmul.f32 %v5668_v42, %v6113_v33  ;;  %v3301_v52 = vmul.f32 %v5668_v42, %v6109_v31  ;;  %v3313_v61 = vmul.f32 %v5668_v42, %v6118_v38  ;;  %v3285_v20 = vmul.f32 %v5668_v42, %v6133_v45 }
0x1fdc   : > { %v3275_v49 = vpop.f32.mrf.mxu1  ;;  %v3329_v42 = vsub.f32 1.0, %v6752_v58 }
0x1fdd   : > { %v3288_v51 = vmul.f32 %v3275_v49, %v6105_v29  ;;  %3294 = vrot.lane.b32.xlu1 %v3289_v48, %s5918_s24  ;;  %v3300_v63 = vmul.f32 %v3275_v49, %v6122_v40  ;;  %v3312_v54 = vmul.f32 %v3275_v49, %v6128_v43  ;;  %v3284_v15 = vmul.f32 %v3275_v49, %v6135_v46 }
0x1fde   : > { %v3287_v23 = vadd.f32 %v6107_v30, %v3285_v20  ;;  %v3327_v49 = vmul.f32 %v6752_v58, %v6688_v16 }
0x1fdf   : > { %3292 = vrot.lane.b32.xlu0 %v3288_v51, %s5918_s24  ;;  %v3286_v9 = vadd.f32 %v3284_v15, %v6111_v32 }
0x1fe1   : > { %3306 = vrot.lane.b32.xlu1 %v3301_v52, %s5915_s30 }
0x1fe3   : > { %3304 = vrot.lane.b32.xlu0 %v3300_v63, %s5915_s30  ;;  %v3328_v63 = vsub.f32 1.0, %v6755_v22 }
0x1fe5   : > { %3318 = vrot.lane.b32.xlu1 %v3313_v61, %s7291_s19  ;;  %v3326_v61 = vmul.f32 %v6755_v22, %v6695_v1 }
0x1fe7   : > { %3316 = vrot.lane.b32.xlu0 %v3312_v54, %s7291_s19 }
0x1fe9   : > { %3363 = vperm.xlu1 %5792, %v3355_v8  }
0x1feb   : > { %3358 = vperm.xlu0 %5791, %v3354_v50   ;;  %v5282_v50 = vld [vmem:[%s6025_s13 + $0x50] sm:$0xff] }
0x1fec   : > { %5673 = vmatprep.mubr.msk.f32.mxu0 %vm675_vm2, %v5282_v50  ;;  %5689 = vmatprep.mubr.msk.f32.mxu1 %vm675_vm2, %v5282_v50 }
0x1fed   : > { %2846 = vrot.lane.b32.xlu1 %v6685_v18, %s5918_s24 }
0x1fef   : > { %2844 = vrot.lane.b32.xlu0 %v6690_v35, %s5918_s24 }
0x1ff1   : > { %3349 = vperm.xlu1 %5792, %v5265_v59  }
0x1ff5   : > { %3344 = vperm.xlu1 %5792, %v5264_v14  }
0x204f   : > { %v3295_v57 = vpop.permute.xlu1 %3294 }
0x2050   : > { %v3299_v24 = vadd.f32 %v3295_v57, %v3287_v23 }
0x2051   : > { %v3293_v0 = vpop.permute.xlu0 %3292 }
0x2052   : > { %v3298_v4 = vadd.f32 %v3293_v0, %v3286_v9 }
0x2053   : > { %v3307_v6 = vpop.permute.xlu1 %3306 }
0x2054   : > { %v3311_v18 = vadd.f32 %v3307_v6, %v3299_v24  ;;  %v6838_v6 = vld [vmem:[%s6039_s18 + $0x58] sm:$0xff] }
0x2055   : > { %v3305_v21 = vpop.permute.xlu0 %3304 }
0x2056   : > { %v3310_v55 = vadd.f32 %v3305_v21, %v3298_v4  ;;  %v6843_v21 = vld [vmem:[%s6039_s18 + $0x50] sm:$0xff] }
0x2057   : > { %v3319_v10 = vpop.permute.xlu1 %3318 }
0x2058   : > { %v3323_v35 = vadd.f32 %v3319_v10, %v3311_v18  ;;  %v6848_v10 = vld [vmem:[%s6025_s13 + $0x58] sm:$0xff] }
0x2059   : > { %v3317_v53 = vpop.permute.xlu0 %3316 }
0x205a   : > { %5849 = vtanh.f32 %v3323_v35  ;;  %v3322_v47 = vadd.f32 %v3317_v53, %v3310_v55 }
0x205c   : > { %5851 = vtanh.f32 %v3322_v47 }
0x2064   : > { %v3364_v13 = vpop.permute.xlu1 %3363 }
0x2066   : > { %v3359_v25 = vpop.permute.xlu0 %3358 }
0x2067   : > { %v5850_v11 = vpop.eup %5849 }
0x2068   : > { %v2847_v36 = vpop.permute.xlu1 %2846  ;;  %3334 = vrot.lane.b32.xlu0 %v5850_v11, %s7297_s20 }
0x2069   : > { %v6804_v3 = vadd.f32 %v2847_v36, %v2839_v5  ;;  %v5852_v60 = vpop.eup %5851 }
0x206a   : > { %v2845_v56 = vpop.permute.xlu0 %2844 }
0x206b   : > { %v3367_v26 = vmul.f32 %v3364_v13, %v6804_v3  ;;  %v6808_v41 = vadd.f32 %v2845_v56, %v2838_v2 }
0x206c   : > { %3332 = vrot.lane.b32.xlu0 %v5852_v60, %s7297_s20  ;;  %v3350_v37 = vpop.permute.xlu1 %3349 }
0x206d   : > { %v3366_v62 = vmul.f32 %v3359_v25, %v6808_v41  ;;  %3372 = vrot.lane.b32.xlu1 %v3367_v26, %s7297_s20 }
0x2070   : > { %3370 = vrot.lane.b32.xlu0 %v3366_v62, %s7297_s20  ;;  %v3345_v44 = vpop.permute.xlu1 %3344 }
0x20da   : > { %v3335_v48 = vpop.permute.xlu0 %3334 }
0x20db   : > { %v3339_v51 = vmul.f32 %v3335_v48, %v3329_v42 }
0x20dd   : > { %v3341_v52 = vadd.f32 %v3339_v51, %v3327_v49 }
0x20de   : > { %v3333_v59 = vpop.permute.xlu0 %3332 }
0x20df   : > { %v3338_v14 = vmul.f32 %v3333_v59, %v3328_v63  ;;  %v3373_v54 = vpop.permute.xlu1 %3372  ;;  %v3353_v8 = vmul.f32 %v3350_v37, %v3341_v52 }
0x20e1   : > { %v3340_v20 = vadd.f32 %v3338_v14, %v3326_v61  ;;  %v3377_v57 = vadd.f32 %v3373_v54, %v3353_v8 }
0x20e2   : > { %v3371_v15 = vpop.permute.xlu0 %3370 }
0x20e3   : > { %v6823_v16 = vmul.f32 0.2, %v3377_v57  ;;  %v3352_v58 = vmul.f32 %v3345_v44, %v3340_v20 }
0x20e5   : > { %v6826_v0 = vadd.f32 %v6823_v16, %v3341_v52  ;;  %v3376_v1 = vadd.f32 %v3371_v15, %v3352_v58 }
0x20e7   : > { %v6828_v22 = vmul.f32 0.2, %v3376_v1  ;;  %3416 = vrot.lane.b32.xlu1 %v6826_v0, %s7298_s26 }
0x20e9   : > { %v6833_v23 = vadd.f32 %v6828_v22, %v3340_v20 }
0x20eb   : > { %3414 = vrot.lane.b32.xlu0 %v6833_v23, %s7298_s26 }
0x2159   : > { %v3417_v24 = vpop.permute.xlu1 %3416 }
0x215a   : > { %v3421_v9 = vsel %vm672_vm3, %v6838_v6, %v3417_v24 }
0x215b   : > { %5669 = vmatprep.subr.mxu0 %v3421_v9 }
0x215c   : > { %5670 = vmatpush3.msra.mxu0 %v3421_v9 }
0x215d   : > { %v3415_v4 = vpop.permute.xlu0 %3414 }
0x215e   : > { %v3420_v18 = vsel %vm672_vm3, %v6843_v21, %v3415_v4 }
0x215f   : > { %5671 = vmatprep.subr.mxu0 %v3420_v18 }
0x2160   : > { %5672 = vmatpush3.msra.mxu0 %v3420_v18 }
0x2161   : > { %5674 = vmatmul.mubr.msk.f32.vlgmr.msra.gmra.mxu0 %vm675_vm2, %v6848_v10  ;;  %5676 = vmatprep.subr.msk.mxu0 %vm496_vm0, %v6549_v27 }
0x2162   : > { %5677 = vmatpush3.msk.msra.mxu0 %vm496_vm0, %v6549_v27 }
0x2163   : > { %5678 = vmatprep.subr.mxu0 %v6558_v28 }
0x2164   : > { %5679 = vmatpush3.msra.mxu0 %v6558_v28 }
0x2165   : > { %5680 = vmatprep.subr.mxu0 %v6565_v34 }
0x2166   : > { %5681 = vmatpush3.msra.mxu0 %v6565_v34 }
0x2221   : > { %v5675_v55 = vpop.f32.mrf.mxu0 }
0x2222   : > { %3507 = vrot.lane.b32.xlu0 %v5675_v55, %s5912_s28 }
0x2223   : > { %v3494_v35 = vpop.f32.mrf.mxu0 }
0x2224   : > { %3505 = vrot.lane.b32.xlu1 %v3494_v35, %s5912_s28 }
0x2294   : > { %v3508_v53 = vpop.permute.xlu0 %3507 }
0x2295   : > { %v3512_v27 = vsel %vm765_vm4, %v3421_v9, %v3508_v53 }
0x2296   : > { %v3506_v47 = vpop.permute.xlu1 %3505 }
0x2297   : > { %v3511_v13 = vsel %vm765_vm4, %v3420_v18, %v3506_v47 }
0x2298   : > { %5682 = vmatprep.mubr.msk.f32.mxu0 %vm768_vm5, %v3511_v13 }
0x2299   : > { %5683 = vmatmul.mubr.msk.f32.vlgmr.msra.gmra.mxu0 %vm768_vm5, %v3512_v27 }
0x2359   : > { %v5684_v28 = vpop.f32.mrf.mxu0 }
0x235a   : > { %v3599_v25 = vmul.f32 %v5684_v28, %v6113_v33  ;;  %v3611_v5 = vmul.f32 %v5684_v28, %v6109_v31  ;;  %v3623_v2 = vmul.f32 %v5684_v28, %v6118_v38  ;;  %v3595_v60 = vmul.f32 %v5684_v28, %v6133_v45 }
0x235b   : > { %v3585_v34 = vpop.f32.mrf.mxu0 }
0x235c   : > { %v3598_v11 = vmul.f32 %v3585_v34, %v6105_v29  ;;  %3604 = vrot.lane.b32.xlu1 %v3599_v25, %s5915_s30  ;;  %v3610_v36 = vmul.f32 %v3585_v34, %v6122_v40  ;;  %v3622_v56 = vmul.f32 %v3585_v34, %v6128_v43  ;;  %v3594_v62 = vmul.f32 %v3585_v34, %v6135_v46 }
0x235d   : > { %v3597_v42 = vadd.f32 %v6086_v17, %v3595_v60  ;;  %v5284_v60 = vld [vmem:[%s6193_s16 + $0x50] sm:$0xff] }
0x235e   : > { %3602 = vrot.lane.b32.xlu0 %v3598_v11, %s5915_s30  ;;  %v3596_v49 = vadd.f32 %v3594_v62, %v6090_v19 }
0x2360   : > { %3616 = vrot.lane.b32.xlu1 %v3611_v5, %s5916_s12 }
0x2362   : > { %3614 = vrot.lane.b32.xlu0 %v3610_v36, %s5916_s12 }
0x2364   : > { %3628 = vrot.lane.b32.xlu1 %v3623_v2, %s7295_s15  ;;  %v5285_v2 = vld [vmem:[%s6193_s16 + $0x58] sm:$0xff] }
0x2365   : > { %v3895_v62 = vsub.f32 1.0, %v5285_v2 }
0x2366   : > { %3626 = vrot.lane.b32.xlu0 %v3622_v56, %s7295_s15 }
0x2368   : > { %3398 = vrot.lane.b32.xlu1 %v6826_v0, %s5918_s24 }
0x236a   : > { %3396 = vrot.lane.b32.xlu0 %v6833_v23, %s5918_s24 }
0x23ce   : > { %v3605_v26 = vpop.permute.xlu1 %3604 }
0x23cf   : > { %v3609_v44 = vadd.f32 %v3605_v26, %v3597_v42 }
0x23d0   : > { %v3603_v37 = vpop.permute.xlu0 %3602 }
0x23d1   : > { %v3608_v52 = vadd.f32 %v3603_v37, %v3596_v49  ;;  %v3894_v37 = vsub.f32 1.0, %v5284_v60 }
0x23d2   : > { %v3617_v48 = vpop.permute.xlu1 %3616 }
0x23d3   : > { %v3621_v63 = vadd.f32 %v3617_v48, %v3609_v44 }
0x23d4   : > { %v3615_v51 = vpop.permute.xlu0 %3614 }
0x23d5   : > { %v3620_v61 = vadd.f32 %v3615_v51, %v3608_v52 }
0x23d6   : > { %v3629_v59 = vpop.permute.xlu1 %3628 }
0x23d7   : > { %v3633_v14 = vadd.f32 %v3629_v59, %v3621_v63 }
0x23d8   : > { %v3627_v54 = vpop.permute.xlu0 %3626 }
0x23d9   : > { %v5292_v8 = vmul.f32 -1.442695, %v3633_v14  ;;  %v3632_v50 = vadd.f32 %v3627_v54, %v3620_v61 }
0x23da   : > { %v3399_v20 = vpop.permute.xlu1 %3398 }
0x23db   : > { %5853 = vpow2.f32 %v5292_v8  ;;  %v5291_v57 = vmul.f32 -1.442695, %v3632_v50  ;;  %5279 = vst.msk [vmem:[%s6302_s22 + $0x48] sm:$0xff] %vm1242_vm6, %v3399_v20 }
0x23dc   : > { %v3397_v58 = vpop.permute.xlu0 %3396 }
0x23dd   : > { %5855 = vpow2.f32 %v5291_v57  ;;  %5278 = vst.msk [vmem:[%s6302_s22 + $0x40] sm:$0xff] %vm1242_vm6, %v3397_v58 }
0x23e8   : > { %v5854_v15 = vpop.eup %5853 }
0x23e9   : > { %v3641_v1 = vadd.f32 1.0, %v5854_v15 }
0x23ea   : > { %v5856_v24 = vpop.eup %5855 }
0x23eb   : > { %5857 = vrcp.f32 %v3641_v1  ;;  %v3640_v9 = vadd.f32 1.0, %v5856_v24  ;;  %v3379_v1 = vmul.f32 0.8, %v6804_v3 }
0x23ed   : > { %5859 = vrcp.f32 %v3640_v9 }
0x23f8   : > { %v6890_v4 = vpop.eup %5857 }
0x23f9   : > { %v3647_v18 = vmul.f32 %v6890_v4, %v3399_v20 }
0x23fa   : > { %v6893_v55 = vpop.eup %5859 }
0x23fb   : > { %v3646_v35 = vmul.f32 %v6893_v55, %v3397_v58  ;;  %3652 = vrot.lane.b32.xlu1 %v3647_v18, %s7293_s14  ;;  %v3378_v18 = vmul.f32 0.8, %v6808_v41 }
0x23fd   : > { %3650 = vrot.lane.b32.xlu0 %v3646_v35, %s7293_s14  ;;  %s7299_s14 = smov 2  }
0x246d   : > { %v3653_v53 = vpop.permute.xlu1 %3652 }
0x246e   : > { %v3657_v47 = vsel %vm672_vm3, %v6838_v6, %v3653_v53 }
0x246f   : > { %5685 = vmatprep.subr.mxu1 %v3657_v47  ;;  %v3651_v13 = vpop.permute.xlu0 %3650 }
0x2470   : > { %5686 = vmatpush3.msra.mxu1 %v3657_v47  ;;  %v3656_v27 = vsel %vm672_vm3, %v6843_v21, %v3651_v13 }
0x2471   : > { %5687 = vmatprep.subr.mxu1 %v3656_v27 }
0x2472   : > { %5688 = vmatpush3.msra.mxu1 %v3656_v27 }
0x2473   : > { %5690 = vmatmul.mubr.msk.f32.vlgmr.msra.gmra.mxu1 %vm675_vm2, %v6848_v10  ;;  %5692 = vmatprep.subr.msk.mxu1 %vm496_vm0, %v6616_v39 }
0x2474   : > { %5693 = vmatpush3.msk.msra.mxu1 %vm496_vm0, %v6616_v39 }
0x2475   : > { %5694 = vmatprep.subr.mxu1 %v6625_v7 }
0x2476   : > { %5695 = vmatpush3.msra.mxu1 %v6625_v7 }
0x2477   : > { %5696 = vmatprep.subr.mxu1 %v6632_v12 }
0x2478   : > { %5697 = vmatpush3.msra.mxu1 %v6632_v12 }
0x2533   : > { %v5691_v6 = vpop.f32.mrf.mxu1 }
0x2534   : > { %3737 = vrot.lane.b32.xlu0 %v5691_v6, %s5912_s28  ;;  %v3869_v6 = vsub.f32 1.0, %v6890_v4 }
0x2535   : > { %v3724_v21 = vpop.f32.mrf.mxu1 }
0x2536   : > { %3735 = vrot.lane.b32.xlu1 %v3724_v21, %s5912_s28 }
0x25a6   : > { %v3738_v10 = vpop.permute.xlu0 %3737 }
0x25a7   : > { %v3742_v39 = vsel %vm765_vm4, %v3657_v47, %v3738_v10  ;;  %v3867_v10 = vmul.f32 %v6890_v4, %v6826_v0 }
0x25a8   : > { %v3736_v28 = vpop.permute.xlu1 %3735 }
0x25a9   : > { %v3741_v25 = vsel %vm765_vm4, %v3656_v27, %v3736_v28 }
0x25aa   : > { %5698 = vmatprep.mubr.msk.f32.mxu1 %vm768_vm5, %v3741_v25 }
0x25ab   : > { %5699 = vmatmul.mubr.msk.f32.vlgmr.msra.gmra.mxu1 %vm768_vm5, %v3742_v39  ;;  %v3868_v39 = vsub.f32 1.0, %v6893_v55 }
0x266b   : > { %v5700_v7 = vpop.f32.mrf.mxu1 }
0x266c   : > { %v3829_v12 = vmul.f32 %v5700_v7, %v6113_v33  ;;  %v3841_v5 = vmul.f32 %v5700_v7, %v6109_v31  ;;  %v3853_v56 = vmul.f32 %v5700_v7, %v6118_v38  ;;  %v3825_v42 = vmul.f32 %v5700_v7, %v6133_v45 }
0x266d   : > { %v3815_v34 = vpop.f32.mrf.mxu1 }
0x266e   : > { %v3828_v11 = vmul.f32 %v3815_v34, %v6105_v29  ;;  %3834 = vrot.lane.b32.xlu1 %v3829_v12, %s5918_s24  ;;  %v3840_v36 = vmul.f32 %v3815_v34, %v6122_v40  ;;  %v3852_v26 = vmul.f32 %v3815_v34, %v6128_v43  ;;  %v3824_v44 = vmul.f32 %v3815_v34, %v6135_v46 }
0x266f   : > { %v3827_v51 = vadd.f32 %v6107_v30, %v3825_v42  ;;  %v3866_v12 = vmul.f32 %v6893_v55, %v6833_v23 }
0x2670   : > { %3832 = vrot.lane.b32.xlu0 %v3828_v11, %s5918_s24  ;;  %v3826_v59 = vadd.f32 %v3824_v44, %v6111_v32  ;;  %v6981_v44 = vld [vmem:[%s6039_s18 + $0x60] sm:$0xff] }
0x2672   : > { %3846 = vrot.lane.b32.xlu1 %v3841_v5, %s5915_s30 }
0x2674   : > { %3844 = vrot.lane.b32.xlu0 %v3840_v36, %s5915_s30  ;;  %v5302_v36 = vld [vmem:[%s6025_s13 + $0x60] sm:$0xff] }
0x2675   : > { %5705 = vmatprep.mubr.msk.f32.mxu0 %vm675_vm2, %v5302_v36  ;;  %5721 = vmatprep.mubr.msk.f32.mxu1 %vm675_vm2, %v5302_v36 }
0x2676   : > { %3858 = vrot.lane.b32.xlu1 %v3853_v56, %s7291_s19 }
0x2678   : > { %3856 = vrot.lane.b32.xlu0 %v3852_v26, %s7291_s19 }
0x267a   : > { %3903 = vperm.xlu1 %5792, %v3895_v62  }
0x267c   : > { %3898 = vperm.xlu0 %5791, %v3894_v37   ;;  %v6976_v37 = vld [vmem:[%s6039_s18 + $0x68] sm:$0xff] }
0x267e   : > { %3386 = vrot.lane.b32.xlu1 %v6823_v16, %s5918_s24 }
0x2680   : > { %3384 = vrot.lane.b32.xlu0 %v6828_v22, %s5918_s24 }
0x2682   : > { %3889 = vperm.xlu1 %5792, %v5285_v2  }
0x2686   : > { %3884 = vperm.xlu1 %5792, %v5284_v60  }
0x26e0   : > { %v3835_v48 = vpop.permute.xlu1 %3834 }
0x26e1   : > { %v3839_v63 = vadd.f32 %v3835_v48, %v3827_v51 }
0x26e2   : > { %v3833_v49 = vpop.permute.xlu0 %3832 }
0x26e3   : > { %v3838_v14 = vadd.f32 %v3833_v49, %v3826_v59  ;;  %v7002_v59 = vld [vmem:[%s7281_s6 + $0x8] sm:$0xff] }
0x26e4   : > { %v3847_v52 = vpop.permute.xlu1 %3846 }
0x26e5   : > { %v3851_v16 = vadd.f32 %v3847_v52, %v3839_v63  ;;  %v6986_v52 = vld [vmem:[%s6025_s13 + $0x68] sm:$0xff]  ;;  %v6993_v63 = vld [vmem:[%s7281_s6 + $0x10] sm:$0xf] }
0x26e6   : > { %v3845_v61 = vpop.permute.xlu0 %3844 }
0x26e7   : > { %v3850_v8 = vadd.f32 %v3845_v61, %v3838_v14  ;;  %v7009_v61 = vld [vmem:[%s7281_s6] sm:$0xff] }
0x26e8   : > { %v3859_v54 = vpop.permute.xlu1 %3858 }
0x26e9   : > { %v3863_v22 = vadd.f32 %v3859_v54, %v3851_v16 }
0x26ea   : > { %v3857_v50 = vpop.permute.xlu0 %3856 }
0x26eb   : > { %5861 = vtanh.f32 %v3863_v22  ;;  %v3862_v20 = vadd.f32 %v3857_v50, %v3850_v8 }
0x26ed   : > { %5863 = vtanh.f32 %v3862_v20 }
0x26f5   : > { %v3904_v57 = vpop.permute.xlu1 %3903 }
0x26f7   : > { %v3899_v58 = vpop.permute.xlu0 %3898 }
0x26f8   : > { %v5862_v15 = vpop.eup %5861 }
0x26f9   : > { %v3387_v24 = vpop.permute.xlu1 %3386  ;;  %3874 = vrot.lane.b32.xlu0 %v5862_v15, %s7297_s20 }
0x26fa   : > { %v6942_v9 = vadd.f32 %v3387_v24, %v3379_v1  ;;  %v5864_v53 = vpop.eup %5863 }
0x26fb   : > { %v3385_v35 = vpop.permute.xlu0 %3384 }
0x26fc   : > { %v3907_v47 = vmul.f32 %v3904_v57, %v6942_v9  ;;  %v6946_v13 = vadd.f32 %v3385_v35, %v3378_v18 }
0x26fd   : > { %3872 = vrot.lane.b32.xlu0 %v5864_v53, %s7297_s20  ;;  %v3890_v3 = vpop.permute.xlu1 %3889 }
0x26fe   : > { %v3906_v27 = vmul.f32 %v3899_v58, %v6946_v13  ;;  %3912 = vrot.lane.b32.xlu1 %v3907_v47, %s7297_s20 }
0x2701   : > { %3910 = vrot.lane.b32.xlu0 %v3906_v27, %s7297_s20  ;;  %v3885_v41 = vpop.permute.xlu1 %3884 }
0x276b   : > { %v3875_v21 = vpop.permute.xlu0 %3874 }
0x276c   : > { %v3879_v28 = vmul.f32 %v3875_v21, %v3869_v6 }
0x276e   : > { %v3881_v25 = vadd.f32 %v3879_v28, %v3867_v10 }
0x276f   : > { %v3873_v7 = vpop.permute.xlu0 %3872 }
0x2770   : > { %v3878_v34 = vmul.f32 %v3873_v7, %v3868_v39  ;;  %v3913_v11 = vpop.permute.xlu1 %3912  ;;  %v3893_v5 = vmul.f32 %v3890_v3, %v3881_v25 }
0x2772   : > { %v3880_v2 = vadd.f32 %v3878_v34, %v3866_v12  ;;  %v3917_v56 = vadd.f32 %v3913_v11, %v3893_v5 }
0x2773   : > { %v3911_v60 = vpop.permute.xlu0 %3910 }
0x2774   : > { %v6961_v0 = vmul.f32 0.2, %v3917_v56  ;;  %v3892_v4 = vmul.f32 %v3885_v41, %v3880_v2 }
0x2776   : > { %v6964_v26 = vadd.f32 %v6961_v0, %v3881_v25  ;;  %v3916_v23 = vadd.f32 %v3911_v60, %v3892_v4 }
0x2778   : > { %v6966_v55 = vmul.f32 0.2, %v3916_v23  ;;  %3956 = vrot.lane.b32.xlu1 %v6964_v26, %s7298_s26 }
0x277a   : > { %v6971_v62 = vadd.f32 %v6966_v55, %v3880_v2 }
0x277c   : > { %3954 = vrot.lane.b32.xlu0 %v6971_v62, %s7298_s26 }
0x27ea   : > { %v3957_v42 = vpop.permute.xlu1 %3956 }
0x27eb   : > { %v3961_v48 = vsel %vm672_vm3, %v6976_v37, %v3957_v42 }
0x27ec   : > { %5701 = vmatprep.subr.mxu0 %v3961_v48 }
0x27ed   : > { %5702 = vmatpush3.msra.mxu0 %v3961_v48 }
0x27ee   : > { %v3955_v49 = vpop.permute.xlu0 %3954 }
0x27ef   : > { %v3960_v51 = vsel %vm672_vm3, %v6981_v44, %v3955_v49 }
0x27f0   : > { %5703 = vmatprep.subr.mxu0 %v3960_v51 }
0x27f1   : > { %5704 = vmatpush3.msra.mxu0 %v3960_v51 }
0x27f2   : > { %5706 = vmatmul.mubr.msk.f32.vlgmr.msra.gmra.mxu0 %vm675_vm2, %v6986_v52  ;;  %5708 = vmatprep.subr.msk.mxu0 %vm496_vm0, %v6993_v63 }
0x27f3   : > { %5709 = vmatpush3.msk.msra.mxu0 %vm496_vm0, %v6993_v63 }
0x27f4   : > { %5710 = vmatprep.subr.mxu0 %v7002_v59 }
0x27f5   : > { %5711 = vmatpush3.msra.mxu0 %v7002_v59 }
0x27f6   : > { %5712 = vmatprep.subr.mxu0 %v7009_v61 }
0x27f7   : > { %5713 = vmatpush3.msra.mxu0 %v7009_v61 }
0x28b2   : > { %v5707_v14 = vpop.f32.mrf.mxu0 }
0x28b3   : > { %4047 = vrot.lane.b32.xlu0 %v5707_v14, %s5912_s28 }
0x28b4   : > { %v4034_v16 = vpop.f32.mrf.mxu0 }
0x28b5   : > { %4045 = vrot.lane.b32.xlu1 %v4034_v16, %s5912_s28 }
0x2925   : > { %v4048_v54 = vpop.permute.xlu0 %4047 }
0x2926   : > { %v4052_v50 = vsel %vm765_vm4, %v3961_v48, %v4048_v54 }
0x2927   : > { %v4046_v8 = vpop.permute.xlu1 %4045 }
0x2928   : > { %v4051_v22 = vsel %vm765_vm4, %v3960_v51, %v4046_v8 }
0x2929   : > { %5714 = vmatprep.mubr.msk.f32.mxu0 %vm768_vm5, %v4051_v22 }
0x292a   : > { %5715 = vmatmul.mubr.msk.f32.vlgmr.msra.gmra.mxu0 %vm768_vm5, %v4052_v50 }
0x29ea   : > { %v5716_v20 = vpop.f32.mrf.mxu0 }
0x29eb   : > { %v4139_v57 = vmul.f32 %v5716_v20, %v6113_v33  ;;  %v4151_v1 = vmul.f32 %v5716_v20, %v6109_v31  ;;  %v4163_v18 = vmul.f32 %v5716_v20, %v6118_v38  ;;  %v4135_v53 = vmul.f32 %v5716_v20, %v6133_v45  ;;  %v7060_v20 = vld [vmem:[%s7283_s8 + $0x10] sm:$0xf] }
0x29ec   : > { %v4125_v58 = vpop.f32.mrf.mxu0 }
0x29ed   : > { %v4138_v15 = vmul.f32 %v4125_v58, %v6105_v29  ;;  %4144 = vrot.lane.b32.xlu1 %v4139_v57, %s5915_s30  ;;  %v4150_v24 = vmul.f32 %v4125_v58, %v6122_v40  ;;  %v4162_v35 = vmul.f32 %v4125_v58, %v6128_v43  ;;  %v4134_v27 = vmul.f32 %v4125_v58, %v6135_v46 }
0x29ee   : > { %v4137_v6 = vadd.f32 %v6086_v17, %v4135_v53 }
0x29ef   : > { %4142 = vrot.lane.b32.xlu0 %v4138_v15, %s5915_s30  ;;  %v4136_v10 = vadd.f32 %v4134_v27, %v6090_v19 }
0x29f1   : > { %4156 = vrot.lane.b32.xlu1 %v4151_v1, %s5916_s12 }
0x29f3   : > { %4154 = vrot.lane.b32.xlu0 %v4150_v24, %s5916_s12 }
0x29f5   : > { %4168 = vrot.lane.b32.xlu1 %v4163_v18, %s7295_s15 }
0x29f7   : > { %4166 = vrot.lane.b32.xlu0 %v4162_v35, %s7295_s15  ;;  %s7300_s15 = smov 104  }
0x29f9   : > { %3938 = vrot.lane.b32.xlu1 %v6964_v26, %s5918_s24 }
0x29fb   : > { %3936 = vrot.lane.b32.xlu0 %v6971_v62, %s5918_s24 }
0x2a5f   : > { %v4145_v47 = vpop.permute.xlu1 %4144 }
0x2a60   : > { %v4149_v41 = vadd.f32 %v4145_v47, %v4137_v6  ;;  %v5305_v6 = vld [vmem:[%s6193_s16 + $0x68] sm:$0xff] }
0x2a61   : > { %v4143_v3 = vpop.permute.xlu0 %4142 }
0x2a62   : > { %v4148_v25 = vadd.f32 %v4143_v3, %v4136_v10 }
0x2a63   : > { %v4157_v21 = vpop.permute.xlu1 %4156 }
0x2a64   : > { %v4161_v39 = vadd.f32 %v4157_v21, %v4149_v41  ;;  %v5304_v41 = vld [vmem:[%s6193_s16 + $0x60] sm:$0xff] }
0x2a65   : > { %v4155_v28 = vpop.permute.xlu0 %4154 }
0x2a66   : > { %v4160_v12 = vadd.f32 %v4155_v28, %v4148_v25  ;;  %v4435_v28 = vsub.f32 1.0, %v5305_v6  ;;  %v4434_v25 = vsub.f32 1.0, %v5304_v41 }
0x2a67   : > { %v4169_v7 = vpop.permute.xlu1 %4168 }
0x2a68   : > { %v4173_v34 = vadd.f32 %v4169_v7, %v4161_v39 }
0x2a69   : > { %v4167_v11 = vpop.permute.xlu0 %4166 }
0x2a6a   : > { %v5312_v5 = vmul.f32 -1.442695, %v4173_v34  ;;  %v4172_v36 = vadd.f32 %v4167_v11, %v4160_v12 }
0x2a6b   : > { %v3939_v2 = vpop.permute.xlu1 %3938 }
0x2a6c   : > { %5865 = vpow2.f32 %v5312_v5  ;;  %v5311_v56 = vmul.f32 -1.442695, %v4172_v36  ;;  %5299 = vst.msk [vmem:[%s6302_s22 + $0x58] sm:$0xff] %vm1242_vm6, %v3939_v2 }
0x2a6d   : > { %v3937_v4 = vpop.permute.xlu0 %3936 }
0x2a6e   : > { %5867 = vpow2.f32 %v5311_v56  ;;  %5298 = vst.msk [vmem:[%s6302_s22 + $0x50] sm:$0xff] %vm1242_vm6, %v3937_v4 }
0x2a79   : > { %v5866_v60 = vpop.eup %5865 }
0x2a7a   : > { %v4181_v23 = vadd.f32 1.0, %v5866_v60 }
0x2a7b   : > { %v5868_v42 = vpop.eup %5867 }
0x2a7c   : > { %5869 = vrcp.f32 %v4181_v23  ;;  %v4180_v48 = vadd.f32 1.0, %v5868_v42 }
0x2a7e   : > { %5871 = vrcp.f32 %v4180_v48 }
0x2a89   : > { %v7043_v49 = vpop.eup %5869 }
0x2a8a   : > { %v4187_v51 = vmul.f32 %v7043_v49, %v3939_v2 }
0x2a8b   : > { %v7046_v14 = vpop.eup %5871 }
0x2a8c   : > { %v4186_v16 = vmul.f32 %v7046_v14, %v3937_v4  ;;  %4192 = vrot.lane.b32.xlu1 %v4187_v51, %s7299_s14 }
0x2a8e   : > { %4190 = vrot.lane.b32.xlu0 %v4186_v16, %s7299_s14 }
0x2afe   : > { %v4193_v54 = vpop.permute.xlu1 %4192 }
0x2aff   : > { %v4197_v8 = vsel %vm672_vm3, %v6976_v37, %v4193_v54  ;;  %v7069_v37 = vld [vmem:[%s7283_s8 + $0x8] sm:$0xff] }
0x2b00   : > { %5717 = vmatprep.subr.mxu1 %v4197_v8  ;;  %v4191_v22 = vpop.permute.xlu0 %4190 }
0x2b01   : > { %5718 = vmatpush3.msra.mxu1 %v4197_v8  ;;  %v4196_v50 = vsel %vm672_vm3, %v6981_v44, %v4191_v22  ;;  %v7076_v44 = vld [vmem:[%s7283_s8] sm:$0xff] }
0x2b02   : > { %5719 = vmatprep.subr.mxu1 %v4196_v50 }
0x2b03   : > { %5720 = vmatpush3.msra.mxu1 %v4196_v50 }
0x2b04   : > { %5722 = vmatmul.mubr.msk.f32.vlgmr.msra.gmra.mxu1 %vm675_vm2, %v6986_v52  ;;  %5724 = vmatprep.subr.msk.mxu1 %vm496_vm0, %v7060_v20 }
0x2b05   : > { %5725 = vmatpush3.msk.msra.mxu1 %vm496_vm0, %v7060_v20 }
0x2b06   : > { %5726 = vmatprep.subr.mxu1 %v7069_v37 }
0x2b07   : > { %5727 = vmatpush3.msra.mxu1 %v7069_v37 }
0x2b08   : > { %5728 = vmatprep.subr.mxu1 %v7076_v44 }
0x2b09   : > { %5729 = vmatpush3.msra.mxu1 %v7076_v44 }
0x2bc4   : > { %v5723_v52 = vpop.f32.mrf.mxu1 }
0x2bc5   : > { %4277 = vrot.lane.b32.xlu0 %v5723_v52, %s5912_s28  ;;  %v3918_v52 = vmul.f32 0.8, %v6946_v13 }
0x2bc6   : > { %v4264_v57 = vpop.f32.mrf.mxu1 }
0x2bc7   : > { %4275 = vrot.lane.b32.xlu1 %v4264_v57, %s5912_s28 }
0x2c37   : > { %v4278_v58 = vpop.permute.xlu0 %4277 }
0x2c38   : > { %v4282_v24 = vsel %vm765_vm4, %v4197_v8, %v4278_v58  ;;  %v3919_v8 = vmul.f32 0.8, %v6942_v9 }
0x2c39   : > { %v4276_v15 = vpop.permute.xlu1 %4275 }
0x2c3a   : > { %v4281_v1 = vsel %vm765_vm4, %v4196_v50, %v4276_v15 }
0x2c3b   : > { %5730 = vmatprep.mubr.msk.f32.mxu1 %vm768_vm5, %v4281_v1 }
0x2c3c   : > { %5731 = vmatmul.mubr.msk.f32.vlgmr.msra.gmra.mxu1 %vm768_vm5, %v4282_v24 }
0x2cfc   : > { %v5732_v18 = vpop.f32.mrf.mxu1 }
0x2cfd   : > { %v4369_v35 = vmul.f32 %v5732_v18, %v6113_v33  ;;  %v4381_v27 = vmul.f32 %v5732_v18, %v6109_v31  ;;  %v4393_v21 = vmul.f32 %v5732_v18, %v6118_v38  ;;  %v4365_v39 = vmul.f32 %v5732_v18, %v6133_v45 }
0x2cfe   : > { %v4355_v53 = vpop.f32.mrf.mxu1  ;;  %v4409_v18 = vsub.f32 1.0, %v7043_v49 }
0x2cff   : > { %v4368_v47 = vmul.f32 %v4355_v53, %v6105_v29  ;;  %4374 = vrot.lane.b32.xlu1 %v4369_v35, %s5918_s24  ;;  %v4380_v3 = vmul.f32 %v4355_v53, %v6122_v40  ;;  %v4392_v10 = vmul.f32 %v4355_v53, %v6128_v43  ;;  %v4364_v12 = vmul.f32 %v4355_v53, %v6135_v46 }
0x2d00   : > { %v4367_v11 = vadd.f32 %v6107_v30, %v4365_v39  ;;  %v4407_v53 = vmul.f32 %v7043_v49, %v6964_v26 }
0x2d01   : > { %4372 = vrot.lane.b32.xlu0 %v4368_v47, %s5918_s24  ;;  %v4366_v2 = vadd.f32 %v4364_v12, %v6111_v32 }
0x2d03   : > { %4386 = vrot.lane.b32.xlu1 %v4381_v27, %s5915_s30 }
0x2d05   : > { %4384 = vrot.lane.b32.xlu0 %v4380_v3, %s5915_s30  ;;  %v4408_v3 = vsub.f32 1.0, %v7046_v14 }
0x2d07   : > { %4398 = vrot.lane.b32.xlu1 %v4393_v21, %s7300_s15  ;;  %v4406_v21 = vmul.f32 %v7046_v14, %v6971_v62 }
0x2d09   : > { %4396 = vrot.lane.b32.xlu0 %v4392_v10, %s7300_s15 }
0x2d0b   : > { %4443 = vperm.xlu1 %5792, %v4435_v28  }
0x2d0d   : > { %4438 = vperm.xlu0 %5791, %v4434_v25   ;;  %v5322_v25 = vld [vmem:[%s6025_s13 + $0x70] sm:$0xff] }
0x2d0e   : > { %5737 = vmatprep.mubr.msk.f32.mxu0 %vm675_vm2, %v5322_v25  ;;  %5753 = vmatprep.mubr.msk.f32.mxu1 %vm675_vm2, %v5322_v25 }
0x2d0f   : > { %3926 = vrot.lane.b32.xlu1 %v6961_v0, %s5918_s24 }
0x2d11   : > { %3924 = vrot.lane.b32.xlu0 %v6966_v55, %s5918_s24 }
0x2d13   : > { %4429 = vperm.xlu1 %5792, %v5305_v6  }
0x2d17   : > { %4424 = vperm.xlu1 %5792, %v5304_v41  }
0x2d71   : > { %v4375_v7 = vpop.permute.xlu1 %4374 }
0x2d72   : > { %v4379_v36 = vadd.f32 %v4375_v7, %v4367_v11 }
0x2d73   : > { %v4373_v34 = vpop.permute.xlu0 %4372 }
0x2d74   : > { %v4378_v4 = vadd.f32 %v4373_v34, %v4366_v2 }
0x2d75   : > { %v4387_v5 = vpop.permute.xlu1 %4386 }
0x2d76   : > { %v4391_v0 = vadd.f32 %v4387_v5, %v4379_v36  ;;  %v7144_v5 = vld [vmem:[%s6039_s18 + $0x78] sm:$0xff] }
0x2d77   : > { %v4385_v56 = vpop.permute.xlu0 %4384 }
0x2d78   : > { %v4390_v23 = vadd.f32 %v4385_v56, %v4378_v4  ;;  %v7149_v56 = vld [vmem:[%s6039_s18 + $0x70] sm:$0xff] }
0x2d79   : > { %v4399_v60 = vpop.permute.xlu1 %4398 }
0x2d7a   : > { %v4403_v55 = vadd.f32 %v4399_v60, %v4391_v0  ;;  %v7154_v60 = vld [vmem:[%s6025_s13 + $0x78] sm:$0xff]  ;;  %s7301_s13 = smov 80  }
0x2d7b   : > { %v4397_v42 = vpop.permute.xlu0 %4396 }
0x2d7c   : > { %5873 = vtanh.f32 %v4403_v55  ;;  %v4402_v48 = vadd.f32 %v4397_v42, %v4390_v23 }
0x2d7e   : > { %5875 = vtanh.f32 %v4402_v48 }
0x2d86   : > { %v4444_v51 = vpop.permute.xlu1 %4443 }
0x2d88   : > { %v4439_v16 = vpop.permute.xlu0 %4438 }
0x2d89   : > { %v5874_v54 = vpop.eup %5873 }
0x2d8a   : > { %v3927_v22 = vpop.permute.xlu1 %3926  ;;  %4414 = vrot.lane.b32.xlu0 %v5874_v54, %s7297_s20 }
0x2d8b   : > { %v7110_v50 = vadd.f32 %v3927_v22, %v3919_v8  ;;  %v5876_v58 = vpop.eup %5875 }
0x2d8c   : > { %v3925_v57 = vpop.permute.xlu0 %3924 }
0x2d8d   : > { %v4447_v15 = vmul.f32 %v4444_v51, %v7110_v50  ;;  %v7114_v1 = vadd.f32 %v3925_v57, %v3918_v52 }
0x2d8e   : > { %4412 = vrot.lane.b32.xlu0 %v5876_v58, %s7297_s20  ;;  %v4430_v9 = vpop.permute.xlu1 %4429 }
0x2d8f   : > { %v4446_v24 = vmul.f32 %v4439_v16, %v7114_v1  ;;  %4452 = vrot.lane.b32.xlu1 %v4447_v15, %s7297_s20 }
0x2d92   : > { %4450 = vrot.lane.b32.xlu0 %v4446_v24, %s7297_s20  ;;  %v4425_v13 = vpop.permute.xlu1 %4424 }
0x2dfc   : > { %v4415_v35 = vpop.permute.xlu0 %4414 }
0x2dfd   : > { %v4419_v47 = vmul.f32 %v4415_v35, %v4409_v18 }
0x2dff   : > { %v4421_v27 = vadd.f32 %v4419_v47, %v4407_v53 }
0x2e00   : > { %v4413_v6 = vpop.permute.xlu0 %4412 }
0x2e01   : > { %v4418_v41 = vmul.f32 %v4413_v6, %v4408_v3  ;;  %v4453_v10 = vpop.permute.xlu1 %4452  ;;  %v4433_v28 = vmul.f32 %v4430_v9, %v4421_v27 }
0x2e03   : > { %v4420_v39 = vadd.f32 %v4418_v41, %v4406_v21  ;;  %v4457_v7 = vadd.f32 %v4453_v10, %v4433_v28 }
0x2e04   : > { %v4451_v12 = vpop.permute.xlu0 %4450 }
0x2e05   : > { %v7129_v26 = vmul.f32 0.2, %v4457_v7  ;;  %v4432_v49 = vmul.f32 %v4425_v13, %v4420_v39 }
0x2e07   : > { %v7132_v34 = vadd.f32 %v7129_v26, %v4421_v27  ;;  %v4456_v62 = vadd.f32 %v4451_v12, %v4432_v49 }
0x2e09   : > { %v7134_v14 = vmul.f32 0.2, %v4456_v62  ;;  %4496 = vrot.lane.b32.xlu1 %v7132_v34, %s7298_s26 }
0x2e0b   : > { %v7139_v11 = vadd.f32 %v7134_v14, %v4420_v39 }
0x2e0d   : > { %4494 = vrot.lane.b32.xlu0 %v7139_v11, %s7298_s26 }
0x2e7b   : > { %v4497_v36 = vpop.permute.xlu1 %4496 }
0x2e7c   : > { %v4501_v2 = vsel %vm672_vm3, %v7144_v5, %v4497_v36 }
0x2e7d   : > { %5733 = vmatprep.subr.mxu0 %v4501_v2 }
0x2e7e   : > { %5734 = vmatpush3.msra.mxu0 %v4501_v2 }
0x2e7f   : > { %v4495_v4 = vpop.permute.xlu0 %4494 }
0x2e80   : > { %v4500_v0 = vsel %vm672_vm3, %v7149_v56, %v4495_v4 }
0x2e81   : > { %5735 = vmatprep.subr.mxu0 %v4500_v0 }
0x2e82   : > { %5736 = vmatpush3.msra.mxu0 %v4500_v0 }
0x2e83   : > { %5738 = vmatmul.mubr.msk.f32.vlgmr.msra.gmra.mxu0 %vm675_vm2, %v7154_v60  ;;  %5740 = vmatprep.subr.msk.mxu0 %vm496_vm0, %v6993_v63 }
0x2e84   : > { %5741 = vmatpush3.msk.msra.mxu0 %vm496_vm0, %v6993_v63 }
0x2e85   : > { %5742 = vmatprep.subr.mxu0 %v7002_v59 }
0x2e86   : > { %5743 = vmatpush3.msra.mxu0 %v7002_v59 }
0x2e87   : > { %5744 = vmatprep.subr.mxu0 %v7009_v61 }
0x2e88   : > { %5745 = vmatpush3.msra.mxu0 %v7009_v61 }
0x2f43   : > { %v5739_v23 = vpop.f32.mrf.mxu0 }
0x2f44   : > { %4587 = vrot.lane.b32.xlu0 %v5739_v23, %s5912_s28 }
0x2f45   : > { %v4574_v55 = vpop.f32.mrf.mxu0 }
0x2f46   : > { %4585 = vrot.lane.b32.xlu1 %v4574_v55, %s5912_s28 }
0x2fb6   : > { %v4588_v42 = vpop.permute.xlu0 %4587 }
0x2fb7   : > { %v4592_v63 = vsel %vm765_vm4, %v4501_v2, %v4588_v42 }
0x2fb8   : > { %v4586_v48 = vpop.permute.xlu1 %4585 }
0x2fb9   : > { %v4591_v51 = vsel %vm765_vm4, %v4500_v0, %v4586_v48 }
0x2fba   : > { %5746 = vmatprep.mubr.msk.f32.mxu0 %vm768_vm5, %v4591_v51 }
0x2fbb   : > { %5747 = vmatmul.mubr.msk.f32.vlgmr.msra.gmra.mxu0 %vm768_vm5, %v4592_v63 }
0x307b   : > { %v5748_v59 = vpop.f32.mrf.mxu0 }
0x307c   : > { %v4679_v16 = vmul.f32 %v5748_v59, %v6113_v33  ;;  %v4691_v8 = vmul.f32 %v5748_v59, %v6109_v31  ;;  %v4703_v52 = vmul.f32 %v5748_v59, %v6118_v38  ;;  %v4675_v58 = vmul.f32 %v5748_v59, %v6133_v45 }
0x307d   : > { %v4665_v61 = vpop.f32.mrf.mxu0 }
0x307e   : > { %v4678_v54 = vmul.f32 %v4665_v61, %v6105_v29  ;;  %4684 = vrot.lane.b32.xlu1 %v4679_v16, %s5915_s30  ;;  %v4690_v22 = vmul.f32 %v4665_v61, %v6122_v40  ;;  %v4702_v57 = vmul.f32 %v4665_v61, %v6128_v43  ;;  %v4674_v24 = vmul.f32 %v4665_v61, %v6135_v46 }
0x307f   : > { %v4677_v18 = vadd.f32 %v6086_v17, %v4675_v58 }
0x3080   : > { %4682 = vrot.lane.b32.xlu0 %v4678_v54, %s5915_s30  ;;  %v4676_v53 = vadd.f32 %v4674_v24, %v6090_v19 }
0x3082   : > { %4696 = vrot.lane.b32.xlu1 %v4691_v8, %s5916_s12  ;;  %v5325_v8 = vld [vmem:[%s6193_s16 + $0x78] sm:$0xff] }
0x3084   : > { %4694 = vrot.lane.b32.xlu0 %v4690_v22, %s5916_s12 }
0x3086   : > { %4708 = vrot.lane.b32.xlu1 %v4703_v52, %s7301_s13  ;;  %v5324_v52 = vld [vmem:[%s6193_s16 + $0x70] sm:$0xff] }
0x3088   : > { %4706 = vrot.lane.b32.xlu0 %v4702_v57, %s7301_s13 }
0x308a   : > { %4478 = vrot.lane.b32.xlu1 %v7132_v34, %s5918_s24 }
0x308c   : > { %4476 = vrot.lane.b32.xlu0 %v7139_v11, %s5918_s24 }
0x30f0   : > { %v4685_v15 = vpop.permute.xlu1 %4684 }
0x30f1   : > { %v4689_v13 = vadd.f32 %v4685_v15, %v4677_v18 }
0x30f2   : > { %v4683_v9 = vpop.permute.xlu0 %4682 }
0x30f3   : > { %v4688_v27 = vadd.f32 %v4683_v9, %v4676_v53 }
0x30f4   : > { %v4697_v35 = vpop.permute.xlu1 %4696 }
0x30f5   : > { %v4701_v3 = vadd.f32 %v4697_v35, %v4689_v13 }
0x30f6   : > { %v4695_v47 = vpop.permute.xlu0 %4694 }
0x30f7   : > { %v4700_v21 = vadd.f32 %v4695_v47, %v4688_v27 }
0x30f8   : > { %v4709_v6 = vpop.permute.xlu1 %4708 }
0x30f9   : > { %v4713_v41 = vadd.f32 %v4709_v6, %v4701_v3  ;;  %v4459_v6 = vmul.f32 0.8, %v7110_v50 }
0x30fa   : > { %v4707_v10 = vpop.permute.xlu0 %4706 }
0x30fb   : > { %v5332_v28 = vmul.f32 -1.442695, %v4713_v41  ;;  %v4712_v25 = vadd.f32 %v4707_v10, %v4700_v21  ;;  %v4458_v41 = vmul.f32 0.8, %v7114_v1 }
0x30fc   : > { %v4479_v39 = vpop.permute.xlu1 %4478 }
0x30fd   : > { %5877 = vpow2.f32 %v5332_v28  ;;  %v5331_v7 = vmul.f32 -1.442695, %v4712_v25  ;;  %5319 = vst.msk [vmem:[%s6302_s22 + $0x68] sm:$0xff] %vm1242_vm6, %v4479_v39 }
0x30fe   : > { %v4477_v17 = vpop.permute.xlu0 %4476 }
0x30ff   : > { %5879 = vpow2.f32 %v5331_v7  ;;  %5318 = vst.msk [vmem:[%s6302_s22 + $0x60] sm:$0xff] %vm1242_vm6, %v4477_v17 }
0x310a   : > { %v5878_v19 = vpop.eup %5877 }
0x310b   : > { %v4721_v49 = vadd.f32 1.0, %v5878_v19 }
0x310c   : > { %v5880_v12 = vpop.eup %5879 }
0x310d   : > { %5881 = vrcp.f32 %v4721_v49  ;;  %v4720_v62 = vadd.f32 1.0, %v5880_v12 }
0x310f   : > { %5883 = vrcp.f32 %v4720_v62 }
0x311a   : > { %v7196_v36 = vpop.eup %5881 }
0x311b   : > { %v4727_v2 = vmul.f32 %v7196_v36, %v4479_v39  ;;  %v4949_v50 = vsub.f32 1.0, %v7196_v36  ;;  %v4947_v49 = vmul.f32 %v7196_v36, %v7132_v34 }
0x311c   : > { %v7199_v4 = vpop.eup %5883 }
0x311d   : > { %v4726_v0 = vmul.f32 %v7199_v4, %v4477_v17  ;;  %4732 = vrot.lane.b32.xlu1 %v4727_v2, %s7299_s14  ;;  %v4948_v1 = vsub.f32 1.0, %v7199_v4 }
0x311f   : > { %4730 = vrot.lane.b32.xlu0 %v4726_v0, %s7299_s14  ;;  %v4946_v0 = vmul.f32 %v7199_v4, %v7139_v11 }
0x318f   : > { %v4733_v23 = vpop.permute.xlu1 %4732 }
0x3190   : > { %v4737_v55 = vsel %vm672_vm3, %v7144_v5, %v4733_v23 }
0x3191   : > { %5749 = vmatprep.subr.mxu1 %v4737_v55  ;;  %v4731_v42 = vpop.permute.xlu0 %4730 }
0x3192   : > { %5750 = vmatpush3.msra.mxu1 %v4737_v55  ;;  %v4736_v48 = vsel %vm672_vm3, %v7149_v56, %v4731_v42 }
0x3193   : > { %5751 = vmatprep.subr.mxu1 %v4736_v48 }
0x3194   : > { %5752 = vmatpush3.msra.mxu1 %v4736_v48 }
0x3195   : > { %5754 = vmatmul.mubr.msk.f32.vlgmr.msra.gmra.mxu1 %vm675_vm2, %v7154_v60  ;;  %5756 = vmatprep.subr.msk.mxu1 %vm496_vm0, %v7060_v20 }
0x3196   : > { %5757 = vmatpush3.msk.msra.mxu1 %vm496_vm0, %v7060_v20 }
0x3197   : > { %5758 = vmatprep.subr.mxu1 %v7069_v37 }
0x3198   : > { %5759 = vmatpush3.msra.mxu1 %v7069_v37 }
0x3199   : > { %5760 = vmatprep.subr.mxu1 %v7076_v44 }
0x319a   : > { %5761 = vmatpush3.msra.mxu1 %v7076_v44 }
0x3255   : > { %v5755_v5 = vpop.f32.mrf.mxu1 }
0x3256   : > { %4817 = vrot.lane.b32.xlu0 %v5755_v5, %s5912_s28 }
0x3257   : > { %v4804_v56 = vpop.f32.mrf.mxu1 }
0x3258   : > { %4815 = vrot.lane.b32.xlu1 %v4804_v56, %s5912_s28 }
0x32c8   : > { %v4818_v60 = vpop.permute.xlu0 %4817 }
0x32c9   : > { %v4822_v20 = vsel %vm765_vm4, %v4737_v55, %v4818_v60 }
0x32ca   : > { %v4816_v51 = vpop.permute.xlu1 %4815 }
0x32cb   : > { %v4821_v63 = vsel %vm765_vm4, %v4736_v48, %v4816_v51 }
0x32cc   : > { %5762 = vmatprep.mubr.msk.f32.mxu1 %vm768_vm5, %v4821_v63 }
0x32cd   : > { %5763 = vmatmul.mubr.msk.f32.vlgmr.msra.gmra.mxu1 %vm768_vm5, %v4822_v20 }
0x338d   : > { %v5764_v37 = vpop.f32.mrf.mxu1 }
0x338e   : > { %v4909_v44 = vmul.f32 %v5764_v37, %v6113_v33  ;;  %v4921_v61 = vmul.f32 %v5764_v37, %v6109_v31  ;;  %v4933_v22 = vmul.f32 %v5764_v37, %v6118_v38  ;;  %v4974_v31 = vsub.f32 1.0, %v5324_v52 }
0x338f   : > { %v4895_v59 = vpop.f32.mrf.mxu1  ;;  %v4905_v38 = vmul.f32 %v5764_v37, %v6133_v45 }
0x3390   : > { %v4908_v16 = vmul.f32 %v4895_v59, %v6105_v29  ;;  %4914 = vrot.lane.b32.xlu0 %v4909_v44, %s5918_s24  ;;  %v4920_v54 = vmul.f32 %v4895_v59, %v6122_v40  ;;  %v4932_v33 = vmul.f32 %v4895_v59, %v6128_v43  ;;  %v4975_v29 = vsub.f32 1.0, %v5325_v8 }
0x3391   : > { %v4904_v43 = vmul.f32 %v4895_v59, %v6135_v46  ;;  %v4907_v58 = vadd.f32 %v6107_v30, %v4905_v38 }
0x3392   : > { %4912 = vrot.lane.b32.xlu1 %v4908_v16, %s5918_s24 }
0x3393   : > { %v4906_v9 = vadd.f32 %v4904_v43, %v6111_v32 }
0x3394   : > { %4926 = vrot.lane.b32.xlu0 %v4921_v61, %s5915_s30 }
0x3396   : > { %4924 = vrot.lane.b32.xlu1 %v4920_v54, %s5915_s30  ;;  %s479_s30 = scalar_lea.vmem %s7286_s11, %s6011_s25 }
0x3398   : > { %4938 = vrot.lane.b32.xlu0 %v4933_v22, %s7300_s15 }
0x339a   : > { %4936 = vrot.lane.b32.xlu1 %v4932_v33, %s7300_s15 }
0x339c   : > { %4983 = vperm.xlu0 %5791, %v4975_v29  }
0x339e   : > { %4978 = vperm.xlu1 %5792, %v4974_v31  }
0x33a0   : > { %4466 = vrot.lane.b32.xlu0 %v7129_v26, %s5918_s24 }
0x33a2   : > { %4464 = vrot.lane.b32.xlu1 %v7134_v14, %s5918_s24 }
0x33a4   : > { %4969 = vperm.xlu0 %5791, %v5325_v8  }
0x33a6   : > { %4964 = vperm.xlu1 %5792, %v5324_v52  }
0x3402   : > { %v4915_v40 = vpop.permute.xlu0 %4914 }
0x3403   : > { %v4919_v24 = vadd.f32 %v4915_v40, %v4907_v58 }
0x3404   : > { %v4913_v57 = vpop.permute.xlu1 %4912 }
0x3405   : > { %v4918_v35 = vadd.f32 %v4913_v57, %v4906_v9 }
0x3406   : > { %v4927_v15 = vpop.permute.xlu0 %4926 }
0x3407   : > { %v4931_v26 = vadd.f32 %v4927_v15, %v4919_v24 }
0x3408   : > { %v4925_v18 = vpop.permute.xlu1 %4924 }
0x3409   : > { %v4930_v53 = vadd.f32 %v4925_v18, %v4918_v35 }
0x340a   : > { %v4939_v13 = vpop.permute.xlu0 %4938 }
0x340b   : > { %v4943_v14 = vadd.f32 %v4939_v13, %v4931_v26 }
0x340c   : > { %v4937_v47 = vpop.permute.xlu1 %4936 }
0x340d   : > { %5885 = vtanh.f32 %v4943_v14  ;;  %v4942_v27 = vadd.f32 %v4937_v47, %v4930_v53 }
0x340f   : > { %5887 = vtanh.f32 %v4942_v27 }
0x3417   : > { %v4984_v45 = vpop.permute.xlu0 %4983 }
0x3419   : > { %v4979_v3 = vpop.permute.xlu1 %4978 }
0x341a   : > { %v5886_v46 = vpop.eup %5885 }
0x341b   : > { %v4467_v30 = vpop.permute.xlu0 %4466  ;;  %4954 = vrot.lane.b32.xlu0 %v5886_v46, %s7297_s20 }
0x341c   : > { %v5888_v21 = vpop.eup %5887  ;;  %v4471_v32 = vadd.f32 %v4467_v30, %v4459_v6 }
0x341d   : > { %v4465_v10 = vpop.permute.xlu1 %4464  ;;  %4952 = vrot.lane.b32.xlu1 %v5888_v21, %s7297_s20 }
0x341e   : > { %v4987_v28 = vmul.f32 %v4984_v45, %v4471_v32  ;;  %v4470_v25 = vadd.f32 %v4465_v10, %v4458_v41  ;;  %v4999_v11 = vmul.f32 0.8, %v4471_v32 }
0x341f   : > { %v4970_v7 = vpop.permute.xlu0 %4969 }
0x3420   : > { %v4986_v39 = vmul.f32 %v4979_v3, %v4470_v25  ;;  %4992 = vrot.lane.b32.xlu0 %v4987_v28, %s7297_s20  ;;  %v4998_v44 = vmul.f32 0.8, %v4470_v25 }
0x3421   : > { %v4965_v17 = vpop.permute.xlu1 %4964 }
0x3422   : > { %4990 = vrot.lane.b32.xlu1 %v4986_v39, %s7297_s20 }
0x348d   : > { %v4955_v19 = vpop.permute.xlu0 %4954 }
0x348e   : > { %v4959_v12 = vmul.f32 %v4955_v19, %v4949_v50 }
0x348f   : > { %v4953_v62 = vpop.permute.xlu1 %4952 }
0x3490   : > { %v4961_v2 = vadd.f32 %v4959_v12, %v4947_v49  ;;  %v4958_v23 = vmul.f32 %v4953_v62, %v4948_v1 }
0x3492   : > { %v4960_v55 = vadd.f32 %v4958_v23, %v4946_v0  ;;  %v4973_v42 = vmul.f32 %v4970_v7, %v4961_v2  ;;  %v4993_v48 = vpop.permute.xlu0 %4992 }
0x3494   : > { %v4997_v5 = vadd.f32 %v4993_v48, %v4973_v42  ;;  %v4972_v56 = vmul.f32 %v4965_v17, %v4960_v55  ;;  %v4991_v60 = vpop.permute.xlu1 %4990 }
0x3496   : > { %v5001_v51 = vmul.f32 0.2, %v4997_v5  ;;  %v4996_v63 = vadd.f32 %v4991_v60, %v4972_v56 }
0x3498   : > { %v5000_v20 = vmul.f32 0.2, %v4996_v63  ;;  %5006 = vrot.lane.b32.xlu0 %v5001_v51, %s5918_s24  ;;  %v5013_v34 = vadd.f32 %v5001_v51, %v4961_v2 }
0x349a   : > { %5004 = vrot.lane.b32.xlu1 %v5000_v20, %s5918_s24  ;;  %v5012_v36 = vadd.f32 %v5000_v20, %v4960_v55 }
0x349c   : > { %5018 = vrot.lane.b32.xlu0 %v5013_v34, %s5918_s24 }
0x349e   : > { %5016 = vrot.lane.b32.xlu1 %v5012_v36, %s5918_s24 }
0x350a   : > { %v5007_v4 = vpop.permute.xlu0 %5006 }
0x350b   : > { %v5011_v37 = vadd.f32 %v5007_v4, %v4999_v11 }
0x350c   : > { %v5005_v59 = vpop.permute.xlu1 %5004 }
0x350d   : > { %5026 = vst.msk [vmem:[%s479_s30 + $0x8] sm:$0xff] %vm1242_vm6, %v5011_v37  ;;  %v5010_v16 = vadd.f32 %v5005_v59, %v4998_v44 }
0x350e   : > { %v5019_v61 = vpop.permute.xlu0 %5018 }
0x350f   : > { %5025 = vst.msk [vmem:[%s479_s30] sm:$0xff] %vm1242_vm6, %v5010_v16  ;;  %5339 = vst.msk [vmem:[%s6302_s22 + $0x78] sm:$0xff] %vm1242_vm6, %v5019_v61 }
0x3510   : > { %v5017_v54 = vpop.permute.xlu1 %5016 }
0x3511   : > { %5338 = vst.msk [vmem:[%s6302_s22 + $0x70] sm:$0xff] %vm1242_vm6, %v5017_v54 }
0x3512 PF: > { %s22_s17 = sadd.s32 1, %s5907_s17  }
0x3513   : > { %p19_p4 = scmp.ge.s32.totalorder %s22_s17, 4  }
0x3515   :  { %21 = sbr.rel (!%p19_p4) target bundleno = 1 (0x1), region = 142 }

</bundles_post_ra>
